<compile_context>
chip_gen: v6e
topology: v6e:2x2x1
jax: 0.10.0
libtpu: 0.0.40
codegen_flags: <defaults>
</compile_context>

<pallas_src>
import functools

import numpy as np
import jax
import jax.numpy as jnp
from jax.experimental import pallas as pl
from jax.experimental.pallas import tpu as pltpu


# ---------------------------------------------------------------------------
# Fused Pallas kernel: 4 x (3x3 conv + GroupNorm [+ReLU]) + SE + combine
# ---------------------------------------------------------------------------
def residual_block_kernel(x_ref, mask_ref,
                          w0_ref, b0_ref, g0_ref, be0_ref,
                          w1_ref, b1_ref, g1_ref, be1_ref,
                          w2_ref, b2_ref, g2_ref, be2_ref,
                          w3_ref, b3_ref, g3_ref, be3_ref,
                          Gn_ref, Gc_ref,
                          sw1_ref, sw2_ref, sw3_ref, sw4_ref,
                          out_ref,
                          padw_ref, padn_ref,
                          *, W, eps):
    """Whole Residual block for one batch element in NHWC-flattened layout.

    x_ref   : (1, HW, C3) f32      input (channels on lanes)
    mask_ref: (HW, 9) f32          per-tap spatial validity masks
    w*_ref  : (9, Cin, Cout) bf16  conv weights, tap-major
    b*_ref  : (1, Cout) f32        conv bias; g*/be* GroupNorm gamma/beta
    Gn/Gc   : (C, C) f32           group-averaging matrices (nf / 3nf channels)
    sw*_ref : SE MLP weights laid out as (in, out), no bias
    out_ref : (1, HW, C3) f32
    padw/padn_ref : (HW + 2*(W+1), C) f32 VMEM scratch (zero-bordered tap buffer)
    """
    HW = x_ref.shape[1]
    PAD = W + 1
    inv_hw = 1.0 / HW

    # Zero the padded scratch buffers once; borders stay zero for every stage.
    padw_ref[...] = jnp.zeros_like(padw_ref)
    padn_ref[...] = jnp.zeros_like(padn_ref)

    x = x_ref[0]                                              # (HW, C3) f32

    def conv3x3(act, w_ref, b_ref, pad_ref):
        # act: (HW, Cin) f32 ; returns conv output (HW, Cout) f32
        Cout = w_ref.shape[2]
        pad_ref[PAD:PAD + HW, :] = act                        # in-kernel "im2col"
        acc = jnp.zeros((HW, Cout), jnp.float32)
        for t in range(9):
            oy, ox = t // 3 - 1, t % 3 - 1
            d = oy * W + ox                                   # flat spatial offset
            if d == 0:
                tap = act                                     # centre tap, mask == 1
            else:
                tap = pad_ref[PAD + d:PAD + d + HW, :]
                tap = jnp.where(mask_ref[:, t:t + 1] > 0.0, tap, 0.0)
            acc = acc + jnp.dot(tap.astype(jnp.bfloat16), w_ref[t],
                                preferred_element_type=jnp.float32)
        return acc + b_ref[...]

    def group_norm(y, gamma_ref, beta_ref, G_ref, relu):
        # y: (HW, C) f32; group stats via the group-averaging matrix G (C, C).
        m = jnp.sum(y, axis=0, keepdims=True) * inv_hw        # (1, C)
        msq = jnp.sum(y * y, axis=0, keepdims=True) * inv_hw  # (1, C)
        gm = jnp.dot(m, G_ref[...], preferred_element_type=jnp.float32)
        gmsq = jnp.dot(msq, G_ref[...], preferred_element_type=jnp.float32)
        var = jnp.maximum(gmsq - gm * gm, 0.0)                # clamp E[x^2]-E[x]^2
        scale = gamma_ref[...] * jax.lax.rsqrt(var + eps)     # folded affine
        shift = beta_ref[...] - gm * scale
        z = y * scale + shift
        if relu:
            z = jnp.maximum(z, 0.0)
        return z

    h1 = group_norm(conv3x3(x, w0_ref, b0_ref, padw_ref), g0_ref, be0_ref, Gn_ref, True)
    h2 = group_norm(conv3x3(h1, w1_ref, b1_ref, padn_ref), g1_ref, be1_ref, Gn_ref, True)
    h3 = group_norm(conv3x3(h2, w2_ref, b2_ref, padn_ref), g2_ref, be2_ref, Gn_ref, True)
    r = group_norm(conv3x3(h3, w3_ref, b3_ref, padn_ref), g3_ref, be3_ref, Gc_ref, False)

    # SELayer: y = sigmoid(W4 relu(W3 relu(W2 relu(W1 avgpool(r)))))
    p = jnp.sum(r, axis=0, keepdims=True) * inv_hw            # (1, C3)
    y = jnp.maximum(jnp.dot(p, sw1_ref[...], preferred_element_type=jnp.float32), 0.0)
    y = jnp.maximum(jnp.dot(y, sw2_ref[...], preferred_element_type=jnp.float32), 0.0)
    y = jnp.maximum(jnp.dot(y, sw3_ref[...], preferred_element_type=jnp.float32), 0.0)
    y = jax.nn.sigmoid(jnp.dot(y, sw4_ref[...], preferred_element_type=jnp.float32))

    out_ref[0] = (r * (r * y) + x).astype(out_ref.dtype)


# ---------------------------------------------------------------------------
# Plain-JAX / numpy glue
# ---------------------------------------------------------------------------
def _group_avg_matrix(C, groups=32):
    cpg = C // groups
    gid = np.arange(C) // cpg
    G = (gid[:, None] == gid[None, :]).astype(np.float32) / float(cpg)
    return jnp.asarray(G)


def _tap_masks(h, w):
    """(HW, 9) f32: mask[p, t] == 1 iff tap t of output position p is inside the image."""
    HW = h * w
    yy, xx = np.divmod(np.arange(HW), w)
    m = np.zeros((HW, 9), np.float32)
    for t in range(9):
        oy, ox = t // 3 - 1, t % 3 - 1
        m[:, t] = ((yy + oy >= 0) & (yy + oy < h)
                   & (xx + ox >= 0) & (xx + ox < w)).astype(np.float32)
    return jnp.asarray(m)


def residual_forward(x5, params):
    """Pallas implementation of Residual.forward: (b,t,c,h,w) -> NCHW (b, t*c, h, w)."""
    b, t, c, h, w = x5.shape
    C3 = t * c
    nf = params['conv0_w'].shape[0]
    HW = h * w
    Cr = params['se_w1'].shape[0]

    x_nchw = x5.reshape(b, C3, h, w)
    x_flat = jnp.transpose(x_nchw, (0, 2, 3, 1)).reshape(b, HW, C3)   # NHWC flattened

    mask = _tap_masks(h, w)
    Gn = _group_avg_matrix(nf, 32)
    Gc = _group_avg_matrix(C3, 32)

    def prep_w(wt):      # OIHW (Cout, Cin, 3, 3) -> (9, Cin, Cout) bf16 (tap-major)
        co, ci = wt.shape[0], wt.shape[1]
        return jnp.transpose(wt, (2, 3, 1, 0)).reshape(9, ci, co).astype(jnp.bfloat16)

    def prep_v(v):       # (C,) -> (1, C) f32
        return v.reshape(1, -1).astype(jnp.float32)

    def full(*shape):    # whole-array block, resident across the grid
        return pl.BlockSpec(shape, lambda i, _s=shape: (0,) * len(_s))

    kern = functools.partial(residual_block_kernel, W=w, eps=1e-6)
    out = pl.pallas_call(
        kern,
        out_shape=jax.ShapeDtypeStruct((b, HW, C3), jnp.float32),
        grid=(b,),
        in_specs=[
            pl.BlockSpec((1, HW, C3), lambda i: (i, 0, 0)),              # x
            full(HW, 9),                                                 # tap masks
            full(9, C3, nf), full(1, nf), full(1, nf), full(1, nf),      # stage 0
            full(9, nf, nf), full(1, nf), full(1, nf), full(1, nf),      # stage 1
            full(9, nf, nf), full(1, nf), full(1, nf), full(1, nf),      # stage 2
            full(9, nf, C3), full(1, C3), full(1, C3), full(1, C3),      # stage 3
            full(nf, nf), full(C3, C3),                                  # group-avg mats
            full(C3, Cr), full(Cr, Cr), full(Cr, Cr), full(Cr, C3),      # SE MLP
        ],
        out_specs=pl.BlockSpec((1, HW, C3), lambda i: (i, 0, 0)),
        scratch_shapes=[
            pltpu.VMEM((HW + 2 * (w + 1), C3), jnp.float32),             # wide tap buf
            pltpu.VMEM((HW + 2 * (w + 1), nf), jnp.float32),             # narrow tap buf
        ],
        compiler_params=pltpu.CompilerParams(dimension_semantics=("parallel",)),
    )(
        x_flat, mask,
        prep_w(params['conv0_w']), prep_v(params['conv0_b']), prep_v(params['gn0_g']), prep_v(params['gn0_b']),
        prep_w(params['conv1_w']), prep_v(params['conv1_b']), prep_v(params['gn1_g']), prep_v(params['gn1_b']),
        prep_w(params['conv2_w']), prep_v(params['conv2_b']), prep_v(params['gn2_g']), prep_v(params['gn2_b']),
        prep_w(params['conv3_w']), prep_v(params['conv3_b']), prep_v(params['gn3_g']), prep_v(params['gn3_b']),
        Gn, Gc,
        params['se_w1'].T, params['se_w2'].T, params['se_w3'].T, params['se_w4'].T,
    )

    out_nhwc = out.reshape(b, h, w, C3)
    return jnp.transpose(out_nhwc, (0, 3, 1, 2))     # back to NCHW like PyTorch


# ---------------------------------------------------------------------------
# Pure-JAX f32 reference (for self-check)
# ---------------------------------------------------------------------------
def ref_forward(x5, params):
    b, t, c, h, w = x5.shape
    x = x5.reshape(b, t * c, h, w)

    def conv(xx, wt, bias):
        y = jax.lax.conv_general_dilated(xx, wt, (1, 1), ((1, 1), (1, 1)),
                                         dimension_numbers=('NCHW', 'OIHW', 'NCHW'))
        return y + bias[None, :, None, None]

    def gn(xx, g, bb, groups=32, eps=1e-6):
        bsz, C, H, W = xx.shape
        xg = xx.reshape(bsz, groups, C // groups, H, W)
        m = xg.mean(axis=(2, 3, 4), keepdims=True)
        v = xg.var(axis=(2, 3, 4), keepdims=True)
        xn = ((xg - m) / jnp.sqrt(v + eps)).reshape(bsz, C, H, W)
        return xn * g[None, :, None, None] + bb[None, :, None, None]

    hh = jax.nn.relu(gn(conv(x, params['conv0_w'], params['conv0_b']),
                        params['gn0_g'], params['gn0_b']))
    hh = jax.nn.relu(gn(conv(hh, params['conv1_w'], params['conv1_b']),
                        params['gn1_g'], params['gn1_b']))
    hh = jax.nn.relu(gn(conv(hh, params['conv2_w'], params['conv2_b']),
                        params['gn2_g'], params['gn2_b']))
    r = gn(conv(hh, params['conv3_w'], params['conv3_b']),
           params['gn3_g'], params['gn3_b'])
    p = r.mean(axis=(2, 3))
    y = jax.nn.relu(p @ params['se_w1'].T)
    y = jax.nn.relu(y @ params['se_w2'].T)
    y = jax.nn.relu(y @ params['se_w3'].T)
    y = jax.nn.sigmoid(y @ params['se_w4'].T)
    se = r * y[:, :, None, None]
    return r * se + x


# ---------------------------------------------------------------------------
# Deterministic parameter init (PyTorch shapes)
# ---------------------------------------------------------------------------
def init_params(key, nf):
    C3 = 3 * nf
    Cr = C3 // 16
    ks = jax.random.split(key, 24)

    def cw(k, co, ci):
        return 0.05 * jax.random.normal(k, (co, ci, 3, 3), jnp.float32)

    def v(k, n, s):
        return s * jax.random.normal(k, (n,), jnp.float32)

    return {
        'conv0_w': cw(ks[0], nf, C3), 'conv0_b': v(ks[1], nf, 0.1),
        'gn0_g': 1.0 + v(ks[2], nf, 0.1), 'gn0_b': v(ks[3], nf, 0.1),
        'conv1_w': cw(ks[4], nf, nf), 'conv1_b': v(ks[5], nf, 0.1),
        'gn1_g': 1.0 + v(ks[6], nf, 0.1), 'gn1_b': v(ks[7], nf, 0.1),
        'conv2_w': cw(ks[8], nf, nf), 'conv2_b': v(ks[9], nf, 0.1),
        'gn2_g': 1.0 + v(ks[10], nf, 0.1), 'gn2_b': v(ks[11], nf, 0.1),
        'conv3_w': cw(ks[12], C3, nf), 'conv3_b': v(ks[13], C3, 0.1),    # self.conv1
        'gn3_g': 1.0 + v(ks[14], C3, 0.1), 'gn3_b': v(ks[15], C3, 0.1),  # self.no
        'se_w1': 0.1 * jax.random.normal(ks[16], (Cr, C3), jnp.float32),
        'se_w2': 0.3 * jax.random.normal(ks[17], (Cr, Cr), jnp.float32),
        'se_w3': 0.3 * jax.random.normal(ks[18], (Cr, Cr), jnp.float32),
        'se_w4': 0.1 * jax.random.normal(ks[19], (C3, Cr), jnp.float32),
    }


if __name__ == "__main__":
    nf = 32                      # GroupNorm(32, ...) requires nf % 32 == 0
    b, t, c, h, w = 2, 3, nf, 8, 8
    key = jax.random.PRNGKey(0)
    kx, kp = jax.random.split(key)
    x5 = jax.random.normal(kx, (b, t, c, h, w), jnp.float32)
    params = init_params(kp, nf)

    fwd = jax.jit(residual_forward)
    out = jax.block_until_ready(fwd(x5, params))
    ref = jax.block_until_ready(ref_forward(x5, params))

    # bf16 MXU operands (f32 accumulate / f32 GroupNorm) vs. an all-f32 reference.
    np.testing.assert_allclose(np.asarray(out), np.asarray(ref), rtol=5e-2, atol=2e-1)
    assert out.shape == (b, t * c, h, w)
    print("KERNEL_OK")
</pallas_src>

<mosaic_0001>
module attributes {stable_mosaic.version = 11 : i64} {
  func.func @residual_block_kernel(%arg0: i32, %arg1: memref<1x64x96xf32, #tpu.memory_space<vmem>>, %arg2: memref<64x9xf32, #tpu.memory_space<vmem>>, %arg3: memref<9x96x32xbf16, #tpu.memory_space<vmem>>, %arg4: memref<1x32xf32, #tpu.memory_space<vmem>>, %arg5: memref<1x32xf32, #tpu.memory_space<vmem>>, %arg6: memref<1x32xf32, #tpu.memory_space<vmem>>, %arg7: memref<9x32x32xbf16, #tpu.memory_space<vmem>>, %arg8: memref<1x32xf32, #tpu.memory_space<vmem>>, %arg9: memref<1x32xf32, #tpu.memory_space<vmem>>, %arg10: memref<1x32xf32, #tpu.memory_space<vmem>>, %arg11: memref<9x32x32xbf16, #tpu.memory_space<vmem>>, %arg12: memref<1x32xf32, #tpu.memory_space<vmem>>, %arg13: memref<1x32xf32, #tpu.memory_space<vmem>>, %arg14: memref<1x32xf32, #tpu.memory_space<vmem>>, %arg15: memref<9x32x96xbf16, #tpu.memory_space<vmem>>, %arg16: memref<1x96xf32, #tpu.memory_space<vmem>>, %arg17: memref<1x96xf32, #tpu.memory_space<vmem>>, %arg18: memref<1x96xf32, #tpu.memory_space<vmem>>, %arg19: memref<32x32xf32, #tpu.memory_space<vmem>>, %arg20: memref<96x96xf32, #tpu.memory_space<vmem>>, %arg21: memref<96x6xf32, #tpu.memory_space<vmem>>, %arg22: memref<6x6xf32, #tpu.memory_space<vmem>>, %arg23: memref<6x6xf32, #tpu.memory_space<vmem>>, %arg24: memref<6x96xf32, #tpu.memory_space<vmem>>, %arg25: memref<1x64x96xf32, #tpu.memory_space<vmem>>, %arg26: memref<82x96xf32, #tpu.memory_space<vmem>>, %arg27: memref<82x32xf32, #tpu.memory_space<vmem>>) attributes {dimension_semantics = [#tpu.dimension_semantics<parallel>], iteration_bounds = array<i64: 2>, scalar_prefetch = 0 : i64, scratch_operands = 2 : i64, tpu.core_type = #tpu.core_type<tc>, window_params = [{transform_indices = @transform_0, window_bounds = array<i64: 1, 64, 96>}, {pipeline_mode = #tpu.pipeline_mode<synchronous>, transform_indices = @transform_1, window_bounds = array<i64: 64, 9>}, {pipeline_mode = #tpu.pipeline_mode<synchronous>, transform_indices = @transform_2, window_bounds = array<i64: 9, 96, 32>}, {pipeline_mode = #tpu.pipeline_mode<synchronous>, transform_indices = @transform_3, window_bounds = array<i64: 1, 32>}, {pipeline_mode = #tpu.pipeline_mode<synchronous>, transform_indices = @transform_4, window_bounds = array<i64: 1, 32>}, {pipeline_mode = #tpu.pipeline_mode<synchronous>, transform_indices = @transform_5, window_bounds = array<i64: 1, 32>}, {pipeline_mode = #tpu.pipeline_mode<synchronous>, transform_indices = @transform_6, window_bounds = array<i64: 9, 32, 32>}, {pipeline_mode = #tpu.pipeline_mode<synchronous>, transform_indices = @transform_7, window_bounds = array<i64: 1, 32>}, {pipeline_mode = #tpu.pipeline_mode<synchronous>, transform_indices = @transform_8, window_bounds = array<i64: 1, 32>}, {pipeline_mode = #tpu.pipeline_mode<synchronous>, transform_indices = @transform_9, window_bounds = array<i64: 1, 32>}, {pipeline_mode = #tpu.pipeline_mode<synchronous>, transform_indices = @transform_10, window_bounds = array<i64: 9, 32, 32>}, {pipeline_mode = #tpu.pipeline_mode<synchronous>, transform_indices = @transform_11, window_bounds = array<i64: 1, 32>}, {pipeline_mode = #tpu.pipeline_mode<synchronous>, transform_indices = @transform_12, window_bounds = array<i64: 1, 32>}, {pipeline_mode = #tpu.pipeline_mode<synchronous>, transform_indices = @transform_13, window_bounds = array<i64: 1, 32>}, {pipeline_mode = #tpu.pipeline_mode<synchronous>, transform_indices = @transform_14, window_bounds = array<i64: 9, 32, 96>}, {pipeline_mode = #tpu.pipeline_mode<synchronous>, transform_indices = @transform_15, window_bounds = array<i64: 1, 96>}, {pipeline_mode = #tpu.pipeline_mode<synchronous>, transform_indices = @transform_16, window_bounds = array<i64: 1, 96>}, {pipeline_mode = #tpu.pipeline_mode<synchronous>, transform_indices = @transform_17, window_bounds = array<i64: 1, 96>}, {pipeline_mode = #tpu.pipeline_mode<synchronous>, transform_indices = @transform_18, window_bounds = array<i64: 32, 32>}, {pipeline_mode = #tpu.pipeline_mode<synchronous>, transform_indices = @transform_19, window_bounds = array<i64: 96, 96>}, {pipeline_mode = #tpu.pipeline_mode<synchronous>, transform_indices = @transform_20, window_bounds = array<i64: 96, 6>}, {pipeline_mode = #tpu.pipeline_mode<synchronous>, transform_indices = @transform_21, window_bounds = array<i64: 6, 6>}, {pipeline_mode = #tpu.pipeline_mode<synchronous>, transform_indices = @transform_22, window_bounds = array<i64: 6, 6>}, {pipeline_mode = #tpu.pipeline_mode<synchronous>, transform_indices = @transform_23, window_bounds = array<i64: 6, 96>}, {transform_indices = @transform_24, window_bounds = array<i64: 1, 64, 96>}]} {
    %cst = arith.constant 0.000000e+00 : f32
    %0 = vector.broadcast %cst : f32 to vector<82x96xf32>
    %c0 = arith.constant 0 : index
    %c0_0 = arith.constant 0 : index
    %1 = vector.load %arg26[%c0, %c0_0] : memref<82x96xf32, #tpu.memory_space<vmem>>, vector<82x96xf32>
    tpu.vector_store %arg26[%c0, %c0_0], %0 {strides = array<i32>} : memref<82x96xf32, #tpu.memory_space<vmem>>, vector<82x96xf32>,
    %cst_1 = arith.constant 0.000000e+00 : f32
    %2 = vector.broadcast %cst_1 : f32 to vector<82x32xf32>
    %c0_2 = arith.constant 0 : index
    %c0_3 = arith.constant 0 : index
    %3 = vector.load %arg27[%c0_2, %c0_3] : memref<82x32xf32, #tpu.memory_space<vmem>>, vector<82x32xf32>
    tpu.vector_store %arg27[%c0_2, %c0_3], %2 {strides = array<i32>} : memref<82x32xf32, #tpu.memory_space<vmem>>, vector<82x32xf32>,
    %c0_4 = arith.constant 0 : index
    %c0_5 = arith.constant 0 : index
    %c0_6 = arith.constant 0 : index
    %4 = vector.load %arg1[%c0_4, %c0_5, %c0_6] : memref<1x64x96xf32, #tpu.memory_space<vmem>>, vector<1x64x96xf32>
    %5 = vector.shape_cast %4 : vector<1x64x96xf32> to vector<64x96xf32>
    %c9 = arith.constant 9 : index
    %c0_7 = arith.constant 0 : index
    %6 = vector.load %arg26[%c9, %c0_7] : memref<82x96xf32, #tpu.memory_space<vmem>>, vector<64x96xf32>
    tpu.vector_store %arg26[%c9, %c0_7], %5 {strides = array<i32>} : memref<82x96xf32, #tpu.memory_space<vmem>>, vector<64x96xf32>,
    %cst_8 = arith.constant 0.000000e+00 : f32
    %7 = vector.broadcast %cst_8 : f32 to vector<64x32xf32>
    %c0_9 = arith.constant 0 : index
    %c0_10 = arith.constant 0 : index
    %8 = vector.load %arg26[%c0_9, %c0_10] : memref<82x96xf32, #tpu.memory_space<vmem>>, vector<64x96xf32>
    %c0_11 = arith.constant 0 : index
    %c0_12 = arith.constant 0 : index
    %9 = vector.load %arg2[%c0_11, %c0_12] : memref<64x9xf32, #tpu.memory_space<vmem>>, vector<64x1xf32>
    %cst_13 = arith.constant 0.000000e+00 : f32
    %10 = vector.broadcast %cst_13 : f32 to vector<64x1xf32>
    %11 = arith.cmpf ogt, %9, %10 : vector<64x1xf32>
    %cst_14 = arith.constant 0.000000e+00 : f32
    %12 = vector.shape_cast %11 : vector<64x1xi1> to vector<64x1xi1>
    %13 = vector.broadcast %12 : vector<64x1xi1> to vector<64x96xi1>
    %14 = vector.broadcast %cst_14 : f32 to vector<64x96xf32>
    %15 = arith.select %13, %8, %14 : vector<64x96xi1>, vector<64x96xf32>
    %16 = arith.truncf %15 : vector<64x96xf32> to vector<64x96xbf16>
    %c0_15 = arith.constant 0 : index
    %c0_16 = arith.constant 0 : index
    %c0_17 = arith.constant 0 : index
    %17 = vector.load %arg3[%c0_15, %c0_16, %c0_17] : memref<9x96x32xbf16, #tpu.memory_space<vmem>>, vector<1x96x32xbf16>
    %18 = vector.shape_cast %17 : vector<1x96x32xbf16> to vector<96x32xbf16>
    %cst_18 = arith.constant dense<0.000000e+00> : vector<64x32xf32>
    %19 = tpu.matmul %16, %18, %cst_18 {dimension_numbers = #tpu.dot_dimension_numbers<[1], [0], [0], [1], [0, 0, 1, 1], [], []>} : vector<64x96xbf16>, vector<96x32xbf16>, vector<64x32xf32> -> vector<64x32xf32>
    %20 = arith.addf %7, %19 : vector<64x32xf32>
    %c1 = arith.constant 1 : index
    %c0_19 = arith.constant 0 : index
    %21 = vector.load %arg26[%c1, %c0_19] : memref<82x96xf32, #tpu.memory_space<vmem>>, vector<64x96xf32>
    %c0_20 = arith.constant 0 : index
    %c1_21 = arith.constant 1 : index
    %22 = vector.load %arg2[%c0_20, %c1_21] : memref<64x9xf32, #tpu.memory_space<vmem>>, vector<64x1xf32>
    %cst_22 = arith.constant 0.000000e+00 : f32
    %23 = vector.broadcast %cst_22 : f32 to vector<64x1xf32>
    %24 = arith.cmpf ogt, %22, %23 : vector<64x1xf32>
    %cst_23 = arith.constant 0.000000e+00 : f32
    %25 = vector.shape_cast %24 : vector<64x1xi1> to vector<64x1xi1>
    %26 = vector.broadcast %25 : vector<64x1xi1> to vector<64x96xi1>
    %27 = vector.broadcast %cst_23 : f32 to vector<64x96xf32>
    %28 = arith.select %26, %21, %27 : vector<64x96xi1>, vector<64x96xf32>
    %29 = arith.truncf %28 : vector<64x96xf32> to vector<64x96xbf16>
    %c1_24 = arith.constant 1 : index
    %c0_25 = arith.constant 0 : index
    %c0_26 = arith.constant 0 : index
    %30 = vector.load %arg3[%c1_24, %c0_25, %c0_26] : memref<9x96x32xbf16, #tpu.memory_space<vmem>>, vector<1x96x32xbf16>
    %31 = vector.shape_cast %30 : vector<1x96x32xbf16> to vector<96x32xbf16>
    %cst_27 = arith.constant dense<0.000000e+00> : vector<64x32xf32>
    %32 = tpu.matmul %29, %31, %cst_27 {dimension_numbers = #tpu.dot_dimension_numbers<[1], [0], [0], [1], [0, 0, 1, 1], [], []>} : vector<64x96xbf16>, vector<96x32xbf16>, vector<64x32xf32> -> vector<64x32xf32>
    %33 = arith.addf %20, %32 : vector<64x32xf32>
    %c2 = arith.constant 2 : index
    %c0_28 = arith.constant 0 : index
    %34 = vector.load %arg26[%c2, %c0_28] : memref<82x96xf32, #tpu.memory_space<vmem>>, vector<64x96xf32>
    %c0_29 = arith.constant 0 : index
    %c2_30 = arith.constant 2 : index
    %35 = vector.load %arg2[%c0_29, %c2_30] : memref<64x9xf32, #tpu.memory_space<vmem>>, vector<64x1xf32>
    %cst_31 = arith.constant 0.000000e+00 : f32
    %36 = vector.broadcast %cst_31 : f32 to vector<64x1xf32>
    %37 = arith.cmpf ogt, %35, %36 : vector<64x1xf32>
    %cst_32 = arith.constant 0.000000e+00 : f32
    %38 = vector.shape_cast %37 : vector<64x1xi1> to vector<64x1xi1>
    %39 = vector.broadcast %38 : vector<64x1xi1> to vector<64x96xi1>
    %40 = vector.broadcast %cst_32 : f32 to vector<64x96xf32>
    %41 = arith.select %39, %34, %40 : vector<64x96xi1>, vector<64x96xf32>
    %42 = arith.truncf %41 : vector<64x96xf32> to vector<64x96xbf16>
    %c2_33 = arith.constant 2 : index
    %c0_34 = arith.constant 0 : index
    %c0_35 = arith.constant 0 : index
    %43 = vector.load %arg3[%c2_33, %c0_34, %c0_35] : memref<9x96x32xbf16, #tpu.memory_space<vmem>>, vector<1x96x32xbf16>
    %44 = vector.shape_cast %43 : vector<1x96x32xbf16> to vector<96x32xbf16>
    %cst_36 = arith.constant dense<0.000000e+00> : vector<64x32xf32>
    %45 = tpu.matmul %42, %44, %cst_36 {dimension_numbers = #tpu.dot_dimension_numbers<[1], [0], [0], [1], [0, 0, 1, 1], [], []>} : vector<64x96xbf16>, vector<96x32xbf16>, vector<64x32xf32> -> vector<64x32xf32>
    %46 = arith.addf %33, %45 : vector<64x32xf32>
    %c8 = arith.constant 8 : index
    %c0_37 = arith.constant 0 : index
    %47 = vector.load %arg26[%c8, %c0_37] : memref<82x96xf32, #tpu.memory_space<vmem>>, vector<64x96xf32>
    %c0_38 = arith.constant 0 : index
    %c3 = arith.constant 3 : index
    %48 = vector.load %arg2[%c0_38, %c3] : memref<64x9xf32, #tpu.memory_space<vmem>>, vector<64x1xf32>
    %cst_39 = arith.constant 0.000000e+00 : f32
    %49 = vector.broadcast %cst_39 : f32 to vector<64x1xf32>
    %50 = arith.cmpf ogt, %48, %49 : vector<64x1xf32>
    %cst_40 = arith.constant 0.000000e+00 : f32
    %51 = vector.shape_cast %50 : vector<64x1xi1> to vector<64x1xi1>
    %52 = vector.broadcast %51 : vector<64x1xi1> to vector<64x96xi1>
    %53 = vector.broadcast %cst_40 : f32 to vector<64x96xf32>
    %54 = arith.select %52, %47, %53 : vector<64x96xi1>, vector<64x96xf32>
    %55 = arith.truncf %54 : vector<64x96xf32> to vector<64x96xbf16>
    %c3_41 = arith.constant 3 : index
    %c0_42 = arith.constant 0 : index
    %c0_43 = arith.constant 0 : index
    %56 = vector.load %arg3[%c3_41, %c0_42, %c0_43] : memref<9x96x32xbf16, #tpu.memory_space<vmem>>, vector<1x96x32xbf16>
    %57 = vector.shape_cast %56 : vector<1x96x32xbf16> to vector<96x32xbf16>
    %cst_44 = arith.constant dense<0.000000e+00> : vector<64x32xf32>
    %58 = tpu.matmul %55, %57, %cst_44 {dimension_numbers = #tpu.dot_dimension_numbers<[1], [0], [0], [1], [0, 0, 1, 1], [], []>} : vector<64x96xbf16>, vector<96x32xbf16>, vector<64x32xf32> -> vector<64x32xf32>
    %59 = arith.addf %46, %58 : vector<64x32xf32>
    %60 = arith.truncf %5 : vector<64x96xf32> to vector<64x96xbf16>
    %c4 = arith.constant 4 : index
    %c0_45 = arith.constant 0 : index
    %c0_46 = arith.constant 0 : index
    %61 = vector.load %arg3[%c4, %c0_45, %c0_46] : memref<9x96x32xbf16, #tpu.memory_space<vmem>>, vector<1x96x32xbf16>
    %62 = vector.shape_cast %61 : vector<1x96x32xbf16> to vector<96x32xbf16>
    %cst_47 = arith.constant dense<0.000000e+00> : vector<64x32xf32>
    %63 = tpu.matmul %60, %62, %cst_47 {dimension_numbers = #tpu.dot_dimension_numbers<[1], [0], [0], [1], [0, 0, 1, 1], [], []>} : vector<64x96xbf16>, vector<96x32xbf16>, vector<64x32xf32> -> vector<64x32xf32>
    %64 = arith.addf %59, %63 : vector<64x32xf32>
    %c10 = arith.constant 10 : index
    %c0_48 = arith.constant 0 : index
    %65 = vector.load %arg26[%c10, %c0_48] : memref<82x96xf32, #tpu.memory_space<vmem>>, vector<64x96xf32>
    %c0_49 = arith.constant 0 : index
    %c5 = arith.constant 5 : index
    %66 = vector.load %arg2[%c0_49, %c5] : memref<64x9xf32, #tpu.memory_space<vmem>>, vector<64x1xf32>
    %cst_50 = arith.constant 0.000000e+00 : f32
    %67 = vector.broadcast %cst_50 : f32 to vector<64x1xf32>
    %68 = arith.cmpf ogt, %66, %67 : vector<64x1xf32>
    %cst_51 = arith.constant 0.000000e+00 : f32
    %69 = vector.shape_cast %68 : vector<64x1xi1> to vector<64x1xi1>
    %70 = vector.broadcast %69 : vector<64x1xi1> to vector<64x96xi1>
    %71 = vector.broadcast %cst_51 : f32 to vector<64x96xf32>
    %72 = arith.select %70, %65, %71 : vector<64x96xi1>, vector<64x96xf32>
    %73 = arith.truncf %72 : vector<64x96xf32> to vector<64x96xbf16>
    %c5_52 = arith.constant 5 : index
    %c0_53 = arith.constant 0 : index
    %c0_54 = arith.constant 0 : index
    %74 = vector.load %arg3[%c5_52, %c0_53, %c0_54] : memref<9x96x32xbf16, #tpu.memory_space<vmem>>, vector<1x96x32xbf16>
    %75 = vector.shape_cast %74 : vector<1x96x32xbf16> to vector<96x32xbf16>
    %cst_55 = arith.constant dense<0.000000e+00> : vector<64x32xf32>
    %76 = tpu.matmul %73, %75, %cst_55 {dimension_numbers = #tpu.dot_dimension_numbers<[1], [0], [0], [1], [0, 0, 1, 1], [], []>} : vector<64x96xbf16>, vector<96x32xbf16>, vector<64x32xf32> -> vector<64x32xf32>
    %77 = arith.addf %64, %76 : vector<64x32xf32>
    %c16 = arith.constant 16 : index
    %c0_56 = arith.constant 0 : index
    %78 = vector.load %arg26[%c16, %c0_56] : memref<82x96xf32, #tpu.memory_space<vmem>>, vector<64x96xf32>
    %c0_57 = arith.constant 0 : index
    %c6 = arith.constant 6 : index
    %79 = vector.load %arg2[%c0_57, %c6] : memref<64x9xf32, #tpu.memory_space<vmem>>, vector<64x1xf32>
    %cst_58 = arith.constant 0.000000e+00 : f32
    %80 = vector.broadcast %cst_58 : f32 to vector<64x1xf32>
    %81 = arith.cmpf ogt, %79, %80 : vector<64x1xf32>
    %cst_59 = arith.constant 0.000000e+00 : f32
    %82 = vector.shape_cast %81 : vector<64x1xi1> to vector<64x1xi1>
    %83 = vector.broadcast %82 : vector<64x1xi1> to vector<64x96xi1>
    %84 = vector.broadcast %cst_59 : f32 to vector<64x96xf32>
    %85 = arith.select %83, %78, %84 : vector<64x96xi1>, vector<64x96xf32>
    %86 = arith.truncf %85 : vector<64x96xf32> to vector<64x96xbf16>
    %c6_60 = arith.constant 6 : index
    %c0_61 = arith.constant 0 : index
    %c0_62 = arith.constant 0 : index
    %87 = vector.load %arg3[%c6_60, %c0_61, %c0_62] : memref<9x96x32xbf16, #tpu.memory_space<vmem>>, vector<1x96x32xbf16>
    %88 = vector.shape_cast %87 : vector<1x96x32xbf16> to vector<96x32xbf16>
    %cst_63 = arith.constant dense<0.000000e+00> : vector<64x32xf32>
    %89 = tpu.matmul %86, %88, %cst_63 {dimension_numbers = #tpu.dot_dimension_numbers<[1], [0], [0], [1], [0, 0, 1, 1], [], []>} : vector<64x96xbf16>, vector<96x32xbf16>, vector<64x32xf32> -> vector<64x32xf32>
    %90 = arith.addf %77, %89 : vector<64x32xf32>
    %c17 = arith.constant 17 : index
    %c0_64 = arith.constant 0 : index
    %91 = vector.load %arg26[%c17, %c0_64] : memref<82x96xf32, #tpu.memory_space<vmem>>, vector<64x96xf32>
    %c0_65 = arith.constant 0 : index
    %c7 = arith.constant 7 : index
    %92 = vector.load %arg2[%c0_65, %c7] : memref<64x9xf32, #tpu.memory_space<vmem>>, vector<64x1xf32>
    %cst_66 = arith.constant 0.000000e+00 : f32
    %93 = vector.broadcast %cst_66 : f32 to vector<64x1xf32>
    %94 = arith.cmpf ogt, %92, %93 : vector<64x1xf32>
    %cst_67 = arith.constant 0.000000e+00 : f32
    %95 = vector.shape_cast %94 : vector<64x1xi1> to vector<64x1xi1>
    %96 = vector.broadcast %95 : vector<64x1xi1> to vector<64x96xi1>
    %97 = vector.broadcast %cst_67 : f32 to vector<64x96xf32>
    %98 = arith.select %96, %91, %97 : vector<64x96xi1>, vector<64x96xf32>
    %99 = arith.truncf %98 : vector<64x96xf32> to vector<64x96xbf16>
    %c7_68 = arith.constant 7 : index
    %c0_69 = arith.constant 0 : index
    %c0_70 = arith.constant 0 : index
    %100 = vector.load %arg3[%c7_68, %c0_69, %c0_70] : memref<9x96x32xbf16, #tpu.memory_space<vmem>>, vector<1x96x32xbf16>
    %101 = vector.shape_cast %100 : vector<1x96x32xbf16> to vector<96x32xbf16>
    %cst_71 = arith.constant dense<0.000000e+00> : vector<64x32xf32>
    %102 = tpu.matmul %99, %101, %cst_71 {dimension_numbers = #tpu.dot_dimension_numbers<[1], [0], [0], [1], [0, 0, 1, 1], [], []>} : vector<64x96xbf16>, vector<96x32xbf16>, vector<64x32xf32> -> vector<64x32xf32>
    %103 = arith.addf %90, %102 : vector<64x32xf32>
    %c18 = arith.constant 18 : index
    %c0_72 = arith.constant 0 : index
    %104 = vector.load %arg26[%c18, %c0_72] : memref<82x96xf32, #tpu.memory_space<vmem>>, vector<64x96xf32>
    %c0_73 = arith.constant 0 : index
    %c8_74 = arith.constant 8 : index
    %105 = vector.load %arg2[%c0_73, %c8_74] : memref<64x9xf32, #tpu.memory_space<vmem>>, vector<64x1xf32>
    %cst_75 = arith.constant 0.000000e+00 : f32
    %106 = vector.broadcast %cst_75 : f32 to vector<64x1xf32>
    %107 = arith.cmpf ogt, %105, %106 : vector<64x1xf32>
    %cst_76 = arith.constant 0.000000e+00 : f32
    %108 = vector.shape_cast %107 : vector<64x1xi1> to vector<64x1xi1>
    %109 = vector.broadcast %108 : vector<64x1xi1> to vector<64x96xi1>
    %110 = vector.broadcast %cst_76 : f32 to vector<64x96xf32>
    %111 = arith.select %109, %104, %110 : vector<64x96xi1>, vector<64x96xf32>
    %112 = arith.truncf %111 : vector<64x96xf32> to vector<64x96xbf16>
    %c8_77 = arith.constant 8 : index
    %c0_78 = arith.constant 0 : index
    %c0_79 = arith.constant 0 : index
    %113 = vector.load %arg3[%c8_77, %c0_78, %c0_79] : memref<9x96x32xbf16, #tpu.memory_space<vmem>>, vector<1x96x32xbf16>
    %114 = vector.shape_cast %113 : vector<1x96x32xbf16> to vector<96x32xbf16>
    %cst_80 = arith.constant dense<0.000000e+00> : vector<64x32xf32>
    %115 = tpu.matmul %112, %114, %cst_80 {dimension_numbers = #tpu.dot_dimension_numbers<[1], [0], [0], [1], [0, 0, 1, 1], [], []>} : vector<64x96xbf16>, vector<96x32xbf16>, vector<64x32xf32> -> vector<64x32xf32>
    %116 = arith.addf %103, %115 : vector<64x32xf32>
    %c0_81 = arith.constant 0 : index
    %c0_82 = arith.constant 0 : index
    %117 = vector.load %arg4[%c0_81, %c0_82] : memref<1x32xf32, #tpu.memory_space<vmem>>, vector<1x32xf32>
    %118 = vector.broadcast %117 : vector<1x32xf32> to vector<64x32xf32>
    %119 = arith.addf %116, %118 : vector<64x32xf32>
    %cst_83 = arith.constant dense<0.000000e+00> : vector<32xf32>
    %120 = vector.multi_reduction <add>, %119, %cst_83 [0] : vector<64x32xf32> to vector<32xf32>
    %121 = vector.shape_cast %120 : vector<32xf32> to vector<1x32xf32>
    %cst_84 = arith.constant 1.562500e-02 : f32
    %122 = vector.broadcast %cst_84 : f32 to vector<1x32xf32>
    %123 = arith.mulf %121, %122 : vector<1x32xf32>
    %124 = arith.mulf %119, %119 : vector<64x32xf32>
    %cst_85 = arith.constant dense<0.000000e+00> : vector<32xf32>
    %125 = vector.multi_reduction <add>, %124, %cst_85 [0] : vector<64x32xf32> to vector<32xf32>
    %126 = vector.shape_cast %125 : vector<32xf32> to vector<1x32xf32>
    %cst_86 = arith.constant 1.562500e-02 : f32
    %127 = vector.broadcast %cst_86 : f32 to vector<1x32xf32>
    %128 = arith.mulf %126, %127 : vector<1x32xf32>
    %c0_87 = arith.constant 0 : index
    %c0_88 = arith.constant 0 : index
    %129 = vector.load %arg19[%c0_87, %c0_88] : memref<32x32xf32, #tpu.memory_space<vmem>>, vector<32x32xf32>
    %cst_89 = arith.constant dense<0.000000e+00> : vector<1x32xf32>
    %130 = tpu.matmul %123, %129, %cst_89 {dimension_numbers = #tpu.dot_dimension_numbers<[1], [0], [0], [1], [0, 0, 1, 1], [], []>} : vector<1x32xf32>, vector<32x32xf32>, vector<1x32xf32> -> vector<1x32xf32>
    %c0_90 = arith.constant 0 : index
    %c0_91 = arith.constant 0 : index
    %131 = vector.load %arg19[%c0_90, %c0_91] : memref<32x32xf32, #tpu.memory_space<vmem>>, vector<32x32xf32>
    %cst_92 = arith.constant dense<0.000000e+00> : vector<1x32xf32>
    %132 = tpu.matmul %128, %131, %cst_92 {dimension_numbers = #tpu.dot_dimension_numbers<[1], [0], [0], [1], [0, 0, 1, 1], [], []>} : vector<1x32xf32>, vector<32x32xf32>, vector<1x32xf32> -> vector<1x32xf32>
    %133 = arith.mulf %130, %130 : vector<1x32xf32>
    %134 = arith.subf %132, %133 : vector<1x32xf32>
    %cst_93 = arith.constant 0.000000e+00 : f32
    %135 = vector.broadcast %cst_93 : f32 to vector<1x32xf32>
    %136 = arith.maximumf %134, %135 : vector<1x32xf32>
    %c0_94 = arith.constant 0 : index
    %c0_95 = arith.constant 0 : index
    %137 = vector.load %arg5[%c0_94, %c0_95] : memref<1x32xf32, #tpu.memory_space<vmem>>, vector<1x32xf32>
    %cst_96 = arith.constant 9.99999997E-7 : f32
    %138 = vector.broadcast %cst_96 : f32 to vector<1x32xf32>
    %139 = arith.addf %136, %138 : vector<1x32xf32>
    %140 = math.rsqrt %139 : vector<1x32xf32>
    %141 = arith.mulf %137, %140 : vector<1x32xf32>
    %c0_97 = arith.constant 0 : index
    %c0_98 = arith.constant 0 : index
    %142 = vector.load %arg6[%c0_97, %c0_98] : memref<1x32xf32, #tpu.memory_space<vmem>>, vector<1x32xf32>
    %143 = arith.mulf %130, %141 : vector<1x32xf32>
    %144 = arith.subf %142, %143 : vector<1x32xf32>
    %145 = vector.broadcast %141 : vector<1x32xf32> to vector<64x32xf32>
    %146 = arith.mulf %119, %145 : vector<64x32xf32>
    %147 = vector.broadcast %144 : vector<1x32xf32> to vector<64x32xf32>
    %148 = arith.addf %146, %147 : vector<64x32xf32>
    %cst_99 = arith.constant 0.000000e+00 : f32
    %149 = vector.broadcast %cst_99 : f32 to vector<64x32xf32>
    %150 = arith.maximumf %148, %149 : vector<64x32xf32>
    %c9_100 = arith.constant 9 : index
    %c0_101 = arith.constant 0 : index
    %151 = vector.load %arg27[%c9_100, %c0_101] : memref<82x32xf32, #tpu.memory_space<vmem>>, vector<64x32xf32>
    tpu.vector_store %arg27[%c9_100, %c0_101], %150 {strides = array<i32>} : memref<82x32xf32, #tpu.memory_space<vmem>>, vector<64x32xf32>,
    %cst_102 = arith.constant 0.000000e+00 : f32
    %152 = vector.broadcast %cst_102 : f32 to vector<64x32xf32>
    %c0_103 = arith.constant 0 : index
    %c0_104 = arith.constant 0 : index
    %153 = vector.load %arg27[%c0_103, %c0_104] : memref<82x32xf32, #tpu.memory_space<vmem>>, vector<64x32xf32>
    %c0_105 = arith.constant 0 : index
    %c0_106 = arith.constant 0 : index
    %154 = vector.load %arg2[%c0_105, %c0_106] : memref<64x9xf32, #tpu.memory_space<vmem>>, vector<64x1xf32>
    %cst_107 = arith.constant 0.000000e+00 : f32
    %155 = vector.broadcast %cst_107 : f32 to vector<64x1xf32>
    %156 = arith.cmpf ogt, %154, %155 : vector<64x1xf32>
    %cst_108 = arith.constant 0.000000e+00 : f32
    %157 = vector.shape_cast %156 : vector<64x1xi1> to vector<64x1xi1>
    %158 = vector.broadcast %157 : vector<64x1xi1> to vector<64x32xi1>
    %159 = vector.broadcast %cst_108 : f32 to vector<64x32xf32>
    %160 = arith.select %158, %153, %159 : vector<64x32xi1>, vector<64x32xf32>
    %161 = arith.truncf %160 : vector<64x32xf32> to vector<64x32xbf16>
    %c0_109 = arith.constant 0 : index
    %c0_110 = arith.constant 0 : index
    %c0_111 = arith.constant 0 : index
    %162 = vector.load %arg7[%c0_109, %c0_110, %c0_111] : memref<9x32x32xbf16, #tpu.memory_space<vmem>>, vector<1x32x32xbf16>
    %163 = vector.shape_cast %162 : vector<1x32x32xbf16> to vector<32x32xbf16>
    %cst_112 = arith.constant dense<0.000000e+00> : vector<64x32xf32>
    %164 = tpu.matmul %161, %163, %cst_112 {dimension_numbers = #tpu.dot_dimension_numbers<[1], [0], [0], [1], [0, 0, 1, 1], [], []>} : vector<64x32xbf16>, vector<32x32xbf16>, vector<64x32xf32> -> vector<64x32xf32>
    %165 = arith.addf %152, %164 : vector<64x32xf32>
    %c1_113 = arith.constant 1 : index
    %c0_114 = arith.constant 0 : index
    %166 = vector.load %arg27[%c1_113, %c0_114] : memref<82x32xf32, #tpu.memory_space<vmem>>, vector<64x32xf32>
    %c0_115 = arith.constant 0 : index
    %c1_116 = arith.constant 1 : index
    %167 = vector.load %arg2[%c0_115, %c1_116] : memref<64x9xf32, #tpu.memory_space<vmem>>, vector<64x1xf32>
    %cst_117 = arith.constant 0.000000e+00 : f32
    %168 = vector.broadcast %cst_117 : f32 to vector<64x1xf32>
    %169 = arith.cmpf ogt, %167, %168 : vector<64x1xf32>
    %cst_118 = arith.constant 0.000000e+00 : f32
    %170 = vector.shape_cast %169 : vector<64x1xi1> to vector<64x1xi1>
    %171 = vector.broadcast %170 : vector<64x1xi1> to vector<64x32xi1>
    %172 = vector.broadcast %cst_118 : f32 to vector<64x32xf32>
    %173 = arith.select %171, %166, %172 : vector<64x32xi1>, vector<64x32xf32>
    %174 = arith.truncf %173 : vector<64x32xf32> to vector<64x32xbf16>
    %c1_119 = arith.constant 1 : index
    %c0_120 = arith.constant 0 : index
    %c0_121 = arith.constant 0 : index
    %175 = vector.load %arg7[%c1_119, %c0_120, %c0_121] : memref<9x32x32xbf16, #tpu.memory_space<vmem>>, vector<1x32x32xbf16>
    %176 = vector.shape_cast %175 : vector<1x32x32xbf16> to vector<32x32xbf16>
    %cst_122 = arith.constant dense<0.000000e+00> : vector<64x32xf32>
    %177 = tpu.matmul %174, %176, %cst_122 {dimension_numbers = #tpu.dot_dimension_numbers<[1], [0], [0], [1], [0, 0, 1, 1], [], []>} : vector<64x32xbf16>, vector<32x32xbf16>, vector<64x32xf32> -> vector<64x32xf32>
    %178 = arith.addf %165, %177 : vector<64x32xf32>
    %c2_123 = arith.constant 2 : index
    %c0_124 = arith.constant 0 : index
    %179 = vector.load %arg27[%c2_123, %c0_124] : memref<82x32xf32, #tpu.memory_space<vmem>>, vector<64x32xf32>
    %c0_125 = arith.constant 0 : index
    %c2_126 = arith.constant 2 : index
    %180 = vector.load %arg2[%c0_125, %c2_126] : memref<64x9xf32, #tpu.memory_space<vmem>>, vector<64x1xf32>
    %cst_127 = arith.constant 0.000000e+00 : f32
    %181 = vector.broadcast %cst_127 : f32 to vector<64x1xf32>
    %182 = arith.cmpf ogt, %180, %181 : vector<64x1xf32>
    %cst_128 = arith.constant 0.000000e+00 : f32
    %183 = vector.shape_cast %182 : vector<64x1xi1> to vector<64x1xi1>
    %184 = vector.broadcast %183 : vector<64x1xi1> to vector<64x32xi1>
    %185 = vector.broadcast %cst_128 : f32 to vector<64x32xf32>
    %186 = arith.select %184, %179, %185 : vector<64x32xi1>, vector<64x32xf32>
    %187 = arith.truncf %186 : vector<64x32xf32> to vector<64x32xbf16>
    %c2_129 = arith.constant 2 : index
    %c0_130 = arith.constant 0 : index
    %c0_131 = arith.constant 0 : index
    %188 = vector.load %arg7[%c2_129, %c0_130, %c0_131] : memref<9x32x32xbf16, #tpu.memory_space<vmem>>, vector<1x32x32xbf16>
    %189 = vector.shape_cast %188 : vector<1x32x32xbf16> to vector<32x32xbf16>
    %cst_132 = arith.constant dense<0.000000e+00> : vector<64x32xf32>
    %190 = tpu.matmul %187, %189, %cst_132 {dimension_numbers = #tpu.dot_dimension_numbers<[1], [0], [0], [1], [0, 0, 1, 1], [], []>} : vector<64x32xbf16>, vector<32x32xbf16>, vector<64x32xf32> -> vector<64x32xf32>
    %191 = arith.addf %178, %190 : vector<64x32xf32>
    %c8_133 = arith.constant 8 : index
    %c0_134 = arith.constant 0 : index
    %192 = vector.load %arg27[%c8_133, %c0_134] : memref<82x32xf32, #tpu.memory_space<vmem>>, vector<64x32xf32>
    %c0_135 = arith.constant 0 : index
    %c3_136 = arith.constant 3 : index
    %193 = vector.load %arg2[%c0_135, %c3_136] : memref<64x9xf32, #tpu.memory_space<vmem>>, vector<64x1xf32>
    %cst_137 = arith.constant 0.000000e+00 : f32
    %194 = vector.broadcast %cst_137 : f32 to vector<64x1xf32>
    %195 = arith.cmpf ogt, %193, %194 : vector<64x1xf32>
    %cst_138 = arith.constant 0.000000e+00 : f32
    %196 = vector.shape_cast %195 : vector<64x1xi1> to vector<64x1xi1>
    %197 = vector.broadcast %196 : vector<64x1xi1> to vector<64x32xi1>
    %198 = vector.broadcast %cst_138 : f32 to vector<64x32xf32>
    %199 = arith.select %197, %192, %198 : vector<64x32xi1>, vector<64x32xf32>
    %200 = arith.truncf %199 : vector<64x32xf32> to vector<64x32xbf16>
    %c3_139 = arith.constant 3 : index
    %c0_140 = arith.constant 0 : index
    %c0_141 = arith.constant 0 : index
    %201 = vector.load %arg7[%c3_139, %c0_140, %c0_141] : memref<9x32x32xbf16, #tpu.memory_space<vmem>>, vector<1x32x32xbf16>
    %202 = vector.shape_cast %201 : vector<1x32x32xbf16> to vector<32x32xbf16>
    %cst_142 = arith.constant dense<0.000000e+00> : vector<64x32xf32>
    %203 = tpu.matmul %200, %202, %cst_142 {dimension_numbers = #tpu.dot_dimension_numbers<[1], [0], [0], [1], [0, 0, 1, 1], [], []>} : vector<64x32xbf16>, vector<32x32xbf16>, vector<64x32xf32> -> vector<64x32xf32>
    %204 = arith.addf %191, %203 : vector<64x32xf32>
    %205 = arith.truncf %150 : vector<64x32xf32> to vector<64x32xbf16>
    %c4_143 = arith.constant 4 : index
    %c0_144 = arith.constant 0 : index
    %c0_145 = arith.constant 0 : index
    %206 = vector.load %arg7[%c4_143, %c0_144, %c0_145] : memref<9x32x32xbf16, #tpu.memory_space<vmem>>, vector<1x32x32xbf16>
    %207 = vector.shape_cast %206 : vector<1x32x32xbf16> to vector<32x32xbf16>
    %cst_146 = arith.constant dense<0.000000e+00> : vector<64x32xf32>
    %208 = tpu.matmul %205, %207, %cst_146 {dimension_numbers = #tpu.dot_dimension_numbers<[1], [0], [0], [1], [0, 0, 1, 1], [], []>} : vector<64x32xbf16>, vector<32x32xbf16>, vector<64x32xf32> -> vector<64x32xf32>
    %209 = arith.addf %204, %208 : vector<64x32xf32>
    %c10_147 = arith.constant 10 : index
    %c0_148 = arith.constant 0 : index
    %210 = vector.load %arg27[%c10_147, %c0_148] : memref<82x32xf32, #tpu.memory_space<vmem>>, vector<64x32xf32>
    %c0_149 = arith.constant 0 : index
    %c5_150 = arith.constant 5 : index
    %211 = vector.load %arg2[%c0_149, %c5_150] : memref<64x9xf32, #tpu.memory_space<vmem>>, vector<64x1xf32>
    %cst_151 = arith.constant 0.000000e+00 : f32
    %212 = vector.broadcast %cst_151 : f32 to vector<64x1xf32>
    %213 = arith.cmpf ogt, %211, %212 : vector<64x1xf32>
    %cst_152 = arith.constant 0.000000e+00 : f32
    %214 = vector.shape_cast %213 : vector<64x1xi1> to vector<64x1xi1>
    %215 = vector.broadcast %214 : vector<64x1xi1> to vector<64x32xi1>
    %216 = vector.broadcast %cst_152 : f32 to vector<64x32xf32>
    %217 = arith.select %215, %210, %216 : vector<64x32xi1>, vector<64x32xf32>
    %218 = arith.truncf %217 : vector<64x32xf32> to vector<64x32xbf16>
    %c5_153 = arith.constant 5 : index
    %c0_154 = arith.constant 0 : index
    %c0_155 = arith.constant 0 : index
    %219 = vector.load %arg7[%c5_153, %c0_154, %c0_155] : memref<9x32x32xbf16, #tpu.memory_space<vmem>>, vector<1x32x32xbf16>
    %220 = vector.shape_cast %219 : vector<1x32x32xbf16> to vector<32x32xbf16>
    %cst_156 = arith.constant dense<0.000000e+00> : vector<64x32xf32>
    %221 = tpu.matmul %218, %220, %cst_156 {dimension_numbers = #tpu.dot_dimension_numbers<[1], [0], [0], [1], [0, 0, 1, 1], [], []>} : vector<64x32xbf16>, vector<32x32xbf16>, vector<64x32xf32> -> vector<64x32xf32>
    %222 = arith.addf %209, %221 : vector<64x32xf32>
    %c16_157 = arith.constant 16 : index
    %c0_158 = arith.constant 0 : index
    %223 = vector.load %arg27[%c16_157, %c0_158] : memref<82x32xf32, #tpu.memory_space<vmem>>, vector<64x32xf32>
    %c0_159 = arith.constant 0 : index
    %c6_160 = arith.constant 6 : index
    %224 = vector.load %arg2[%c0_159, %c6_160] : memref<64x9xf32, #tpu.memory_space<vmem>>, vector<64x1xf32>
    %cst_161 = arith.constant 0.000000e+00 : f32
    %225 = vector.broadcast %cst_161 : f32 to vector<64x1xf32>
    %226 = arith.cmpf ogt, %224, %225 : vector<64x1xf32>
    %cst_162 = arith.constant 0.000000e+00 : f32
    %227 = vector.shape_cast %226 : vector<64x1xi1> to vector<64x1xi1>
    %228 = vector.broadcast %227 : vector<64x1xi1> to vector<64x32xi1>
    %229 = vector.broadcast %cst_162 : f32 to vector<64x32xf32>
    %230 = arith.select %228, %223, %229 : vector<64x32xi1>, vector<64x32xf32>
    %231 = arith.truncf %230 : vector<64x32xf32> to vector<64x32xbf16>
    %c6_163 = arith.constant 6 : index
    %c0_164 = arith.constant 0 : index
    %c0_165 = arith.constant 0 : index
    %232 = vector.load %arg7[%c6_163, %c0_164, %c0_165] : memref<9x32x32xbf16, #tpu.memory_space<vmem>>, vector<1x32x32xbf16>
    %233 = vector.shape_cast %232 : vector<1x32x32xbf16> to vector<32x32xbf16>
    %cst_166 = arith.constant dense<0.000000e+00> : vector<64x32xf32>
    %234 = tpu.matmul %231, %233, %cst_166 {dimension_numbers = #tpu.dot_dimension_numbers<[1], [0], [0], [1], [0, 0, 1, 1], [], []>} : vector<64x32xbf16>, vector<32x32xbf16>, vector<64x32xf32> -> vector<64x32xf32>
    %235 = arith.addf %222, %234 : vector<64x32xf32>
    %c17_167 = arith.constant 17 : index
    %c0_168 = arith.constant 0 : index
    %236 = vector.load %arg27[%c17_167, %c0_168] : memref<82x32xf32, #tpu.memory_space<vmem>>, vector<64x32xf32>
    %c0_169 = arith.constant 0 : index
    %c7_170 = arith.constant 7 : index
    %237 = vector.load %arg2[%c0_169, %c7_170] : memref<64x9xf32, #tpu.memory_space<vmem>>, vector<64x1xf32>
    %cst_171 = arith.constant 0.000000e+00 : f32
    %238 = vector.broadcast %cst_171 : f32 to vector<64x1xf32>
    %239 = arith.cmpf ogt, %237, %238 : vector<64x1xf32>
    %cst_172 = arith.constant 0.000000e+00 : f32
    %240 = vector.shape_cast %239 : vector<64x1xi1> to vector<64x1xi1>
    %241 = vector.broadcast %240 : vector<64x1xi1> to vector<64x32xi1>
    %242 = vector.broadcast %cst_172 : f32 to vector<64x32xf32>
    %243 = arith.select %241, %236, %242 : vector<64x32xi1>, vector<64x32xf32>
    %244 = arith.truncf %243 : vector<64x32xf32> to vector<64x32xbf16>
    %c7_173 = arith.constant 7 : index
    %c0_174 = arith.constant 0 : index
    %c0_175 = arith.constant 0 : index
    %245 = vector.load %arg7[%c7_173, %c0_174, %c0_175] : memref<9x32x32xbf16, #tpu.memory_space<vmem>>, vector<1x32x32xbf16>
    %246 = vector.shape_cast %245 : vector<1x32x32xbf16> to vector<32x32xbf16>
    %cst_176 = arith.constant dense<0.000000e+00> : vector<64x32xf32>
    %247 = tpu.matmul %244, %246, %cst_176 {dimension_numbers = #tpu.dot_dimension_numbers<[1], [0], [0], [1], [0, 0, 1, 1], [], []>} : vector<64x32xbf16>, vector<32x32xbf16>, vector<64x32xf32> -> vector<64x32xf32>
    %248 = arith.addf %235, %247 : vector<64x32xf32>
    %c18_177 = arith.constant 18 : index
    %c0_178 = arith.constant 0 : index
    %249 = vector.load %arg27[%c18_177, %c0_178] : memref<82x32xf32, #tpu.memory_space<vmem>>, vector<64x32xf32>
    %c0_179 = arith.constant 0 : index
    %c8_180 = arith.constant 8 : index
    %250 = vector.load %arg2[%c0_179, %c8_180] : memref<64x9xf32, #tpu.memory_space<vmem>>, vector<64x1xf32>
    %cst_181 = arith.constant 0.000000e+00 : f32
    %251 = vector.broadcast %cst_181 : f32 to vector<64x1xf32>
    %252 = arith.cmpf ogt, %250, %251 : vector<64x1xf32>
    %cst_182 = arith.constant 0.000000e+00 : f32
    %253 = vector.shape_cast %252 : vector<64x1xi1> to vector<64x1xi1>
    %254 = vector.broadcast %253 : vector<64x1xi1> to vector<64x32xi1>
    %255 = vector.broadcast %cst_182 : f32 to vector<64x32xf32>
    %256 = arith.select %254, %249, %255 : vector<64x32xi1>, vector<64x32xf32>
    %257 = arith.truncf %256 : vector<64x32xf32> to vector<64x32xbf16>
    %c8_183 = arith.constant 8 : index
    %c0_184 = arith.constant 0 : index
    %c0_185 = arith.constant 0 : index
    %258 = vector.load %arg7[%c8_183, %c0_184, %c0_185] : memref<9x32x32xbf16, #tpu.memory_space<vmem>>, vector<1x32x32xbf16>
    %259 = vector.shape_cast %258 : vector<1x32x32xbf16> to vector<32x32xbf16>
    %cst_186 = arith.constant dense<0.000000e+00> : vector<64x32xf32>
    %260 = tpu.matmul %257, %259, %cst_186 {dimension_numbers = #tpu.dot_dimension_numbers<[1], [0], [0], [1], [0, 0, 1, 1], [], []>} : vector<64x32xbf16>, vector<32x32xbf16>, vector<64x32xf32> -> vector<64x32xf32>
    %261 = arith.addf %248, %260 : vector<64x32xf32>
    %c0_187 = arith.constant 0 : index
    %c0_188 = arith.constant 0 : index
    %262 = vector.load %arg8[%c0_187, %c0_188] : memref<1x32xf32, #tpu.memory_space<vmem>>, vector<1x32xf32>
    %263 = vector.broadcast %262 : vector<1x32xf32> to vector<64x32xf32>
    %264 = arith.addf %261, %263 : vector<64x32xf32>
    %cst_189 = arith.constant dense<0.000000e+00> : vector<32xf32>
    %265 = vector.multi_reduction <add>, %264, %cst_189 [0] : vector<64x32xf32> to vector<32xf32>
    %266 = vector.shape_cast %265 : vector<32xf32> to vector<1x32xf32>
    %cst_190 = arith.constant 1.562500e-02 : f32
    %267 = vector.broadcast %cst_190 : f32 to vector<1x32xf32>
    %268 = arith.mulf %266, %267 : vector<1x32xf32>
    %269 = arith.mulf %264, %264 : vector<64x32xf32>
    %cst_191 = arith.constant dense<0.000000e+00> : vector<32xf32>
    %270 = vector.multi_reduction <add>, %269, %cst_191 [0] : vector<64x32xf32> to vector<32xf32>
    %271 = vector.shape_cast %270 : vector<32xf32> to vector<1x32xf32>
    %cst_192 = arith.constant 1.562500e-02 : f32
    %272 = vector.broadcast %cst_192 : f32 to vector<1x32xf32>
    %273 = arith.mulf %271, %272 : vector<1x32xf32>
    %c0_193 = arith.constant 0 : index
    %c0_194 = arith.constant 0 : index
    %274 = vector.load %arg19[%c0_193, %c0_194] : memref<32x32xf32, #tpu.memory_space<vmem>>, vector<32x32xf32>
    %cst_195 = arith.constant dense<0.000000e+00> : vector<1x32xf32>
    %275 = tpu.matmul %268, %274, %cst_195 {dimension_numbers = #tpu.dot_dimension_numbers<[1], [0], [0], [1], [0, 0, 1, 1], [], []>} : vector<1x32xf32>, vector<32x32xf32>, vector<1x32xf32> -> vector<1x32xf32>
    %c0_196 = arith.constant 0 : index
    %c0_197 = arith.constant 0 : index
    %276 = vector.load %arg19[%c0_196, %c0_197] : memref<32x32xf32, #tpu.memory_space<vmem>>, vector<32x32xf32>
    %cst_198 = arith.constant dense<0.000000e+00> : vector<1x32xf32>
    %277 = tpu.matmul %273, %276, %cst_198 {dimension_numbers = #tpu.dot_dimension_numbers<[1], [0], [0], [1], [0, 0, 1, 1], [], []>} : vector<1x32xf32>, vector<32x32xf32>, vector<1x32xf32> -> vector<1x32xf32>
    %278 = arith.mulf %275, %275 : vector<1x32xf32>
    %279 = arith.subf %277, %278 : vector<1x32xf32>
    %cst_199 = arith.constant 0.000000e+00 : f32
    %280 = vector.broadcast %cst_199 : f32 to vector<1x32xf32>
    %281 = arith.maximumf %279, %280 : vector<1x32xf32>
    %c0_200 = arith.constant 0 : index
    %c0_201 = arith.constant 0 : index
    %282 = vector.load %arg9[%c0_200, %c0_201] : memref<1x32xf32, #tpu.memory_space<vmem>>, vector<1x32xf32>
    %cst_202 = arith.constant 9.99999997E-7 : f32
    %283 = vector.broadcast %cst_202 : f32 to vector<1x32xf32>
    %284 = arith.addf %281, %283 : vector<1x32xf32>
    %285 = math.rsqrt %284 : vector<1x32xf32>
    %286 = arith.mulf %282, %285 : vector<1x32xf32>
    %c0_203 = arith.constant 0 : index
    %c0_204 = arith.constant 0 : index
    %287 = vector.load %arg10[%c0_203, %c0_204] : memref<1x32xf32, #tpu.memory_space<vmem>>, vector<1x32xf32>
    %288 = arith.mulf %275, %286 : vector<1x32xf32>
    %289 = arith.subf %287, %288 : vector<1x32xf32>
    %290 = vector.broadcast %286 : vector<1x32xf32> to vector<64x32xf32>
    %291 = arith.mulf %264, %290 : vector<64x32xf32>
    %292 = vector.broadcast %289 : vector<1x32xf32> to vector<64x32xf32>
    %293 = arith.addf %291, %292 : vector<64x32xf32>
    %cst_205 = arith.constant 0.000000e+00 : f32
    %294 = vector.broadcast %cst_205 : f32 to vector<64x32xf32>
    %295 = arith.maximumf %293, %294 : vector<64x32xf32>
    %c9_206 = arith.constant 9 : index
    %c0_207 = arith.constant 0 : index
    %296 = vector.load %arg27[%c9_206, %c0_207] : memref<82x32xf32, #tpu.memory_space<vmem>>, vector<64x32xf32>
    tpu.vector_store %arg27[%c9_206, %c0_207], %295 {strides = array<i32>} : memref<82x32xf32, #tpu.memory_space<vmem>>, vector<64x32xf32>,
    %cst_208 = arith.constant 0.000000e+00 : f32
    %297 = vector.broadcast %cst_208 : f32 to vector<64x32xf32>
    %c0_209 = arith.constant 0 : index
    %c0_210 = arith.constant 0 : index
    %298 = vector.load %arg27[%c0_209, %c0_210] : memref<82x32xf32, #tpu.memory_space<vmem>>, vector<64x32xf32>
    %c0_211 = arith.constant 0 : index
    %c0_212 = arith.constant 0 : index
    %299 = vector.load %arg2[%c0_211, %c0_212] : memref<64x9xf32, #tpu.memory_space<vmem>>, vector<64x1xf32>
    %cst_213 = arith.constant 0.000000e+00 : f32
    %300 = vector.broadcast %cst_213 : f32 to vector<64x1xf32>
    %301 = arith.cmpf ogt, %299, %300 : vector<64x1xf32>
    %cst_214 = arith.constant 0.000000e+00 : f32
    %302 = vector.shape_cast %301 : vector<64x1xi1> to vector<64x1xi1>
    %303 = vector.broadcast %302 : vector<64x1xi1> to vector<64x32xi1>
    %304 = vector.broadcast %cst_214 : f32 to vector<64x32xf32>
    %305 = arith.select %303, %298, %304 : vector<64x32xi1>, vector<64x32xf32>
    %306 = arith.truncf %305 : vector<64x32xf32> to vector<64x32xbf16>
    %c0_215 = arith.constant 0 : index
    %c0_216 = arith.constant 0 : index
    %c0_217 = arith.constant 0 : index
    %307 = vector.load %arg11[%c0_215, %c0_216, %c0_217] : memref<9x32x32xbf16, #tpu.memory_space<vmem>>, vector<1x32x32xbf16>
    %308 = vector.shape_cast %307 : vector<1x32x32xbf16> to vector<32x32xbf16>
    %cst_218 = arith.constant dense<0.000000e+00> : vector<64x32xf32>
    %309 = tpu.matmul %306, %308, %cst_218 {dimension_numbers = #tpu.dot_dimension_numbers<[1], [0], [0], [1], [0, 0, 1, 1], [], []>} : vector<64x32xbf16>, vector<32x32xbf16>, vector<64x32xf32> -> vector<64x32xf32>
    %310 = arith.addf %297, %309 : vector<64x32xf32>
    %c1_219 = arith.constant 1 : index
    %c0_220 = arith.constant 0 : index
    %311 = vector.load %arg27[%c1_219, %c0_220] : memref<82x32xf32, #tpu.memory_space<vmem>>, vector<64x32xf32>
    %c0_221 = arith.constant 0 : index
    %c1_222 = arith.constant 1 : index
    %312 = vector.load %arg2[%c0_221, %c1_222] : memref<64x9xf32, #tpu.memory_space<vmem>>, vector<64x1xf32>
    %cst_223 = arith.constant 0.000000e+00 : f32
    %313 = vector.broadcast %cst_223 : f32 to vector<64x1xf32>
    %314 = arith.cmpf ogt, %312, %313 : vector<64x1xf32>
    %cst_224 = arith.constant 0.000000e+00 : f32
    %315 = vector.shape_cast %314 : vector<64x1xi1> to vector<64x1xi1>
    %316 = vector.broadcast %315 : vector<64x1xi1> to vector<64x32xi1>
    %317 = vector.broadcast %cst_224 : f32 to vector<64x32xf32>
    %318 = arith.select %316, %311, %317 : vector<64x32xi1>, vector<64x32xf32>
    %319 = arith.truncf %318 : vector<64x32xf32> to vector<64x32xbf16>
    %c1_225 = arith.constant 1 : index
    %c0_226 = arith.constant 0 : index
    %c0_227 = arith.constant 0 : index
    %320 = vector.load %arg11[%c1_225, %c0_226, %c0_227] : memref<9x32x32xbf16, #tpu.memory_space<vmem>>, vector<1x32x32xbf16>
    %321 = vector.shape_cast %320 : vector<1x32x32xbf16> to vector<32x32xbf16>
    %cst_228 = arith.constant dense<0.000000e+00> : vector<64x32xf32>
    %322 = tpu.matmul %319, %321, %cst_228 {dimension_numbers = #tpu.dot_dimension_numbers<[1], [0], [0], [1], [0, 0, 1, 1], [], []>} : vector<64x32xbf16>, vector<32x32xbf16>, vector<64x32xf32> -> vector<64x32xf32>
    %323 = arith.addf %310, %322 : vector<64x32xf32>
    %c2_229 = arith.constant 2 : index
    %c0_230 = arith.constant 0 : index
    %324 = vector.load %arg27[%c2_229, %c0_230] : memref<82x32xf32, #tpu.memory_space<vmem>>, vector<64x32xf32>
    %c0_231 = arith.constant 0 : index
    %c2_232 = arith.constant 2 : index
    %325 = vector.load %arg2[%c0_231, %c2_232] : memref<64x9xf32, #tpu.memory_space<vmem>>, vector<64x1xf32>
    %cst_233 = arith.constant 0.000000e+00 : f32
    %326 = vector.broadcast %cst_233 : f32 to vector<64x1xf32>
    %327 = arith.cmpf ogt, %325, %326 : vector<64x1xf32>
    %cst_234 = arith.constant 0.000000e+00 : f32
    %328 = vector.shape_cast %327 : vector<64x1xi1> to vector<64x1xi1>
    %329 = vector.broadcast %328 : vector<64x1xi1> to vector<64x32xi1>
    %330 = vector.broadcast %cst_234 : f32 to vector<64x32xf32>
    %331 = arith.select %329, %324, %330 : vector<64x32xi1>, vector<64x32xf32>
    %332 = arith.truncf %331 : vector<64x32xf32> to vector<64x32xbf16>
    %c2_235 = arith.constant 2 : index
    %c0_236 = arith.constant 0 : index
    %c0_237 = arith.constant 0 : index
    %333 = vector.load %arg11[%c2_235, %c0_236, %c0_237] : memref<9x32x32xbf16, #tpu.memory_space<vmem>>, vector<1x32x32xbf16>
    %334 = vector.shape_cast %333 : vector<1x32x32xbf16> to vector<32x32xbf16>
    %cst_238 = arith.constant dense<0.000000e+00> : vector<64x32xf32>
    %335 = tpu.matmul %332, %334, %cst_238 {dimension_numbers = #tpu.dot_dimension_numbers<[1], [0], [0], [1], [0, 0, 1, 1], [], []>} : vector<64x32xbf16>, vector<32x32xbf16>, vector<64x32xf32> -> vector<64x32xf32>
    %336 = arith.addf %323, %335 : vector<64x32xf32>
    %c8_239 = arith.constant 8 : index
    %c0_240 = arith.constant 0 : index
    %337 = vector.load %arg27[%c8_239, %c0_240] : memref<82x32xf32, #tpu.memory_space<vmem>>, vector<64x32xf32>
    %c0_241 = arith.constant 0 : index
    %c3_242 = arith.constant 3 : index
    %338 = vector.load %arg2[%c0_241, %c3_242] : memref<64x9xf32, #tpu.memory_space<vmem>>, vector<64x1xf32>
    %cst_243 = arith.constant 0.000000e+00 : f32
    %339 = vector.broadcast %cst_243 : f32 to vector<64x1xf32>
    %340 = arith.cmpf ogt, %338, %339 : vector<64x1xf32>
    %cst_244 = arith.constant 0.000000e+00 : f32
    %341 = vector.shape_cast %340 : vector<64x1xi1> to vector<64x1xi1>
    %342 = vector.broadcast %341 : vector<64x1xi1> to vector<64x32xi1>
    %343 = vector.broadcast %cst_244 : f32 to vector<64x32xf32>
    %344 = arith.select %342, %337, %343 : vector<64x32xi1>, vector<64x32xf32>
    %345 = arith.truncf %344 : vector<64x32xf32> to vector<64x32xbf16>
    %c3_245 = arith.constant 3 : index
    %c0_246 = arith.constant 0 : index
    %c0_247 = arith.constant 0 : index
    %346 = vector.load %arg11[%c3_245, %c0_246, %c0_247] : memref<9x32x32xbf16, #tpu.memory_space<vmem>>, vector<1x32x32xbf16>
    %347 = vector.shape_cast %346 : vector<1x32x32xbf16> to vector<32x32xbf16>
    %cst_248 = arith.constant dense<0.000000e+00> : vector<64x32xf32>
    %348 = tpu.matmul %345, %347, %cst_248 {dimension_numbers = #tpu.dot_dimension_numbers<[1], [0], [0], [1], [0, 0, 1, 1], [], []>} : vector<64x32xbf16>, vector<32x32xbf16>, vector<64x32xf32> -> vector<64x32xf32>
    %349 = arith.addf %336, %348 : vector<64x32xf32>
    %350 = arith.truncf %295 : vector<64x32xf32> to vector<64x32xbf16>
    %c4_249 = arith.constant 4 : index
    %c0_250 = arith.constant 0 : index
    %c0_251 = arith.constant 0 : index
    %351 = vector.load %arg11[%c4_249, %c0_250, %c0_251] : memref<9x32x32xbf16, #tpu.memory_space<vmem>>, vector<1x32x32xbf16>
    %352 = vector.shape_cast %351 : vector<1x32x32xbf16> to vector<32x32xbf16>
    %cst_252 = arith.constant dense<0.000000e+00> : vector<64x32xf32>
    %353 = tpu.matmul %350, %352, %cst_252 {dimension_numbers = #tpu.dot_dimension_numbers<[1], [0], [0], [1], [0, 0, 1, 1], [], []>} : vector<64x32xbf16>, vector<32x32xbf16>, vector<64x32xf32> -> vector<64x32xf32>
    %354 = arith.addf %349, %353 : vector<64x32xf32>
    %c10_253 = arith.constant 10 : index
    %c0_254 = arith.constant 0 : index
    %355 = vector.load %arg27[%c10_253, %c0_254] : memref<82x32xf32, #tpu.memory_space<vmem>>, vector<64x32xf32>
    %c0_255 = arith.constant 0 : index
    %c5_256 = arith.constant 5 : index
    %356 = vector.load %arg2[%c0_255, %c5_256] : memref<64x9xf32, #tpu.memory_space<vmem>>, vector<64x1xf32>
    %cst_257 = arith.constant 0.000000e+00 : f32
    %357 = vector.broadcast %cst_257 : f32 to vector<64x1xf32>
    %358 = arith.cmpf ogt, %356, %357 : vector<64x1xf32>
    %cst_258 = arith.constant 0.000000e+00 : f32
    %359 = vector.shape_cast %358 : vector<64x1xi1> to vector<64x1xi1>
    %360 = vector.broadcast %359 : vector<64x1xi1> to vector<64x32xi1>
    %361 = vector.broadcast %cst_258 : f32 to vector<64x32xf32>
    %362 = arith.select %360, %355, %361 : vector<64x32xi1>, vector<64x32xf32>
    %363 = arith.truncf %362 : vector<64x32xf32> to vector<64x32xbf16>
    %c5_259 = arith.constant 5 : index
    %c0_260 = arith.constant 0 : index
    %c0_261 = arith.constant 0 : index
    %364 = vector.load %arg11[%c5_259, %c0_260, %c0_261] : memref<9x32x32xbf16, #tpu.memory_space<vmem>>, vector<1x32x32xbf16>
    %365 = vector.shape_cast %364 : vector<1x32x32xbf16> to vector<32x32xbf16>
    %cst_262 = arith.constant dense<0.000000e+00> : vector<64x32xf32>
    %366 = tpu.matmul %363, %365, %cst_262 {dimension_numbers = #tpu.dot_dimension_numbers<[1], [0], [0], [1], [0, 0, 1, 1], [], []>} : vector<64x32xbf16>, vector<32x32xbf16>, vector<64x32xf32> -> vector<64x32xf32>
    %367 = arith.addf %354, %366 : vector<64x32xf32>
    %c16_263 = arith.constant 16 : index
    %c0_264 = arith.constant 0 : index
    %368 = vector.load %arg27[%c16_263, %c0_264] : memref<82x32xf32, #tpu.memory_space<vmem>>, vector<64x32xf32>
    %c0_265 = arith.constant 0 : index
    %c6_266 = arith.constant 6 : index
    %369 = vector.load %arg2[%c0_265, %c6_266] : memref<64x9xf32, #tpu.memory_space<vmem>>, vector<64x1xf32>
    %cst_267 = arith.constant 0.000000e+00 : f32
    %370 = vector.broadcast %cst_267 : f32 to vector<64x1xf32>
    %371 = arith.cmpf ogt, %369, %370 : vector<64x1xf32>
    %cst_268 = arith.constant 0.000000e+00 : f32
    %372 = vector.shape_cast %371 : vector<64x1xi1> to vector<64x1xi1>
    %373 = vector.broadcast %372 : vector<64x1xi1> to vector<64x32xi1>
    %374 = vector.broadcast %cst_268 : f32 to vector<64x32xf32>
    %375 = arith.select %373, %368, %374 : vector<64x32xi1>, vector<64x32xf32>
    %376 = arith.truncf %375 : vector<64x32xf32> to vector<64x32xbf16>
    %c6_269 = arith.constant 6 : index
    %c0_270 = arith.constant 0 : index
    %c0_271 = arith.constant 0 : index
    %377 = vector.load %arg11[%c6_269, %c0_270, %c0_271] : memref<9x32x32xbf16, #tpu.memory_space<vmem>>, vector<1x32x32xbf16>
    %378 = vector.shape_cast %377 : vector<1x32x32xbf16> to vector<32x32xbf16>
    %cst_272 = arith.constant dense<0.000000e+00> : vector<64x32xf32>
    %379 = tpu.matmul %376, %378, %cst_272 {dimension_numbers = #tpu.dot_dimension_numbers<[1], [0], [0], [1], [0, 0, 1, 1], [], []>} : vector<64x32xbf16>, vector<32x32xbf16>, vector<64x32xf32> -> vector<64x32xf32>
    %380 = arith.addf %367, %379 : vector<64x32xf32>
    %c17_273 = arith.constant 17 : index
    %c0_274 = arith.constant 0 : index
    %381 = vector.load %arg27[%c17_273, %c0_274] : memref<82x32xf32, #tpu.memory_space<vmem>>, vector<64x32xf32>
    %c0_275 = arith.constant 0 : index
    %c7_276 = arith.constant 7 : index
    %382 = vector.load %arg2[%c0_275, %c7_276] : memref<64x9xf32, #tpu.memory_space<vmem>>, vector<64x1xf32>
    %cst_277 = arith.constant 0.000000e+00 : f32
    %383 = vector.broadcast %cst_277 : f32 to vector<64x1xf32>
    %384 = arith.cmpf ogt, %382, %383 : vector<64x1xf32>
    %cst_278 = arith.constant 0.000000e+00 : f32
    %385 = vector.shape_cast %384 : vector<64x1xi1> to vector<64x1xi1>
    %386 = vector.broadcast %385 : vector<64x1xi1> to vector<64x32xi1>
    %387 = vector.broadcast %cst_278 : f32 to vector<64x32xf32>
    %388 = arith.select %386, %381, %387 : vector<64x32xi1>, vector<64x32xf32>
    %389 = arith.truncf %388 : vector<64x32xf32> to vector<64x32xbf16>
    %c7_279 = arith.constant 7 : index
    %c0_280 = arith.constant 0 : index
    %c0_281 = arith.constant 0 : index
    %390 = vector.load %arg11[%c7_279, %c0_280, %c0_281] : memref<9x32x32xbf16, #tpu.memory_space<vmem>>, vector<1x32x32xbf16>
    %391 = vector.shape_cast %390 : vector<1x32x32xbf16> to vector<32x32xbf16>
    %cst_282 = arith.constant dense<0.000000e+00> : vector<64x32xf32>
    %392 = tpu.matmul %389, %391, %cst_282 {dimension_numbers = #tpu.dot_dimension_numbers<[1], [0], [0], [1], [0, 0, 1, 1], [], []>} : vector<64x32xbf16>, vector<32x32xbf16>, vector<64x32xf32> -> vector<64x32xf32>
    %393 = arith.addf %380, %392 : vector<64x32xf32>
    %c18_283 = arith.constant 18 : index
    %c0_284 = arith.constant 0 : index
    %394 = vector.load %arg27[%c18_283, %c0_284] : memref<82x32xf32, #tpu.memory_space<vmem>>, vector<64x32xf32>
    %c0_285 = arith.constant 0 : index
    %c8_286 = arith.constant 8 : index
    %395 = vector.load %arg2[%c0_285, %c8_286] : memref<64x9xf32, #tpu.memory_space<vmem>>, vector<64x1xf32>
    %cst_287 = arith.constant 0.000000e+00 : f32
    %396 = vector.broadcast %cst_287 : f32 to vector<64x1xf32>
    %397 = arith.cmpf ogt, %395, %396 : vector<64x1xf32>
    %cst_288 = arith.constant 0.000000e+00 : f32
    %398 = vector.shape_cast %397 : vector<64x1xi1> to vector<64x1xi1>
    %399 = vector.broadcast %398 : vector<64x1xi1> to vector<64x32xi1>
    %400 = vector.broadcast %cst_288 : f32 to vector<64x32xf32>
    %401 = arith.select %399, %394, %400 : vector<64x32xi1>, vector<64x32xf32>
    %402 = arith.truncf %401 : vector<64x32xf32> to vector<64x32xbf16>
    %c8_289 = arith.constant 8 : index
    %c0_290 = arith.constant 0 : index
    %c0_291 = arith.constant 0 : index
    %403 = vector.load %arg11[%c8_289, %c0_290, %c0_291] : memref<9x32x32xbf16, #tpu.memory_space<vmem>>, vector<1x32x32xbf16>
    %404 = vector.shape_cast %403 : vector<1x32x32xbf16> to vector<32x32xbf16>
    %cst_292 = arith.constant dense<0.000000e+00> : vector<64x32xf32>
    %405 = tpu.matmul %402, %404, %cst_292 {dimension_numbers = #tpu.dot_dimension_numbers<[1], [0], [0], [1], [0, 0, 1, 1], [], []>} : vector<64x32xbf16>, vector<32x32xbf16>, vector<64x32xf32> -> vector<64x32xf32>
    %406 = arith.addf %393, %405 : vector<64x32xf32>
    %c0_293 = arith.constant 0 : index
    %c0_294 = arith.constant 0 : index
    %407 = vector.load %arg12[%c0_293, %c0_294] : memref<1x32xf32, #tpu.memory_space<vmem>>, vector<1x32xf32>
    %408 = vector.broadcast %407 : vector<1x32xf32> to vector<64x32xf32>
    %409 = arith.addf %406, %408 : vector<64x32xf32>
    %cst_295 = arith.constant dense<0.000000e+00> : vector<32xf32>
    %410 = vector.multi_reduction <add>, %409, %cst_295 [0] : vector<64x32xf32> to vector<32xf32>
    %411 = vector.shape_cast %410 : vector<32xf32> to vector<1x32xf32>
    %cst_296 = arith.constant 1.562500e-02 : f32
    %412 = vector.broadcast %cst_296 : f32 to vector<1x32xf32>
    %413 = arith.mulf %411, %412 : vector<1x32xf32>
    %414 = arith.mulf %409, %409 : vector<64x32xf32>
    %cst_297 = arith.constant dense<0.000000e+00> : vector<32xf32>
    %415 = vector.multi_reduction <add>, %414, %cst_297 [0] : vector<64x32xf32> to vector<32xf32>
    %416 = vector.shape_cast %415 : vector<32xf32> to vector<1x32xf32>
    %cst_298 = arith.constant 1.562500e-02 : f32
    %417 = vector.broadcast %cst_298 : f32 to vector<1x32xf32>
    %418 = arith.mulf %416, %417 : vector<1x32xf32>
    %c0_299 = arith.constant 0 : index
    %c0_300 = arith.constant 0 : index
    %419 = vector.load %arg19[%c0_299, %c0_300] : memref<32x32xf32, #tpu.memory_space<vmem>>, vector<32x32xf32>
    %cst_301 = arith.constant dense<0.000000e+00> : vector<1x32xf32>
    %420 = tpu.matmul %413, %419, %cst_301 {dimension_numbers = #tpu.dot_dimension_numbers<[1], [0], [0], [1], [0, 0, 1, 1], [], []>} : vector<1x32xf32>, vector<32x32xf32>, vector<1x32xf32> -> vector<1x32xf32>
    %c0_302 = arith.constant 0 : index
    %c0_303 = arith.constant 0 : index
    %421 = vector.load %arg19[%c0_302, %c0_303] : memref<32x32xf32, #tpu.memory_space<vmem>>, vector<32x32xf32>
    %cst_304 = arith.constant dense<0.000000e+00> : vector<1x32xf32>
    %422 = tpu.matmul %418, %421, %cst_304 {dimension_numbers = #tpu.dot_dimension_numbers<[1], [0], [0], [1], [0, 0, 1, 1], [], []>} : vector<1x32xf32>, vector<32x32xf32>, vector<1x32xf32> -> vector<1x32xf32>
    %423 = arith.mulf %420, %420 : vector<1x32xf32>
    %424 = arith.subf %422, %423 : vector<1x32xf32>
    %cst_305 = arith.constant 0.000000e+00 : f32
    %425 = vector.broadcast %cst_305 : f32 to vector<1x32xf32>
    %426 = arith.maximumf %424, %425 : vector<1x32xf32>
    %c0_306 = arith.constant 0 : index
    %c0_307 = arith.constant 0 : index
    %427 = vector.load %arg13[%c0_306, %c0_307] : memref<1x32xf32, #tpu.memory_space<vmem>>, vector<1x32xf32>
    %cst_308 = arith.constant 9.99999997E-7 : f32
    %428 = vector.broadcast %cst_308 : f32 to vector<1x32xf32>
    %429 = arith.addf %426, %428 : vector<1x32xf32>
    %430 = math.rsqrt %429 : vector<1x32xf32>
    %431 = arith.mulf %427, %430 : vector<1x32xf32>
    %c0_309 = arith.constant 0 : index
    %c0_310 = arith.constant 0 : index
    %432 = vector.load %arg14[%c0_309, %c0_310] : memref<1x32xf32, #tpu.memory_space<vmem>>, vector<1x32xf32>
    %433 = arith.mulf %420, %431 : vector<1x32xf32>
    %434 = arith.subf %432, %433 : vector<1x32xf32>
    %435 = vector.broadcast %431 : vector<1x32xf32> to vector<64x32xf32>
    %436 = arith.mulf %409, %435 : vector<64x32xf32>
    %437 = vector.broadcast %434 : vector<1x32xf32> to vector<64x32xf32>
    %438 = arith.addf %436, %437 : vector<64x32xf32>
    %cst_311 = arith.constant 0.000000e+00 : f32
    %439 = vector.broadcast %cst_311 : f32 to vector<64x32xf32>
    %440 = arith.maximumf %438, %439 : vector<64x32xf32>
    %c9_312 = arith.constant 9 : index
    %c0_313 = arith.constant 0 : index
    %441 = vector.load %arg27[%c9_312, %c0_313] : memref<82x32xf32, #tpu.memory_space<vmem>>, vector<64x32xf32>
    tpu.vector_store %arg27[%c9_312, %c0_313], %440 {strides = array<i32>} : memref<82x32xf32, #tpu.memory_space<vmem>>, vector<64x32xf32>,
    %cst_314 = arith.constant 0.000000e+00 : f32
    %442 = vector.broadcast %cst_314 : f32 to vector<64x96xf32>
    %c0_315 = arith.constant 0 : index
    %c0_316 = arith.constant 0 : index
    %443 = vector.load %arg27[%c0_315, %c0_316] : memref<82x32xf32, #tpu.memory_space<vmem>>, vector<64x32xf32>
    %c0_317 = arith.constant 0 : index
    %c0_318 = arith.constant 0 : index
    %444 = vector.load %arg2[%c0_317, %c0_318] : memref<64x9xf32, #tpu.memory_space<vmem>>, vector<64x1xf32>
    %cst_319 = arith.constant 0.000000e+00 : f32
    %445 = vector.broadcast %cst_319 : f32 to vector<64x1xf32>
    %446 = arith.cmpf ogt, %444, %445 : vector<64x1xf32>
    %cst_320 = arith.constant 0.000000e+00 : f32
    %447 = vector.shape_cast %446 : vector<64x1xi1> to vector<64x1xi1>
    %448 = vector.broadcast %447 : vector<64x1xi1> to vector<64x32xi1>
    %449 = vector.broadcast %cst_320 : f32 to vector<64x32xf32>
    %450 = arith.select %448, %443, %449 : vector<64x32xi1>, vector<64x32xf32>
    %451 = arith.truncf %450 : vector<64x32xf32> to vector<64x32xbf16>
    %c0_321 = arith.constant 0 : index
    %c0_322 = arith.constant 0 : index
    %c0_323 = arith.constant 0 : index
    %452 = vector.load %arg15[%c0_321, %c0_322, %c0_323] : memref<9x32x96xbf16, #tpu.memory_space<vmem>>, vector<1x32x96xbf16>
    %453 = vector.shape_cast %452 : vector<1x32x96xbf16> to vector<32x96xbf16>
    %cst_324 = arith.constant dense<0.000000e+00> : vector<64x96xf32>
    %454 = tpu.matmul %451, %453, %cst_324 {dimension_numbers = #tpu.dot_dimension_numbers<[1], [0], [0], [1], [0, 0, 1, 1], [], []>} : vector<64x32xbf16>, vector<32x96xbf16>, vector<64x96xf32> -> vector<64x96xf32>
    %455 = arith.addf %442, %454 : vector<64x96xf32>
    %c1_325 = arith.constant 1 : index
    %c0_326 = arith.constant 0 : index
    %456 = vector.load %arg27[%c1_325, %c0_326] : memref<82x32xf32, #tpu.memory_space<vmem>>, vector<64x32xf32>
    %c0_327 = arith.constant 0 : index
    %c1_328 = arith.constant 1 : index
    %457 = vector.load %arg2[%c0_327, %c1_328] : memref<64x9xf32, #tpu.memory_space<vmem>>, vector<64x1xf32>
    %cst_329 = arith.constant 0.000000e+00 : f32
    %458 = vector.broadcast %cst_329 : f32 to vector<64x1xf32>
    %459 = arith.cmpf ogt, %457, %458 : vector<64x1xf32>
    %cst_330 = arith.constant 0.000000e+00 : f32
    %460 = vector.shape_cast %459 : vector<64x1xi1> to vector<64x1xi1>
    %461 = vector.broadcast %460 : vector<64x1xi1> to vector<64x32xi1>
    %462 = vector.broadcast %cst_330 : f32 to vector<64x32xf32>
    %463 = arith.select %461, %456, %462 : vector<64x32xi1>, vector<64x32xf32>
    %464 = arith.truncf %463 : vector<64x32xf32> to vector<64x32xbf16>
    %c1_331 = arith.constant 1 : index
    %c0_332 = arith.constant 0 : index
    %c0_333 = arith.constant 0 : index
    %465 = vector.load %arg15[%c1_331, %c0_332, %c0_333] : memref<9x32x96xbf16, #tpu.memory_space<vmem>>, vector<1x32x96xbf16>
    %466 = vector.shape_cast %465 : vector<1x32x96xbf16> to vector<32x96xbf16>
    %cst_334 = arith.constant dense<0.000000e+00> : vector<64x96xf32>
    %467 = tpu.matmul %464, %466, %cst_334 {dimension_numbers = #tpu.dot_dimension_numbers<[1], [0], [0], [1], [0, 0, 1, 1], [], []>} : vector<64x32xbf16>, vector<32x96xbf16>, vector<64x96xf32> -> vector<64x96xf32>
    %468 = arith.addf %455, %467 : vector<64x96xf32>
    %c2_335 = arith.constant 2 : index
    %c0_336 = arith.constant 0 : index
    %469 = vector.load %arg27[%c2_335, %c0_336] : memref<82x32xf32, #tpu.memory_space<vmem>>, vector<64x32xf32>
    %c0_337 = arith.constant 0 : index
    %c2_338 = arith.constant 2 : index
    %470 = vector.load %arg2[%c0_337, %c2_338] : memref<64x9xf32, #tpu.memory_space<vmem>>, vector<64x1xf32>
    %cst_339 = arith.constant 0.000000e+00 : f32
    %471 = vector.broadcast %cst_339 : f32 to vector<64x1xf32>
    %472 = arith.cmpf ogt, %470, %471 : vector<64x1xf32>
    %cst_340 = arith.constant 0.000000e+00 : f32
    %473 = vector.shape_cast %472 : vector<64x1xi1> to vector<64x1xi1>
    %474 = vector.broadcast %473 : vector<64x1xi1> to vector<64x32xi1>
    %475 = vector.broadcast %cst_340 : f32 to vector<64x32xf32>
    %476 = arith.select %474, %469, %475 : vector<64x32xi1>, vector<64x32xf32>
    %477 = arith.truncf %476 : vector<64x32xf32> to vector<64x32xbf16>
    %c2_341 = arith.constant 2 : index
    %c0_342 = arith.constant 0 : index
    %c0_343 = arith.constant 0 : index
    %478 = vector.load %arg15[%c2_341, %c0_342, %c0_343] : memref<9x32x96xbf16, #tpu.memory_space<vmem>>, vector<1x32x96xbf16>
    %479 = vector.shape_cast %478 : vector<1x32x96xbf16> to vector<32x96xbf16>
    %cst_344 = arith.constant dense<0.000000e+00> : vector<64x96xf32>
    %480 = tpu.matmul %477, %479, %cst_344 {dimension_numbers = #tpu.dot_dimension_numbers<[1], [0], [0], [1], [0, 0, 1, 1], [], []>} : vector<64x32xbf16>, vector<32x96xbf16>, vector<64x96xf32> -> vector<64x96xf32>
    %481 = arith.addf %468, %480 : vector<64x96xf32>
    %c8_345 = arith.constant 8 : index
    %c0_346 = arith.constant 0 : index
    %482 = vector.load %arg27[%c8_345, %c0_346] : memref<82x32xf32, #tpu.memory_space<vmem>>, vector<64x32xf32>
    %c0_347 = arith.constant 0 : index
    %c3_348 = arith.constant 3 : index
    %483 = vector.load %arg2[%c0_347, %c3_348] : memref<64x9xf32, #tpu.memory_space<vmem>>, vector<64x1xf32>
    %cst_349 = arith.constant 0.000000e+00 : f32
    %484 = vector.broadcast %cst_349 : f32 to vector<64x1xf32>
    %485 = arith.cmpf ogt, %483, %484 : vector<64x1xf32>
    %cst_350 = arith.constant 0.000000e+00 : f32
    %486 = vector.shape_cast %485 : vector<64x1xi1> to vector<64x1xi1>
    %487 = vector.broadcast %486 : vector<64x1xi1> to vector<64x32xi1>
    %488 = vector.broadcast %cst_350 : f32 to vector<64x32xf32>
    %489 = arith.select %487, %482, %488 : vector<64x32xi1>, vector<64x32xf32>
    %490 = arith.truncf %489 : vector<64x32xf32> to vector<64x32xbf16>
    %c3_351 = arith.constant 3 : index
    %c0_352 = arith.constant 0 : index
    %c0_353 = arith.constant 0 : index
    %491 = vector.load %arg15[%c3_351, %c0_352, %c0_353] : memref<9x32x96xbf16, #tpu.memory_space<vmem>>, vector<1x32x96xbf16>
    %492 = vector.shape_cast %491 : vector<1x32x96xbf16> to vector<32x96xbf16>
    %cst_354 = arith.constant dense<0.000000e+00> : vector<64x96xf32>
    %493 = tpu.matmul %490, %492, %cst_354 {dimension_numbers = #tpu.dot_dimension_numbers<[1], [0], [0], [1], [0, 0, 1, 1], [], []>} : vector<64x32xbf16>, vector<32x96xbf16>, vector<64x96xf32> -> vector<64x96xf32>
    %494 = arith.addf %481, %493 : vector<64x96xf32>
    %495 = arith.truncf %440 : vector<64x32xf32> to vector<64x32xbf16>
    %c4_355 = arith.constant 4 : index
    %c0_356 = arith.constant 0 : index
    %c0_357 = arith.constant 0 : index
    %496 = vector.load %arg15[%c4_355, %c0_356, %c0_357] : memref<9x32x96xbf16, #tpu.memory_space<vmem>>, vector<1x32x96xbf16>
    %497 = vector.shape_cast %496 : vector<1x32x96xbf16> to vector<32x96xbf16>
    %cst_358 = arith.constant dense<0.000000e+00> : vector<64x96xf32>
    %498 = tpu.matmul %495, %497, %cst_358 {dimension_numbers = #tpu.dot_dimension_numbers<[1], [0], [0], [1], [0, 0, 1, 1], [], []>} : vector<64x32xbf16>, vector<32x96xbf16>, vector<64x96xf32> -> vector<64x96xf32>
    %499 = arith.addf %494, %498 : vector<64x96xf32>
    %c10_359 = arith.constant 10 : index
    %c0_360 = arith.constant 0 : index
    %500 = vector.load %arg27[%c10_359, %c0_360] : memref<82x32xf32, #tpu.memory_space<vmem>>, vector<64x32xf32>
    %c0_361 = arith.constant 0 : index
    %c5_362 = arith.constant 5 : index
    %501 = vector.load %arg2[%c0_361, %c5_362] : memref<64x9xf32, #tpu.memory_space<vmem>>, vector<64x1xf32>
    %cst_363 = arith.constant 0.000000e+00 : f32
    %502 = vector.broadcast %cst_363 : f32 to vector<64x1xf32>
    %503 = arith.cmpf ogt, %501, %502 : vector<64x1xf32>
    %cst_364 = arith.constant 0.000000e+00 : f32
    %504 = vector.shape_cast %503 : vector<64x1xi1> to vector<64x1xi1>
    %505 = vector.broadcast %504 : vector<64x1xi1> to vector<64x32xi1>
    %506 = vector.broadcast %cst_364 : f32 to vector<64x32xf32>
    %507 = arith.select %505, %500, %506 : vector<64x32xi1>, vector<64x32xf32>
    %508 = arith.truncf %507 : vector<64x32xf32> to vector<64x32xbf16>
    %c5_365 = arith.constant 5 : index
    %c0_366 = arith.constant 0 : index
    %c0_367 = arith.constant 0 : index
    %509 = vector.load %arg15[%c5_365, %c0_366, %c0_367] : memref<9x32x96xbf16, #tpu.memory_space<vmem>>, vector<1x32x96xbf16>
    %510 = vector.shape_cast %509 : vector<1x32x96xbf16> to vector<32x96xbf16>
    %cst_368 = arith.constant dense<0.000000e+00> : vector<64x96xf32>
    %511 = tpu.matmul %508, %510, %cst_368 {dimension_numbers = #tpu.dot_dimension_numbers<[1], [0], [0], [1], [0, 0, 1, 1], [], []>} : vector<64x32xbf16>, vector<32x96xbf16>, vector<64x96xf32> -> vector<64x96xf32>
    %512 = arith.addf %499, %511 : vector<64x96xf32>
    %c16_369 = arith.constant 16 : index
    %c0_370 = arith.constant 0 : index
    %513 = vector.load %arg27[%c16_369, %c0_370] : memref<82x32xf32, #tpu.memory_space<vmem>>, vector<64x32xf32>
    %c0_371 = arith.constant 0 : index
    %c6_372 = arith.constant 6 : index
    %514 = vector.load %arg2[%c0_371, %c6_372] : memref<64x9xf32, #tpu.memory_space<vmem>>, vector<64x1xf32>
    %cst_373 = arith.constant 0.000000e+00 : f32
    %515 = vector.broadcast %cst_373 : f32 to vector<64x1xf32>
    %516 = arith.cmpf ogt, %514, %515 : vector<64x1xf32>
    %cst_374 = arith.constant 0.000000e+00 : f32
    %517 = vector.shape_cast %516 : vector<64x1xi1> to vector<64x1xi1>
    %518 = vector.broadcast %517 : vector<64x1xi1> to vector<64x32xi1>
    %519 = vector.broadcast %cst_374 : f32 to vector<64x32xf32>
    %520 = arith.select %518, %513, %519 : vector<64x32xi1>, vector<64x32xf32>
    %521 = arith.truncf %520 : vector<64x32xf32> to vector<64x32xbf16>
    %c6_375 = arith.constant 6 : index
    %c0_376 = arith.constant 0 : index
    %c0_377 = arith.constant 0 : index
    %522 = vector.load %arg15[%c6_375, %c0_376, %c0_377] : memref<9x32x96xbf16, #tpu.memory_space<vmem>>, vector<1x32x96xbf16>
    %523 = vector.shape_cast %522 : vector<1x32x96xbf16> to vector<32x96xbf16>
    %cst_378 = arith.constant dense<0.000000e+00> : vector<64x96xf32>
    %524 = tpu.matmul %521, %523, %cst_378 {dimension_numbers = #tpu.dot_dimension_numbers<[1], [0], [0], [1], [0, 0, 1, 1], [], []>} : vector<64x32xbf16>, vector<32x96xbf16>, vector<64x96xf32> -> vector<64x96xf32>
    %525 = arith.addf %512, %524 : vector<64x96xf32>
    %c17_379 = arith.constant 17 : index
    %c0_380 = arith.constant 0 : index
    %526 = vector.load %arg27[%c17_379, %c0_380] : memref<82x32xf32, #tpu.memory_space<vmem>>, vector<64x32xf32>
    %c0_381 = arith.constant 0 : index
    %c7_382 = arith.constant 7 : index
    %527 = vector.load %arg2[%c0_381, %c7_382] : memref<64x9xf32, #tpu.memory_space<vmem>>, vector<64x1xf32>
    %cst_383 = arith.constant 0.000000e+00 : f32
    %528 = vector.broadcast %cst_383 : f32 to vector<64x1xf32>
    %529 = arith.cmpf ogt, %527, %528 : vector<64x1xf32>
    %cst_384 = arith.constant 0.000000e+00 : f32
    %530 = vector.shape_cast %529 : vector<64x1xi1> to vector<64x1xi1>
    %531 = vector.broadcast %530 : vector<64x1xi1> to vector<64x32xi1>
    %532 = vector.broadcast %cst_384 : f32 to vector<64x32xf32>
    %533 = arith.select %531, %526, %532 : vector<64x32xi1>, vector<64x32xf32>
    %534 = arith.truncf %533 : vector<64x32xf32> to vector<64x32xbf16>
    %c7_385 = arith.constant 7 : index
    %c0_386 = arith.constant 0 : index
    %c0_387 = arith.constant 0 : index
    %535 = vector.load %arg15[%c7_385, %c0_386, %c0_387] : memref<9x32x96xbf16, #tpu.memory_space<vmem>>, vector<1x32x96xbf16>
    %536 = vector.shape_cast %535 : vector<1x32x96xbf16> to vector<32x96xbf16>
    %cst_388 = arith.constant dense<0.000000e+00> : vector<64x96xf32>
    %537 = tpu.matmul %534, %536, %cst_388 {dimension_numbers = #tpu.dot_dimension_numbers<[1], [0], [0], [1], [0, 0, 1, 1], [], []>} : vector<64x32xbf16>, vector<32x96xbf16>, vector<64x96xf32> -> vector<64x96xf32>
    %538 = arith.addf %525, %537 : vector<64x96xf32>
    %c18_389 = arith.constant 18 : index
    %c0_390 = arith.constant 0 : index
    %539 = vector.load %arg27[%c18_389, %c0_390] : memref<82x32xf32, #tpu.memory_space<vmem>>, vector<64x32xf32>
    %c0_391 = arith.constant 0 : index
    %c8_392 = arith.constant 8 : index
    %540 = vector.load %arg2[%c0_391, %c8_392] : memref<64x9xf32, #tpu.memory_space<vmem>>, vector<64x1xf32>
    %cst_393 = arith.constant 0.000000e+00 : f32
    %541 = vector.broadcast %cst_393 : f32 to vector<64x1xf32>
    %542 = arith.cmpf ogt, %540, %541 : vector<64x1xf32>
    %cst_394 = arith.constant 0.000000e+00 : f32
    %543 = vector.shape_cast %542 : vector<64x1xi1> to vector<64x1xi1>
    %544 = vector.broadcast %543 : vector<64x1xi1> to vector<64x32xi1>
    %545 = vector.broadcast %cst_394 : f32 to vector<64x32xf32>
    %546 = arith.select %544, %539, %545 : vector<64x32xi1>, vector<64x32xf32>
    %547 = arith.truncf %546 : vector<64x32xf32> to vector<64x32xbf16>
    %c8_395 = arith.constant 8 : index
    %c0_396 = arith.constant 0 : index
    %c0_397 = arith.constant 0 : index
    %548 = vector.load %arg15[%c8_395, %c0_396, %c0_397] : memref<9x32x96xbf16, #tpu.memory_space<vmem>>, vector<1x32x96xbf16>
    %549 = vector.shape_cast %548 : vector<1x32x96xbf16> to vector<32x96xbf16>
    %cst_398 = arith.constant dense<0.000000e+00> : vector<64x96xf32>
    %550 = tpu.matmul %547, %549, %cst_398 {dimension_numbers = #tpu.dot_dimension_numbers<[1], [0], [0], [1], [0, 0, 1, 1], [], []>} : vector<64x32xbf16>, vector<32x96xbf16>, vector<64x96xf32> -> vector<64x96xf32>
    %551 = arith.addf %538, %550 : vector<64x96xf32>
    %c0_399 = arith.constant 0 : index
    %c0_400 = arith.constant 0 : index
    %552 = vector.load %arg16[%c0_399, %c0_400] : memref<1x96xf32, #tpu.memory_space<vmem>>, vector<1x96xf32>
    %553 = vector.broadcast %552 : vector<1x96xf32> to vector<64x96xf32>
    %554 = arith.addf %551, %553 : vector<64x96xf32>
    %cst_401 = arith.constant dense<0.000000e+00> : vector<96xf32>
    %555 = vector.multi_reduction <add>, %554, %cst_401 [0] : vector<64x96xf32> to vector<96xf32>
    %556 = vector.shape_cast %555 : vector<96xf32> to vector<1x96xf32>
    %cst_402 = arith.constant 1.562500e-02 : f32
    %557 = vector.broadcast %cst_402 : f32 to vector<1x96xf32>
    %558 = arith.mulf %556, %557 : vector<1x96xf32>
    %559 = arith.mulf %554, %554 : vector<64x96xf32>
    %cst_403 = arith.constant dense<0.000000e+00> : vector<96xf32>
    %560 = vector.multi_reduction <add>, %559, %cst_403 [0] : vector<64x96xf32> to vector<96xf32>
    %561 = vector.shape_cast %560 : vector<96xf32> to vector<1x96xf32>
    %cst_404 = arith.constant 1.562500e-02 : f32
    %562 = vector.broadcast %cst_404 : f32 to vector<1x96xf32>
    %563 = arith.mulf %561, %562 : vector<1x96xf32>
    %c0_405 = arith.constant 0 : index
    %c0_406 = arith.constant 0 : index
    %564 = vector.load %arg20[%c0_405, %c0_406] : memref<96x96xf32, #tpu.memory_space<vmem>>, vector<96x96xf32>
    %cst_407 = arith.constant dense<0.000000e+00> : vector<1x96xf32>
    %565 = tpu.matmul %558, %564, %cst_407 {dimension_numbers = #tpu.dot_dimension_numbers<[1], [0], [0], [1], [0, 0, 1, 1], [], []>} : vector<1x96xf32>, vector<96x96xf32>, vector<1x96xf32> -> vector<1x96xf32>
    %c0_408 = arith.constant 0 : index
    %c0_409 = arith.constant 0 : index
    %566 = vector.load %arg20[%c0_408, %c0_409] : memref<96x96xf32, #tpu.memory_space<vmem>>, vector<96x96xf32>
    %cst_410 = arith.constant dense<0.000000e+00> : vector<1x96xf32>
    %567 = tpu.matmul %563, %566, %cst_410 {dimension_numbers = #tpu.dot_dimension_numbers<[1], [0], [0], [1], [0, 0, 1, 1], [], []>} : vector<1x96xf32>, vector<96x96xf32>, vector<1x96xf32> -> vector<1x96xf32>
    %568 = arith.mulf %565, %565 : vector<1x96xf32>
    %569 = arith.subf %567, %568 : vector<1x96xf32>
    %cst_411 = arith.constant 0.000000e+00 : f32
    %570 = vector.broadcast %cst_411 : f32 to vector<1x96xf32>
    %571 = arith.maximumf %569, %570 : vector<1x96xf32>
    %c0_412 = arith.constant 0 : index
    %c0_413 = arith.constant 0 : index
    %572 = vector.load %arg17[%c0_412, %c0_413] : memref<1x96xf32, #tpu.memory_space<vmem>>, vector<1x96xf32>
    %cst_414 = arith.constant 9.99999997E-7 : f32
    %573 = vector.broadcast %cst_414 : f32 to vector<1x96xf32>
    %574 = arith.addf %571, %573 : vector<1x96xf32>
    %575 = math.rsqrt %574 : vector<1x96xf32>
    %576 = arith.mulf %572, %575 : vector<1x96xf32>
    %c0_415 = arith.constant 0 : index
    %c0_416 = arith.constant 0 : index
    %577 = vector.load %arg18[%c0_415, %c0_416] : memref<1x96xf32, #tpu.memory_space<vmem>>, vector<1x96xf32>
    %578 = arith.mulf %565, %576 : vector<1x96xf32>
    %579 = arith.subf %577, %578 : vector<1x96xf32>
    %580 = vector.broadcast %576 : vector<1x96xf32> to vector<64x96xf32>
    %581 = arith.mulf %554, %580 : vector<64x96xf32>
    %582 = vector.broadcast %579 : vector<1x96xf32> to vector<64x96xf32>
    %583 = arith.addf %581, %582 : vector<64x96xf32>
    %cst_417 = arith.constant dense<0.000000e+00> : vector<96xf32>
    %584 = vector.multi_reduction <add>, %583, %cst_417 [0] : vector<64x96xf32> to vector<96xf32>
    %585 = vector.shape_cast %584 : vector<96xf32> to vector<1x96xf32>
    %cst_418 = arith.constant 1.562500e-02 : f32
    %586 = vector.broadcast %cst_418 : f32 to vector<1x96xf32>
    %587 = arith.mulf %585, %586 : vector<1x96xf32>
    %c0_419 = arith.constant 0 : index
    %c0_420 = arith.constant 0 : index
    %588 = vector.load %arg21[%c0_419, %c0_420] : memref<96x6xf32, #tpu.memory_space<vmem>>, vector<96x6xf32>
    %cst_421 = arith.constant dense<0.000000e+00> : vector<1x6xf32>
    %589 = tpu.matmul %587, %588, %cst_421 {dimension_numbers = #tpu.dot_dimension_numbers<[1], [0], [0], [1], [0, 0, 1, 1], [], []>} : vector<1x96xf32>, vector<96x6xf32>, vector<1x6xf32> -> vector<1x6xf32>
    %cst_422 = arith.constant 0.000000e+00 : f32
    %590 = vector.broadcast %cst_422 : f32 to vector<1x6xf32>
    %591 = arith.maximumf %589, %590 : vector<1x6xf32>
    %c0_423 = arith.constant 0 : index
    %c0_424 = arith.constant 0 : index
    %592 = vector.load %arg22[%c0_423, %c0_424] : memref<6x6xf32, #tpu.memory_space<vmem>>, vector<6x6xf32>
    %cst_425 = arith.constant dense<0.000000e+00> : vector<1x6xf32>
    %593 = tpu.matmul %591, %592, %cst_425 {dimension_numbers = #tpu.dot_dimension_numbers<[1], [0], [0], [1], [0, 0, 1, 1], [], []>} : vector<1x6xf32>, vector<6x6xf32>, vector<1x6xf32> -> vector<1x6xf32>
    %cst_426 = arith.constant 0.000000e+00 : f32
    %594 = vector.broadcast %cst_426 : f32 to vector<1x6xf32>
    %595 = arith.maximumf %593, %594 : vector<1x6xf32>
    %c0_427 = arith.constant 0 : index
    %c0_428 = arith.constant 0 : index
    %596 = vector.load %arg23[%c0_427, %c0_428] : memref<6x6xf32, #tpu.memory_space<vmem>>, vector<6x6xf32>
    %cst_429 = arith.constant dense<0.000000e+00> : vector<1x6xf32>
    %597 = tpu.matmul %595, %596, %cst_429 {dimension_numbers = #tpu.dot_dimension_numbers<[1], [0], [0], [1], [0, 0, 1, 1], [], []>} : vector<1x6xf32>, vector<6x6xf32>, vector<1x6xf32> -> vector<1x6xf32>
    %cst_430 = arith.constant 0.000000e+00 : f32
    %598 = vector.broadcast %cst_430 : f32 to vector<1x6xf32>
    %599 = arith.maximumf %597, %598 : vector<1x6xf32>
    %c0_431 = arith.constant 0 : index
    %c0_432 = arith.constant 0 : index
    %600 = vector.load %arg24[%c0_431, %c0_432] : memref<6x96xf32, #tpu.memory_space<vmem>>, vector<6x96xf32>
    %cst_433 = arith.constant dense<0.000000e+00> : vector<1x96xf32>
    %601 = tpu.matmul %599, %600, %cst_433 {dimension_numbers = #tpu.dot_dimension_numbers<[1], [0], [0], [1], [0, 0, 1, 1], [], []>} : vector<1x6xf32>, vector<6x96xf32>, vector<1x96xf32> -> vector<1x96xf32>
    %602 = arith.negf %601 : vector<1x96xf32>
    %603 = math.exp %602 : vector<1x96xf32>
    %cst_434 = arith.constant 1.000000e+00 : f32
    %604 = vector.broadcast %cst_434 : f32 to vector<1x96xf32>
    %605 = arith.addf %604, %603 : vector<1x96xf32>
    %606 = arith.divf %604, %605 : vector<1x96xf32>
    %607 = vector.broadcast %606 : vector<1x96xf32> to vector<64x96xf32>
    %608 = arith.mulf %583, %607 : vector<64x96xf32>
    %609 = arith.mulf %583, %608 : vector<64x96xf32>
    %610 = arith.addf %609, %5 : vector<64x96xf32>
    %c0_435 = arith.constant 0 : index
    %c0_436 = arith.constant 0 : index
    %c0_437 = arith.constant 0 : index
    %611 = vector.load %arg25[%c0_435, %c0_436, %c0_437] : memref<1x64x96xf32, #tpu.memory_space<vmem>>, vector<1x64x96xf32>
    %612 = vector.shape_cast %611 : vector<1x64x96xf32> to vector<64x96xf32>
    %613 = vector.shape_cast %610 : vector<64x96xf32> to vector<1x64x96xf32>
    tpu.vector_store %arg25[%c0_435, %c0_436, %c0_437], %613 {strides = array<i32>} : memref<1x64x96xf32, #tpu.memory_space<vmem>>, vector<1x64x96xf32>,
    return
  }
  func.func @transform_0(%arg0: i32) -> (i32, i32, i32) {
    %c0_i32 = arith.constant 0 : i32
    %c0_i32_0 = arith.constant 0 : i32
    %c0_i32_1 = arith.constant 0 : i32
    return %arg0, %c0_i32, %c0_i32_0 : i32, i32, i32
  }
  func.func @transform_1(%arg0: i32) -> (i32, i32) {
    %c0_i32 = arith.constant 0 : i32
    %c0_i32_0 = arith.constant 0 : i32
    %c0_i32_1 = arith.constant 0 : i32
    return %c0_i32, %c0_i32_0 : i32, i32
  }
  func.func @transform_2(%arg0: i32) -> (i32, i32, i32) {
    %c0_i32 = arith.constant 0 : i32
    %c0_i32_0 = arith.constant 0 : i32
    %c0_i32_1 = arith.constant 0 : i32
    %c0_i32_2 = arith.constant 0 : i32
    return %c0_i32, %c0_i32_0, %c0_i32_1 : i32, i32, i32
  }
  func.func @transform_3(%arg0: i32) -> (i32, i32) {
    %c0_i32 = arith.constant 0 : i32
    %c0_i32_0 = arith.constant 0 : i32
    %c0_i32_1 = arith.constant 0 : i32
    return %c0_i32, %c0_i32_0 : i32, i32
  }
  func.func @transform_4(%arg0: i32) -> (i32, i32) {
    %c0_i32 = arith.constant 0 : i32
    %c0_i32_0 = arith.constant 0 : i32
    %c0_i32_1 = arith.constant 0 : i32
    return %c0_i32, %c0_i32_0 : i32, i32
  }
  func.func @transform_5(%arg0: i32) -> (i32, i32) {
    %c0_i32 = arith.constant 0 : i32
    %c0_i32_0 = arith.constant 0 : i32
    %c0_i32_1 = arith.constant 0 : i32
    return %c0_i32, %c0_i32_0 : i32, i32
  }
  func.func @transform_6(%arg0: i32) -> (i32, i32, i32) {
    %c0_i32 = arith.constant 0 : i32
    %c0_i32_0 = arith.constant 0 : i32
    %c0_i32_1 = arith.constant 0 : i32
    %c0_i32_2 = arith.constant 0 : i32
    return %c0_i32, %c0_i32_0, %c0_i32_1 : i32, i32, i32
  }
  func.func @transform_7(%arg0: i32) -> (i32, i32) {
    %c0_i32 = arith.constant 0 : i32
    %c0_i32_0 = arith.constant 0 : i32
    %c0_i32_1 = arith.constant 0 : i32
    return %c0_i32, %c0_i32_0 : i32, i32
  }
  func.func @transform_8(%arg0: i32) -> (i32, i32) {
    %c0_i32 = arith.constant 0 : i32
    %c0_i32_0 = arith.constant 0 : i32
    %c0_i32_1 = arith.constant 0 : i32
    return %c0_i32, %c0_i32_0 : i32, i32
  }
  func.func @transform_9(%arg0: i32) -> (i32, i32) {
    %c0_i32 = arith.constant 0 : i32
    %c0_i32_0 = arith.constant 0 : i32
    %c0_i32_1 = arith.constant 0 : i32
    return %c0_i32, %c0_i32_0 : i32, i32
  }
  func.func @transform_10(%arg0: i32) -> (i32, i32, i32) {
    %c0_i32 = arith.constant 0 : i32
    %c0_i32_0 = arith.constant 0 : i32
    %c0_i32_1 = arith.constant 0 : i32
    %c0_i32_2 = arith.constant 0 : i32
    return %c0_i32, %c0_i32_0, %c0_i32_1 : i32, i32, i32
  }
  func.func @transform_11(%arg0: i32) -> (i32, i32) {
    %c0_i32 = arith.constant 0 : i32
    %c0_i32_0 = arith.constant 0 : i32
    %c0_i32_1 = arith.constant 0 : i32
    return %c0_i32, %c0_i32_0 : i32, i32
  }
  func.func @transform_12(%arg0: i32) -> (i32, i32) {
    %c0_i32 = arith.constant 0 : i32
    %c0_i32_0 = arith.constant 0 : i32
    %c0_i32_1 = arith.constant 0 : i32
    return %c0_i32, %c0_i32_0 : i32, i32
  }
  func.func @transform_13(%arg0: i32) -> (i32, i32) {
    %c0_i32 = arith.constant 0 : i32
    %c0_i32_0 = arith.constant 0 : i32
    %c0_i32_1 = arith.constant 0 : i32
    return %c0_i32, %c0_i32_0 : i32, i32
  }
  func.func @transform_14(%arg0: i32) -> (i32, i32, i32) {
    %c0_i32 = arith.constant 0 : i32
    %c0_i32_0 = arith.constant 0 : i32
    %c0_i32_1 = arith.constant 0 : i32
    %c0_i32_2 = arith.constant 0 : i32
    return %c0_i32, %c0_i32_0, %c0_i32_1 : i32, i32, i32
  }
  func.func @transform_15(%arg0: i32) -> (i32, i32) {
    %c0_i32 = arith.constant 0 : i32
    %c0_i32_0 = arith.constant 0 : i32
    %c0_i32_1 = arith.constant 0 : i32
    return %c0_i32, %c0_i32_0 : i32, i32
  }
  func.func @transform_16(%arg0: i32) -> (i32, i32) {
    %c0_i32 = arith.constant 0 : i32
    %c0_i32_0 = arith.constant 0 : i32
    %c0_i32_1 = arith.constant 0 : i32
    return %c0_i32, %c0_i32_0 : i32, i32
  }
  func.func @transform_17(%arg0: i32) -> (i32, i32) {
    %c0_i32 = arith.constant 0 : i32
    %c0_i32_0 = arith.constant 0 : i32
    %c0_i32_1 = arith.constant 0 : i32
    return %c0_i32, %c0_i32_0 : i32, i32
  }
  func.func @transform_18(%arg0: i32) -> (i32, i32) {
    %c0_i32 = arith.constant 0 : i32
    %c0_i32_0 = arith.constant 0 : i32
    %c0_i32_1 = arith.constant 0 : i32
    return %c0_i32, %c0_i32_0 : i32, i32
  }
  func.func @transform_19(%arg0: i32) -> (i32, i32) {
    %c0_i32 = arith.constant 0 : i32
    %c0_i32_0 = arith.constant 0 : i32
    %c0_i32_1 = arith.constant 0 : i32
    return %c0_i32, %c0_i32_0 : i32, i32
  }
  func.func @transform_20(%arg0: i32) -> (i32, i32) {
    %c0_i32 = arith.constant 0 : i32
    %c0_i32_0 = arith.constant 0 : i32
    %c0_i32_1 = arith.constant 0 : i32
    return %c0_i32, %c0_i32_0 : i32, i32
  }
  func.func @transform_21(%arg0: i32) -> (i32, i32) {
    %c0_i32 = arith.constant 0 : i32
    %c0_i32_0 = arith.constant 0 : i32
    %c0_i32_1 = arith.constant 0 : i32
    return %c0_i32, %c0_i32_0 : i32, i32
  }
  func.func @transform_22(%arg0: i32) -> (i32, i32) {
    %c0_i32 = arith.constant 0 : i32
    %c0_i32_0 = arith.constant 0 : i32
    %c0_i32_1 = arith.constant 0 : i32
    return %c0_i32, %c0_i32_0 : i32, i32
  }
  func.func @transform_23(%arg0: i32) -> (i32, i32) {
    %c0_i32 = arith.constant 0 : i32
    %c0_i32_0 = arith.constant 0 : i32
    %c0_i32_1 = arith.constant 0 : i32
    return %c0_i32, %c0_i32_0 : i32, i32
  }
  func.func @transform_24(%arg0: i32) -> (i32, i32, i32) {
    %c0_i32 = arith.constant 0 : i32
    %c0_i32_0 = arith.constant 0 : i32
    %c0_i32_1 = arith.constant 0 : i32
    return %arg0, %c0_i32, %c0_i32_0 : i32, i32, i32
  }
}

</mosaic_0001>

<bundles_post_ra>
// kernel: residual_forward.1
= control target key start
LH: loop header
LB: loop body
LE: loop exit
PB: predicated region body
PF: predicated region fallthrough
CT: control target
= control target key end

     0   :  { %s13394_s0 = inlined_call_operand.vmem [shape: f32[2,64,96], index: 0, kind: input, shape index: {}]   ;;  %s13395_s1 = inlined_call_operand.vmem [shape: f32[64,9], index: 1, kind: input, shape index: {}]   ;;  %s13396_s2 = inlined_call_operand.vmem [shape: bf16[9,96,32], index: 2, kind: input, shape index: {}]   ;;  %s13397_s3 = inlined_call_operand.vmem [shape: f32[1,32], index: 3, kind: input, shape index: {}]   ;;  %s13398_s4 = inlined_call_operand.vmem [shape: f32[1,32], index: 4, kind: input, shape index: {}]   ;;  %s13399_s5 = inlined_call_operand.vmem [shape: f32[1,32], index: 5, kind: input, shape index: {}]   ;;  %s13400_s6 = inlined_call_operand.vmem [shape: bf16[9,32,32], index: 6, kind: input, shape index: {}]   ;;  %s13401_s7 = inlined_call_operand.vmem [shape: f32[1,32], index: 7, kind: input, shape index: {}]   ;;  %s13402_s8 = inlined_call_operand.vmem [shape: f32[1,32], index: 8, kind: input, shape index: {}]   ;;  %s13403_s9 = inlined_call_operand.vmem [shape: f32[1,32], index: 9, kind: input, shape index: {}]   ;;  %s13404_s10 = inlined_call_operand.vmem [shape: bf16[9,32,32], index: 10, kind: input, shape index: {}]   ;;  %s13405_s11 = inlined_call_operand.vmem [shape: f32[1,32], index: 11, kind: input, shape index: {}]   ;;  %s13406_s12 = inlined_call_operand.vmem [shape: f32[1,32], index: 12, kind: input, shape index: {}]   ;;  %s13407_s13 = inlined_call_operand.vmem [shape: f32[1,32], index: 13, kind: input, shape index: {}]   ;;  %s13408_s14 = inlined_call_operand.vmem [shape: bf16[9,32,96], index: 14, kind: input, shape index: {}]   ;;  %s13409_s15 = inlined_call_operand.vmem [shape: f32[1,96], index: 15, kind: input, shape index: {}]   ;;  %s13410_s16 = inlined_call_operand.vmem [shape: f32[1,96], index: 16, kind: input, shape index: {}]   ;;  %s13411_s17 = inlined_call_operand.vmem [shape: f32[1,96], index: 17, kind: input, shape index: {}]   ;;  %s13412_s18 = inlined_call_operand.vmem [shape: f32[32,32], index: 18, kind: input, shape index: {}]   ;;  %s13413_s19 = inlined_call_operand.vmem [shape: f32[96,96], index: 19, kind: input, shape index: {}]   ;;  %s13414_s20 = inlined_call_operand.vmem [shape: f32[96,6], index: 20, kind: input, shape index: {}]   ;;  %s13415_s21 = inlined_call_operand.vmem [shape: f32[6,6], index: 21, kind: input, shape index: {}]   ;;  %s13416_s22 = inlined_call_operand.vmem [shape: f32[6,6], index: 22, kind: input, shape index: {}]   ;;  %s13417_s23 = inlined_call_operand.vmem [shape: f32[6,96], index: 23, kind: input, shape index: {}]   ;;  %s13418_s24 = inlined_call_operand.hbm [shape: f32[2,64,96], index: 24, kind: output, shape index: {}]  }
   0x1   :  { %13526 = sst [smem:[#allocation33_spill]] %s13394_s0 }
   0x2   :  { %13527 = sst [smem:[#allocation34_spill]] %s13395_s1 }
   0x3   :  { %13528 = sst [smem:[#allocation35_spill]] %s13396_s2 }
   0x4   :  { %13529 = sst [smem:[#allocation36_spill]] %s13397_s3 }
   0x5   :  { %13530 = sst [smem:[#allocation37_spill]] %s13398_s4 }
   0x6   :  { %13531 = sst [smem:[#allocation38_spill]] %s13399_s5 }
   0x7   :  { %13532 = sst [smem:[#allocation39_spill]] %s13400_s6 }
   0x8   :  { %13533 = sst [smem:[#allocation40_spill]] %s13401_s7 }
   0x9   :  { %13534 = sst [smem:[#allocation41_spill]] %s13402_s8 }
   0xa   :  { %29 = vsyncpa [#allocation5], 0 }
   0xb   :  { %31 = vsyncpa [#allocation5 + $0x1], 0  ;;  %s9914_s5 = smov 0   ;;  %s9916_s26 = smov 0  }
   0xc   :  { %s9918_s27 = smov 0   ;;  %s9920_s28 = smov 0  }
   0xd LB: > { %13535 = sst [smem:[#allocation7_spill]] %s9762_s5  ;;  %s9935_s6 = sadd.s32 4294967295, %s9774_s28   ;;  %s9774_s28 = sphi %s9920_s28, %s13705_s28   ;;  %s9770_s27 = sphi %s9918_s27, %s13707_s27   ;;  %s9766_s26 = sphi %s9916_s26, %s13709_s26   ;;  %s9762_s5 = sphi %s9914_s5, %s13708_s5  }
   0xe   : > { %13536 = sst [smem:[#allocation8_spill]] %s9770_s27  ;;  %s7984_s2 = sadd.s32 4294967294, %s9774_s28  }
   0xf   : > { %13537 = sst [smem:[#allocation9_spill]] %s9774_s28  ;;  %s9939_s29 = sadd.s32 1, %s9774_s28  }
  0x10   : > { %13538 = sst [smem:[#allocation10_spill]] %s9939_s29  ;;  %s553_s0 = sadd.s32 1, %s9770_s27 }
  0x11   : > { %s550_s7 = ssub.s32 %s9774_s28, %s9939_s29  ;;  %p563_p0 = scmp.ne.s32.totalorder %s9770_s27, %s9766_s26 }
  0x12   : > { %p551_p1 = scmp.eq.s32.totalorder %s550_s7, 0  ;;  %p564_p2 = scmp.eq.s32.totalorder %s9935_s6, 1 }
  0x13   : > { %p569_p3 = scmp.ne.s32.totalorder %s9766_s26, %s9762_s5  ;;  %p570_p4 = scmp.eq.s32.totalorder %s7984_s2, 1 }
  0x14   : > { %s9950_s30 = scalar_select %p551_p1, %s9770_s27, %s553_s0  }
  0x15   : > { %p9952_p5 = por %p564_p2, %p563_p0  ;;  %p9956_p6 = por %p570_p4, %p569_p3 }
  0x16   : > { %13539 = sst [smem:[#allocation11_spill]] %s9950_s30  ;;  %p7987_p7 = scmp.ge.s32.totalorder %s9774_s28, 1 }
  0x17   : > { %s13541_s25 = scalar_select %p9956_p6, 1, 0 }
  0x18   : > { %p665_p8 = scmp.lt.s32.totalorder %s9774_s28, 3 }
  0x19   : > { %13542 = sst [smem:[#allocation12_spill]] %s13541_s25 }
  0x1a   : > { %p666_p9 = pnand %p7987_p7, %p665_p8 }
  0x1c   : > { %669 = sbr.rel (%p666_p9) target bundleno = 3270 (0xcc6), region = 116 }
  0x21   : > { %s13543_s1 = sld [smem:[#allocation34_spill]]  ;;  %v13432_v3 = vmov 1   ;;  %v13428_v7 = vmov 0   ;;  %p731_p10 = scmp.lt.s32.totalorder %s9935_s6, 1  ;;  %vm737_vm8 = vcmask 785408   ;;  %v13430_v19 = vmov 0.0  }
  0x22   : > { %9507 = vset.pattern.permute.xlu1 %v13432_v3  ;;  %9506 = vset.pattern.permute.xlu0 %v13432_v3  ;;  %s13544_s7 = sld [smem:[#allocation35_spill]]  ;;  %740 = vst.msk [vmem:[#allocation2 + $0x10] sm:$0xff] %vm737_vm8, %v13430_v19  ;;  %741 = vst.msk [vmem:[#allocation2 + $0x18] sm:$0xff] %vm737_vm8, %v13430_v19  ;;  %v13434_v39 = vmov 2   ;;  %v13446_v41 = vmov 3   ;;  %v13440_v43 = vmov 5  }
  0x23   : > { %738 = vst.msk [vmem:[#allocation2] sm:$0xff] %vm737_vm8, %v13430_v19  ;;  %739 = vst.msk [vmem:[#allocation2 + $0x8] sm:$0xff] %vm737_vm8, %v13430_v19  ;;  %s732_s29 = scalar_select %p731_p10, %s9935_s6, 1  ;;  %v13442_v44 = vmov 6   ;;  %v13438_v45 = vmov 7   ;;  %v13436_v46 = vmov 8  }
  0x24   : > { %742 = vst.msk [vmem:[#allocation2 + $0x20] sm:$0xff] %vm737_vm8, %v13430_v19  ;;  %743 = vst.msk [vmem:[#allocation2 + $0x28] sm:$0xff] %vm737_vm8, %v13430_v19  ;;  %s13545_s5 = sld [smem:[#allocation33_spill]]  ;;  %s8461_s2 = sshll.u32 %s9935_s6, 10 }
  0x25   : > { %744 = vst.msk [vmem:[#allocation2 + $0x30] sm:$0xff] %vm737_vm8, %v13430_v19  ;;  %745 = vst.msk [vmem:[#allocation2 + $0x38] sm:$0xff] %vm737_vm8, %v13430_v19  ;;  %s8460_s0 = sshll.u32 %s732_s29, 6  ;;  %s13569_s25 = sld [smem:[#allocation36_spill]] }
  0x26   : > { %746 = vst.msk [vmem:[#allocation2 + $0x40] sm:$0xff] %vm737_vm8, %v13430_v19  ;;  %747 = vst.msk [vmem:[#allocation2 + $0x48] sm:$0xff] %vm737_vm8, %v13430_v19  ;;  %s13585_s27 = sld [smem:[#allocation39_spill]] }
  0x27   : > { %v789_v0 = vld [vmem:[%s13543_s1 + $0x10] sm:$0xff]  ;;  %v787_v1 = vld [vmem:[%s13543_s1] sm:$0xff]  ;;  %v790_v2 = vld [vmem:[%s13543_s1 + $0x18] sm:$0xff]  ;;  %s13587_s29 = sld [smem:[#allocation37_spill]] }
  0x28   : > { %vm797_vm0 = vcmp.gt.f32.partialorder %v789_v0, 0.0  ;;  %vm795_vm1 = vcmp.gt.f32.partialorder %v787_v1, 0.0  ;;  %vm798_vm2 = vcmp.gt.f32.partialorder %v790_v2, 0.0  ;;  %v788_v4 = vld [vmem:[%s13543_s1 + $0x8] sm:$0xff]  ;;  %v791_v6 = vld [vmem:[%s13543_s1 + $0x20] sm:$0xff]  ;;  %v794_v10 = vld [vmem:[%s13543_s1 + $0x38] sm:$0xff] }
  0x29   : > { %v792_v5 = vld [vmem:[%s13543_s1 + $0x28] sm:$0xff]  ;;  %v9983_v8 = vsel %vm797_vm0, 1, %v13428_v7  ;;  %v9986_v9 = vsel %vm795_vm1, 1, %v13428_v7  ;;  %vm796_vm3 = vcmp.gt.f32.partialorder %v788_v4, 0.0  ;;  %v9994_v11 = vsel %vm798_vm2, 1, %v13428_v7  ;;  %v793_v13 = vld [vmem:[%s13543_s1 + $0x30] sm:$0xff] }
  0x2a   : > { %882 = vperm.xlu1 %9507, %v9983_v8   ;;  %876 = vperm.xlu0 %9506, %v9986_v9   ;;  %v9997_v12 = vsel %vm796_vm3, 1, %v13428_v7  ;;  %vm800_vm4 = vcmp.gt.f32.partialorder %v792_v5, 0.0  ;;  %vm799_vm5 = vcmp.gt.f32.partialorder %v791_v6, 0.0  ;;  %vm802_vm6 = vcmp.gt.f32.partialorder %v794_v10, 0.0  ;;  %v9594_v14 = vld [vmem:[%s13544_s7 + $0x58] sm:$0xff]   ;;  %v9595_v15 = vld [vmem:[%s13544_s7 + $0x50] sm:$0xff]   ;;  %s10065_s28 = scalar_lea.vmem %s13545_s5, %s8460_s0 }
  0x2b   : > { %v10011_v16 = vsel %vm800_vm4, 1, %v13428_v7  ;;  %v10014_v17 = vsel %vm799_vm5, 1, %v13428_v7  ;;  %vm801_vm7 = vcmp.gt.f32.partialorder %v793_v13, 0.0  ;;  %8789 = vmatprep.subr.bf16.mxu0 %v9594_v14  ;;  %v9596_v18 = vld [vmem:[%s13544_s7 + $0x48] sm:$0xff]   ;;  %v10050_v21 = vsel %vm802_vm6, 1, %v13428_v7  ;;  %v9597_v23 = vld [vmem:[%s13544_s7 + $0x40] sm:$0xff]  }
  0x2c   : > { %8790 = vmatpush3.bf16.msra.mxu0 %v9594_v14  ;;  %v9599_v20 = vld [vmem:[%s13544_s7 + $0x28] sm:$0xff]   ;;  %v10054_v22 = vsel %vm801_vm7, 1, %v13428_v7  ;;  %v9601_v24 = vld [vmem:[%s13544_s7 + $0x20] sm:$0xff]   ;;  %v9602_v25 = vld [vmem:[%s13544_s7 + $0x18] sm:$0xff]   ;;  %vm748_vm1 = vcmask 779264   ;;  %s13586_s8 = smov %s13585_s27  ;;  %s13589_s30 = sld [smem:[#allocation38_spill]] }
  0x2d   : > { %8791 = vmatprep.subr.bf16.mxu0 %v9595_v15  ;;  %8809 = vmatprep.subr.bf16.mxu1 %v9599_v20  ;;  %v10071_v26 = vld [vmem:[%s10065_s28 + $0x8] sm:$0xff]  ;;  %v10074_v27 = vld [vmem:[%s10065_s28 + $0x10] sm:$0xff]  ;;  %v10077_v28 = vld [vmem:[%s10065_s28 + $0x20] sm:$0xff]  ;;  %749 = vst.msk [vmem:[#allocation2 + $0x50] sm:$0x3] %vm748_vm1, %v13430_v19 }
  0x2e   : > { %885 = vperm.xlu1 %9507, %v9994_v11   ;;  %879 = vperm.xlu0 %9506, %v9997_v12   ;;  %13546 = vst [vmem:[#allocation13_spill] sm:$0xff] %v10071_v26  ;;  %13547 = vst [vmem:[#allocation14_spill] sm:$0xff] %v10074_v27  ;;  %v10088_v29 = vld [vmem:[%s10065_s28 + $0x18] sm:$0xff]  ;;  %v10091_v30 = vld [vmem:[%s10065_s28] sm:$0xff] }
  0x2f   : > { %8810 = vmatpush3.bf16.msra.mxu1 %v9599_v20  ;;  %13548 = vst [vmem:[#allocation15_spill] sm:$0xff] %v10077_v28  ;;  %772 = vst.msk [vmem:[#allocation2 + $0x11] sm:$0xff] %vm737_vm8, %v10071_v26  ;;  %v10094_v31 = vld [vmem:[%s10065_s28 + $0x30] sm:$0xff]  ;;  %v10103_v32 = vld [vmem:[%s10065_s28 + $0x28] sm:$0xff] }
  0x30   : > { %8792 = vmatpush3.bf16.msra.mxu0 %v9595_v15  ;;  %8811 = vmatprep.subr.bf16.mxu1 %v9601_v24  ;;  %773 = vst.msk [vmem:[#allocation2 + $0x19] sm:$0xff] %vm737_vm8, %v10074_v27  ;;  %775 = vst.msk [vmem:[#allocation2 + $0x29] sm:$0xff] %vm737_vm8, %v10077_v28  ;;  %v9598_v33 = vld [vmem:[%s13544_s7 + $0x38] sm:$0xff]   ;;  %v9603_v34 = vld [vmem:[%s13544_s7 + $0x10] sm:$0xff]  }
  0x31   : > { %8793 = vmatprep.subr.bf16.mxu0 %v9596_v18  ;;  %13549 = vst [vmem:[#allocation16_spill] sm:$0xff] %v10088_v29  ;;  %13550 = vst [vmem:[#allocation17_spill] sm:$0xff] %v10091_v30  ;;  %v9600_v35 = vld [vmem:[%s13544_s7 + $0x30] sm:$0xff]   ;;  %v9605_v36 = vld [vmem:[%s13544_s7 + $0x8] sm:$0xff]  }
  0x32   : > { %891 = vperm.xlu1 %9507, %v10011_v16   ;;  %888 = vperm.xlu0 %9506, %v10014_v17   ;;  %13551 = vst [vmem:[#allocation18_spill] sm:$0xff] %v10094_v31  ;;  %774 = vst.msk [vmem:[#allocation2 + $0x21] sm:$0xff] %vm737_vm8, %v10088_v29  ;;  %v10128_v37 = vld [vmem:[%s13544_s7 + $0x88] sm:$0xff]   ;;  %v9607_v38 = vld [vmem:[%s13544_s7] sm:$0xff]  }
  0x33   : > { %771 = vst.msk [vmem:[#allocation2 + $0x9] sm:$0xff] %vm737_vm8, %v10091_v30  ;;  %777 = vst.msk [vmem:[#allocation2 + $0x39] sm:$0xff] %vm737_vm8, %v10094_v31  ;;  %8812 = vmatpush3.bf16.msra.mxu1 %v9601_v24  ;;  %v10147_v40 = vld [vmem:[%s13544_s7 + $0xb8] sm:$0xff]   ;;  %v867_v49 = vld [vmem:[#allocation2 + $0x1] sm:$0xff] }
  0x34   : > { %13552 = vst [vmem:[#allocation19_spill] sm:$0xff] %v10103_v32  ;;  %8794 = vmatpush3.bf16.msra.mxu0 %v9596_v18  ;;  %776 = vst.msk [vmem:[#allocation2 + $0x31] sm:$0xff] %vm737_vm8, %v10103_v32  ;;  %8813 = vmatprep.subr.bf16.mxu1 %v9602_v25  ;;  %v10155_v42 = vld [vmem:[%s10065_s28 + $0x38] sm:$0xff]  ;;  %v9606_v1 = vld [vmem:[%s13544_s7 + $0x80] sm:$0xff]   ;;  %s13629_s28 = sld [smem:[#allocation41_spill]] }
  0x35   : > { %8795 = vmatprep.subr.bf16.mxu0 %v9597_v23  ;;  %13553 = vst [vmem:[#allocation20_spill] sm:$0xff] %v10155_v42  ;;  %778 = vst.msk [vmem:[#allocation2 + $0x41] sm:$0xff] %vm737_vm8, %v10155_v42  ;;  %v9608_v13 = vld [vmem:[%s13544_s7 + $0x78] sm:$0xff]  }
  0x36   : > { %897 = vperm.xlu1 %9507, %v10050_v21   ;;  %894 = vperm.xlu0 %9506, %v10054_v22   ;;  %v10204_v50 = vld [vmem:[#allocation2 + $0x11] sm:$0xff] }
  0x37   : > { %8814 = vmatpush3.bf16.msra.mxu1 %v9602_v25  ;;  %v10207_v51 = vld [vmem:[#allocation2 + $0x19] sm:$0xff]  ;;  %v10212_v60 = vld [vmem:[#allocation2 + $0x29] sm:$0xff] }
  0x38   : > { %8796 = vmatpush3.bf16.msra.mxu0 %v9597_v23  ;;  %8815 = vmatprep.subr.bf16.mxu1 %v9603_v34  ;;  %v9609_v23 = vld [vmem:[%s13544_s7 + $0x70] sm:$0xff]  }
  0x39   : > { %8797 = vmatprep.subr.bf16.mxu0 %v9598_v33  ;;  %v10214_v61 = vld [vmem:[#allocation2 + $0x21] sm:$0xff] }
  0x3a   : > { %9509 = vset.pattern.permute.xlu1 %v13428_v7  ;;  %9508 = vset.pattern.permute.xlu0 %v13428_v7  ;;  %v868_v52 = vld [vmem:[#allocation2 + $0x9] sm:$0xff]  ;;  %v10224_v6 = vld [vmem:[#allocation2 + $0x39] sm:$0xff] }
  0x3b   : > { %815 = vperm.xlu1 %9509, %v9997_v12   ;;  %812 = vperm.xlu0 %9508, %v9986_v9   ;;  %v10237_v20 = vld [vmem:[#allocation2 + $0x8] sm:$0xff] }
  0x3c   : > { %8798 = vmatpush3.bf16.msra.mxu0 %v9598_v33  ;;  %8816 = vmatpush3.bf16.msra.mxu1 %v9603_v34 }
  0x3d   : > { %8799 = vmatprep.subr.bf16.mxu0 %v9600_v35  ;;  %8817 = vmatprep.subr.bf16.mxu1 %v9605_v36 }
  0x3f   : > { %818 = vperm.xlu1 %9509, %v9983_v8   ;;  %821 = vperm.xlu0 %9508, %v9994_v11  }
  0x40   : > { %8800 = vmatpush3.bf16.msra.mxu0 %v9600_v35  ;;  %8818 = vmatpush3.bf16.msra.mxu1 %v9605_v36  ;;  %v10248_v35 = vld [vmem:[#allocation2 + $0x18] sm:$0xff] }
  0x41   : > { %8829 = vmatprep.subr.bf16.mxu0 %v10128_v37  ;;  %8819 = vmatprep.subr.bf16.mxu1 %v9607_v38 }
  0x43   : > { %9510 = vset.pattern.permute.xlu1 %v13434_v39  ;;  %824 = vperm.xlu0 %9508, %v10014_v17  }
  0x44   : > { %1167 = vperm.xlu1 %9510, %v9986_v9   ;;  %8820 = vmatpush3.bf16.msra.mxu1 %v9607_v38 }
  0x45   : > { %8849 = vmatprep.subr.bf16.mxu1 %v10147_v40 }
  0x47   : > { %833 = vperm.xlu0 %9508, %v10050_v21  }
  0x48   : > { %1173 = vperm.xlu1 %9510, %v9983_v8  }
  0x4b   : > { %9512 = vset.pattern.permute.xlu0 %v13434_v39 }
  0x4c   : > { %1176 = vperm.xlu1 %9510, %v9994_v11   ;;  %1170 = vperm.xlu0 %9512, %v9997_v12  }
  0x50   : > { %9511 = vset.pattern.permute.xlu1 %v13428_v7  ;;  %1182 = vperm.xlu0 %9512, %v10011_v16  }
  0x51   : > { %827 = vperm.xlu1 %9511, %v10011_v16  }
  0x54   : > { %9514 = vset.pattern.permute.xlu0 %v13446_v41 }
  0x55   : > { %830 = vperm.xlu1 %9511, %v10054_v22   ;;  %1353 = vperm.xlu0 %9514, %v9986_v9  }
  0x59   : > { %9513 = vset.pattern.permute.xlu1 %v13434_v39  ;;  %1362 = vperm.xlu0 %9514, %v9994_v11  }
  0x5a   : > { %1179 = vperm.xlu1 %9513, %v10014_v17  }
  0x5d   : > { %1368 = vperm.xlu0 %9514, %v10011_v16  }
  0x5e   : > { %1185 = vperm.xlu1 %9513, %v10054_v22  }
  0x61   : > { %1374 = vperm.xlu0 %9514, %v10050_v21  }
  0x62   : > { %1188 = vperm.xlu1 %9513, %v10050_v21  }
  0x65   : > { %9517 = vset.pattern.permute.xlu0 %v13440_v43 }
  0x66   : > { %9515 = vset.pattern.permute.xlu1 %v13446_v41  ;;  %1680 = vperm.xlu0 %9517, %v9997_v12  }
  0x67   : > { %1356 = vperm.xlu1 %9515, %v9997_v12  }
  0x6a   : > { %1692 = vperm.xlu0 %9517, %v10011_v16  }
  0x6b   : > { %1359 = vperm.xlu1 %9515, %v9983_v8  }
  0x6e   : > { %9520 = vset.pattern.permute.xlu0 %v13442_v44 }
  0x6f   : > { %1365 = vperm.xlu1 %9515, %v10014_v17   ;;  %1863 = vperm.xlu0 %9520, %v9986_v9  }
  0x73   : > { %1371 = vperm.xlu1 %9515, %v10054_v22   ;;  %1872 = vperm.xlu0 %9520, %v9994_v11  }
  0x77   : > { %9516 = vset.pattern.permute.xlu1 %v13440_v43  ;;  %1875 = vperm.xlu0 %9520, %v10014_v17  }
  0x78   : > { %1677 = vperm.xlu1 %9516, %v9986_v9  }
  0x7b   : > { %1884 = vperm.xlu0 %9520, %v10050_v21  }
  0x7c   : > { %1683 = vperm.xlu1 %9516, %v9983_v8  }
  0x7f   : > { %9523 = vset.pattern.permute.xlu0 %v13438_v45 }
  0x80   : > { %1686 = vperm.xlu1 %9516, %v9994_v11   ;;  %2052 = vperm.xlu0 %9523, %v9997_v12  }
  0x84   : > { %9518 = vset.pattern.permute.xlu1 %v13442_v44  ;;  %2064 = vperm.xlu0 %9523, %v10011_v16  }
  0x85   : > { %1866 = vperm.xlu1 %9518, %v9997_v12  }
  0x88   : > { %9526 = vset.pattern.permute.xlu0 %v13436_v46 }
  0x89   : > { %1869 = vperm.xlu1 %9518, %v9983_v8   ;;  %2235 = vperm.xlu0 %9526, %v9986_v9  }
  0x8d   : > { %9519 = vset.pattern.permute.xlu1 %v13440_v43  ;;  %2244 = vperm.xlu0 %9526, %v9994_v11  }
  0x8e   : > { %1689 = vperm.xlu1 %9519, %v10014_v17  }
  0x91   : > { %2247 = vperm.xlu0 %9526, %v10014_v17  }
  0x92   : > { %1695 = vperm.xlu1 %9519, %v10054_v22  }
  0x95   : > { %2256 = vperm.xlu0 %9526, %v10050_v21  }
  0x96   : > { %1698 = vperm.xlu1 %9519, %v10050_v21  }
  0x99   : > { %9529 = vset.pattern.permute.xlu0 %v13432_v3 }
  0x9a   : > { %9521 = vset.pattern.permute.xlu1 %v13442_v44 }
  0x9b   : > { %1878 = vperm.xlu1 %9521, %v10011_v16  }
  0x9f   : > { %1881 = vperm.xlu1 %9521, %v10054_v22  }
  0xa3   : > { %9522 = vset.pattern.permute.xlu1 %v13438_v45 }
  0xa4   : > { %2049 = vperm.xlu1 %9522, %v9986_v9   ;;  %v10226_v9 = vld [vmem:[#allocation2 + $0x31] sm:$0xff] }
  0xa5   : > { %v883_v47 = vpop.permute.xlu1 %882  ;;  %v877_v48 = vpop.permute.xlu0 %876 }
  0xa6   : > { %vm899_vm9 = vcmp.eq.s32.totalorder %v877_v48, 1  ;;  %vm901_vm10 = vcmp.eq.s32.totalorder %v883_v47, 1 }
  0xa7   : > { %v907_v55 = vsel %vm899_vm9, %v867_v49, 0.0  ;;  %v909_v56 = vsel %vm901_vm10, %v10204_v50, 0.0 }
  0xa8   : > { %2055 = vperm.xlu1 %9522, %v9983_v8  }
  0xa9   : > { %v886_v53 = vpop.permute.xlu1 %885  ;;  %v880_v54 = vpop.permute.xlu0 %879 }
  0xaa   : > { %vm902_vm11 = vcmp.eq.s32.totalorder %v886_v53, 1  ;;  %vm900_vm12 = vcmp.eq.s32.totalorder %v880_v54, 1  ;;  %v9611_v53 = vld [vmem:[%s13544_s7 + $0x60] sm:$0xff]  }
  0xab   : > { %v910_v57 = vsel %vm902_vm11, %v10207_v51, 0.0  ;;  %v908_v58 = vsel %vm900_vm12, %v868_v52, 0.0 }
  0xac   : > { %v916_v59 = vpack.c.bf16 %v910_v57, %v909_v56  ;;  %2058 = vperm.xlu1 %9522, %v9994_v11   ;;  %v915_v62 = vpack.c.bf16 %v908_v58, %v907_v55  ;;  %v9613_v56 = vld [vmem:[%s13544_s7 + $0xe8] sm:$0xff]  }
  0xad   : > { %v892_v63 = vpop.permute.xlu1 %891  ;;  %v889_v0 = vpop.permute.xlu0 %888  ;;  %v9616_v57 = vld [vmem:[%s13544_s7 + $0xa8] sm:$0xff]  }
  0xae   : > { %vm904_vm13 = vcmp.eq.s32.totalorder %v892_v63, 1  ;;  %vm903_vm14 = vcmp.eq.s32.totalorder %v889_v0, 1  ;;  %8801 = vmatprep.mubr.msk.bf16.mxu0 %vm737_vm8, %v915_v62  ;;  %v1158_v62 = vld [vmem:[#allocation2 + $0x2] sm:$0xff]  ;;  %v10276_v63 = vld [vmem:[#allocation2 + $0x12] sm:$0xff]  ;;  %v10279_v0 = vld [vmem:[#allocation2 + $0x1a] sm:$0xff] }
  0xaf   : > { %v912_v2 = vsel %vm904_vm13, %v10212_v60, 0.0  ;;  %v911_v4 = vsel %vm903_vm14, %v10214_v61, 0.0  ;;  %8802 = vmatmul.mubr.msk.bf16.vlgmr.msra.gmra.mxu0 %vm737_vm8, %v916_v59 }
  0xb0   : > { %v917_v5 = vpack.c.bf16 %v912_v2, %v911_v4  ;;  %9524 = vset.pattern.permute.xlu1 %v13436_v46  ;;  %8830 = vmatpush3.bf16.msra.mxu0 %v10128_v37  ;;  %v9610_v37 = vld [vmem:[%s13544_s7 + $0x68] sm:$0xff]  }
  0xb1   : > { %v898_v10 = vpop.permute.xlu1 %897  ;;  %2238 = vperm.xlu1 %9524, %v9997_v12   ;;  %v895_v11 = vpop.permute.xlu0 %894  ;;  %8831 = vmatprep.subr.bf16.mxu0 %v9606_v1  ;;  %v779_v12 = vld [vmem:[#allocation2] sm:$0xff] }
  0xb2   : > { %vm906_vm15 = vcmp.eq.s32.totalorder %v898_v10, 1  ;;  %vm905_vm0 = vcmp.eq.s32.totalorder %v895_v11, 1  ;;  %8805 = vmatprep.mubr.msk.bf16.mxu0 %vm737_vm8, %v917_v5  ;;  %v10284_v5 = vld [vmem:[#allocation2 + $0x20] sm:$0xff] }
  0xb3   : > { %v914_v14 = vsel %vm906_vm15, %v10224_v6, 0.0  ;;  %v913_v15 = vsel %vm905_vm0, %v10226_v9, 0.0 }
  0xb4   : > { %v918_v18 = vpack.c.bf16 %v914_v14, %v913_v15  ;;  %8832 = vmatpush3.bf16.msra.mxu0 %v9606_v1 }
  0xb5   : > { %2241 = vperm.xlu1 %9524, %v9983_v8   ;;  %8833 = vmatprep.subr.bf16.mxu0 %v9608_v13  ;;  %v10246_v8 = vld [vmem:[#allocation2 + $0x10] sm:$0xff] }
  0xb6   : > { %v816_v24 = vpop.permute.xlu1 %815  ;;  %v813_v25 = vpop.permute.xlu0 %812 }
  0xb7   : > { %vm836_vm2 = vcmp.eq.s32.totalorder %v816_v24, 1  ;;  %vm835_vm3 = vcmp.eq.s32.totalorder %v813_v25, 1  ;;  %8806 = vmatmul.mubr.msk.bf16.gmra.mxu0 %vm737_vm8, %v918_v18  ;;  %v10293_v18 = vld [vmem:[#allocation2 + $0x28] sm:$0xff]  ;;  %v10301_v25 = vld [vmem:[#allocation2 + $0x38] sm:$0xff] }
  0xb8   : > { %v843_v33 = vsel %vm835_vm3, %v779_v12, 0.0  ;;  %v844_v34 = vsel %vm836_vm2, %v10237_v20, 0.0  ;;  %8834 = vmatpush3.bf16.msra.mxu0 %v9608_v13  ;;  %v9615_v12 = vld [vmem:[%s13544_s7 + $0xe0] sm:$0xff]  }
  0xb9   : > { %9525 = vset.pattern.permute.xlu1 %v13438_v45  ;;  %v851_v36 = vpack.c.bf16 %v844_v34, %v843_v33  ;;  %8835 = vmatprep.subr.bf16.mxu0 %v9609_v23 }
  0xba   : > { %v819_v38 = vpop.permute.xlu1 %818  ;;  %2061 = vperm.xlu1 %9525, %v10014_v17   ;;  %v822_v47 = vpop.permute.xlu0 %821  ;;  %v9614_v17 = vld [vmem:[%s13544_s7 + $0xb0] sm:$0xff]  }
  0xbb   : > { %vm837_vm4 = vcmp.eq.s32.totalorder %v819_v38, 1  ;;  %vm838_vm5 = vcmp.eq.s32.totalorder %v822_v47, 1  ;;  %8821 = vmatprep.mubr.msk.bf16.mxu1 %vm737_vm8, %v851_v36  ;;  %v10308_v36 = vld [vmem:[#allocation2 + $0x30] sm:$0xff]  ;;  %v9617_v38 = vld [vmem:[%s13544_s7 + $0xd8] sm:$0xff]  }
  0xbc   : > { %v845_v48 = vsel %vm837_vm4, %v10246_v8, 0.0  ;;  %v846_v49 = vsel %vm838_vm5, %v10248_v35, 0.0  ;;  %8836 = vmatpush3.bf16.msra.mxu0 %v9609_v23 }
  0xbd   : > { %v852_v52 = vpack.c.bf16 %v846_v49, %v845_v48  ;;  %8837 = vmatprep.subr.bf16.mxu0 %v9610_v37  ;;  %v10319_v49 = vld [vmem:[%s13544_s7 + $0x118] sm:$0xff]  }
  0xbe   : > { %2067 = vperm.xlu1 %9525, %v10054_v22   ;;  %v825_v54 = vpop.permute.xlu0 %824 }
  0xbf   : > { %v1168_v55 = vpop.permute.xlu1 %1167  ;;  %8822 = vmatmul.mubr.msk.bf16.vlgmr.msra.gmra.mxu1 %vm737_vm8, %v852_v52  ;;  %vm839_vm9 = vcmp.eq.s32.totalorder %v825_v54, 1  ;;  %v9619_v54 = vld [vmem:[%s13544_s7 + $0xd0] sm:$0xff]  }
  0xc0   : > { %8838 = vmatpush3.bf16.msra.mxu0 %v9610_v37  ;;  %8850 = vmatpush3.bf16.msra.mxu1 %v10147_v40  ;;  %v9618_v40 = vld [vmem:[%s13544_s7 + $0xa0] sm:$0xff]   ;;  %vm1190_vm6 = vcmp.eq.s32.totalorder %v1168_v55, 1  ;;  %v847_v23 = vsel %vm839_vm9, %v10284_v5, 0.0 }
  0xc1   : > { %8839 = vmatprep.subr.bf16.mxu0 %v9611_v53  ;;  %8851 = vmatprep.subr.bf16.mxu1 %v9614_v17  ;;  %v1198_v4 = vsel %vm1190_vm6, %v1158_v62, 0.0  ;;  %v10327_v55 = vld [vmem:[#allocation2 + $0x22] sm:$0xff] }
  0xc2   : > { %2070 = vperm.xlu1 %9525, %v10050_v21   ;;  %v834_v58 = vpop.permute.xlu0 %833  ;;  %v10281_v21 = vld [vmem:[#allocation2 + $0xa] sm:$0xff] }
  0xc3   : > { %v1174_v59 = vpop.permute.xlu1 %1173  ;;  %vm842_vm12 = vcmp.eq.s32.totalorder %v834_v58, 1  ;;  %v9621_v62 = vld [vmem:[%s13544_s7 + $0xc8] sm:$0xff]  }
  0xc4   : > { %8840 = vmatpush3.bf16.msra.mxu0 %v9611_v53  ;;  %8852 = vmatpush3.bf16.msra.mxu1 %v9614_v17  ;;  %vm1192_vm7 = vcmp.eq.s32.totalorder %v1174_v59, 1  ;;  %v850_v47 = vsel %vm842_vm12, %v10301_v25, 0.0  ;;  %v10322_v53 = vld [vmem:[#allocation2 + $0x2a] sm:$0xff] }
  0xc5   : > { %8869 = vmatprep.subr.bf16.mxu0 %v9613_v56  ;;  %8853 = vmatprep.subr.bf16.mxu1 %v9616_v57  ;;  %v1200_v10 = vsel %vm1192_vm7, %v10276_v63, 0.0 }
  0xc6   : > { %9527 = vset.pattern.permute.xlu1 %v13436_v46 }
  0xc7   : > { %2250 = vperm.xlu1 %9527, %v10011_v16   ;;  %v1177_v1 = vpop.permute.xlu1 %1176  ;;  %v1171_v2 = vpop.permute.xlu0 %1170  ;;  %v9620_v16 = vld [vmem:[%s13544_s7 + $0x98] sm:$0xff]  }
  0xc8   : > { %vm1193_vm10 = vcmp.eq.s32.totalorder %v1177_v1, 1  ;;  %vm1191_vm11 = vcmp.eq.s32.totalorder %v1171_v2, 1  ;;  %8854 = vmatpush3.bf16.msra.mxu1 %v9616_v57 }
  0xc9   : > { %v1201_v11 = vsel %vm1193_vm10, %v10279_v0, 0.0  ;;  %v1199_v13 = vsel %vm1191_vm11, %v10281_v21, 0.0  ;;  %8855 = vmatprep.subr.bf16.mxu1 %v9618_v40 }
  0xca   : > { %v1207_v14 = vpack.c.bf16 %v1201_v11, %v1200_v10  ;;  %v1206_v15 = vpack.c.bf16 %v1199_v13, %v1198_v4  ;;  %v9623_v4 = vld [vmem:[%s13544_s7 + $0xc0] sm:$0xff]   ;;  %v10340_v10 = vld [vmem:[#allocation2 + $0x32] sm:$0xff] }
  0xcb   : > { %2253 = vperm.xlu1 %9527, %v10054_v22   ;;  %v9622_v22 = vld [vmem:[%s13544_s7 + $0x90] sm:$0xff]   ;;  %v1183_v37 = vpop.permute.xlu0 %1182  ;;  %v10342_v11 = vld [vmem:[#allocation2 + $0x3a] sm:$0xff] }
  0xcc   : > { %v828_v24 = vpop.permute.xlu1 %827  ;;  %8841 = vmatprep.mubr.msk.bf16.mxu0 %vm737_vm8, %v1206_v15  ;;  %8856 = vmatpush3.bf16.msra.mxu1 %v9618_v40  ;;  %vm1195_vm15 = vcmp.eq.s32.totalorder %v1183_v37, 1  ;;  %v1530_v15 = vpack.c.bf16 %v10071_v26, %v10091_v30 }
  0xcd   : > { %vm840_vm13 = vcmp.eq.s32.totalorder %v828_v24, 1  ;;  %8842 = vmatmul.mubr.msk.bf16.vlgmr.msra.gmra.mxu0 %vm737_vm8, %v1207_v14  ;;  %8857 = vmatprep.subr.bf16.mxu1 %v9620_v16  ;;  %v1203_v57 = vsel %vm1195_vm15, %v10322_v53, 0.0 }
  0xce   : > { %v848_v33 = vsel %vm840_vm13, %v10293_v18, 0.0  ;;  %8870 = vmatpush3.bf16.msra.mxu0 %v9613_v56 }
  0xcf   : > { %v853_v34 = vpack.c.bf16 %v848_v33, %v847_v23  ;;  %8871 = vmatprep.subr.bf16.mxu0 %v9615_v12  ;;  %9528 = vset.pattern.permute.xlu1 %v13432_v3  ;;  %v9626_v23 = vld [vmem:[%s13544_s7 + $0x148] sm:$0xff]  }
  0xd0   : > { %v831_v48 = vpop.permute.xlu1 %830  ;;  %8858 = vmatpush3.bf16.msra.mxu1 %v9620_v16  ;;  %v1354_v58 = vpop.permute.xlu0 %1353 }
  0xd1   : > { %vm841_vm14 = vcmp.eq.s32.totalorder %v831_v48, 1  ;;  %8825 = vmatprep.mubr.msk.bf16.mxu1 %vm737_vm8, %v853_v34  ;;  %8859 = vmatprep.subr.bf16.mxu1 %v9622_v22  ;;  %vm1376_vm3 = vcmp.eq.s32.totalorder %v1354_v58, 1  ;;  %v1531_v48 = vpack.c.bf16 %v10088_v29, %v10074_v27  ;;  %v13562_v27 = vmov 5  }
  0xd2   : > { %v849_v52 = vsel %vm841_vm14, %v10308_v36, 0.0  ;;  %8872 = vmatpush3.bf16.msra.mxu0 %v9615_v12  ;;  %v1384_v33 = vsel %vm1376_vm3, %v10237_v20, 0.0 }
  0xd3   : > { %v854_v17 = vpack.c.bf16 %v850_v47, %v849_v52  ;;  %8873 = vmatprep.subr.bf16.mxu0 %v9617_v38 }
  0xd4   : > { %8860 = vmatpush3.bf16.msra.mxu1 %v9622_v22  ;;  %v1363_v2 = vpop.permute.xlu0 %1362 }
  0xd5   : > { %v1180_v56 = vpop.permute.xlu1 %1179  ;;  %8826 = vmatmul.mubr.msk.bf16.gmra.mxu1 %vm737_vm8, %v854_v17  ;;  %8889 = vmatprep.subr.bf16.mxu1 %v10319_v49  ;;  %vm1379_vm5 = vcmp.eq.s32.totalorder %v1363_v2, 1  ;;  %v1532_v17 = vpack.c.bf16 %v10103_v32, %v10077_v28 }
  0xd6   : > { %vm1194_vm0 = vcmp.eq.s32.totalorder %v1180_v56, 1  ;;  %8874 = vmatpush3.bf16.msra.mxu0 %v9617_v38  ;;  %v1387_v47 = vsel %vm1379_vm5, %v10284_v5, 0.0  ;;  %v9625_v56 = vld [vmem:[%s13544_s7 + $0x110] sm:$0xff]  }
  0xd7   : > { %v1202_v59 = vsel %vm1194_vm0, %v10327_v55, 0.0  ;;  %8875 = vmatprep.subr.bf16.mxu0 %v9619_v54 }
  0xd8   : > { %v1208_v40 = vpack.c.bf16 %v1203_v57, %v1202_v59  ;;  %v1369_v24 = vpop.permute.xlu0 %1368  ;;  %v9628_v57 = vld [vmem:[%s13544_s7 + $0x140] sm:$0xff]  }
  0xd9   : > { %v1186_v1 = vpop.permute.xlu1 %1185  ;;  %vm1381_vm7 = vcmp.eq.s32.totalorder %v1369_v24, 1  ;;  %v9629_v24 = vld [vmem:[%s13544_s7 + $0x100] sm:$0xff]  }
  0xda   : > { %8845 = vmatprep.mubr.msk.bf16.mxu0 %vm737_vm8, %v1208_v40  ;;  %8876 = vmatpush3.bf16.msra.mxu0 %v9619_v54  ;;  %vm1196_vm1 = vcmp.eq.s32.totalorder %v1186_v1, 1  ;;  %v1389_v59 = vsel %vm1381_vm7, %v10308_v36, 0.0  ;;  %v9630_v1 = vld [vmem:[%s13544_s7 + $0x138] sm:$0xff]  }
  0xdb   : > { %8877 = vmatprep.subr.bf16.mxu0 %v9621_v62  ;;  %v1204_v16 = vsel %vm1196_vm1, %v10340_v10, 0.0 }
  0xdc   : > { %v1375_v20 = vpop.permute.xlu0 %1374 }
  0xdd   : > { %v1189_v13 = vpop.permute.xlu1 %1188  ;;  %vm1383_vm10 = vcmp.eq.s32.totalorder %v1375_v20, 1 }
  0xde   : > { %vm1197_vm2 = vcmp.eq.s32.totalorder %v1189_v13, 1  ;;  %8878 = vmatpush3.bf16.msra.mxu0 %v9621_v62  ;;  %v10371_v62 = vld [vmem:[#allocation2 + $0x40] sm:$0xff] }
  0xdf   : > { %v1205_v14 = vsel %vm1197_vm2, %v10342_v11, 0.0  ;;  %8879 = vmatprep.subr.bf16.mxu0 %v9623_v4 }
  0xe0   : > { %v1209_v12 = vpack.c.bf16 %v1205_v14, %v1204_v16  ;;  %v1391_v14 = vsel %vm1383_vm10, %v10371_v62, 0.0 }
  0xe1   : > { %v1681_v13 = vpop.permute.xlu0 %1680 }
  0xe2   : > { %v1357_v22 = vpop.permute.xlu1 %1356  ;;  %8846 = vmatmul.mubr.msk.bf16.gmra.mxu0 %vm737_vm8, %v1209_v12  ;;  %vm1701_vm12 = vcmp.eq.s32.totalorder %v1681_v13, 1  ;;  %v9632_v12 = vld [vmem:[%s13544_s7 + $0x130] sm:$0xff]  }
  0xe3   : > { %vm1377_vm4 = vcmp.eq.s32.totalorder %v1357_v22, 1  ;;  %8880 = vmatpush3.bf16.msra.mxu0 %v9623_v4  ;;  %8881 = vmatprep.mubr.msk.bf16.mxu0 %vm737_vm8, %v1530_v15  ;;  %v9627_v4 = vld [vmem:[%s13544_s7 + $0x108] sm:$0xff]   ;;  %v9637_v13 = vld [vmem:[%s13544_s7 + $0x170] sm:$0xff]  }
  0xe4   : > { %v1385_v34 = vsel %vm1377_vm4, %v10246_v8, 0.0  ;;  %8909 = vmatprep.subr.bf16.mxu0 %v9626_v23 }
  0xe5   : > { %v1392_v37 = vpack.c.bf16 %v1385_v34, %v1384_v33  ;;  %v1693_v22 = vpop.permute.xlu0 %1692  ;;  %v1709_v34 = vsel %vm1701_vm12, %v10276_v63, 0.0 }
  0xe6   : > { %v1360_v38 = vpop.permute.xlu1 %1359  ;;  %vm1705_vm4 = vcmp.eq.s32.totalorder %v1693_v22, 1  ;;  %v9643_v22 = vld [vmem:[%s13544_s7 + $0x198] sm:$0xff]  }
  0xe7   : > { %vm1378_vm6 = vcmp.eq.s32.totalorder %v1360_v38, 1  ;;  %8861 = vmatprep.mubr.msk.bf16.mxu1 %vm737_vm8, %v1392_v37  ;;  %v9631_v38 = vld [vmem:[%s13544_s7 + $0xf8] sm:$0xff]  }
  0xe8   : > { %v1386_v52 = vsel %vm1378_vm6, %v10248_v35, 0.0 }
  0xe9   : > { %v1393_v54 = vpack.c.bf16 %v1387_v47, %v1386_v52  ;;  %v9634_v47 = vld [vmem:[%s13544_s7 + $0x128] sm:$0xff]  }
  0xea   : > { %v1366_v58 = vpop.permute.xlu1 %1365  ;;  %8882 = vmatmul.mubr.msk.bf16.vlgmr.msra.gmra.mxu0 %vm737_vm8, %v1531_v48  ;;  %v1864_v52 = vpop.permute.xlu0 %1863 }
  0xeb   : > { %vm1380_vm9 = vcmp.eq.s32.totalorder %v1366_v58, 1  ;;  %8862 = vmatmul.mubr.msk.bf16.vlgmr.msra.gmra.mxu1 %vm737_vm8, %v1393_v54  ;;  %8910 = vmatpush3.bf16.msra.mxu0 %v9626_v23  ;;  %vm1886_vm0 = vcmp.eq.s32.totalorder %v1864_v52, 1 }
  0xec   : > { %v1388_v40 = vsel %vm1380_vm9, %v10293_v18, 0.0  ;;  %8890 = vmatpush3.bf16.msra.mxu1 %v10319_v49  ;;  %8885 = vmatprep.mubr.msk.bf16.mxu0 %vm737_vm8, %v1532_v17  ;;  %v1533_v49 = vpack.c.bf16 %v10155_v42, %v10094_v31  ;;  %v9633_v17 = vld [vmem:[%s13544_s7 + $0xf0] sm:$0xff]   ;;  %v13560_v42 = vmov 6  }
  0xed   : > { %v1394_v2 = vpack.c.bf16 %v1389_v59, %v1388_v40  ;;  %8891 = vmatprep.subr.bf16.mxu1 %v9625_v56  ;;  %8911 = vmatprep.subr.bf16.mxu0 %v9628_v57 }
  0xee   : > { %v1372_v16 = vpop.permute.xlu1 %1371  ;;  %v1873_v59 = vpop.permute.xlu0 %1872 }
  0xef   : > { %vm1382_vm11 = vcmp.eq.s32.totalorder %v1372_v16, 1  ;;  %8865 = vmatprep.mubr.msk.bf16.mxu1 %vm737_vm8, %v1394_v2  ;;  %8912 = vmatpush3.bf16.msra.mxu0 %v9628_v57  ;;  %v9636_v57 = vld [vmem:[%s13544_s7 + $0x178] sm:$0xff]   ;;  %v1894_v2 = vsel %vm1886_vm0, %v10246_v8, 0.0  ;;  %vm1889_vm2 = vcmp.eq.s32.totalorder %v1873_v59, 1  ;;  %v9638_v8 = vld [vmem:[%s13544_s7 + $0x168] sm:$0xff]  }
  0xf0   : > { %v1390_v15 = vsel %vm1382_vm11, %v10301_v25, 0.0  ;;  %8892 = vmatpush3.bf16.msra.mxu1 %v9625_v56  ;;  %8913 = vmatprep.subr.bf16.mxu0 %v9630_v1  ;;  %v9639_v56 = vld [vmem:[%s13544_s7 + $0x1a8] sm:$0xff]  }
  0xf1   : > { %v1395_v23 = vpack.c.bf16 %v1391_v14, %v1390_v15  ;;  %8893 = vmatprep.subr.bf16.mxu1 %v9627_v4  ;;  %v1897_v15 = vsel %vm1889_vm2, %v10293_v18, 0.0  ;;  %v1713_v18 = vsel %vm1705_vm4, %v10340_v10, 0.0 }
  0xf2   : > { %8886 = vmatmul.mubr.msk.bf16.gmra.mxu0 %vm737_vm8, %v1533_v49 }
  0xf3   : > { %v1678_v33 = vpop.permute.xlu1 %1677  ;;  %8866 = vmatmul.mubr.msk.bf16.gmra.mxu1 %vm737_vm8, %v1395_v23  ;;  %8914 = vmatpush3.bf16.msra.mxu0 %v9630_v1 }
  0xf4   : > { %vm1700_vm13 = vcmp.eq.s32.totalorder %v1678_v33, 1  ;;  %8894 = vmatpush3.bf16.msra.mxu1 %v9627_v4  ;;  %8915 = vmatprep.subr.bf16.mxu0 %v9632_v12  ;;  %v9640_v33 = vld [vmem:[%s13544_s7 + $0x160] sm:$0xff]  }
  0xf5   : > { %v1708_v37 = vsel %vm1700_vm13, %v10281_v21, 0.0  ;;  %8895 = vmatprep.subr.bf16.mxu1 %v9629_v24  ;;  %v9635_v21 = vld [vmem:[%s13544_s7 + $0x120] sm:$0xff]  }
  0xf6   : > { %v1716_v48 = vpack.c.bf16 %v1709_v34, %v1708_v37 }
  0xf7   : > { %v1684_v20 = vpop.permute.xlu1 %1683  ;;  %8916 = vmatpush3.bf16.msra.mxu0 %v9632_v12 }
  0xf8   : > { %8896 = vmatpush3.bf16.msra.mxu1 %v9629_v24  ;;  %8901 = vmatprep.mubr.msk.bf16.mxu1 %vm737_vm8, %v1716_v48  ;;  %vm1702_vm15 = vcmp.eq.s32.totalorder %v1684_v20, 1  ;;  %v9645_v48 = vld [vmem:[%s13544_s7 + $0x190] sm:$0xff]   ;;  %v10449_v20 = vld [vmem:[#allocation2 + $0x42] sm:$0xff] }
  0xf9   : > { %8897 = vmatprep.subr.bf16.mxu1 %v9631_v38  ;;  %8917 = vmatprep.subr.bf16.mxu0 %v9634_v47  ;;  %v1710_v40 = vsel %vm1702_vm15, %v10279_v0, 0.0 }
  0xfb   : > { %v1687_v54 = vpop.permute.xlu1 %1686  ;;  %8918 = vmatpush3.bf16.msra.mxu0 %v9634_v47  ;;  %v9642_v47 = vld [vmem:[%s13544_s7 + $0x158] sm:$0xff]  }
  0xfc   : > { %vm1703_vm14 = vcmp.eq.s32.totalorder %v1687_v54, 1  ;;  %8898 = vmatpush3.bf16.msra.mxu1 %v9631_v38  ;;  %8919 = vmatprep.subr.bf16.mxu0 %v9635_v21  ;;  %v1876_v38 = vpop.permute.xlu0 %1875 }
  0xfd   : > { %8899 = vmatprep.subr.bf16.mxu1 %v9633_v17  ;;  %v1711_v58 = vsel %vm1703_vm14, %v10327_v55, 0.0  ;;  %vm1890_vm9 = vcmp.eq.s32.totalorder %v1876_v38, 1 }
  0xfe   : > { %v1717_v4 = vpack.c.bf16 %v1711_v58, %v1710_v40  ;;  %v1898_v40 = vsel %vm1890_vm9, %v10308_v36, 0.0 }
  0xff   : > { %8920 = vmatpush3.bf16.msra.mxu0 %v9635_v21  ;;  %v9644_v21 = vld [vmem:[%s13544_s7 + $0x150] sm:$0xff]  }
 0x100   : > { %8900 = vmatpush3.bf16.msra.mxu1 %v9633_v17  ;;  %v1867_v1 = vpop.permute.xlu1 %1866  ;;  %8949 = vmatprep.subr.bf16.mxu0 %v9639_v56 }
 0x101   : > { %vm1887_vm1 = vcmp.eq.s32.totalorder %v1867_v1, 1  ;;  %8929 = vmatprep.subr.bf16.mxu1 %v9636_v57  ;;  %v1861_v1 = vld [vmem:[#allocation2 + $0x48] sm:$0xff] }
 0x102   : > { %v1895_v16 = vsel %vm1887_vm1, %v10248_v35, 0.0  ;;  %v9641_v35 = vld [vmem:[%s13544_s7 + $0x1a0] sm:$0xff]  }
 0x103   : > { %v1902_v14 = vpack.c.bf16 %v1895_v16, %v1894_v2  ;;  %8902 = vmatmul.mubr.msk.bf16.vlgmr.msra.gmra.mxu1 %vm737_vm8, %v1717_v4  ;;  %v9647_v2 = vld [vmem:[%s13544_s7 + $0x180] sm:$0xff]  }
 0x104   : > { %v1870_v49 = vpop.permute.xlu1 %1869  ;;  %8930 = vmatpush3.bf16.msra.mxu1 %v9636_v57  ;;  %v9646_v57 = vld [vmem:[%s13544_s7 + $0x188] sm:$0xff]  }
 0x105   : > { %vm1888_vm3 = vcmp.eq.s32.totalorder %v1870_v49, 1  ;;  %8921 = vmatprep.mubr.msk.bf16.mxu0 %vm737_vm8, %v1902_v14  ;;  %8931 = vmatprep.subr.bf16.mxu1 %v9637_v13 }
 0x106   : > { %v1896_v12 = vsel %vm1888_vm3, %v10284_v5, 0.0 }
 0x107   : > { %v1903_v23 = vpack.c.bf16 %v1897_v15, %v1896_v12 }
 0x108   : > { %8932 = vmatpush3.bf16.msra.mxu1 %v9637_v13 }
 0x109   : > { %v1690_v24 = vpop.permute.xlu1 %1689  ;;  %8922 = vmatmul.mubr.msk.bf16.vlgmr.msra.gmra.mxu0 %vm737_vm8, %v1903_v23  ;;  %8933 = vmatprep.subr.bf16.mxu1 %v9638_v8 }
 0x10a   : > { %vm1704_vm5 = vcmp.eq.s32.totalorder %v1690_v24, 1  ;;  %8950 = vmatpush3.bf16.msra.mxu0 %v9639_v56  ;;  %v1885_v56 = vpop.permute.xlu0 %1884 }
 0x10b   : > { %v1712_v5 = vsel %vm1704_vm5, %v10322_v53, 0.0  ;;  %8951 = vmatprep.subr.bf16.mxu0 %v9641_v35  ;;  %vm1893_vm11 = vcmp.eq.s32.totalorder %v1885_v56, 1  ;;  %v2047_v56 = vld [vmem:[#allocation2 + $0x49] sm:$0xff] }
 0x10c   : > { %v1718_v34 = vpack.c.bf16 %v1713_v18, %v1712_v5  ;;  %8934 = vmatpush3.bf16.msra.mxu1 %v9638_v8  ;;  %v1901_v36 = vsel %vm1893_vm11, %v1861_v1, 0.0 }
 0x10d   : > { %v1696_v37 = vpop.permute.xlu1 %1695  ;;  %8935 = vmatprep.subr.bf16.mxu1 %v9640_v33 }
 0x10e   : > { %8905 = vmatprep.mubr.msk.bf16.mxu1 %vm737_vm8, %v1718_v34  ;;  %8952 = vmatpush3.bf16.msra.mxu0 %v9641_v35  ;;  %vm1706_vm6 = vcmp.eq.s32.totalorder %v1696_v37, 1  ;;  %v2053_v16 = vpop.permute.xlu0 %2052 }
 0x10f   : > { %8953 = vmatprep.subr.bf16.mxu0 %v9643_v22  ;;  %v1714_v17 = vsel %vm1706_vm6, %v10342_v11, 0.0  ;;  %vm2073_vm13 = vcmp.eq.s32.totalorder %v2053_v16, 1 }
 0x110   : > { %8936 = vmatpush3.bf16.msra.mxu1 %v9640_v33 }
 0x111   : > { %v1699_v52 = vpop.permute.xlu1 %1698  ;;  %8937 = vmatprep.subr.bf16.mxu1 %v9642_v47 }
 0x112   : > { %vm1707_vm7 = vcmp.eq.s32.totalorder %v1699_v52, 1  ;;  %8954 = vmatpush3.bf16.msra.mxu0 %v9643_v22  ;;  %v2065_v8 = vpop.permute.xlu0 %2064 }
 0x113   : > { %v1715_v54 = vsel %vm1707_vm7, %v10449_v20, 0.0  ;;  %8955 = vmatprep.subr.bf16.mxu0 %v9645_v48  ;;  %vm2077_vm5 = vcmp.eq.s32.totalorder %v2065_v8, 1 }
 0x114   : > { %v1719_v58 = vpack.c.bf16 %v1715_v54, %v1714_v17  ;;  %8938 = vmatpush3.bf16.msra.mxu1 %v9642_v47  ;;  %v2046_v54 = vld [vmem:[#allocation2 + $0x41] sm:$0xff] }
 0x115   : > { %8939 = vmatprep.subr.bf16.mxu1 %v9644_v21 }
 0x116   : > { %v1879_v59 = vpop.permute.xlu1 %1878  ;;  %8906 = vmatmul.mubr.msk.bf16.gmra.mxu1 %vm737_vm8, %v1719_v58  ;;  %8956 = vmatpush3.bf16.msra.mxu0 %v9645_v48  ;;  %v2236_v24 = vpop.permute.xlu0 %2235 }
 0x117   : > { %vm1891_vm10 = vcmp.eq.s32.totalorder %v1879_v59, 1  ;;  %8957 = vmatprep.subr.bf16.mxu0 %v9646_v57  ;;  %vm2258_vm1 = vcmp.eq.s32.totalorder %v2236_v24, 1 }
 0x118   : > { %v1899_v4 = vsel %vm1891_vm10, %v10301_v25, 0.0  ;;  %8940 = vmatpush3.bf16.msra.mxu1 %v9644_v21  ;;  %v2081_v25 = vsel %vm2073_vm13, %v10207_v51, 0.0  ;;  %v2266_v37 = vsel %vm2258_vm1, %v10276_v63, 0.0  ;;  %v2085_v63 = vsel %vm2077_vm5, %v10224_v6, 0.0 }
 0x119   : > { %v1904_v13 = vpack.c.bf16 %v1899_v4, %v1898_v40  ;;  %8969 = vmatprep.subr.mxu1 %v13430_v19 }
 0x11a   : > { %v1882_v14 = vpop.permute.xlu1 %1881  ;;  %8958 = vmatpush3.bf16.msra.mxu0 %v9646_v57  ;;  %v2245_v51 = vpop.permute.xlu0 %2244 }
 0x11b   : > { %vm1892_vm12 = vcmp.eq.s32.totalorder %v1882_v14, 1  ;;  %8925 = vmatprep.mubr.msk.bf16.mxu0 %vm737_vm8, %v1904_v13  ;;  %8959 = vmatprep.subr.bf16.mxu0 %v9647_v2  ;;  %vm2261_vm3 = vcmp.eq.s32.totalorder %v2245_v51, 1 }
 0x11c   : > { %v1900_v49 = vsel %vm1892_vm12, %v10371_v62, 0.0  ;;  %v2269_v48 = vsel %vm2261_vm3, %v10322_v53, 0.0 }
 0x11d   : > { %v1905_v15 = vpack.c.bf16 %v1901_v36, %v1900_v49 }
 0x11e   : > { %8960 = vmatpush3.bf16.msra.mxu0 %v9647_v2  ;;  %v2248_v53 = vpop.permute.xlu0 %2247  ;;  %v2233_v2 = vld [vmem:[#allocation2 + $0x4a] sm:$0xff] }
 0x11f   : > { %v2050_v12 = vpop.permute.xlu1 %2049  ;;  %8926 = vmatmul.mubr.msk.bf16.gmra.mxu0 %vm737_vm8, %v1905_v15  ;;  %vm2262_vm10 = vcmp.eq.s32.totalorder %v2248_v53, 1  ;;  %v2694_v15 = vld [vmem:[%s13543_s1 + $0x18] sm:$0xff]  ;;  %v2697_v53 = vld [vmem:[%s13543_s1 + $0x30] sm:$0xff] }
 0x120   : > { %vm2072_vm14 = vcmp.eq.s32.totalorder %v2050_v12, 1  ;;  %v2270_v6 = vsel %vm2262_vm10, %v10340_v10, 0.0  ;;  %v2691_v10 = vld [vmem:[%s13543_s1] sm:$0xff]  ;;  %vm2702_vm1 = vcmp.gt.f32.partialorder %v2694_v15, 0.0  ;;  %vm2705_vm5 = vcmp.gt.f32.partialorder %v2697_v53, 0.0 }
 0x121   : > { %v2080_v23 = vsel %vm2072_vm14, %v10204_v50, 0.0  ;;  %vm750_vm14 = vcmask 261120   ;;  %v10530_v12 = vsel %vm2702_vm1, 1, %v13428_v7 }
 0x122   : > { %v2088_v35 = vpack.c.bf16 %v2081_v25, %v2080_v23  ;;  %v2257_v40 = vpop.permute.xlu0 %2256  ;;  %751 = vst.msk [vmem:[#allocation3] sm:$0xff] %vm750_vm14, %v13430_v19  ;;  %752 = vst.msk [vmem:[#allocation3 + $0x8] sm:$0xff] %vm750_vm14, %v13430_v19  ;;  %v2696_v25 = vld [vmem:[%s13543_s1 + $0x28] sm:$0xff] }
 0x123   : > { %v2056_v18 = vpop.permute.xlu1 %2055  ;;  %vm2265_vm12 = vcmp.eq.s32.totalorder %v2257_v40, 1  ;;  %753 = vst.msk [vmem:[#allocation3 + $0x10] sm:$0xff] %vm750_vm14, %v13430_v19  ;;  %754 = vst.msk [vmem:[#allocation3 + $0x18] sm:$0xff] %vm750_vm14, %v13430_v19 }
 0x124   : > { %8941 = vmatprep.mubr.msk.bf16.mxu1 %vm737_vm8, %v2088_v35  ;;  %vm2074_vm15 = vcmp.eq.s32.totalorder %v2056_v18, 1  ;;  %v2273_v16 = vsel %vm2265_vm12, %v2233_v2, 0.0  ;;  %755 = vst.msk [vmem:[#allocation3 + $0x20] sm:$0xff] %vm750_vm14, %v13430_v19  ;;  %756 = vst.msk [vmem:[#allocation3 + $0x28] sm:$0xff] %vm750_vm14, %v13430_v19  ;;  %v2698_v18 = vld [vmem:[%s13543_s1 + $0x38] sm:$0xff] }
 0x125   : > { %v2082_v62 = vsel %vm2074_vm15, %v10214_v61, 0.0  ;;  %757 = vst.msk [vmem:[#allocation3 + $0x30] sm:$0xff] %vm750_vm14, %v13430_v19  ;;  %758 = vst.msk [vmem:[#allocation3 + $0x38] sm:$0xff] %vm750_vm14, %v13430_v19  ;;  %vm2699_vm15 = vcmp.gt.f32.partialorder %v2691_v10, 0.0  ;;  %vm2706_vm3 = vcmp.gt.f32.partialorder %v2698_v18, 0.0 }
 0x126   : > { %759 = vst.msk [vmem:[#allocation3 + $0x40] sm:$0xff] %vm750_vm14, %v13430_v19  ;;  %760 = vst.msk [vmem:[#allocation3 + $0x48] sm:$0xff] %vm750_vm14, %v13430_v19 }
 0x127   : > { %v2059_v33 = vpop.permute.xlu1 %2058 }
 0x128   : > { %vm2075_vm0 = vcmp.eq.s32.totalorder %v2059_v33, 1  ;;  %v10548_v33 = vsel %vm2706_vm3, 1, %v13428_v7 }
 0x129   : > { %v2083_v5 = vsel %vm2075_vm0, %v10212_v60, 0.0 }
 0x12a   : > { %v2089_v22 = vpack.c.bf16 %v2083_v5, %v2082_v62  ;;  %v2692_v62 = vld [vmem:[%s13543_s1 + $0x8] sm:$0xff] }
 0x12c   : > { %v2239_v34 = vpop.permute.xlu1 %2238  ;;  %8942 = vmatmul.mubr.msk.bf16.vlgmr.msra.gmra.mxu1 %vm737_vm8, %v2089_v22 }
 0x12d   : > { %vm2259_vm2 = vcmp.eq.s32.totalorder %v2239_v34, 1 }
 0x12e   : > { %v2267_v50 = vsel %vm2259_vm2, %v10279_v0, 0.0  ;;  %vm2704_vm2 = vcmp.gt.f32.partialorder %v2696_v25, 0.0 }
 0x12f   : > { %v2274_v38 = vpack.c.bf16 %v2267_v50, %v2266_v37  ;;  %v10539_v35 = vsel %vm2704_vm2, 1, %v13428_v7 }
 0x130   : > { %v2242_v47 = vpop.permute.xlu1 %2241 }
 0x131   : > { %vm2260_vm4 = vcmp.eq.s32.totalorder %v2242_v47, 1  ;;  %8961 = vmatprep.mubr.msk.bf16.mxu0 %vm737_vm8, %v2274_v38 }
 0x132   : > { %v2268_v60 = vsel %vm2260_vm4, %v10327_v55, 0.0  ;;  %vm2700_vm4 = vcmp.gt.f32.partialorder %v2692_v62, 0.0 }
 0x133   : > { %v2275_v61 = vpack.c.bf16 %v2269_v48, %v2268_v60  ;;  %v10558_v22 = vsel %vm2700_vm4, 1, %v13428_v7 }
 0x134   : > { %2775 = vperm.xlu0 %9529, %v10558_v22  }
 0x135   : > { %v2062_v52 = vpop.permute.xlu1 %2061  ;;  %8962 = vmatmul.mubr.msk.bf16.vlgmr.msra.gmra.mxu0 %vm737_vm8, %v2275_v61 }
 0x136   : > { %vm2076_vm6 = vcmp.eq.s32.totalorder %v2062_v52, 1  ;;  %v10588_v52 = vld [vmem:[%s13412_s18 + $0x18] sm:$0xff] }
 0x137   : > { %v2084_v21 = vsel %vm2076_vm6, %v10226_v9, 0.0  ;;  %13554 = vst [vmem:[#allocation21_spill] sm:$0xff] %v10588_v52  ;;  %8970 = vmatpush3.msra.mxu1 %v10588_v52  ;;  %vm9785_vm6 = vmmov 0  }
 0x138   : > { %v2090_v0 = vpack.c.bf16 %v2085_v63, %v2084_v21  ;;  %8971 = vmatprep.subr.mxu1 %v13430_v19  ;;  %v10598_v21 = vld [vmem:[%s13412_s18 + $0x10] sm:$0xff] }
 0x139   : > { %v2068_v17 = vpop.permute.xlu1 %2067  ;;  %13555 = vst [vmem:[#allocation22_spill] sm:$0xff] %v10598_v21  ;;  %8972 = vmatpush3.msra.mxu1 %v10598_v21 }
 0x13a   : > { %8945 = vmatprep.mubr.msk.bf16.mxu1 %vm737_vm8, %v2090_v0  ;;  %vm2078_vm7 = vcmp.eq.s32.totalorder %v2068_v17, 1  ;;  %v10607_v17 = vld [vmem:[%s13412_s18 + $0x8] sm:$0xff]  ;;  %8973 = vmatprep.subr.mxu1 %v13430_v19 }
 0x13b   : > { %v2086_v55 = vsel %vm2078_vm7, %v2046_v54, 0.0  ;;  %13556 = vst [vmem:[#allocation23_spill] sm:$0xff] %v10607_v17  ;;  %8974 = vmatpush3.msra.mxu1 %v10607_v17 }
 0x13c   : > { %8975 = vmatprep.subr.mxu1 %v13430_v19 }
 0x13d   : > { %v2071_v57 = vpop.permute.xlu1 %2070 }
 0x13e   : > { %vm2079_vm9 = vcmp.eq.s32.totalorder %v2071_v57, 1  ;;  %v10624_v57 = vsel %vm2705_vm5, 1, %v13428_v7 }
 0x13f   : > { %v2087_v58 = vsel %vm2079_vm9, %v2047_v56, 0.0  ;;  %v10618_v56 = vld [vmem:[%s13412_s18] sm:$0xff]  ;;  %vm761_vm9 = vcmask 254976  }
 0x140   : > { %v2091_v59 = vpack.c.bf16 %v2087_v58, %v2086_v55  ;;  %13557 = vst [vmem:[#allocation24_spill] sm:$0xff] %v10618_v56  ;;  %8976 = vmatpush3.msra.mxu1 %v10618_v56 }
 0x141   : > { %8980 = vmatprep.subr.mxu1 %v13430_v19 }
 0x142   : > { %v2251_v1 = vpop.permute.xlu1 %2250  ;;  %8946 = vmatmul.mubr.msk.bf16.gmra.mxu1 %vm737_vm8, %v2091_v59  ;;  %v2695_v59 = vld [vmem:[%s13543_s1 + $0x20] sm:$0xff] }
 0x143   : > { %vm2263_vm11 = vcmp.eq.s32.totalorder %v2251_v1, 1  ;;  %8977 = vmatprep.mubr.msk.f32.mxu1 %vm9785_vm6, %v13430_v19  ;;  %vm2703_vm7 = vcmp.gt.f32.partialorder %v2695_v59, 0.0 }
 0x144   : > { %v2271_v9 = vsel %vm2263_vm11, %v10342_v11, 0.0  ;;  %v10514_v11 = vsel %vm2699_vm15, 1, %v13428_v7 }
 0x145   : > { %v2276_v4 = vpack.c.bf16 %v2271_v9, %v2270_v6  ;;  %2772 = vperm.xlu1 %9528, %v10514_v11   ;;  %v10643_v6 = vsel %vm2703_vm7, 1, %v13428_v7 }
 0x146   : > { %v2254_v13 = vpop.permute.xlu1 %2253  ;;  %2784 = vperm.xlu0 %9529, %v10643_v6  }
 0x147   : > { %vm2264_vm13 = vcmp.eq.s32.totalorder %v2254_v13, 1  ;;  %8965 = vmatprep.mubr.msk.bf16.mxu0 %vm737_vm8, %v2276_v4 }
 0x148   : > { %v2272_v14 = vsel %vm2264_vm13, %v10449_v20, 0.0  ;;  %v2693_v20 = vld [vmem:[%s13543_s1 + $0x10] sm:$0xff] }
 0x149   : > { %v2277_v36 = vpack.c.bf16 %v2273_v16, %v2272_v14  ;;  %vm2701_vm0 = vcmp.gt.f32.partialorder %v2693_v20, 0.0 }
 0x14a   : > { %v10521_v49 = vsel %vm2701_vm0, 1, %v13428_v7  ;;  %2790 = vperm.xlu0 %9529, %v10624_v57  }
 0x14b   : > { %8966 = vmatmul.mubr.msk.bf16.gmra.mxu0 %vm737_vm8, %v2277_v36  ;;  %2778 = vperm.xlu1 %9528, %v10521_v49  }
 0x14e   : > { %9530 = vset.pattern.permute.xlu0 %v13428_v7 }
 0x14f   : > { %2781 = vperm.xlu1 %9528, %v10530_v12   ;;  %2716 = vperm.xlu0 %9530, %v10514_v11  }
 0x153   : > { %2787 = vperm.xlu1 %9528, %v10539_v35   ;;  %2725 = vperm.xlu0 %9530, %v10530_v12  }
 0x157   : > { %2793 = vperm.xlu1 %9528, %v10548_v33   ;;  %2728 = vperm.xlu0 %9530, %v10643_v6  }
 0x15b   : > { %9531 = vset.pattern.permute.xlu1 %v13428_v7  ;;  %2737 = vperm.xlu0 %9530, %v10548_v33  }
 0x15c   : > { %2719 = vperm.xlu1 %9531, %v10558_v22  }
 0x15f   : > { %9534 = vset.pattern.permute.xlu0 %v13434_v39 }
 0x160   : > { %2722 = vperm.xlu1 %9531, %v10521_v49   ;;  %3010 = vperm.xlu0 %9534, %v10558_v22  }
 0x164   : > { %9532 = vset.pattern.permute.xlu1 %v13434_v39  ;;  %3022 = vperm.xlu0 %9534, %v10539_v35  }
 0x165   : > { %3007 = vperm.xlu1 %9532, %v10514_v11  }
 0x168   : > { %9536 = vset.pattern.permute.xlu0 %v13446_v41 }
 0x169   : > { %3013 = vperm.xlu1 %9532, %v10521_v49   ;;  %3161 = vperm.xlu0 %9536, %v10514_v11  }
 0x16d   : > { %3016 = vperm.xlu1 %9532, %v10530_v12   ;;  %3170 = vperm.xlu0 %9536, %v10530_v12  }
 0x16f   : > { %v10527_v8 = vpop.f32.mrf.mxu0 }
 0x171   : > { %v10536_v23 = vpop.f32.mrf.mxu0  ;;  %9533 = vset.pattern.permute.xlu1 %v13428_v7  ;;  %3176 = vperm.xlu0 %9536, %v10539_v35  }
 0x172   : > { %2731 = vperm.xlu1 %9533, %v10539_v35  }
 0x173   : > { %v10545_v24 = vpop.f32.mrf.mxu0 }
 0x175   : > { %v10554_v5 = vpop.f32.mrf.mxu0  ;;  %3182 = vperm.xlu0 %9536, %v10548_v33  }
 0x176   : > { %2734 = vperm.xlu1 %9533, %v10624_v57  }
 0x177   : > { %v10562_v51 = vpop.f32.mrf.mxu0 }
 0x179   : > { %v10565_v34 = vpop.f32.mrf.mxu0  ;;  %9539 = vset.pattern.permute.xlu0 %v13562_v27 }
 0x17a   : > { %9535 = vset.pattern.permute.xlu1 %v13434_v39  ;;  %3424 = vperm.xlu0 %9539, %v10558_v22  }
 0x17b   : > { %v10571_v50 = vpop.f32.mrf.mxu0  ;;  %3019 = vperm.xlu1 %9535, %v10643_v6  }
 0x17d   : > { %v10576_v47 = vpop.f32.mrf.mxu0 }
 0x17e   : > { %3436 = vperm.xlu0 %9539, %v10539_v35  }
 0x17f   : > { %v10568_v37 = vpop.f32.mrf.mxu1  ;;  %3025 = vperm.xlu1 %9535, %v10624_v57  }
 0x181   : > { %v10573_v38 = vpop.f32.mrf.mxu1 }
 0x182   : > { %9542 = vset.pattern.permute.xlu0 %v13560_v42 }
 0x183   : > { %v10580_v60 = vpop.f32.mrf.mxu1  ;;  %3028 = vperm.xlu1 %9535, %v10548_v33   ;;  %3575 = vperm.xlu0 %9542, %v10514_v11  }
 0x185   : > { %v10590_v63 = vpop.f32.mrf.mxu1 }
 0x187   : > { %9537 = vset.pattern.permute.xlu1 %v13446_v41  ;;  %3584 = vperm.xlu0 %9542, %v10530_v12  }
 0x188   : > { %3164 = vperm.xlu1 %9537, %v10558_v22  }
 0x18b   : > { %3587 = vperm.xlu0 %9542, %v10643_v6  }
 0x18c   : > { %3167 = vperm.xlu1 %9537, %v10521_v49  }
 0x18d   : > { %v10578_v48 = vpop.f32.mrf.mxu0 }
 0x18f   : > { %v10583_v61 = vpop.f32.mrf.mxu0  ;;  %3596 = vperm.xlu0 %9542, %v10548_v33  }
 0x190   : > { %3173 = vperm.xlu1 %9537, %v10643_v6  }
 0x191   : > { %v10612_v54 = vpop.f32.mrf.mxu0 }
 0x193   : > { %v10631_v58 = vpop.f32.mrf.mxu0 }
 0x194   : > { %3179 = vperm.xlu1 %9537, %v10624_v57  }
 0x195   : > { %v10601_v0 = vpop.f32.mrf.mxu1 }
 0x197   : > { %v10628_v55 = vpop.f32.mrf.mxu1 }
 0x198   : > { %9538 = vset.pattern.permute.xlu1 %v13440_v43 }
 0x199   : > { %v10640_v1 = vpop.f32.mrf.mxu1  ;;  %3421 = vperm.xlu1 %9538, %v10514_v11  }
 0x19b   : > { %v10649_v2 = vpop.f32.mrf.mxu1 }
 0x19d   : > { %3427 = vperm.xlu1 %9538, %v10521_v49  }
 0x1a1   : > { %3430 = vperm.xlu1 %9538, %v10530_v12  }
 0x1a2   : > { %v10637_v40 = vpop.f32.mrf.mxu0 }
 0x1a4   : > { %v10647_v9 = vpop.f32.mrf.mxu0 }
 0x1a5   : > { %9540 = vset.pattern.permute.xlu1 %v13560_v42 }
 0x1a6   : > { %v10655_v13 = vpop.f32.mrf.mxu0  ;;  %3578 = vperm.xlu1 %9540, %v10558_v22  }
 0x1a8   : > { %v10662_v14 = vpop.f32.mrf.mxu0 }
 0x1aa   : > { %v10664_v36 = vpop.f32.mrf.mxu0  ;;  %3581 = vperm.xlu1 %9540, %v10521_v49  }
 0x1ab   : > { %v10653_v4 = vpop.f32.mrf.mxu1 }
 0x1ac   : > { %v10671_v20 = vpop.f32.mrf.mxu0 }
 0x1ad   : > { %v10659_v16 = vpop.f32.mrf.mxu1 }
 0x1ae   : > { %v10677_v25 = vpop.f32.mrf.mxu0  ;;  %9541 = vset.pattern.permute.xlu1 %v13562_v27 }
 0x1af   : > { %v10667_v10 = vpop.f32.mrf.mxu1  ;;  %3433 = vperm.xlu1 %9541, %v10643_v6  }
 0x1b0   : > { %v10683_v62 = vpop.f32.mrf.mxu0 }
 0x1b1   : > { %v10673_v15 = vpop.f32.mrf.mxu1 }
 0x1b2   : > { %v10690_v59 = vpop.f32.mrf.mxu0 }
 0x1b3   : > { %v10679_v18 = vpop.f32.mrf.mxu1  ;;  %3439 = vperm.xlu1 %9541, %v10624_v57  }
 0x1b4   : > { %v10697_v19 = vpop.f32.mrf.mxu0 }
 0x1b5   : > { %v10685_v53 = vpop.f32.mrf.mxu1 }
 0x1b6   : > { %v10706_v46 = vpop.f32.mrf.mxu0 }
 0x1b7   : > { %v10692_v7 = vpop.f32.mrf.mxu1  ;;  %13558 = vst [vmem:[#allocation25_spill] sm:$0xff] %v10706_v46  ;;  %3442 = vperm.xlu1 %9541, %v10548_v33  }
 0x1b8   : > { %v10710_v43 = vpop.f32.mrf.mxu0 }
 0x1b9   : > { %v10699_v3 = vpop.f32.mrf.mxu1  ;;  %13559 = vst [vmem:[#allocation26_spill] sm:$0xff] %v10710_v43 }
 0x1bb   : > { %9543 = vset.pattern.permute.xlu1 %v13560_v42 }
 0x1bc   : > { %3590 = vperm.xlu1 %9543, %v10539_v35  }
 0x1c0   : > { %3593 = vperm.xlu1 %9543, %v10624_v57  }
 0x1c3   : > { %v10703_v39 = vpop.f32.mrf.mxu1 }
 0x1c5   : > { %v1815_v45 = vpop.f32.mrf.mxu1 }
 0x1c7   : > { %v10715_v31 = vpop.f32.mrf.mxu1 }
 0x1c9   : > { %v10712_v44 = vpop.f32.mrf.mxu0  ;;  %v1818_v32 = vpop.f32.mrf.mxu1 }
 0x1cb   : > { %v2001_v41 = vpop.f32.mrf.mxu0 }
 0x1cd   : > { %v10723_v29 = vpop.f32.mrf.mxu0 }
 0x1cf   : > { %v2004_v30 = vpop.f32.mrf.mxu0 }
 0x1d6   : > { %v10721_v28 = vpop.f32.mrf.mxu1 }
 0x1d7   : > { %13561 = vst [vmem:[#allocation27_spill] sm:$0xff] %v10721_v28 }
 0x1d8   : > { %v10729_v26 = vpop.f32.mrf.mxu1 }
 0x1d9   : > { %13563 = vst [vmem:[#allocation28_spill] sm:$0xff] %v10729_v26 }
 0x1da   : > { %v10735_v17 = vpop.f32.mrf.mxu1 }
 0x1db   : > { %13565 = vst [vmem:[#allocation30_spill] sm:$0xff] %v10735_v17 }
 0x1dc   : > { %v10741_v27 = vpop.f32.mrf.mxu1 }
 0x1dd   : > { %13567 = vst [vmem:[#allocation32_spill] sm:$0xff] %v10741_v27 }
 0x1df   : > { %v10731_v56 = vpop.f32.mrf.mxu0 }
 0x1e0   : > { %13564 = vst [vmem:[#allocation29_spill] sm:$0xff] %v10731_v56  ;;  %v1131_v56 = vadd.f32 %v10590_v63, %v10554_v5  ;;  %v1136_v5 = vadd.f32 %v10568_v37, %v10527_v8  ;;  %v1139_v8 = vadd.f32 %v10580_v60, %v10545_v24 }
 0x1e1   : > { %v10737_v21 = vpop.f32.mrf.mxu0 }
 0x1e2   : > { %13566 = vst [vmem:[#allocation31_spill] sm:$0xff] %v10737_v21  ;;  %v1128_v21 = vadd.f32 %v10573_v38, %v10536_v23  ;;  %v1337_v17 = vadd.f32 %v10631_v58, %v1131_v56  ;;  %v1338_v23 = vadd.f32 %v10578_v48, %v1136_v5 }
 0x1e3   : > { %v10746_v43 = vpop.f32.mrf.mxu0 }
 0x1e4   : > { %v1336_v26 = vadd.f32 %v10583_v61, %v1128_v21  ;;  %v1523_v28 = vadd.f32 %v10673_v15, %v1337_v17  ;;  %v1524_v21 = vadd.f32 %v10653_v4, %v1338_v23  ;;  %v13568_v17 = vmov 7  }
 0x1e5   : > { %v10756_v46 = vpop.f32.mrf.mxu0  ;;  %9544 = vset.pattern.permute.xlu1 %v13568_v17  ;;  %9545 = vset.pattern.permute.xlu0 %v13568_v17 }
 0x1e6   : > { %v1522_v63 = vadd.f32 %v10659_v16, %v1336_v26  ;;  %v1661_v56 = vadd.f32 %v10683_v62, %v1523_v28  ;;  %3729 = vperm.xlu1 %9544, %v10514_v11   ;;  %v1339_v16 = vadd.f32 %v10612_v54, %v1139_v8  ;;  %v1662_v4 = vadd.f32 %v10664_v36, %v1524_v21  ;;  %v13573_v8 = vld [vmem:[#allocation28_spill] sm:$0xff] }
 0x1e7   : > { %3732 = vperm.xlu0 %9545, %v10558_v22   ;;  %v1155_v36 = vadd.f32 %v10640_v1, %v10571_v50  ;;  %v10799_v50 = vld [vmem:[%s13569_s25] ss:$0 sm:$0xff] }
 0x1e8   : > { %v1660_v37 = vadd.f32 %v10671_v20, %v1522_v63  ;;  %v1847_v58 = vadd.f32 %v1818_v32, %v1661_v56  ;;  %v1525_v5 = vadd.f32 %v10667_v10, %v1339_v16  ;;  %v1152_v32 = vadd.f32 %v10601_v0, %v10562_v51 }
 0x1e9   : > { %v13576_v16 = vld [vmem:[#allocation31_spill] sm:$0xff] }
 0x1ea   : > { %v1846_v28 = vadd.f32 %v1815_v45, %v1660_v37  ;;  %v2033_v15 = vadd.f32 %v2004_v30, %v1847_v58  ;;  %3735 = vperm.xlu1 %9544, %v10521_v49   ;;  %v1144_v45 = vadd.f32 %v10628_v55, %v10565_v34  ;;  %v1848_v30 = vadd.f32 %v10703_v39, %v1662_v4  ;;  %v13575_v58 = vld [vmem:[#allocation30_spill] sm:$0xff]  ;;  %v13577_v4 = vld [vmem:[#allocation29_spill] sm:$0xff] }
 0x1eb   : > { %v1663_v20 = vadd.f32 %v10677_v25, %v1525_v5  ;;  %3744 = vperm.xlu0 %9545, %v10539_v35   ;;  %v1343_v39 = vadd.f32 %v10655_v13, %v1155_v36  ;;  %v13570_v25 = vmov 8  }
 0x1ec   : > { %v8943_v52 = vpop.f32.mrf.mxu1  ;;  %v2032_v23 = vadd.f32 %v2001_v41, %v1846_v28  ;;  %v1342_v41 = vadd.f32 %v10637_v40, %v1152_v32  ;;  %v1340_v10 = vadd.f32 %v10647_v9, %v1144_v45  ;;  %v2034_v63 = vadd.f32 %v10712_v44, %v1848_v30 }
 0x1ed   : > { %v1849_v0 = vadd.f32 %v10715_v31, %v1663_v20  ;;  %v1529_v1 = vadd.f32 %v10692_v7, %v1343_v39 }
 0x1ee   : > { %v2187_v27 = vpop.f32.mrf.mxu1  ;;  %3738 = vperm.xlu1 %9544, %v10530_v12   ;;  %v1528_v51 = vadd.f32 %v10679_v18, %v1342_v41  ;;  %v1526_v34 = vadd.f32 %v10685_v53, %v1340_v10  ;;  %v2220_v55 = vadd.f32 %v8943_v52, %v2034_v63 }
 0x1ef   : > { %v2218_v60 = vadd.f32 %v2187_v27, %v2032_v23  ;;  %v1147_v27 = vadd.f32 %v10649_v2, %v10576_v47  ;;  %v2035_v9 = vadd.f32 %v10723_v29, %v1849_v0  ;;  %9548 = vset.pattern.permute.xlu0 %v13570_v25 }
 0x1f0   : > { %v8944_v38 = vpop.f32.mrf.mxu1  ;;  %v1666_v31 = vadd.f32 %v10690_v59, %v1528_v51  ;;  %v1664_v52 = vadd.f32 %v10697_v19, %v1526_v34  ;;  %3883 = vperm.xlu0 %9548, %v10514_v11  }
 0x1f1   : > { %v1341_v47 = vadd.f32 %v10662_v14, %v1147_v27  ;;  %v2221_v7 = vadd.f32 %v8944_v38, %v2035_v9 }
 0x1f2   : > { %v2190_v48 = vpop.f32.mrf.mxu1  ;;  %9546 = vset.pattern.permute.xlu1 %v13570_v25  ;;  %v1850_v37 = vadd.f32 %v13573_v8, %v1664_v52  ;;  %v13579_v8 = vmov 1  }
 0x1f3   : > { %v2219_v24 = vadd.f32 %v2190_v48, %v2033_v15  ;;  %v1527_v18 = vadd.f32 %v10699_v3, %v1341_v47  ;;  %3886 = vperm.xlu1 %9546, %v10558_v22   ;;  %v13574_v22 = vld [vmem:[#allocation26_spill] sm:$0xff] }
 0x1f4   : > { %v2036_v28 = vadd.f32 %v13576_v16, %v1850_v37  ;;  %3892 = vperm.xlu0 %9548, %v10530_v12  }
 0x1f5   : > { %v8963_v42 = vpop.f32.mrf.mxu0  ;;  %v1665_v38 = vadd.f32 %v13574_v22, %v1527_v18 }
 0x1f6   : > { %v2406_v2 = vadd.f32 %v8963_v42, %v2220_v55  ;;  %v13571_v42 = vld [vmem:[#allocation25_spill] sm:$0xff] }
 0x1f7   : > { %v2373_v61 = vpop.f32.mrf.mxu0  ;;  %v1667_v14 = vadd.f32 %v13571_v42, %v1529_v1  ;;  %3889 = vperm.xlu1 %9546, %v10521_v49  }
 0x1f8   : > { %v2404_v56 = vadd.f32 %v2373_v61, %v2218_v60  ;;  %v13572_v61 = vld [vmem:[#allocation27_spill] sm:$0xff]  ;;  %v10824_v59 = vadd.f32 %v10799_v50, %v2406_v2  ;;  %3895 = vperm.xlu0 %9548, %v10643_v6  }
 0x1f9   : > { %v8964_v26 = vpop.f32.mrf.mxu0  ;;  %v1852_v21 = vadd.f32 %v13572_v61, %v1666_v31  ;;  %v1853_v48 = vadd.f32 %v13575_v58, %v1667_v14 }
 0x1fa   : > { %v10809_v13 = vadd.f32 %v10799_v50, %v2404_v56  ;;  %v2407_v19 = vadd.f32 %v8964_v26, %v2221_v7  ;;  %v2430_v56 = vsel %vm750_vm14, %v10824_v59, 0.0 }
 0x1fb   : > { %v2376_v62 = vpop.f32.mrf.mxu0  ;;  %v2039_v45 = vadd.f32 %v10746_v43, %v1853_v48  ;;  %9547 = vset.pattern.permute.xlu1 %v13568_v17 }
 0x1fc   : > { %v2405_v54 = vadd.f32 %v2376_v62, %v2219_v24  ;;  %v2449_v3 = vmul.f32 %v10809_v13, %v10809_v13  ;;  %v2038_v62 = vadd.f32 %v13577_v4, %v1852_v21  ;;  %v2427_v5 = vsel %vm750_vm14, %v10809_v13, 0.0  ;;  %v13578_v24 = vld [vmem:[#allocation32_spill] sm:$0xff]  ;;  %3741 = vperm.xlu1 %9547, %v10643_v6   ;;  %3904 = vperm.xlu0 %9548, %v10548_v33  }
 0x1fd   : > { %v1851_v32 = vadd.f32 %v13578_v24, %v1665_v38  ;;  %v10845_v12 = vadd.f32 %v10799_v50, %v2407_v19 }
 0x1fe   : > { %v10803_v40 = vadd.f32 %v10799_v50, %v2405_v54  ;;  %v2451_v54 = vmul.f32 %v10824_v59, %v10824_v59  ;;  %v2457_v49 = vsel %vm750_vm14, %v2449_v3, 0.0 }
 0x1ff   : > { %v2037_v43 = vadd.f32 %v10756_v46, %v1851_v32  ;;  %v2452_v55 = vmul.f32 %v10845_v12, %v10845_v12  ;;  %v2432_v6 = vsel %vm750_vm14, %v10845_v12, 0.0 }
 0x200   : > { %v2450_v29 = vmul.f32 %v10803_v40, %v10803_v40  ;;  %v2428_v11 = vsel %vm750_vm14, %v10803_v40, 0.0  ;;  %v2460_v0 = vsel %vm750_vm14, %v2451_v54, 0.0  ;;  %3747 = vperm.xlu1 %9547, %v10624_v57   ;;  %9551 = vset.pattern.permute.xlu0 %v13579_v8 }
 0x201   : > { %v2429_v30 = vadd.f32 %v2428_v11, %v2427_v5  ;;  %v2462_v7 = vsel %vm750_vm14, %v2452_v55, 0.0 }
 0x202   : > { %v8947_v44 = vpop.f32.mrf.mxu1  ;;  %v2458_v26 = vsel %vm750_vm14, %v2450_v29, 0.0 }
 0x203   : > { %v2224_v36 = vadd.f32 %v8947_v44, %v2038_v62  ;;  %v2459_v10 = vadd.f32 %v2458_v26, %v2457_v49  ;;  %v2431_v34 = vadd.f32 %v2430_v56, %v2429_v30 }
 0x204   : > { %v2203_v53 = vpop.f32.mrf.mxu1  ;;  %3750 = vperm.xlu1 %9547, %v10548_v33  }
 0x205   : > { %v2222_v60 = vadd.f32 %v2203_v53, %v2036_v28  ;;  %v2461_v9 = vadd.f32 %v2460_v0, %v2459_v10  ;;  %v2433_v53 = vadd.f32 %v2432_v6, %v2431_v34 }
 0x206   : > { %v8948_v15 = vpop.f32.mrf.mxu1 }
 0x207   : > { %v2225_v27 = vadd.f32 %v8948_v15, %v2039_v45  ;;  %v2463_v21 = vadd.f32 %v2462_v7, %v2461_v9  ;;  %v9650_v9 = vld [vmem:[%s13586_s8 + $0x10] sm:$0xff]   ;;  %v10950_v7 = vld [vmem:[%s13586_s8 + $0x38] sm:$0xff]  }
 0x208   : > { %v2206_v20 = vpop.f32.mrf.mxu1  ;;  %9549 = vset.pattern.permute.xlu1 %v13570_v25 }
 0x209   : > { %v2223_v47 = vadd.f32 %v2206_v20, %v2037_v43  ;;  %3898 = vperm.xlu1 %9549, %v10539_v35   ;;  %v13580_v35 = vld [vmem:[#allocation21_spill] sm:$0xff]  ;;  %v13581_v20 = vmov 0.0   ;;  %v13583_v43 = vld [vmem:[#allocation23_spill] sm:$0xff] }
 0x20a   : > { %762 = vst.msk [vmem:[#allocation3 + $0x50] sm:$0x3] %vm761_vm9, %v13581_v20 }
 0x20b   : > { %v8967_v23 = vpop.f32.mrf.mxu0 }
 0x20c   : > { %v2410_v39 = vadd.f32 %v8967_v23, %v2224_v36 }
 0x20d   : > { %v2389_v41 = vpop.f32.mrf.mxu0  ;;  %3901 = vperm.xlu1 %9549, %v10624_v57  }
 0x20e   : > { %v2408_v63 = vadd.f32 %v2389_v41, %v2222_v60  ;;  %v10865_v31 = vadd.f32 %v10799_v50, %v2410_v39  ;;  %v10910_v39 = vpop.permute.xlu1 %2772 }
 0x20f   : > { %v8968_v51 = vpop.f32.mrf.mxu0  ;;  %vm2795_vm10 = vcmp.eq.s32.totalorder %v10910_v39, 1 }
 0x210   : > { %v10854_v44 = vadd.f32 %v10799_v50, %v2408_v63  ;;  %v2411_v1 = vadd.f32 %v8968_v51, %v2225_v27  ;;  %v2455_v37 = vmul.f32 %v10865_v31, %v10865_v31  ;;  %v13582_v63 = vld [vmem:[#allocation22_spill] sm:$0xff]  ;;  %v13584_v27 = vld [vmem:[#allocation24_spill] sm:$0xff] }
 0x211   : > { %v2392_v46 = vpop.f32.mrf.mxu0  ;;  %9550 = vset.pattern.permute.xlu1 %v13579_v8 }
 0x212   : > { %v2453_v2 = vmul.f32 %v10854_v44, %v10854_v44  ;;  %v2434_v52 = vsel %vm750_vm14, %v10854_v44, 0.0  ;;  %v2409_v18 = vadd.f32 %v2392_v46, %v2223_v47  ;;  %v10873_v42 = vadd.f32 %v10799_v50, %v2411_v1  ;;  %v10912_v51 = vpop.permute.xlu1 %2778  ;;  %v9648_v47 = vld [vmem:[%s13585_s27 + $0x18] sm:$0xff]   ;;  %v9649_v1 = vld [vmem:[%s13586_s8 + $0x8] sm:$0xff]  }
 0x213   : > { %v2435_v61 = vadd.f32 %v2434_v52, %v2433_v53  ;;  %v2468_v28 = vsel %vm750_vm14, %v2455_v37, 0.0  ;;  %9003 = vmatprep.subr.bf16.mxu0 %v9649_v1  ;;  %v10940_v52 = vld [vmem:[%s13586_s8 + $0x28] sm:$0xff]   ;;  %vm2797_vm11 = vcmp.eq.s32.totalorder %v10912_v51, 1 }
 0x214   : > { %v2464_v29 = vsel %vm750_vm14, %v2453_v2, 0.0  ;;  %v10876_v14 = vadd.f32 %v10799_v50, %v2409_v18  ;;  %v2438_v50 = vsel %vm750_vm14, %v10865_v31, 0.0  ;;  %v2456_v38 = vmul.f32 %v10873_v42, %v10873_v42  ;;  %9004 = vmatpush3.bf16.msra.mxu0 %v9649_v1  ;;  %v9651_v2 = vld [vmem:[%s13586_s8] sm:$0xff]  }
 0x215   : > { %v2465_v11 = vadd.f32 %v2464_v29, %v2463_v21  ;;  %v2440_v15 = vsel %vm750_vm14, %v10873_v42, 0.0  ;;  %9005 = vmatprep.subr.bf16.mxu0 %v9651_v2 }
 0x216   : > { %v2436_v3 = vsel %vm750_vm14, %v10876_v14, 0.0  ;;  %v2454_v19 = vmul.f32 %v10876_v14, %v10876_v14  ;;  %v2470_v62 = vsel %vm750_vm14, %v2456_v38, 0.0  ;;  %v10914_v34 = vpop.permute.xlu1 %2781 }
 0x217   : > { %v2437_v22 = vadd.f32 %v2436_v3, %v2435_v61  ;;  %vm2798_vm12 = vcmp.eq.s32.totalorder %v10914_v34, 1 }
 0x218   : > { %v2466_v58 = vsel %vm750_vm14, %v2454_v19, 0.0  ;;  %9006 = vmatpush3.bf16.msra.mxu0 %v9651_v2 }
 0x219   : > { %v2439_v48 = vadd.f32 %v2438_v50, %v2437_v22  ;;  %v2467_v16 = vadd.f32 %v2466_v58, %v2465_v11  ;;  %9027 = vmatprep.subr.bf16.mxu0 %v10950_v7  ;;  %v10965_v11 = vpop.permute.xlu0 %2775 }
 0x21a   : > { %v10916_v0 = vpop.permute.xlu1 %2787  ;;  %vm2796_vm1 = vcmp.eq.s32.totalorder %v10965_v11, 1 }
 0x21b   : > { %v2441_v33 = vadd.f32 %v2440_v15, %v2439_v48  ;;  %v2469_v4 = vadd.f32 %v2468_v28, %v2467_v16  ;;  %vm2800_vm15 = vcmp.eq.s32.totalorder %v10916_v0, 1  ;;  %v9655_v0 = vld [vmem:[%s13586_s8 + $0x30] sm:$0xff]  }
 0x21d   : > { %v2442_v5 = vrot.slane %v2441_v33, 4  ;;  %v2471_v26 = vadd.f32 %v2470_v62, %v2469_v4  ;;  %v10969_v50 = vpop.permute.xlu0 %2784 }
 0x21e   : > { %v10918_v55 = vpop.permute.xlu1 %2793  ;;  %vm2799_vm4 = vcmp.eq.s32.totalorder %v10969_v50, 1 }
 0x21f   : > { %v2443_v23 = vadd.f32 %v2442_v5, %v2441_v33  ;;  %v2472_v24 = vrot.slane %v2471_v26, 4  ;;  %vm2802_vm9 = vcmp.eq.s32.totalorder %v10918_v55, 1 }
 0x221   : > { %v2444_v32 = vrot.slane %v2443_v23, 2  ;;  %v2473_v45 = vadd.f32 %v2472_v24, %v2471_v26  ;;  %v10973_v58 = vpop.permute.xlu0 %2790 }
 0x222   : > { %v10927_v46 = vpop.permute.xlu1 %2719 }
 0x223   : > { %v2445_v30 = vadd.f32 %v2444_v32, %v2443_v23  ;;  %v2474_v60 = vrot.slane %v2473_v45, 2  ;;  %vm2740_vm0 = vcmp.eq.s32.totalorder %v10927_v46, 1 }
 0x225   : > { %v2446_v54 = vrot.slane %v2445_v30, 1  ;;  %v2475_v49 = vadd.f32 %v2474_v60, %v2473_v45  ;;  %v10977_v16 = vpop.permute.xlu0 %2716 }
 0x226   : > { %v10935_v6 = vpop.permute.xlu1 %2722  ;;  %vm2739_vm13 = vcmp.eq.s32.totalorder %v10977_v16, 1 }
 0x227   : > { %v2447_v36 = vadd.f32 %v2446_v54, %v2445_v30  ;;  %v2476_v10 = vrot.slane %v2475_v49, 1  ;;  %vm2741_vm2 = vcmp.eq.s32.totalorder %v10935_v6, 1  ;;  %v9653_v6 = vld [vmem:[%s13586_s8 + $0x20] sm:$0xff]  }
 0x229   : > { %v2448_v41 = vmul.f32 0.015625, %v2447_v36  ;;  %v2477_v57 = vadd.f32 %v2476_v10, %v2475_v49  ;;  %v10981_v4 = vpop.permute.xlu0 %2725  ;;  %v2640_v36 = vlaneseq }
 0x22a   : > { %v10943_v18 = vpop.permute.xlu1 %3007  ;;  %vm2742_vm5 = vcmp.eq.s32.totalorder %v10981_v4, 1 }
 0x22b   : > { %8978 = vmatmul.mubr.msk.f32.vlgmr.msra.gmra.mxu1 %vm750_vm14, %v2448_v41  ;;  %v2478_v56 = vmul.f32 0.015625, %v2477_v57  ;;  %v2641_v10 = vshrl.u32 %v2640_v36, 7  ;;  %v2632_v57 = vld [vmem:[%s13587_s29] sm:$0x1]  ;;  %s13618_s29 = sld [smem:[#allocation40_spill]] }
 0x22c   : > { %8981 = vmatpush3.msra.mxu1 %v13580_v35  ;;  %8988 = vmatprep.mubr.msk.f32.mxu1 %vm9785_vm6, %v13581_v20 }
 0x22d   : > { %8982 = vmatprep.subr.mxu1 %v13581_v20  ;;  %v10985_v23 = vpop.permute.xlu0 %2728 }
 0x22e   : > { %8983 = vmatpush3.msra.mxu1 %v13582_v63  ;;  %v10945_v53 = vpop.permute.xlu1 %3013  ;;  %vm2743_vm7 = vcmp.eq.s32.totalorder %v10985_v23, 1 }
 0x22f   : > { %8984 = vmatprep.subr.mxu1 %v13581_v20 }
 0x230   : > { %8985 = vmatpush3.msra.mxu1 %v13583_v43  ;;  %v11002_v43 = vsub.s32 0, %v2641_v10 }
 0x231   : > { %8986 = vmatprep.subr.mxu1 %v13581_v20  ;;  %v10989_v54 = vpop.permute.xlu0 %2737 }
 0x232   : > { %8987 = vmatpush3.msra.mxu1 %v13584_v27  ;;  %v10953_v29 = vpop.permute.xlu1 %3016  ;;  %13588 = vst [vmem:[#allocation25_spill] sm:$0xff] %v11002_v43 }
 0x233   : > { %8989 = vmatmul.mubr.msk.f32.vlgmr.msra.gmra.mxu1 %vm750_vm14, %v2478_v56  ;;  %8991 = vmatprep.subr.bf16.mxu1 %v9648_v47 }
 0x234   : > { %8992 = vmatpush3.bf16.msra.mxu1 %v9648_v47  ;;  %v2636_v47 = vld [vmem:[%s13589_s30] sm:$0x1]  ;;  %s13336_s30 = scalar_lea.hbm %s13418_s24, %s8461_s2 }
 0x235   : > { %8993 = vmatprep.subr.bf16.mxu1 %v9650_v9  ;;  %v10993_v41 = vpop.permute.xlu0 %3010 }
 0x236   : > { %v10955_v61 = vpop.permute.xlu1 %2731 }
 0x237   : > { %vm2744_vm3 = vcmp.eq.s32.totalorder %v10955_v61, 1 }
 0x238   : > { %8994 = vmatpush3.bf16.msra.mxu1 %v9650_v9 }
 0x239   : > { %9015 = vmatprep.subr.bf16.mxu1 %v10940_v52  ;;  %v11000_v63 = vpop.permute.xlu0 %3022 }
 0x23a   : > { %v10957_v21 = vpop.permute.xlu1 %2734 }
 0x23e   : > { %v10959_v37 = vpop.permute.xlu1 %3019 }
 0x242   : > { %v10961_v3 = vpop.permute.xlu1 %3025 }
 0x246   : > { %v10963_v19 = vpop.permute.xlu1 %3028 }
 0x24a   : > { %v10967_v22 = vpop.permute.xlu1 %3164 }
 0x24e   : > { %v10971_v38 = vpop.permute.xlu1 %3167 }
 0x252   : > { %v10975_v48 = vpop.permute.xlu1 %3173 }
 0x256   : > { %v10979_v15 = vpop.permute.xlu1 %3179 }
 0x25a   : > { %v10983_v62 = vpop.permute.xlu1 %3421 }
 0x25e   : > { %v10987_v30 = vpop.permute.xlu1 %3427 }
 0x262   : > { %v10991_v49 = vpop.permute.xlu1 %3430 }
 0x266   : > { %v10995_v35 = vpop.permute.xlu1 %3578 }
 0x26a   : > { %v11007_v1 = vpop.permute.xlu1 %3581 }
 0x26b   : > { %13590 = vst [vmem:[#allocation27_spill] sm:$0xff] %v11007_v1 }
 0x2eb   : > { %v2552_v28 = vpop.f32.mrf.mxu1 }
 0x2ec   : > { %v2629_v5 = vmul.f32 %v2552_v28, %v2552_v28 }
 0x2ed   : > { %v8979_v33 = vpop.f32.mrf.mxu1 }
 0x2ee   : > { %v11010_v33 = vpop.permute.xlu0 %3161 }
 0x2f3   : > { %v2625_v26 = vpop.f32.mrf.mxu1 }
 0x2f4   : > { %v2630_v24 = vsub.f32 %v2625_v26, %v2629_v5 }
 0x2f5   : > { %v8990_v32 = vpop.f32.mrf.mxu1 }
 0x2f6   : > { %v2631_v45 = vmax.f32 %v2630_v24, 0.0 }
 0x2f8   : > { %v2633_v60 = vadd.f32 1e-06, %v2631_v45 }
 0x2fa   : > { %9702 = vrsqrt.f32 %v2633_v60 }
 0x307   : > { %v9703_v56 = vpop.eup %9702 }
 0x308   : > { %v2635_v27 = vmul.f32 %v9703_v56, %v2632_v57  ;;  %v11021_v56 = vpop.permute.xlu1 %3433 }
 0x30a   : > { %v2637_v9 = vmul.f32 %v2635_v27, %v2552_v28  ;;  %v2643_v2 = vrot.slane %v2635_v27, %v11002_v43 }
 0x30c   : > { %v2638_v5 = vsub.f32 %v2636_v47, %v2637_v9  ;;  %v2645_v26 = vmul.f32 %v2643_v2, %v10809_v13  ;;  %v2647_v24 = vmul.f32 %v2643_v2, %v10824_v59  ;;  %v2646_v45 = vmul.f32 %v2643_v2, %v10803_v40 }
 0x30d   : > { %v2648_v60 = vmul.f32 %v2643_v2, %v10845_v12  ;;  %v2649_v36 = vmul.f32 %v2643_v2, %v10854_v44  ;;  %v2650_v10 = vmul.f32 %v2643_v2, %v10876_v14  ;;  %v2651_v28 = vmul.f32 %v2643_v2, %v10865_v31  ;;  %v11039_v31 = vpop.permute.xlu0 %3170 }
 0x30e   : > { %v2657_v32 = vrot.slane %v2638_v5, %v11002_v43  ;;  %v2652_v57 = vmul.f32 %v2643_v2, %v10873_v42 }
 0x310   : > { %v11023_v27 = vadd.f32 %v2657_v32, %v2646_v45  ;;  %v11025_v13 = vadd.f32 %v2657_v32, %v2645_v26  ;;  %v11027_v59 = vadd.f32 %v2657_v32, %v2647_v24  ;;  %v11029_v47 = vadd.f32 %v2657_v32, %v2648_v60 }
 0x311   : > { %v11031_v40 = vadd.f32 %v2657_v32, %v2649_v36  ;;  %v11033_v12 = vadd.f32 %v2657_v32, %v2650_v10  ;;  %v11035_v44 = vadd.f32 %v2657_v32, %v2651_v28  ;;  %v11037_v14 = vadd.f32 %v2657_v32, %v2652_v57  ;;  %v11073_v32 = vpop.permute.xlu1 %3439  ;;  %v11075_v36 = vpop.permute.xlu0 %3176  ;;  %v2763_v28 = vld [vmem:[#allocation3 + $0x1] sm:$0xff] }
 0x312   : > { %v13466_v42 = vmax.f32 %v11023_v27, 0.0  ;;  %v13467_v9 = vmax.f32 %v11025_v13, 0.0  ;;  %v13465_v2 = vmax.f32 %v11027_v59, 0.0  ;;  %v13464_v5 = vmax.f32 %v11029_v47, 0.0 }
 0x313   : > { %13591 = vst [vmem:[#allocation28_spill] sm:$0xff] %v11037_v14  ;;  %v13463_v26 = vmax.f32 %v11031_v40, 0.0  ;;  %v13460_v24 = vmax.f32 %v11033_v12, 0.0  ;;  %v13461_v45 = vmax.f32 %v11035_v44, 0.0  ;;  %v13462_v60 = vmax.f32 %v11037_v14, 0.0 }
 0x314   : > { %2676 = vst.msk [vmem:[#allocation3 + $0x11] sm:$0xff] %vm750_vm14, %v13466_v42  ;;  %2675 = vst.msk [vmem:[#allocation3 + $0x9] sm:$0xff] %vm750_vm14, %v13467_v9 }
 0x315   : > { %2677 = vst.msk [vmem:[#allocation3 + $0x19] sm:$0xff] %vm750_vm14, %v13465_v2  ;;  %2678 = vst.msk [vmem:[#allocation3 + $0x21] sm:$0xff] %vm750_vm14, %v13464_v5  ;;  %v11077_v10 = vpop.permute.xlu1 %3442  ;;  %v11080_v57 = vpop.permute.xlu0 %3182 }
 0x316   : > { %2679 = vst.msk [vmem:[#allocation3 + $0x29] sm:$0xff] %vm750_vm14, %v13463_v26  ;;  %2680 = vst.msk [vmem:[#allocation3 + $0x31] sm:$0xff] %vm750_vm14, %v13460_v24  ;;  %v2803_v24 = vsel %vm2795_vm10, %v2763_v28, 0.0  ;;  %vm3030_vm10 = vcmp.eq.s32.totalorder %v10943_v18, 1  ;;  %v9658_v18 = vld [vmem:[%s13586_s8 + $0x58] sm:$0xff]  }
 0x317   : > { %2681 = vst.msk [vmem:[#allocation3 + $0x39] sm:$0xff] %vm750_vm14, %v13461_v45  ;;  %2682 = vst.msk [vmem:[#allocation3 + $0x41] sm:$0xff] %vm750_vm14, %v13462_v60  ;;  %v2683_v45 = vld [vmem:[#allocation3] sm:$0xff] }
 0x318   : > { %v2747_v9 = vsel %vm2739_vm13, %v2683_v45, 0.0  ;;  %vm2745_vm13 = vcmp.eq.s32.totalorder %v10957_v21, 1 }
 0x319   : > { %v11090_v26 = vpop.permute.xlu1 %3590  ;;  %v11104_v43 = vpop.permute.xlu0 %3424 }
 0x31a   : > { %13592 = vst [vmem:[#allocation26_spill] sm:$0xff] %v11090_v26 }
 0x31b   : > { %v11085_v60 = vld [vmem:[#allocation3 + $0x11] sm:$0xff]  ;;  %v2764_v5 = vld [vmem:[#allocation3 + $0x9] sm:$0xff] }
 0x31c   : > { %v11092_v39 = vld [vmem:[#allocation3 + $0x10] sm:$0xff]  ;;  %v11094_v28 = vld [vmem:[#allocation3 + $0x18] sm:$0xff]  ;;  %v11099_v16 = vld [vmem:[#allocation3 + $0x21] sm:$0xff]  ;;  %v2804_v17 = vsel %vm2796_vm1, %v2764_v5, 0.0  ;;  %v2805_v4 = vsel %vm2797_vm11, %v11085_v60, 0.0  ;;  %vm3031_vm11 = vcmp.eq.s32.totalorder %v10993_v41, 1 }
 0x31d   : > { %v11101_v2 = vld [vmem:[#allocation3 + $0x19] sm:$0xff]  ;;  %v2684_v42 = vld [vmem:[#allocation3 + $0x8] sm:$0xff]  ;;  %v2811_v1 = vpack.c.bf16 %v2804_v17, %v2803_v24  ;;  %v2749_v11 = vsel %vm2741_vm2, %v11092_v39, 0.0  ;;  %v2750_v46 = vsel %vm2742_vm5, %v11094_v28, 0.0  ;;  %v2807_v23 = vsel %vm2799_vm4, %v11099_v16, 0.0  ;;  %v11141_v50 = vld [vmem:[#allocation3 + $0x30] sm:$0xff]  ;;  %v11161_v61 = vpop.permute.xlu0 %3436 }
 0x31e   : > { %v11106_v8 = vld [vmem:[#allocation3 + $0x20] sm:$0xff]  ;;  %v11108_v25 = vld [vmem:[#allocation3 + $0x29] sm:$0xff]  ;;  %v2748_v20 = vsel %vm2740_vm0, %v2684_v42, 0.0  ;;  %v2806_v14 = vsel %vm2798_vm12, %v11101_v2, 0.0  ;;  %v11151_v24 = vld [vmem:[#allocation3 + $0x31] sm:$0xff]  ;;  %vm3184_vm12 = vcmp.eq.s32.totalorder %v11010_v33, 1 }
 0x31f   : > { %v11115_v26 = vld [vmem:[#allocation3 + $0x28] sm:$0xff]  ;;  %v2755_v45 = vpack.c.bf16 %v2748_v20, %v2747_v9  ;;  %8995 = vmatprep.mubr.msk.bf16.mxu1 %vm750_vm14, %v2811_v1  ;;  %v2812_v17 = vpack.c.bf16 %v2806_v14, %v2805_v4  ;;  %v2756_v20 = vpack.c.bf16 %v2750_v46, %v2749_v11  ;;  %v2808_v51 = vsel %vm2800_vm15, %v11108_v25, 0.0  ;;  %v11139_v9 = vpop.permute.xlu1 %3593  ;;  %v11149_v14 = vld [vmem:[#allocation3 + $0x38] sm:$0xff] }
 0x320   : > { %v2751_v34 = vsel %vm2743_vm7, %v11106_v8, 0.0  ;;  %v2813_v5 = vpack.c.bf16 %v2808_v51, %v2807_v23  ;;  %v2752_v1 = vsel %vm2744_vm3, %v11115_v26, 0.0  ;;  %v2998_v11 = vld [vmem:[#allocation3 + $0x2] sm:$0xff]  ;;  %v11165_v46 = vld [vmem:[#allocation3 + $0xa] sm:$0xff]  ;;  %vm3185_vm15 = vcmp.eq.s32.totalorder %v10967_v22, 1  ;;  %v11198_v33 = vld [vmem:[#allocation3 + $0x1a] sm:$0xff] }
 0x321   : > { %9007 = vmatprep.mubr.msk.bf16.mxu0 %vm750_vm14, %v2755_v45  ;;  %v11153_v45 = vld [vmem:[#allocation3 + $0x39] sm:$0xff]  ;;  %8996 = vmatmul.mubr.msk.bf16.vlgmr.msra.gmra.mxu1 %vm750_vm14, %v2812_v17  ;;  %v2757_v4 = vpack.c.bf16 %v2752_v1, %v2751_v34  ;;  %vm2801_vm0 = vcmp.eq.s32.totalorder %v10973_v58, 1  ;;  %vm2746_vm1 = vcmp.eq.s32.totalorder %v10989_v54, 1  ;;  %v2753_v21 = vsel %vm2745_vm13, %v11141_v50, 0.0 }
 0x322   : > { %9008 = vmatmul.mubr.msk.bf16.vlgmr.msra.gmra.mxu0 %vm750_vm14, %v2756_v20  ;;  %9016 = vmatpush3.bf16.msra.mxu1 %v10940_v52  ;;  %v9656_v52 = vld [vmem:[%s13586_s8 + $0x48] sm:$0xff]   ;;  %v2809_v23 = vsel %vm2801_vm0, %v11151_v24, 0.0  ;;  %v2810_v17 = vsel %vm2802_vm9, %v11153_v45, 0.0  ;;  %v2754_v22 = vsel %vm2746_vm1, %v11149_v14, 0.0  ;;  %v3038_v58 = vsel %vm3030_vm10, %v2998_v11, 0.0 }
 0x323   : > { %8999 = vmatprep.mubr.msk.bf16.mxu1 %vm750_vm14, %v2813_v5  ;;  %9011 = vmatprep.mubr.msk.bf16.mxu0 %vm750_vm14, %v2757_v4  ;;  %v3039_v54 = vsel %vm3031_vm11, %v11165_v46, 0.0  ;;  %v3192_v20 = vsel %vm3184_vm12, %v2684_v42, 0.0  ;;  %v3193_v51 = vsel %vm3185_vm15, %v11092_v39, 0.0  ;;  %v11190_v55 = vpop.permute.xlu1 %3729  ;;  %v2814_v34 = vpack.c.bf16 %v2810_v17, %v2809_v23  ;;  %v11200_v42 = vld [vmem:[#allocation3 + $0x12] sm:$0xff]  ;;  %v11208_v4 = vld [vmem:[#allocation3 + $0x2a] sm:$0xff] }
 0x324   : > { %9017 = vmatprep.subr.bf16.mxu1 %v9653_v6  ;;  %9028 = vmatpush3.bf16.msra.mxu0 %v10950_v7  ;;  %v2758_v5 = vpack.c.bf16 %v2754_v22, %v2753_v21  ;;  %v11195_v7 = vpop.permute.xlu0 %3575  ;;  %v3046_v41 = vpack.c.bf16 %v3039_v54, %v3038_v58  ;;  %v3200_v1 = vpack.c.bf16 %v3193_v51, %v3192_v20  ;;  %vm3187_vm2 = vcmp.eq.s32.totalorder %v11039_v31, 1  ;;  %v9657_v31 = vld [vmem:[%s13586_s8 + $0x40] sm:$0xff]   ;;  %v11242_v20 = vld [vmem:[#allocation3 + $0x3a] sm:$0xff]  ;;  %v11244_v51 = vld [vmem:[#allocation3 + $0x32] sm:$0xff] }
 0x325   : > { %9029 = vmatprep.subr.bf16.mxu0 %v9655_v0  ;;  %vm3032_vm3 = vcmp.eq.s32.totalorder %v10945_v53, 1  ;;  %vm3035_vm4 = vcmp.eq.s32.totalorder %v11000_v63, 1  ;;  %vm3033_vm5 = vcmp.eq.s32.totalorder %v10953_v29, 1  ;;  %vm3034_vm7 = vcmp.eq.s32.totalorder %v10959_v37, 1  ;;  %v11240_v63 = vld [vmem:[#allocation3 + $0x40] sm:$0xff] }
 0x326   : > { %9018 = vmatpush3.bf16.msra.mxu1 %v9653_v6  ;;  %v11206_v6 = vld [vmem:[#allocation3 + $0x22] sm:$0xff]  ;;  %vm3186_vm9 = vcmp.eq.s32.totalorder %v10971_v38, 1  ;;  %vm3189_vm10 = vcmp.eq.s32.totalorder %v11075_v36, 1  ;;  %v3041_v11 = vsel %vm3033_vm5, %v11198_v33, 0.0  ;;  %v3195_v17 = vsel %vm3187_vm2, %v11106_v8, 0.0 }
 0x327   : > { %9039 = vmatprep.subr.bf16.mxu1 %v9656_v52  ;;  %v11216_v53 = vpop.permute.xlu1 %3735  ;;  %v3194_v23 = vsel %vm3186_vm9, %v11094_v28, 0.0  ;;  %vm3188_vm11 = vcmp.eq.s32.totalorder %v10975_v48, 1  ;;  %v3042_v29 = vsel %vm3034_vm7, %v11206_v6, 0.0  ;;  %v3043_v37 = vsel %vm3035_vm4, %v11208_v4, 0.0  ;;  %v9659_v48 = vld [vmem:[%s13586_s8 + $0x50] sm:$0xff]  }
 0x328   : > { %9030 = vmatpush3.bf16.msra.mxu0 %v9655_v0  ;;  %v3040_v0 = vsel %vm3032_vm3, %v11200_v42, 0.0  ;;  %v11229_v38 = vpop.permute.xlu0 %3584  ;;  %v3196_v36 = vsel %vm3188_vm11, %v11115_v26, 0.0  ;;  %v3197_v21 = vsel %vm3189_vm10, %v11141_v50, 0.0  ;;  %v3201_v58 = vpack.c.bf16 %v3195_v17, %v3194_v23  ;;  %v9662_v17 = vld [vmem:[%s13586_s8 + $0x78] sm:$0xff]  }
 0x329   : > { %9000 = vmatmul.mubr.msk.bf16.gmra.mxu1 %vm750_vm14, %v2814_v34  ;;  %9051 = vmatprep.subr.bf16.mxu0 %v9658_v18  ;;  %v3047_v22 = vpack.c.bf16 %v3041_v11, %v3040_v0  ;;  %v3048_v54 = vpack.c.bf16 %v3043_v37, %v3042_v29  ;;  %vm3191_vm12 = vcmp.eq.s32.totalorder %v11080_v57, 1  ;;  %v3202_v34 = vpack.c.bf16 %v3197_v21, %v3196_v36 }
 0x32a   : > { %9012 = vmatmul.mubr.msk.bf16.gmra.mxu0 %vm750_vm14, %v2758_v5  ;;  %9019 = vmatprep.mubr.msk.bf16.mxu1 %vm750_vm14, %v3046_v41  ;;  %vm3445_vm13 = vcmp.eq.s32.totalorder %v11104_v43, 1  ;;  %vm3036_vm15 = vcmp.eq.s32.totalorder %v10961_v3, 1  ;;  %vm3037_vm0 = vcmp.eq.s32.totalorder %v10963_v19, 1  ;;  %vm3190_vm1 = vcmp.eq.s32.totalorder %v10979_v15, 1  ;;  %v9660_v41 = vld [vmem:[%s13586_s8 + $0x68] sm:$0xff]  }
 0x32b   : > { %9031 = vmatprep.mubr.msk.bf16.mxu0 %vm750_vm14, %v3200_v1  ;;  %v11249_v5 = vpop.permute.xlu1 %3738  ;;  %vm3444_vm2 = vcmp.eq.s32.totalorder %v10983_v62, 1  ;;  %v3045_v0 = vsel %vm3037_vm0, %v11242_v20, 0.0  ;;  %v3198_v3 = vsel %vm3190_vm1, %v11149_v14, 0.0  ;;  %v3199_v19 = vsel %vm3191_vm12, %v11240_v63, 0.0 }
 0x32c   : > { %v11260_v1 = vpop.permute.xlu0 %3587  ;;  %v3452_v15 = vsel %vm3444_vm2, %v11165_v46, 0.0  ;;  %v3453_v62 = vsel %vm3445_vm13, %v11200_v42, 0.0  ;;  %v3203_v23 = vpack.c.bf16 %v3199_v19, %v3198_v3  ;;  %v13593_v57 = vmax.f32 %v11025_v13, 0.0 }
 0x32d   : > { %v3460_v37 = vpack.c.bf16 %v3453_v62, %v3452_v15  ;;  %vm3446_vm3 = vcmp.eq.s32.totalorder %v10987_v30, 1  ;;  %vm3447_vm4 = vcmp.eq.s32.totalorder %v10991_v49, 1  ;;  %vm3448_vm5 = vcmp.eq.s32.totalorder %v11021_v56, 1  ;;  %v9661_v56 = vld [vmem:[%s13586_s8 + $0x60] sm:$0xff]  }
 0x32e   : > { %vm3449_vm7 = vcmp.eq.s32.totalorder %v11161_v61, 1  ;;  %v3455_v13 = vsel %vm3447_vm4, %v11206_v6, 0.0  ;;  %v3456_v21 = vsel %vm3448_vm5, %v11208_v4, 0.0  ;;  %v13596_v30 = vmax.f32 %v11029_v47, 0.0  ;;  %v9663_v47 = vld [vmem:[%s13586_s8 + $0x70] sm:$0xff]  }
 0x32f   : > { %v11275_v29 = vpop.permute.xlu1 %3886  ;;  %vm3450_vm9 = vcmp.eq.s32.totalorder %v11073_v32, 1  ;;  %vm3451_vm10 = vcmp.eq.s32.totalorder %v11077_v10, 1  ;;  %vm3599_vm11 = vcmp.eq.s32.totalorder %v10995_v35, 1  ;;  %vm3752_vm12 = vcmp.eq.s32.totalorder %v11190_v55, 1  ;;  %v13600_v32 = vld [vmem:[#allocation28_spill] sm:$0xff] }
 0x330   : > { %v11283_v43 = vpop.permute.xlu0 %3596  ;;  %vm3598_vm13 = vcmp.eq.s32.totalorder %v11195_v7, 1  ;;  %v3458_v35 = vsel %vm3450_vm9, %v11242_v20, 0.0  ;;  %v3760_v7 = vsel %vm3752_vm12, %v11085_v60, 0.0  ;;  %v13599_v15 = vmax.f32 %v11035_v44, 0.0  ;;  %v13602_v60 = vld [vmem:[#allocation27_spill] sm:$0xff]  ;;  %v13603_v44 = vld [vmem:[#allocation26_spill] sm:$0xff] }
 0x331   : > { %9020 = vmatmul.mubr.msk.bf16.vlgmr.msra.gmra.mxu1 %vm750_vm14, %v3047_v22  ;;  %v3457_v22 = vsel %vm3449_vm7, %v11244_v51, 0.0  ;;  %v13601_v62 = vmax.f32 %v13600_v32, 0.0  ;;  %vm3600_vm0 = vcmp.eq.s32.totalorder %v13602_v60, 1  ;;  %vm3754_vm1 = vcmp.eq.s32.totalorder %v11216_v53, 1  ;;  %v4313_v60 = vld [vmem:[%s13543_s1 + $0x30] sm:$0xff] }
 0x332   : > { %9032 = vmatmul.mubr.msk.bf16.vlgmr.msra.gmra.mxu0 %vm750_vm14, %v3201_v58  ;;  %9040 = vmatpush3.bf16.msra.mxu1 %v9656_v52  ;;  %v3044_v52 = vsel %vm3036_vm15, %v11244_v51, 0.0  ;;  %v13595_v58 = vmax.f32 %v11027_v59, 0.0  ;;  %v3462_v59 = vpack.c.bf16 %v3457_v22, %v3456_v21  ;;  %vm3601_vm2 = vcmp.eq.s32.totalorder %v11229_v38, 1  ;;  %v3726_v21 = vld [vmem:[#allocation3 + $0x41] sm:$0xff] }
 0x333   : > { %9023 = vmatprep.mubr.msk.bf16.mxu1 %vm750_vm14, %v3048_v54  ;;  %9035 = vmatprep.mubr.msk.bf16.mxu0 %vm750_vm14, %v3202_v34  ;;  %v3049_v11 = vpack.c.bf16 %v3045_v0, %v3044_v52  ;;  %v11293_v36 = vpop.permute.xlu1 %3889  ;;  %v13597_v54 = vmax.f32 %v11031_v40, 0.0  ;;  %v11310_v52 = vld [vmem:[#allocation3 + $0x42] sm:$0xff]  ;;  %v9664_v40 = vld [vmem:[%s13586_s8 + $0x88] sm:$0xff]   ;;  %v3607_v0 = vsel %vm3599_vm11, %v11094_v28, 0.0  ;;  %vm3603_vm4 = vcmp.eq.s32.totalorder %v13603_v44, 1 }
 0x334   : > { %9041 = vmatprep.subr.bf16.mxu1 %v9657_v31  ;;  %9052 = vmatpush3.bf16.msra.mxu0 %v9658_v18  ;;  %v13594_v18 = vmax.f32 %v11023_v27, 0.0  ;;  %v3454_v27 = vsel %vm3446_vm3, %v11198_v33, 0.0  ;;  %v3307_v49 = vpack.c.bf16 %v13596_v30, %v13595_v58  ;;  %v3733_v61 = vpop.permute.xlu0 %3732  ;;  %v3459_v55 = vsel %vm3451_vm10, %v11310_v52, 0.0  ;;  %v4311_v44 = vld [vmem:[%s13543_s1 + $0x20] sm:$0xff] }
 0x335   : > { %9053 = vmatprep.subr.bf16.mxu0 %v9659_v48  ;;  %vm3753_vm15 = vcmp.eq.s32.totalorder %v3733_v61, 1  ;;  %vm3755_vm3 = vcmp.eq.s32.totalorder %v11249_v5, 1  ;;  %vm3602_vm5 = vcmp.eq.s32.totalorder %v11260_v1, 1  ;;  %v3762_v28 = vsel %vm3754_vm1, %v11099_v16, 0.0  ;;  %v9665_v16 = vld [vmem:[%s13586_s8 + $0x80] sm:$0xff]  }
 0x336   : > { %9042 = vmatpush3.bf16.msra.mxu1 %v9657_v31  ;;  %v3306_v46 = vpack.c.bf16 %v13594_v18, %v13593_v57  ;;  %v3461_v31 = vpack.c.bf16 %v3455_v13, %v3454_v27  ;;  %v3761_v3 = vsel %vm3753_vm15, %v11101_v2, 0.0  ;;  %v3608_v53 = vsel %vm3600_vm0, %v11106_v8, 0.0 }
 0x337   : > { %9063 = vmatprep.subr.bf16.mxu1 %v9660_v41  ;;  %v3609_v38 = vsel %vm3601_vm2, %v11115_v26, 0.0  ;;  %v3763_v5 = vsel %vm3755_vm3, %v11108_v25, 0.0  ;;  %v3610_v1 = vsel %vm3602_vm5, %v11141_v50, 0.0  ;;  %v3611_v18 = vsel %vm3603_vm4, %v11149_v14, 0.0  ;;  %v3573_v25 = vld [vmem:[#allocation3 + $0x48] sm:$0xff] }
 0x338   : > { %9054 = vmatpush3.bf16.msra.mxu0 %v9659_v48  ;;  %v13598_v48 = vmax.f32 %v11033_v12, 0.0  ;;  %v3742_v12 = vpop.permute.xlu1 %3741  ;;  %v3745_v19 = vpop.permute.xlu0 %3744  ;;  %v3615_v27 = vpack.c.bf16 %v3609_v38, %v3608_v53  ;;  %v3769_v13 = vpack.c.bf16 %v3763_v5, %v3762_v28  ;;  %vm3604_vm10 = vcmp.eq.s32.totalorder %v11139_v9, 1  ;;  %v3727_v14 = vld [vmem:[#allocation3 + $0x49] sm:$0xff] }
 0x339   : > { %9024 = vmatmul.mubr.msk.bf16.gmra.mxu1 %vm750_vm14, %v3049_v11  ;;  %9075 = vmatprep.subr.bf16.mxu0 %v9662_v17  ;;  %v3309_v11 = vpack.c.bf16 %v13601_v62, %v13599_v15  ;;  %vm3756_vm7 = vcmp.eq.s32.totalorder %v3742_v12, 1  ;;  %vm3757_vm9 = vcmp.eq.s32.totalorder %v3745_v19, 1  ;;  %v3616_v8 = vpack.c.bf16 %v3611_v18, %v3610_v1  ;;  %v4308_v15 = vld [vmem:[%s13543_s1 + $0x8] sm:$0xff] }
 0x33a   : > { %9036 = vmatmul.mubr.msk.bf16.gmra.mxu0 %vm750_vm14, %v3203_v23  ;;  %9043 = vmatprep.mubr.msk.bf16.mxu1 %vm750_vm14, %v3306_v46  ;;  %v3308_v34 = vpack.c.bf16 %v13598_v48, %v13597_v54  ;;  %v3463_v23 = vpack.c.bf16 %v3459_v55, %v3458_v35  ;;  %v3764_v46 = vsel %vm3756_vm7, %v11151_v24, 0.0  ;;  %vm3605_vm11 = vcmp.eq.s32.totalorder %v11283_v43, 1  ;;  %v4309_v35 = vld [vmem:[%s13543_s1 + $0x10] sm:$0xff]  ;;  %v4310_v55 = vld [vmem:[%s13543_s1 + $0x18] sm:$0xff] }
 0x33b   : > { %9055 = vmatprep.mubr.msk.bf16.mxu0 %vm750_vm14, %v3460_v37  ;;  %v3765_v37 = vsel %vm3757_vm9, %v11153_v45, 0.0  ;;  %vm3907_vm15 = vcmp.eq.s32.totalorder %v11275_v29, 1  ;;  %v3612_v45 = vsel %vm3604_vm10, %v11240_v63, 0.0  ;;  %v3613_v22 = vsel %vm3605_vm11, %v3573_v25, 0.0 }
 0x33c   : > { %v3748_v2 = vpop.permute.xlu1 %3747  ;;  %v3884_v57 = vpop.permute.xlu0 %3883  ;;  %v3770_v50 = vpack.c.bf16 %v3765_v37, %v3764_v46  ;;  %vm3908_vm1 = vcmp.eq.s32.totalorder %v11293_v36, 1  ;;  %vm4317_vm10 = vcmp.gt.f32.partialorder %v4309_v35, 0.0  ;;  %vm4318_vm11 = vcmp.gt.f32.partialorder %v4310_v55, 0.0 }
 0x33d   : > { %vm3758_vm12 = vcmp.eq.s32.totalorder %v3748_v2, 1  ;;  %vm3906_vm0 = vcmp.eq.s32.totalorder %v3884_v57, 1  ;;  %v3916_v9 = vsel %vm3908_vm1, %v11206_v6, 0.0  ;;  %v13608_v62 = vmov 2  }
 0x33e   : > { %v3766_v58 = vsel %vm3758_vm12, %v3726_v21, 0.0  ;;  %v3914_v29 = vsel %vm3906_vm0, %v11200_v42, 0.0  ;;  %vm4321_vm0 = vcmp.gt.f32.partialorder %v4313_v60, 0.0  ;;  %vm4319_vm1 = vcmp.gt.f32.partialorder %v4311_v44, 0.0 }
 0x33f   : > { %v13613_v1 = vmov 3  }
 0x340   : > { %v3751_v26 = vpop.permute.xlu1 %3750  ;;  %v3893_v24 = vpop.permute.xlu0 %3892 }
 0x341   : > { %9044 = vmatmul.mubr.msk.bf16.vlgmr.msra.gmra.mxu1 %vm750_vm14, %v3307_v49  ;;  %v3915_v49 = vsel %vm3907_vm15, %v11198_v33, 0.0  ;;  %vm3909_vm2 = vcmp.eq.s32.totalorder %v3893_v24, 1  ;;  %vm4316_vm15 = vcmp.gt.f32.partialorder %v4308_v15, 0.0 }
 0x342   : > { %9056 = vmatmul.mubr.msk.bf16.vlgmr.msra.gmra.mxu0 %vm750_vm14, %v3461_v31  ;;  %9064 = vmatpush3.bf16.msra.mxu1 %v9660_v41  ;;  %v3606_v41 = vsel %vm3598_vm13, %v11092_v39, 0.0  ;;  %v13604_v39 = vmov 0.0   ;;  %vm3759_vm13 = vcmp.eq.s32.totalorder %v3751_v26, 1  ;;  %v3617_v31 = vpack.c.bf16 %v3613_v22, %v3612_v45 }
 0x343   : > { %9047 = vmatprep.mubr.msk.bf16.mxu1 %vm750_vm14, %v3308_v34  ;;  %9059 = vmatprep.mubr.msk.bf16.mxu0 %vm750_vm14, %v3462_v59  ;;  %v3614_v10 = vpack.c.bf16 %v3607_v0, %v3606_v41  ;;  %v3767_v30 = vsel %vm3759_vm13, %v3727_v14, 0.0  ;;  %v3922_v61 = vpack.c.bf16 %v3915_v49, %v3914_v29  ;;  %v3917_v33 = vsel %vm3909_vm2, %v11208_v4, 0.0  ;;  %v4307_v4 = vld [vmem:[%s13543_s1] sm:$0xff]  ;;  %v4312_v41 = vld [vmem:[%s13543_s1 + $0x28] sm:$0xff] }
 0x344   : > { %9065 = vmatprep.subr.bf16.mxu1 %v9661_v56  ;;  %9076 = vmatpush3.bf16.msra.mxu0 %v9662_v17  ;;  %v3768_v17 = vpack.c.bf16 %v3761_v3, %v3760_v7  ;;  %v3899_v54 = vpop.permute.xlu1 %3898  ;;  %v3896_v48 = vpop.permute.xlu0 %3895  ;;  %v3923_v34 = vpack.c.bf16 %v3917_v33, %v3916_v9  ;;  %vm4315_vm9 = vcmp.gt.f32.partialorder %v4307_v4, 0.0  ;;  %vm4320_vm12 = vcmp.gt.f32.partialorder %v4312_v41, 0.0  ;;  %v4314_v3 = vld [vmem:[%s13543_s1 + $0x38] sm:$0xff] }
 0x345   : > { %9077 = vmatprep.subr.bf16.mxu0 %v9663_v47  ;;  %vm3911_vm3 = vcmp.eq.s32.totalorder %v3899_v54, 1  ;;  %vm3910_vm4 = vcmp.eq.s32.totalorder %v3896_v48, 1  ;;  %vm4322_vm13 = vcmp.gt.f32.partialorder %v4314_v3, 0.0  ;;  %v13614_v29 = vmov 5  }
 0x346   : > { %9066 = vmatpush3.bf16.msra.mxu1 %v9661_v56  ;;  %v3771_v56 = vpack.c.bf16 %v3767_v30, %v3766_v58  ;;  %v3919_v42 = vsel %vm3911_vm3, %v11242_v20, 0.0  ;;  %v3918_v63 = vsel %vm3910_vm4, %v11244_v51, 0.0  ;;  %v13605_v20 = vmov 0  }
 0x347   : > { %9087 = vmatprep.subr.bf16.mxu1 %v9664_v40  ;;  %v3924_v59 = vpack.c.bf16 %v3919_v42, %v3918_v63  ;;  %v11393_v51 = vsel %vm4315_vm9, 1, %v13605_v20  ;;  %v11407_v7 = vsel %vm4318_vm11, 1, %v13605_v20  ;;  %v11414_v0 = vsel %vm4320_vm12, 1, %v13605_v20 }
 0x348   : > { %9078 = vmatpush3.bf16.msra.mxu0 %v9663_v47  ;;  %v3902_v43 = vpop.permute.xlu1 %3901  ;;  %v3905_v36 = vpop.permute.xlu0 %3904  ;;  %v3881_v47 = vld [vmem:[#allocation3 + $0x4a] sm:$0xff]  ;;  %4388 = vperm.xlu1 %9550, %v11393_v51   ;;  %13607 = vst [vmem:[#allocation31_spill] sm:$0xff] %v11407_v7  ;;  %v11421_v19 = vsel %vm4322_vm13, 1, %v13605_v20  ;;  %v11429_v32 = vsel %vm4316_vm15, 1, %v13605_v20  ;;  %v11474_v2 = vsel %vm4319_vm1, 1, %v13605_v20  ;;  %v11479_v28 = vsel %vm4321_vm0, 1, %v13605_v20 }
 0x349   : > { %9048 = vmatmul.mubr.msk.bf16.gmra.mxu1 %vm750_vm14, %v3309_v11  ;;  %9099 = vmatprep.subr.mxu0 %v13604_v39  ;;  %vm3912_vm5 = vcmp.eq.s32.totalorder %v3902_v43, 1  ;;  %vm3913_vm7 = vcmp.eq.s32.totalorder %v3905_v36, 1  ;;  %v11439_v11 = vld [vmem:[%s13412_s18 + $0x18] sm:$0xff] }
 0x34a   : > { %9060 = vmatmul.mubr.msk.bf16.gmra.mxu0 %vm750_vm14, %v3463_v23  ;;  %9067 = vmatprep.mubr.msk.bf16.mxu1 %vm750_vm14, %v3614_v10  ;;  %v3921_v6 = vsel %vm3913_vm7, %v3881_v47, 0.0  ;;  %13609 = vst [vmem:[#allocation29_spill] sm:$0xff] %v11439_v11  ;;  %v11444_v23 = vld [vmem:[%s13412_s18 + $0x10] sm:$0xff]  ;;  %v11452_v10 = vld [vmem:[%s13412_s18 + $0x8] sm:$0xff] }
 0x34b   : > { %9079 = vmatprep.mubr.msk.bf16.mxu0 %vm750_vm14, %v3768_v17  ;;  %4391 = vperm.xlu0 %9551, %v11429_v32   ;;  %13610 = vst [vmem:[#allocation32_spill] sm:$0xff] %v11444_v23  ;;  %13611 = vst [vmem:[#allocation21_spill] sm:$0xff] %v11452_v10  ;;  %v11459_v17 = vld [vmem:[%s13412_s18] sm:$0xff] }
 0x34c   : > { %13612 = vst [vmem:[#allocation22_spill] sm:$0xff] %v11459_v17 }
 0x34f   : > { %4400 = vperm.xlu0 %9551, %v11474_v2  }
 0x351   : > { %9068 = vmatmul.mubr.msk.bf16.vlgmr.msra.gmra.mxu1 %vm750_vm14, %v3615_v27 }
 0x352   : > { %9080 = vmatmul.mubr.msk.bf16.vlgmr.msra.gmra.mxu0 %vm750_vm14, %v3769_v13  ;;  %9088 = vmatpush3.bf16.msra.mxu1 %v9664_v40  ;;  %v3920_v40 = vsel %vm3912_vm5, %v11310_v52, 0.0  ;;  %v11400_v52 = vsel %vm4317_vm10, 1, %v13605_v20 }
 0x353   : > { %9071 = vmatprep.mubr.msk.bf16.mxu1 %vm750_vm14, %v3616_v8  ;;  %9083 = vmatprep.mubr.msk.bf16.mxu0 %vm750_vm14, %v3770_v50  ;;  %v3925_v12 = vpack.c.bf16 %v3921_v6, %v3920_v40  ;;  %13606 = vst [vmem:[#allocation30_spill] sm:$0xff] %v11400_v52 }
 0x354   : > { %9089 = vmatprep.subr.bf16.mxu1 %v9665_v16  ;;  %4394 = vperm.xlu1 %9550, %v11400_v52  }
 0x355   : > { %9100 = vmatpush3.msra.mxu0 %v11439_v11  ;;  %4406 = vperm.xlu0 %9551, %v11479_v28  }
 0x356   : > { %9090 = vmatpush3.bf16.msra.mxu1 %v9665_v16  ;;  %9101 = vmatprep.subr.mxu0 %v13604_v39 }
 0x357   : > { %9102 = vmatpush3.msra.mxu0 %v11444_v23 }
 0x358   : > { %4397 = vperm.xlu1 %9550, %v11407_v7   ;;  %9103 = vmatprep.subr.mxu0 %v13604_v39 }
 0x359   : > { %9072 = vmatmul.mubr.msk.bf16.gmra.mxu1 %vm750_vm14, %v3617_v31  ;;  %9104 = vmatpush3.msra.mxu0 %v11452_v10 }
 0x35a   : > { %9084 = vmatmul.mubr.msk.bf16.gmra.mxu0 %vm750_vm14, %v3771_v56  ;;  %9091 = vmatprep.mubr.msk.bf16.mxu1 %vm750_vm14, %v3922_v61 }
 0x35b   : > { %9107 = vmatprep.mubr.msk.f32.mxu0 %vm9785_vm6, %v13604_v39  ;;  %9105 = vmatprep.subr.mxu0 %v13604_v39 }
 0x35c   : > { %4403 = vperm.xlu1 %9550, %v11414_v0   ;;  %9106 = vmatpush3.msra.mxu0 %v11459_v17 }
 0x35d   : > { %9110 = vmatprep.subr.mxu0 %v13604_v39  ;;  %9552 = vset.pattern.permute.xlu0 %v13605_v20 }
 0x35e   : > { %4332 = vperm.xlu0 %9552, %v11393_v51  }
 0x360   : > { %4409 = vperm.xlu1 %9550, %v11421_v19  }
 0x361   : > { %9092 = vmatmul.mubr.msk.bf16.vlgmr.msra.gmra.mxu1 %vm750_vm14, %v3923_v34 }
 0x362   : > { %9095 = vmatprep.mubr.msk.bf16.mxu1 %vm750_vm14, %v3924_v59  ;;  %4341 = vperm.xlu0 %9552, %v11407_v7   ;;  %v13615_v59 = vmov 6  }
 0x364   : > { %9553 = vset.pattern.permute.xlu1 %v13605_v20 }
 0x365   : > { %4335 = vperm.xlu1 %9553, %v11429_v32  }
 0x366   : > { %4344 = vperm.xlu0 %9552, %v11474_v2  }
 0x369   : > { %9096 = vmatmul.mubr.msk.bf16.gmra.mxu1 %vm750_vm14, %v3925_v12  ;;  %4338 = vperm.xlu1 %9553, %v11400_v52  }
 0x36a   : > { %4353 = vperm.xlu0 %9552, %v11421_v19  }
 0x36d   : > { %9554 = vset.pattern.permute.xlu1 %v13608_v62 }
 0x36e   : > { %4623 = vperm.xlu1 %9554, %v11393_v51   ;;  %9556 = vset.pattern.permute.xlu0 %v13608_v62 }
 0x36f   : > { %4626 = vperm.xlu0 %9556, %v11429_v32  }
 0x372   : > { %4629 = vperm.xlu1 %9554, %v11400_v52  }
 0x373   : > { %4638 = vperm.xlu0 %9556, %v11414_v0  }
 0x376   : > { %4632 = vperm.xlu1 %9554, %v11407_v7  }
 0x377   : > { %9558 = vset.pattern.permute.xlu0 %v13613_v1 }
 0x378   : > { %4777 = vperm.xlu0 %9558, %v11393_v51  }
 0x37a   : > { %9555 = vset.pattern.permute.xlu1 %v13605_v20 }
 0x37b   : > { %4347 = vperm.xlu1 %9555, %v11414_v0  }
 0x37c   : > { %4786 = vperm.xlu0 %9558, %v11407_v7  }
 0x37f   : > { %4350 = vperm.xlu1 %9555, %v11479_v28  }
 0x380   : > { %4792 = vperm.xlu0 %9558, %v11414_v0  }
 0x383   : > { %9557 = vset.pattern.permute.xlu1 %v13608_v62 }
 0x384   : > { %4635 = vperm.xlu1 %9557, %v11474_v2   ;;  %4798 = vperm.xlu0 %9558, %v11421_v19  }
 0x388   : > { %4641 = vperm.xlu1 %9557, %v11479_v28   ;;  %9561 = vset.pattern.permute.xlu0 %v13614_v29 }
 0x389   : > { %5040 = vperm.xlu0 %9561, %v11429_v32  }
 0x38c   : > { %4644 = vperm.xlu1 %9557, %v11421_v19  }
 0x38d   : > { %5052 = vperm.xlu0 %9561, %v11414_v0  }
 0x390   : > { %9559 = vset.pattern.permute.xlu1 %v13613_v1 }
 0x391   : > { %4780 = vperm.xlu1 %9559, %v11429_v32   ;;  %9564 = vset.pattern.permute.xlu0 %v13615_v59 }
 0x392   : > { %5191 = vperm.xlu0 %9564, %v11393_v51  }
 0x395   : > { %4783 = vperm.xlu1 %9559, %v11400_v52  }
 0x396   : > { %5200 = vperm.xlu0 %9564, %v11407_v7  }
 0x399   : > { %4789 = vperm.xlu1 %9559, %v11474_v2  }
 0x39a   : > { %5203 = vperm.xlu0 %9564, %v11474_v2  }
 0x39d   : > { %4795 = vperm.xlu1 %9559, %v11479_v28  }
 0x39e   : > { %5212 = vperm.xlu0 %9564, %v11421_v19  }
 0x3a1   : > { %9560 = vset.pattern.permute.xlu1 %v13614_v29 }
 0x3a2   : > { %5037 = vperm.xlu1 %9560, %v11393_v51  }
 0x3a6   : > { %5043 = vperm.xlu1 %9560, %v11400_v52  }
 0x3aa   : > { %5046 = vperm.xlu1 %9560, %v11407_v7  }
 0x3ae   : > { %9562 = vset.pattern.permute.xlu1 %v13615_v59 }
 0x3af   : > { %5194 = vperm.xlu1 %9562, %v11429_v32  }
 0x3b3   : > { %5197 = vperm.xlu1 %9562, %v11400_v52  }
 0x3b7   : > { %9563 = vset.pattern.permute.xlu1 %v13614_v29 }
 0x3b8   : > { %5049 = vperm.xlu1 %9563, %v11474_v2  }
 0x3bc   : > { %5055 = vperm.xlu1 %9563, %v11479_v28  }
 0x3c0   : > { %5058 = vperm.xlu1 %9563, %v11421_v19  }
 0x3c4   : > { %9565 = vset.pattern.permute.xlu1 %v13615_v59 }
 0x3c5   : > { %5206 = vperm.xlu1 %9565, %v11414_v0  }
 0x3c9   : > { %5209 = vperm.xlu1 %9565, %v11479_v28  }
 0x3e1   : > { %v11491_v53 = vpop.f32.mrf.mxu1 }
 0x3e2   : > { %v11493_v38 = vpop.f32.mrf.mxu0 }
 0x3e3   : > { %v11495_v5 = vpop.f32.mrf.mxu1  ;;  %v2976_v20 = vadd.f32 %v11493_v38, %v11491_v53 }
 0x3e4   : > { %v11497_v57 = vpop.f32.mrf.mxu0 }
 0x3e5   : > { %v11501_v18 = vpop.f32.mrf.mxu1  ;;  %v2968_v29 = vadd.f32 %v11497_v57, %v11495_v5 }
 0x3e6   : > { %v11503_v46 = vpop.f32.mrf.mxu0 }
 0x3e7   : > { %v11506_v37 = vpop.f32.mrf.mxu1  ;;  %v2979_v11 = vadd.f32 %v11503_v46, %v11501_v18 }
 0x3e8   : > { %v11508_v27 = vpop.f32.mrf.mxu0 }
 0x3e9   : > { %v11511_v13 = vpop.f32.mrf.mxu1  ;;  %v2971_v53 = vadd.f32 %v11508_v27, %v11506_v37 }
 0x3ea   : > { %v11513_v16 = vpop.f32.mrf.mxu0 }
 0x3eb   : > { %v11517_v8 = vpop.f32.mrf.mxu1 }
 0x3ec   : > { %v11519_v26 = vpop.f32.mrf.mxu0 }
 0x3ed   : > { %v11521_v25 = vpop.f32.mrf.mxu1  ;;  %v2984_v18 = vadd.f32 %v11519_v26, %v11517_v8 }
 0x3ee   : > { %v11523_v50 = vpop.f32.mrf.mxu0 }
 0x3ef   : > { %v11527_v21 = vpop.f32.mrf.mxu1 }
 0x3f0   : > { %v11529_v14 = vpop.f32.mrf.mxu0 }
 0x3f1   : > { %v9021_v24 = vpop.f32.mrf.mxu1 }
 0x3f2   : > { %v11531_v45 = vpop.f32.mrf.mxu0  ;;  %v3146_v23 = vadd.f32 %v9021_v24, %v2976_v20 }
 0x3f3   : > { %v3113_v22 = vpop.f32.mrf.mxu1 }
 0x3f4   : > { %v11536_v58 = vpop.f32.mrf.mxu0  ;;  %v3144_v39 = vadd.f32 %v3113_v22, %v2968_v29  ;;  %v3300_v7 = vadd.f32 %v11531_v45, %v3146_v23 }
 0x3f5   : > { %v9022_v30 = vpop.f32.mrf.mxu1 }
 0x3f6   : > { %v11538_v49 = vpop.f32.mrf.mxu0  ;;  %v3147_v38 = vadd.f32 %v9022_v30, %v2979_v11  ;;  %v2992_v11 = vadd.f32 %v11513_v16, %v11511_v13  ;;  %v2987_v13 = vadd.f32 %v11529_v14, %v11527_v21 }
 0x3f7   : > { %v3116_v31 = vpop.f32.mrf.mxu1 }
 0x3f8   : > { %v11543_v56 = vpop.f32.mrf.mxu0  ;;  %v3145_v20 = vadd.f32 %v3116_v31, %v2971_v53  ;;  %v3301_v37 = vadd.f32 %v11538_v49, %v3147_v38  ;;  %v13617_v49 = vmov 7  }
 0x3f9   : > { %v11545_v61 = vpop.f32.mrf.mxu1  ;;  %9567 = vset.pattern.permute.xlu0 %v13617_v49  ;;  %9566 = vset.pattern.permute.xlu1 %v13617_v49 }
 0x3fa   : > { %v11547_v54 = vpop.f32.mrf.mxu0  ;;  %5348 = vperm.xlu0 %9567, %v11429_v32   ;;  %5345 = vperm.xlu1 %9566, %v11393_v51  }
 0x3fb   : > { %v11551_v48 = vpop.f32.mrf.mxu1 }
 0x3fc   : > { %v11553_v9 = vpop.f32.mrf.mxu0  ;;  %v3148_v8 = vadd.f32 %v11551_v48, %v2984_v18  ;;  %v13620_v18 = vld [vmem:[#allocation30_spill] sm:$0xff] }
 0x3fd   : > { %v11555_v33 = vpop.f32.mrf.mxu1 }
 0x3fe   : > { %v11557_v42 = vpop.f32.mrf.mxu0  ;;  %v3302_v31 = vadd.f32 %v11553_v9, %v3148_v8  ;;  %5360 = vperm.xlu0 %9567, %v11414_v0   ;;  %5351 = vperm.xlu1 %9566, %v13620_v18  }
 0x3ff   : > { %v11561_v63 = vpop.f32.mrf.mxu1 }
 0x400   : > { %v11563_v43 = vpop.f32.mrf.mxu0 }
 0x401   : > { %v9045_v36 = vpop.f32.mrf.mxu1 }
 0x402   : > { %v11565_v34 = vpop.f32.mrf.mxu0  ;;  %v3406_v46 = vadd.f32 %v9045_v36, %v3300_v7  ;;  %v3299_v7 = vadd.f32 %v11543_v56, %v3145_v20  ;;  %v3149_v56 = vadd.f32 %v11561_v63, %v2987_v13 }
 0x403   : > { %v3373_v47 = vpop.f32.mrf.mxu1 }
 0x404   : > { %v3527_v40 = vpop.f32.mrf.mxu0 }
 0x405   : > { %v9046_v6 = vpop.f32.mrf.mxu1 }
 0x406   : > { %v11571_v12 = vpop.f32.mrf.mxu0  ;;  %v3407_v26 = vadd.f32 %v9046_v6, %v3301_v37 }
 0x407   : > { %v3376_v4 = vpop.f32.mrf.mxu1 }
 0x408   : > { %v11573_v35 = vpop.f32.mrf.mxu0  ;;  %v3405_v29 = vadd.f32 %v3376_v4, %v3299_v7  ;;  %v3561_v48 = vadd.f32 %v11571_v12, %v3407_v26 }
 0x409   : > { %v11577_v55 = vpop.f32.mrf.mxu1 }
 0x40a   : > { %v11579_v41 = vpop.f32.mrf.mxu0 }
 0x40b   : > { %v11581_v3 = vpop.f32.mrf.mxu1 }
 0x40c   : > { %v11583_v15 = vpop.f32.mrf.mxu0 }
 0x40d   : > { %v11589_v60 = vpop.f32.mrf.mxu1 }
 0x40e   : > { %v11591_v44 = vpop.f32.mrf.mxu0 }
 0x40f   : > { %v11593_v1 = vpop.f32.mrf.mxu1 }
 0x410   : > { %v11595_v62 = vpop.f32.mrf.mxu0 }
 0x411   : > { %13616 = vst [vmem:[#allocation23_spill] sm:$0xff] %v11595_v62  ;;  %v9069_v17 = vpop.f32.mrf.mxu1  ;;  %v3298_v62 = vadd.f32 %v11536_v58, %v3144_v39  ;;  %v2995_v39 = vadd.f32 %v11523_v50, %v11521_v25  ;;  %v3560_v58 = vadd.f32 %v11565_v34, %v3406_v46  ;;  %v3408_v34 = vadd.f32 %v11581_v3, %v3302_v31 }
 0x412   : > { %v9081_v10 = vpop.f32.mrf.mxu0 }
 0x413   : > { %v3681_v52 = vpop.f32.mrf.mxu1  ;;  %v3404_v22 = vadd.f32 %v3373_v47, %v3298_v62  ;;  %v3150_v62 = vadd.f32 %v11545_v61, %v2992_v11  ;;  %v3151_v16 = vadd.f32 %v11555_v33, %v2995_v39  ;;  %v3714_v61 = vadd.f32 %v9069_v17, %v3560_v58 }
 0x414   : > { %v3835_v5 = vpop.f32.mrf.mxu0  ;;  %v3559_v47 = vadd.f32 %v11573_v35, %v3405_v29  ;;  %v3562_v35 = vadd.f32 %v11583_v15, %v3408_v34 }
 0x415   : > { %v9070_v57 = vpop.f32.mrf.mxu1  ;;  %v3558_v30 = vadd.f32 %v3527_v40, %v3404_v22  ;;  %v3304_v14 = vadd.f32 %v11547_v54, %v3150_v62  ;;  %v3305_v36 = vadd.f32 %v11557_v42, %v3151_v16  ;;  %v3868_v54 = vadd.f32 %v9081_v10, %v3714_v61 }
 0x416   : > { %v9082_v27 = vpop.f32.mrf.mxu0  ;;  %v3715_v6 = vadd.f32 %v9070_v57, %v3561_v48 }
 0x417   : > { %v3684_v24 = vpop.f32.mrf.mxu1  ;;  %v3712_v21 = vadd.f32 %v3681_v52, %v3558_v30  ;;  %v3410_v40 = vadd.f32 %v11577_v55, %v3304_v14  ;;  %v3303_v52 = vadd.f32 %v11563_v43, %v3149_v56  ;;  %v3411_v17 = vadd.f32 %v11589_v60, %v3305_v36  ;;  %v8266_v43 = vld [vmem:[%s13618_s29] ss:$0 sm:$0xff] }
 0x418   : > { %v3838_v25 = vpop.f32.mrf.mxu0  ;;  %v3713_v42 = vadd.f32 %v3684_v24, %v3559_v47  ;;  %v3869_v57 = vadd.f32 %v9082_v27, %v3715_v6  ;;  %v13619_v60 = vmov 8   ;;  %v13621_v11 = vld [vmem:[#allocation23_spill] sm:$0xff] }
 0x419   : > { %v9073_v23 = vpop.f32.mrf.mxu1  ;;  %v3866_v63 = vadd.f32 %v3835_v5, %v3712_v21  ;;  %v3409_v55 = vadd.f32 %v11593_v1, %v3303_v52  ;;  %v3564_v38 = vadd.f32 %v11579_v41, %v3410_v40  ;;  %9570 = vset.pattern.permute.xlu0 %v13619_v60  ;;  %v3565_v5 = vadd.f32 %v11591_v44, %v3411_v17 }
 0x41a   : > { %v9085_v4 = vpop.f32.mrf.mxu0  ;;  %5499 = vperm.xlu0 %9570, %v11393_v51   ;;  %v3867_v1 = vadd.f32 %v3838_v25, %v3713_v42 }
 0x41b   : > { %v3697_v45 = vpop.f32.mrf.mxu1  ;;  %v3718_v15 = vadd.f32 %v9073_v23, %v3564_v38  ;;  %v3563_v37 = vadd.f32 %v13621_v11, %v3409_v55  ;;  %v13623_v11 = vmov 1  }
 0x41c   : > { %v3851_v20 = vpop.f32.mrf.mxu0  ;;  %v3716_v24 = vadd.f32 %v3697_v45, %v3562_v35  ;;  %v13622_v45 = vld [vmem:[#allocation31_spill] sm:$0xff] }
 0x41d   : > { %v9074_v50 = vpop.f32.mrf.mxu1  ;;  %5354 = vperm.xlu1 %9566, %v13622_v45   ;;  %v3872_v51 = vadd.f32 %v9085_v4, %v3718_v15 }
 0x41e   : > { %v3719_v27 = vadd.f32 %v9074_v50, %v3565_v5  ;;  %v9086_v8 = vpop.f32.mrf.mxu0  ;;  %v3870_v44 = vadd.f32 %v3851_v20, %v3716_v24  ;;  %5508 = vperm.xlu0 %9570, %v13622_v45  }
 0x41f   : > { %v3700_v33 = vpop.f32.mrf.mxu1 }
 0x420   : > { %v3717_v26 = vadd.f32 %v3700_v33, %v3563_v37  ;;  %v3873_v30 = vadd.f32 %v9086_v8, %v3719_v27  ;;  %v3854_v50 = vpop.f32.mrf.mxu0 }
 0x421   : > { %v9093_v9 = vpop.f32.mrf.mxu1  ;;  %9568 = vset.pattern.permute.xlu1 %v13619_v60 }
 0x422   : > { %v4022_v3 = vadd.f32 %v9093_v9, %v3868_v54  ;;  %v3871_v48 = vadd.f32 %v3854_v50, %v3717_v26  ;;  %5511 = vperm.xlu0 %9570, %v11474_v2   ;;  %5502 = vperm.xlu1 %9568, %v11429_v32  }
 0x423   : > { %v3989_v12 = vpop.f32.mrf.mxu1 }
 0x424   : > { %v4020_v53 = vadd.f32 %v3989_v12, %v3866_v63  ;;  %v11657_v39 = vadd.f32 %v8266_v43, %v4022_v3 }
 0x425   : > { %v9094_v10 = vpop.f32.mrf.mxu1 }
 0x426   : > { %v11654_v46 = vadd.f32 %v8266_v43, %v4020_v53  ;;  %v4023_v41 = vadd.f32 %v9094_v10, %v3869_v57  ;;  %v4067_v29 = vmul.f32 %v11657_v39, %v11657_v39  ;;  %v4046_v33 = vsel %vm750_vm14, %v11657_v39, 0.0  ;;  %5520 = vperm.xlu0 %9570, %v11421_v19   ;;  %5505 = vperm.xlu1 %9568, %v13620_v18  }
 0x427   : > { %v3992_v22 = vpop.f32.mrf.mxu1 }
 0x428   : > { %v4021_v7 = vadd.f32 %v3992_v22, %v3867_v1  ;;  %v4065_v23 = vmul.f32 %v11654_v46, %v11654_v46  ;;  %v11663_v13 = vadd.f32 %v8266_v43, %v4023_v41  ;;  %v4043_v31 = vsel %vm750_vm14, %v11654_v46, 0.0 }
 0x429   : > { %v9097_v62 = vpop.f32.mrf.mxu1  ;;  %v4076_v52 = vsel %vm750_vm14, %v4067_v29, 0.0 }
 0x42a   : > { %v11665_v16 = vadd.f32 %v8266_v43, %v4021_v7  ;;  %v4026_v21 = vadd.f32 %v9097_v62, %v3872_v51  ;;  %v4073_v47 = vsel %vm750_vm14, %v4065_v23, 0.0  ;;  %v4068_v40 = vmul.f32 %v11663_v13, %v11663_v13  ;;  %9573 = vset.pattern.permute.xlu0 %v13623_v11  ;;  %9569 = vset.pattern.permute.xlu1 %v13617_v49 }
 0x42b   : > { %v4005_v58 = vpop.f32.mrf.mxu1  ;;  %v4048_v63 = vsel %vm750_vm14, %v11663_v13, 0.0  ;;  %5357 = vperm.xlu1 %9569, %v11474_v2  }
 0x42c   : > { %v4024_v25 = vadd.f32 %v4005_v58, %v3870_v44  ;;  %v4044_v56 = vsel %vm750_vm14, %v11665_v16, 0.0  ;;  %v4066_v61 = vmul.f32 %v11665_v16, %v11665_v16  ;;  %v11689_v42 = vadd.f32 %v8266_v43, %v4026_v21 }
 0x42d   : > { %v9098_v14 = vpop.f32.mrf.mxu1  ;;  %v4045_v36 = vadd.f32 %v4044_v56, %v4043_v31  ;;  %v4078_v53 = vsel %vm750_vm14, %v4068_v40, 0.0  ;;  %v11738_v40 = vpop.permute.xlu1 %4388 }
 0x42e   : > { %v11677_v34 = vadd.f32 %v8266_v43, %v4024_v25  ;;  %v4074_v6 = vsel %vm750_vm14, %v4066_v61, 0.0  ;;  %v4027_v4 = vadd.f32 %v9098_v14, %v3873_v30  ;;  %v4071_v5 = vmul.f32 %v11689_v42, %v11689_v42 }
 0x42f   : > { %v4008_v9 = vpop.f32.mrf.mxu1  ;;  %v4047_v17 = vadd.f32 %v4046_v33, %v4045_v36  ;;  %v4075_v54 = vadd.f32 %v4074_v6, %v4073_v47  ;;  %5363 = vperm.xlu1 %9569, %v11479_v28   ;;  %v13625_v33 = vmov 0.0   ;;  %v13626_v36 = vld [vmem:[#allocation32_spill] sm:$0xff]  ;;  %v13628_v47 = vld [vmem:[#allocation22_spill] sm:$0xff]  ;;  %vm4411_vm2 = vcmp.eq.s32.totalorder %v11738_v40, 1 }
 0x430   : > { %v4069_v12 = vmul.f32 %v11677_v34, %v11677_v34  ;;  %v4025_v35 = vadd.f32 %v4008_v9, %v3871_v48  ;;  %v4050_v32 = vsel %vm750_vm14, %v11677_v34, 0.0  ;;  %v11697_v38 = vadd.f32 %v8266_v43, %v4027_v4  ;;  %v13624_v48 = vld [vmem:[#allocation29_spill] sm:$0xff] }
 0x431   : > { %v4077_v55 = vadd.f32 %v4076_v52, %v4075_v54  ;;  %v4049_v3 = vadd.f32 %v4048_v63, %v4047_v17  ;;  %v4084_v7 = vsel %vm750_vm14, %v4071_v5, 0.0  ;;  %v11740_v6 = vpop.permute.xlu1 %4394  ;;  %v9666_v54 = vld [vmem:[%s13404_s10 + $0x18] sm:$0xff]   ;;  %v9668_v63 = vld [vmem:[%s13404_s10 + $0x8] sm:$0xff]  }
 0x432   : > { %v11699_v57 = vadd.f32 %v8266_v43, %v4025_v35  ;;  %v4080_v24 = vsel %vm750_vm14, %v4069_v12, 0.0  ;;  %v4054_v43 = vsel %vm750_vm14, %v11689_v42, 0.0  ;;  %v4072_v18 = vmul.f32 %v11697_v38, %v11697_v38  ;;  %9121 = vmatprep.subr.bf16.mxu1 %v9666_v54  ;;  %v9667_v35 = vld [vmem:[%s13404_s10 + $0x10] sm:$0xff]  }
 0x433   : > { %v4051_v20 = vadd.f32 %v4050_v32, %v4049_v3  ;;  %v4079_v10 = vadd.f32 %v4078_v53, %v4077_v55  ;;  %v4056_v62 = vsel %vm750_vm14, %v11697_v38, 0.0  ;;  %5366 = vperm.xlu1 %9569, %v11421_v19   ;;  %9122 = vmatpush3.bf16.msra.mxu1 %v9666_v54  ;;  %v9669_v55 = vld [vmem:[%s13404_s10] sm:$0xff]   ;;  %v11767_v3 = vld [vmem:[%s13404_s10 + $0x28] sm:$0xff]   ;;  %v13631_v54 = vld [vmem:[#allocation25_spill] sm:$0xff]  ;;  %vm4413_vm3 = vcmp.eq.s32.totalorder %v11740_v6, 1 }
 0x434   : > { %v4052_v1 = vsel %vm750_vm14, %v11699_v57, 0.0  ;;  %v4070_v15 = vmul.f32 %v11699_v57, %v11699_v57  ;;  %v4086_v45 = vsel %vm750_vm14, %v4072_v18, 0.0  ;;  %9123 = vmatprep.subr.bf16.mxu1 %v9667_v35 }
 0x435   : > { %v4081_v41 = vadd.f32 %v4080_v24, %v4079_v10  ;;  %v4053_v22 = vadd.f32 %v4052_v1, %v4051_v20  ;;  %v11742_v4 = vpop.permute.xlu1 %4397  ;;  %v11777_v20 = vld [vmem:[%s13404_s10 + $0x38] sm:$0xff]  }
 0x436   : > { %v4082_v37 = vsel %vm750_vm14, %v4070_v15, 0.0  ;;  %vm4414_vm4 = vcmp.eq.s32.totalorder %v11742_v4, 1 }
 0x437   : > { %v4055_v27 = vadd.f32 %v4054_v43, %v4053_v22  ;;  %v4083_v8 = vadd.f32 %v4082_v37, %v4081_v41  ;;  %9571 = vset.pattern.permute.xlu1 %v13619_v60  ;;  %9124 = vmatpush3.bf16.msra.mxu1 %v9667_v35  ;;  %v11792_v22 = vpop.permute.xlu0 %4391 }
 0x438   : > { %5514 = vperm.xlu1 %9571, %v11414_v0   ;;  %v13627_v0 = vld [vmem:[#allocation21_spill] sm:$0xff]  ;;  %9145 = vmatprep.subr.bf16.mxu1 %v11767_v3  ;;  %vm4412_vm10 = vcmp.eq.s32.totalorder %v11792_v22, 1 }
 0x439   : > { %v4057_v44 = vadd.f32 %v4056_v62, %v4055_v27  ;;  %v4085_v26 = vadd.f32 %v4084_v7, %v4083_v8  ;;  %v11744_v9 = vpop.permute.xlu1 %4403 }
 0x43a   : > { %vm4416_vm7 = vcmp.eq.s32.totalorder %v11744_v9, 1  ;;  %v9673_v9 = vld [vmem:[%s13404_s10 + $0x30] sm:$0xff]  }
 0x43b   : > { %v4058_v51 = vrot.slane %v4057_v44, 4  ;;  %v4087_v23 = vadd.f32 %v4086_v45, %v4085_v26  ;;  %v11796_v43 = vpop.permute.xlu0 %4400 }
 0x43c   : > { %5517 = vperm.xlu1 %9571, %v11479_v28   ;;  %vm4415_vm13 = vcmp.eq.s32.totalorder %v11796_v43, 1 }
 0x43d   : > { %v4059_v58 = vadd.f32 %v4058_v51, %v4057_v44  ;;  %v4088_v30 = vrot.slane %v4087_v23, 4  ;;  %v11746_v52 = vpop.permute.xlu1 %4409 }
 0x43e   : > { %vm4418_vm1 = vcmp.eq.s32.totalorder %v11746_v52, 1 }
 0x43f   : > { %v4060_v29 = vrot.slane %v4059_v58, 2  ;;  %v4089_v25 = vadd.f32 %v4088_v30, %v4087_v23  ;;  %v11800_v37 = vpop.permute.xlu0 %4406 }
 0x440   : > { %9572 = vset.pattern.permute.xlu1 %v13623_v11 }
 0x441   : > { %v4061_v2 = vadd.f32 %v4060_v29, %v4059_v58  ;;  %v4090_v50 = vrot.slane %v4089_v25, 2  ;;  %v11748_v17 = vpop.permute.xlu1 %4335 }
 0x442   : > { %vm4356_vm9 = vcmp.eq.s32.totalorder %v11748_v17, 1 }
 0x443   : > { %v4062_v31 = vrot.slane %v4061_v2, 1  ;;  %v4091_v56 = vadd.f32 %v4090_v50, %v4089_v25  ;;  %v11804_v8 = vpop.permute.xlu0 %4332 }
 0x444   : > { %vm4355_vm5 = vcmp.eq.s32.totalorder %v11804_v8, 1 }
 0x445   : > { %v4063_v61 = vadd.f32 %v4062_v31, %v4061_v2  ;;  %v4092_v14 = vrot.slane %v4091_v56, 1  ;;  %v11756_v12 = vpop.permute.xlu1 %4338 }
 0x446   : > { %vm4357_vm11 = vcmp.eq.s32.totalorder %v11756_v12, 1  ;;  %v9671_v12 = vld [vmem:[%s13404_s10 + $0x20] sm:$0xff]  }
 0x447   : > { %v4064_v21 = vmul.f32 0.015625, %v4063_v61  ;;  %v4093_v19 = vadd.f32 %v4092_v14, %v4091_v56  ;;  %v11808_v26 = vpop.permute.xlu0 %4341  ;;  %v4248_v14 = vld [vmem:[%s13629_s28] sm:$0x1]  ;;  %s728_s28 = sand.u32 1, %s9766_s26  }
 0x448   : > { %vm4358_vm15 = vcmp.eq.s32.totalorder %v11808_v26, 1  ;;  %s7988_s4 = sshll.u32 %s728_s28, 6  ;;  %s13354_s0 = scalar_lea.sflag [#allocation5], %s728_s28 }
 0x449   : > { %9108 = vmatmul.mubr.msk.f32.vlgmr.msra.gmra.mxu0 %vm750_vm14, %v4064_v21  ;;  %v4094_v28 = vmul.f32 0.015625, %v4093_v19  ;;  %v11770_v53 = vpop.permute.xlu1 %4623  ;;  %s730_s29 = scalar_lea.vmem [#allocation4], %s7988_s4  ;;  %s9786_s4 = smov [#allocation4]  }
 0x44a   : > { %9111 = vmatpush3.msra.mxu0 %v13624_v48  ;;  %9118 = vmatprep.mubr.msk.f32.mxu0 %vm9785_vm6, %v13625_v33  ;;  %s7922_s5 = sshll.u32 %s730_s29, 4  ;;  %s9718_s2 = sshll.u32 %s9786_s4, 4  ;;  %s13338_s5 = int_to_ptr.vmem [resolvable:$true] %s7922_s5  ;;  %s9719_s2 = int_to_ptr.vmem [resolvable:$false] %s9718_s2 }
 0x44b   : > { %9112 = vmatprep.subr.mxu0 %v13625_v33  ;;  %v11812_v58 = vpop.permute.xlu0 %4344  ;;  %s9714_s27 = scalar_lea.vmem %s13338_s5, 1024  ;;  %s9720_s6 = scalar_lea.vmem %s9719_s2, 2048 }
 0x44c   : > { %9113 = vmatpush3.msra.mxu0 %v13626_v36  ;;  %vm4359_vm0 = vcmp.eq.s32.totalorder %v11812_v58, 1  ;;  %p9715_p11 = scmp.ne.s32.totalorder %s13338_s5, %s9714_s27  ;;  %p9721_p0 = scmp.lt.s32.totalorder %s13338_s5, %s9719_s2 }
 0x44d   : > { %9114 = vmatprep.subr.mxu0 %v13625_v33  ;;  %v11772_v32 = vpop.permute.xlu1 %4629  ;;  %p9722_p1 = scmp.lt.s32.totalorder %s9720_s6, %s9714_s27 }
 0x44e   : > { %9115 = vmatpush3.msra.mxu0 %v13627_v0  ;;  %v4252_v0 = vld [vmem:[%s13403_s9] sm:$0x1]  ;;  %p9716_p12 = pnand %p9715_p11, %p9952_p5 }
 0x44f   : > { %9116 = vmatprep.subr.mxu0 %v13625_v33  ;;  %v11816_v31 = vpop.permute.xlu0 %4353  ;;  %p9723_p2 = por %p9722_p1, %p9721_p0 }
 0x450   : > { %9117 = vmatpush3.msra.mxu0 %v13628_v47  ;;  %p9717_p13 = pneg %p9716_p12 }
 0x451   : > { %9119 = vmatmul.mubr.msk.f32.vlgmr.msra.gmra.mxu0 %vm750_vm14, %v4094_v28  ;;  %9133 = vmatprep.subr.bf16.mxu0 %v9668_v63  ;;  %v11780_v10 = vpop.permute.xlu1 %4632 }
 0x452   : > { %9134 = vmatpush3.bf16.msra.mxu0 %v9668_v63  ;;  %p9724_p3 = pnand %p9723_p2, %p9717_p13 }
 0x453   : > { %9135 = vmatprep.subr.bf16.mxu0 %v9669_v55  ;;  %v11820_v61 = vpop.permute.xlu0 %4626 }
 0x455   : > { %v11782_v5 = vpop.permute.xlu1 %4347 }
 0x456   : > { %9136 = vmatpush3.bf16.msra.mxu0 %v9669_v55  ;;  %vm4360_vm12 = vcmp.eq.s32.totalorder %v11782_v5, 1 }
 0x457   : > { %9157 = vmatprep.subr.bf16.mxu0 %v11777_v20  ;;  %v11827_v48 = vpop.permute.xlu0 %4638 }
 0x459   : > { %v11784_v24 = vpop.permute.xlu1 %4350 }
 0x45b   : > { %v11835_v35 = vpop.permute.xlu0 %4777 }
 0x45d   : > { %v11786_v1 = vpop.permute.xlu1 %4635 }
 0x461   : > { %v11788_v15 = vpop.permute.xlu1 %4641 }
 0x465   : > { %v11790_v41 = vpop.permute.xlu1 %4644 }
 0x469   : > { %v11794_v11 = vpop.permute.xlu1 %4780 }
 0x46d   : > { %v11798_v18 = vpop.permute.xlu1 %4783 }
 0x471   : > { %v11802_v27 = vpop.permute.xlu1 %4789 }
 0x475   : > { %v11806_v62 = vpop.permute.xlu1 %4795 }
 0x479   : > { %v11810_v45 = vpop.permute.xlu1 %5037 }
 0x47d   : > { %v11814_v2 = vpop.permute.xlu1 %5043 }
 0x481   : > { %v11818_v56 = vpop.permute.xlu1 %5046 }
 0x485   : > { %v11822_v21 = vpop.permute.xlu1 %5194 }
 0x489   : > { %v11832_v28 = vpop.permute.xlu1 %5197 }
 0x48a   : > { %13630 = vst [vmem:[#allocation24_spill] sm:$0xff] %v11832_v28 }
 0x509   : > { %v4168_v7 = vpop.f32.mrf.mxu0 }
 0x50a   : > { %v4245_v51 = vmul.f32 %v4168_v7, %v4168_v7 }
 0x50b   : > { %v9109_v44 = vpop.f32.mrf.mxu0 }
 0x511   : > { %v4241_v23 = vpop.f32.mrf.mxu0 }
 0x512   : > { %v4246_v30 = vsub.f32 %v4241_v23, %v4245_v51 }
 0x513   : > { %v9120_v29 = vpop.f32.mrf.mxu0 }
 0x514   : > { %v4247_v25 = vmax.f32 %v4246_v30, 0.0 }
 0x516   : > { %v4249_v50 = vadd.f32 1e-06, %v4247_v25 }
 0x518   : > { %9704 = vrsqrt.f32 %v4249_v50 }
 0x525   : > { %v9705_v19 = vpop.eup %9704 }
 0x526   : > { %v4251_v36 = vmul.f32 %v9705_v19, %v4248_v14  ;;  %v11846_v19 = vpop.permute.xlu1 %5049 }
 0x528   : > { %v4253_v47 = vmul.f32 %v4251_v36, %v4168_v7  ;;  %v4259_v63 = vrot.slane %v4251_v36, %v13631_v54 }
 0x52a   : > { %v4254_v55 = vsub.f32 %v4252_v0, %v4253_v47  ;;  %v4261_v44 = vmul.f32 %v4259_v63, %v11654_v46  ;;  %v4262_v51 = vmul.f32 %v4259_v63, %v11665_v16  ;;  %v4263_v23 = vmul.f32 %v4259_v63, %v11657_v39 }
 0x52b   : > { %v4264_v30 = vmul.f32 %v4259_v63, %v11663_v13  ;;  %v4265_v25 = vmul.f32 %v4259_v63, %v11677_v34  ;;  %v4266_v50 = vmul.f32 %v4259_v63, %v11699_v57  ;;  %v4267_v7 = vmul.f32 %v4259_v63, %v11689_v42  ;;  %v11864_v42 = vpop.permute.xlu0 %4786 }
 0x52c   : > { %v4273_v29 = vrot.slane %v4254_v55, %v13631_v54  ;;  %v4268_v14 = vmul.f32 %v4259_v63, %v11697_v38 }
 0x52e   : > { %v11848_v36 = vadd.f32 %v4273_v29, %v4261_v44  ;;  %v11850_v46 = vadd.f32 %v4273_v29, %v4262_v51  ;;  %v11852_v16 = vadd.f32 %v4273_v29, %v4263_v23  ;;  %v11854_v39 = vadd.f32 %v4273_v29, %v4264_v30 }
 0x52f   : > { %v11856_v13 = vadd.f32 %v4273_v29, %v4265_v25  ;;  %v11858_v0 = vadd.f32 %v4273_v29, %v4266_v50  ;;  %v11860_v34 = vadd.f32 %v4273_v29, %v4267_v7  ;;  %v11862_v57 = vadd.f32 %v4273_v29, %v4268_v14  ;;  %v11898_v29 = vpop.permute.xlu1 %5055  ;;  %v11900_v25 = vpop.permute.xlu0 %4792  ;;  %v4379_v7 = vld [vmem:[#allocation3 + $0x1] sm:$0xff] }
 0x530   : > { %v13495_v38 = vmax.f32 %v11848_v36, 0.0  ;;  %v13494_v47 = vmax.f32 %v11850_v46, 0.0  ;;  %v13493_v63 = vmax.f32 %v11852_v16, 0.0  ;;  %v13492_v55 = vmax.f32 %v11854_v39, 0.0 }
 0x531   : > { %13632 = vst [vmem:[#allocation28_spill] sm:$0xff] %v11862_v57  ;;  %v13491_v44 = vmax.f32 %v11856_v13, 0.0  ;;  %v13488_v51 = vmax.f32 %v11858_v0, 0.0  ;;  %v13489_v23 = vmax.f32 %v11860_v34, 0.0  ;;  %v13490_v30 = vmax.f32 %v11862_v57, 0.0 }
 0x532   : > { %4291 = vst.msk [vmem:[#allocation3 + $0x9] sm:$0xff] %vm750_vm14, %v13495_v38  ;;  %4292 = vst.msk [vmem:[#allocation3 + $0x11] sm:$0xff] %vm750_vm14, %v13494_v47 }
 0x533   : > { %4293 = vst.msk [vmem:[#allocation3 + $0x19] sm:$0xff] %vm750_vm14, %v13493_v63  ;;  %4294 = vst.msk [vmem:[#allocation3 + $0x21] sm:$0xff] %vm750_vm14, %v13492_v55  ;;  %v11902_v50 = vpop.permute.xlu1 %5058  ;;  %v11905_v14 = vpop.permute.xlu0 %4798 }
 0x534   : > { %4295 = vst.msk [vmem:[#allocation3 + $0x29] sm:$0xff] %vm750_vm14, %v13491_v44  ;;  %4296 = vst.msk [vmem:[#allocation3 + $0x31] sm:$0xff] %vm750_vm14, %v13488_v51  ;;  %v4419_v51 = vsel %vm4411_vm2, %v4379_v7, 0.0  ;;  %vm4646_vm2 = vcmp.eq.s32.totalorder %v11770_v53, 1  ;;  %v9676_v53 = vld [vmem:[%s13404_s10 + $0x58] sm:$0xff]  }
 0x535   : > { %4297 = vst.msk [vmem:[#allocation3 + $0x39] sm:$0xff] %vm750_vm14, %v13489_v23  ;;  %4298 = vst.msk [vmem:[#allocation3 + $0x41] sm:$0xff] %vm750_vm14, %v13490_v30  ;;  %v4299_v23 = vld [vmem:[#allocation3] sm:$0xff] }
 0x536   : > { %v4363_v38 = vsel %vm4355_vm5, %v4299_v23, 0.0  ;;  %vm4361_vm5 = vcmp.eq.s32.totalorder %v11784_v24, 1 }
 0x537   : > { %v11915_v44 = vpop.permute.xlu1 %5206  ;;  %v11929_v54 = vpop.permute.xlu0 %5040 }
 0x538   : > { %13633 = vst [vmem:[#allocation27_spill] sm:$0xff] %v11915_v44 }
 0x539   : > { %v11910_v30 = vld [vmem:[#allocation3 + $0x11] sm:$0xff]  ;;  %v4380_v55 = vld [vmem:[#allocation3 + $0x9] sm:$0xff] }
 0x53a   : > { %v11917_v40 = vld [vmem:[#allocation3 + $0x10] sm:$0xff]  ;;  %v11919_v7 = vld [vmem:[#allocation3 + $0x18] sm:$0xff]  ;;  %v11924_v8 = vld [vmem:[#allocation3 + $0x21] sm:$0xff]  ;;  %v4420_v59 = vsel %vm4412_vm10, %v4380_v55, 0.0  ;;  %v4421_v26 = vsel %vm4413_vm3, %v11910_v30, 0.0  ;;  %vm4647_vm3 = vcmp.eq.s32.totalorder %v11820_v61, 1 }
 0x53b   : > { %v11926_v63 = vld [vmem:[#allocation3 + $0x19] sm:$0xff]  ;;  %v4300_v47 = vld [vmem:[#allocation3 + $0x8] sm:$0xff]  ;;  %v4427_v28 = vpack.c.bf16 %v4420_v59, %v4419_v51  ;;  %v4365_v22 = vsel %vm4357_vm11, %v11917_v40, 0.0  ;;  %v4366_v17 = vsel %vm4358_vm15, %v11919_v7, 0.0  ;;  %v4423_v58 = vsel %vm4415_vm13, %v11924_v8, 0.0  ;;  %v11966_v43 = vld [vmem:[#allocation3 + $0x30] sm:$0xff]  ;;  %v11986_v5 = vpop.permute.xlu0 %5052 }
 0x53c   : > { %v11931_v60 = vld [vmem:[#allocation3 + $0x20] sm:$0xff]  ;;  %v11933_v49 = vld [vmem:[#allocation3 + $0x29] sm:$0xff]  ;;  %v4364_v33 = vsel %vm4356_vm9, %v4300_v47, 0.0  ;;  %v4422_v57 = vsel %vm4414_vm4, %v11926_v63, 0.0  ;;  %v11976_v51 = vld [vmem:[#allocation3 + $0x31] sm:$0xff]  ;;  %vm4800_vm4 = vcmp.eq.s32.totalorder %v11835_v35, 1 }
 0x53d   : > { %v11940_v44 = vld [vmem:[#allocation3 + $0x28] sm:$0xff]  ;;  %v4371_v23 = vpack.c.bf16 %v4364_v33, %v4363_v38  ;;  %9125 = vmatprep.mubr.msk.bf16.mxu1 %vm750_vm14, %v4427_v28  ;;  %v4428_v59 = vpack.c.bf16 %v4422_v57, %v4421_v26  ;;  %v4372_v33 = vpack.c.bf16 %v4366_v17, %v4365_v22  ;;  %v4424_v6 = vsel %vm4416_vm7, %v11933_v49, 0.0  ;;  %v11964_v38 = vpop.permute.xlu1 %5209  ;;  %v11974_v57 = vld [vmem:[#allocation3 + $0x38] sm:$0xff] }
 0x53e   : > { %v4367_v4 = vsel %vm4359_vm0, %v11931_v60, 0.0  ;;  %v4429_v55 = vpack.c.bf16 %v4424_v6, %v4423_v58  ;;  %v4368_v28 = vsel %vm4360_vm12, %v11940_v44, 0.0  ;;  %v4614_v22 = vld [vmem:[#allocation3 + $0x2] sm:$0xff]  ;;  %v11990_v17 = vld [vmem:[#allocation3 + $0xa] sm:$0xff]  ;;  %vm4801_vm7 = vcmp.eq.s32.totalorder %v11794_v11, 1  ;;  %v12023_v35 = vld [vmem:[#allocation3 + $0x1a] sm:$0xff] }
 0x53f   : > { %9137 = vmatprep.mubr.msk.bf16.mxu0 %vm750_vm14, %v4371_v23  ;;  %v11978_v23 = vld [vmem:[#allocation3 + $0x39] sm:$0xff]  ;;  %9126 = vmatmul.mubr.msk.bf16.vlgmr.msra.gmra.mxu1 %vm750_vm14, %v4428_v59  ;;  %v4373_v26 = vpack.c.bf16 %v4368_v28, %v4367_v4  ;;  %vm4417_vm9 = vcmp.eq.s32.totalorder %v11800_v37, 1  ;;  %vm4362_vm10 = vcmp.eq.s32.totalorder %v11816_v31, 1  ;;  %v4369_v24 = vsel %vm4361_vm5, %v11966_v43, 0.0 }
 0x540   : > { %9138 = vmatmul.mubr.msk.bf16.vlgmr.msra.gmra.mxu0 %vm750_vm14, %v4372_v33  ;;  %9146 = vmatpush3.bf16.msra.mxu1 %v11767_v3  ;;  %v9674_v3 = vld [vmem:[%s13404_s10 + $0x48] sm:$0xff]   ;;  %v4425_v58 = vsel %vm4417_vm9, %v11976_v51, 0.0  ;;  %v4426_v59 = vsel %vm4418_vm1, %v11978_v23, 0.0  ;;  %v4370_v11 = vsel %vm4362_vm10, %v11974_v57, 0.0  ;;  %v4654_v37 = vsel %vm4646_vm2, %v4614_v22, 0.0 }
 0x541   : > { %9129 = vmatprep.mubr.msk.bf16.mxu1 %vm750_vm14, %v4429_v55  ;;  %9141 = vmatprep.mubr.msk.bf16.mxu0 %vm750_vm14, %v4373_v26  ;;  %v4655_v31 = vsel %vm4647_vm3, %v11990_v17, 0.0  ;;  %v4808_v33 = vsel %vm4800_vm4, %v4300_v47, 0.0  ;;  %v4809_v6 = vsel %vm4801_vm7, %v11917_v40, 0.0  ;;  %v12015_v52 = vpop.permute.xlu1 %5345  ;;  %v4430_v4 = vpack.c.bf16 %v4426_v59, %v4425_v58  ;;  %v12025_v47 = vld [vmem:[#allocation3 + $0x12] sm:$0xff]  ;;  %v12033_v26 = vld [vmem:[#allocation3 + $0x2a] sm:$0xff] }
 0x542   : > { %9147 = vmatprep.subr.bf16.mxu1 %v9671_v12  ;;  %9158 = vmatpush3.bf16.msra.mxu0 %v11777_v20  ;;  %v4374_v55 = vpack.c.bf16 %v4370_v11, %v4369_v24  ;;  %v12020_v20 = vpop.permute.xlu0 %5191  ;;  %v4662_v61 = vpack.c.bf16 %v4655_v31, %v4654_v37  ;;  %v4816_v28 = vpack.c.bf16 %v4809_v6, %v4808_v33  ;;  %vm4803_vm11 = vcmp.eq.s32.totalorder %v11864_v42, 1  ;;  %v9675_v42 = vld [vmem:[%s13404_s10 + $0x40] sm:$0xff]   ;;  %v12067_v33 = vld [vmem:[#allocation3 + $0x3a] sm:$0xff]  ;;  %v12069_v6 = vld [vmem:[#allocation3 + $0x32] sm:$0xff] }
 0x543   : > { %9159 = vmatprep.subr.bf16.mxu0 %v9673_v9  ;;  %vm4648_vm12 = vcmp.eq.s32.totalorder %v11772_v32, 1  ;;  %vm4651_vm13 = vcmp.eq.s32.totalorder %v11827_v48, 1  ;;  %vm4649_vm15 = vcmp.eq.s32.totalorder %v11780_v10, 1  ;;  %vm4650_vm0 = vcmp.eq.s32.totalorder %v11786_v1, 1  ;;  %v12065_v48 = vld [vmem:[#allocation3 + $0x40] sm:$0xff] }
 0x544   : > { %9148 = vmatpush3.bf16.msra.mxu1 %v9671_v12  ;;  %v12031_v12 = vld [vmem:[#allocation3 + $0x22] sm:$0xff]  ;;  %vm4802_vm1 = vcmp.eq.s32.totalorder %v11798_v18, 1  ;;  %vm4805_vm2 = vcmp.eq.s32.totalorder %v11900_v25, 1  ;;  %v4657_v22 = vsel %vm4649_vm15, %v12023_v35, 0.0  ;;  %v4811_v59 = vsel %vm4803_vm11, %v11931_v60, 0.0 }
 0x545   : > { %9169 = vmatprep.subr.bf16.mxu1 %v9674_v3  ;;  %v12041_v32 = vpop.permute.xlu1 %5351  ;;  %v4810_v58 = vsel %vm4802_vm1, %v11919_v7, 0.0  ;;  %vm4804_vm3 = vcmp.eq.s32.totalorder %v11802_v27, 1  ;;  %v4658_v10 = vsel %vm4650_vm0, %v12031_v12, 0.0  ;;  %v4659_v1 = vsel %vm4651_vm13, %v12033_v26, 0.0  ;;  %v9677_v27 = vld [vmem:[%s13404_s10 + $0x50] sm:$0xff]  }
 0x546   : > { %9160 = vmatpush3.bf16.msra.mxu0 %v9673_v9  ;;  %v4656_v9 = vsel %vm4648_vm12, %v12025_v47, 0.0  ;;  %v12054_v18 = vpop.permute.xlu0 %5200  ;;  %v4812_v25 = vsel %vm4804_vm3, %v11940_v44, 0.0  ;;  %v4813_v24 = vsel %vm4805_vm2, %v11966_v43, 0.0  ;;  %v4817_v37 = vpack.c.bf16 %v4811_v59, %v4810_v58  ;;  %v9680_v59 = vld [vmem:[%s13404_s10 + $0x78] sm:$0xff]  }
 0x547   : > { %9130 = vmatmul.mubr.msk.bf16.gmra.mxu1 %vm750_vm14, %v4430_v4  ;;  %9181 = vmatprep.subr.bf16.mxu0 %v9676_v53  ;;  %v4663_v11 = vpack.c.bf16 %v4657_v22, %v4656_v9  ;;  %v4664_v31 = vpack.c.bf16 %v4659_v1, %v4658_v10  ;;  %vm4807_vm4 = vcmp.eq.s32.totalorder %v11905_v14, 1  ;;  %v4818_v4 = vpack.c.bf16 %v4813_v24, %v4812_v25 }
 0x548   : > { %9142 = vmatmul.mubr.msk.bf16.gmra.mxu0 %vm750_vm14, %v4374_v55  ;;  %9149 = vmatprep.mubr.msk.bf16.mxu1 %vm750_vm14, %v4662_v61  ;;  %vm5061_vm5 = vcmp.eq.s32.totalorder %v11929_v54, 1  ;;  %vm4652_vm7 = vcmp.eq.s32.totalorder %v11788_v15, 1  ;;  %vm4653_vm9 = vcmp.eq.s32.totalorder %v11790_v41, 1  ;;  %vm4806_vm10 = vcmp.eq.s32.totalorder %v11806_v62, 1  ;;  %v9678_v61 = vld [vmem:[%s13404_s10 + $0x68] sm:$0xff]  }
 0x549   : > { %9161 = vmatprep.mubr.msk.bf16.mxu0 %vm750_vm14, %v4816_v28  ;;  %v12074_v55 = vpop.permute.xlu1 %5354  ;;  %vm5060_vm11 = vcmp.eq.s32.totalorder %v11810_v45, 1  ;;  %v4661_v9 = vsel %vm4653_vm9, %v12067_v33, 0.0  ;;  %v4814_v15 = vsel %vm4806_vm10, %v11974_v57, 0.0  ;;  %v4815_v41 = vsel %vm4807_vm4, %v12065_v48, 0.0 }
 0x54a   : > { %v12085_v28 = vpop.permute.xlu0 %5203  ;;  %v5068_v62 = vsel %vm5060_vm11, %v11990_v17, 0.0  ;;  %v5069_v45 = vsel %vm5061_vm5, %v12025_v47, 0.0  ;;  %v4819_v58 = vpack.c.bf16 %v4815_v41, %v4814_v15  ;;  %v13634_v14 = vmax.f32 %v11848_v36, 0.0 }
 0x54b   : > { %v5076_v1 = vpack.c.bf16 %v5069_v45, %v5068_v62  ;;  %vm5062_vm12 = vcmp.eq.s32.totalorder %v11814_v2, 1  ;;  %vm5063_vm13 = vcmp.eq.s32.totalorder %v11818_v56, 1  ;;  %vm5064_vm15 = vcmp.eq.s32.totalorder %v11846_v19, 1  ;;  %v9679_v19 = vld [vmem:[%s13404_s10 + $0x60] sm:$0xff]  }
 0x54c   : > { %vm5065_vm0 = vcmp.eq.s32.totalorder %v11986_v5, 1  ;;  %v5070_v36 = vsel %vm5062_vm12, %v12023_v35, 0.0  ;;  %v5072_v24 = vsel %vm5064_vm15, %v12033_v26, 0.0  ;;  %v13637_v2 = vmax.f32 %v11854_v39, 0.0  ;;  %v9681_v39 = vld [vmem:[%s13404_s10 + $0x70] sm:$0xff]  }
 0x54d   : > { %v12100_v10 = vpop.permute.xlu1 %5502  ;;  %vm5066_vm1 = vcmp.eq.s32.totalorder %v11898_v29, 1  ;;  %vm5067_vm2 = vcmp.eq.s32.totalorder %v11902_v50, 1  ;;  %vm5215_vm3 = vcmp.eq.s32.totalorder %v11822_v21, 1  ;;  %vm5368_vm4 = vcmp.eq.s32.totalorder %v12015_v52, 1  ;;  %v13641_v29 = vld [vmem:[#allocation28_spill] sm:$0xff] }
 0x54e   : > { %v12108_v54 = vpop.permute.xlu0 %5212  ;;  %vm5214_vm5 = vcmp.eq.s32.totalorder %v12020_v20, 1  ;;  %v5074_v21 = vsel %vm5066_vm1, %v12067_v33, 0.0  ;;  %v5376_v20 = vsel %vm5368_vm4, %v11910_v30, 0.0  ;;  %v13640_v62 = vmax.f32 %v11860_v34, 0.0  ;;  %v13643_v30 = vld [vmem:[#allocation24_spill] sm:$0xff]  ;;  %v13644_v34 = vld [vmem:[#allocation27_spill] sm:$0xff] }
 0x54f   : > { %9150 = vmatmul.mubr.msk.bf16.vlgmr.msra.gmra.mxu1 %vm750_vm14, %v4663_v11  ;;  %v5073_v11 = vsel %vm5065_vm0, %v12069_v6, 0.0  ;;  %v13642_v45 = vmax.f32 %v13641_v29, 0.0  ;;  %vm5216_vm9 = vcmp.eq.s32.totalorder %v13643_v30, 1  ;;  %vm5370_vm10 = vcmp.eq.s32.totalorder %v12041_v32, 1  ;;  %v5929_v30 = vld [vmem:[%s13543_s1 + $0x30] sm:$0xff] }
 0x550   : > { %9162 = vmatmul.mubr.msk.bf16.vlgmr.msra.gmra.mxu0 %vm750_vm14, %v4817_v37  ;;  %9170 = vmatpush3.bf16.msra.mxu1 %v9674_v3  ;;  %v4660_v3 = vsel %vm4652_vm7, %v12069_v6, 0.0  ;;  %v13636_v37 = vmax.f32 %v11852_v16, 0.0  ;;  %v5078_v16 = vpack.c.bf16 %v5073_v11, %v5072_v24  ;;  %vm5217_vm11 = vcmp.eq.s32.totalorder %v12054_v18, 1  ;;  %v5342_v24 = vld [vmem:[#allocation3 + $0x41] sm:$0xff] }
 0x551   : > { %9153 = vmatprep.mubr.msk.bf16.mxu1 %vm750_vm14, %v4664_v31  ;;  %9165 = vmatprep.mubr.msk.bf16.mxu0 %vm750_vm14, %v4818_v4  ;;  %v4665_v22 = vpack.c.bf16 %v4661_v9, %v4660_v3  ;;  %v12118_v25 = vpop.permute.xlu1 %5505  ;;  %v13638_v31 = vmax.f32 %v11856_v13, 0.0  ;;  %v12135_v3 = vld [vmem:[#allocation3 + $0x42] sm:$0xff]  ;;  %v9682_v13 = vld [vmem:[%s13404_s10 + $0x88] sm:$0xff]   ;;  %v5223_v9 = vsel %vm5215_vm3, %v11919_v7, 0.0  ;;  %vm5371_vm12 = vcmp.eq.s32.totalorder %v12074_v55, 1 }
 0x552   : > { %9171 = vmatprep.subr.bf16.mxu1 %v9675_v42  ;;  %9182 = vmatpush3.bf16.msra.mxu0 %v9676_v53  ;;  %v13635_v53 = vmax.f32 %v11850_v46, 0.0  ;;  %v5071_v46 = vsel %vm5063_vm13, %v12031_v12, 0.0  ;;  %v4923_v56 = vpack.c.bf16 %v13637_v2, %v13636_v37  ;;  %v5349_v5 = vpop.permute.xlu0 %5348  ;;  %v5075_v52 = vsel %vm5067_vm2, %v12135_v3, 0.0 }
 0x553   : > { %9183 = vmatprep.subr.bf16.mxu0 %v9677_v27  ;;  %vm5369_vm7 = vcmp.eq.s32.totalorder %v5349_v5, 1  ;;  %vm5219_vm13 = vcmp.eq.s32.totalorder %v13644_v34, 1  ;;  %vm5218_vm15 = vcmp.eq.s32.totalorder %v12085_v28, 1  ;;  %v5378_v7 = vsel %vm5370_vm10, %v11924_v8, 0.0  ;;  %v9683_v8 = vld [vmem:[%s13404_s10 + $0x80] sm:$0xff]  }
 0x554   : > { %9172 = vmatpush3.bf16.msra.mxu1 %v9675_v42  ;;  %v4922_v17 = vpack.c.bf16 %v13635_v53, %v13634_v14  ;;  %v5077_v42 = vpack.c.bf16 %v5071_v46, %v5070_v36  ;;  %v5377_v15 = vsel %vm5369_vm7, %v11926_v63, 0.0  ;;  %v5224_v32 = vsel %vm5216_vm9, %v11931_v60, 0.0  ;;  %v5927_v34 = vld [vmem:[%s13543_s1 + $0x20] sm:$0xff] }
 0x555   : > { %9193 = vmatprep.subr.bf16.mxu1 %v9678_v61  ;;  %v5225_v18 = vsel %vm5217_vm11, %v11940_v44, 0.0  ;;  %v5379_v55 = vsel %vm5371_vm12, %v11933_v49, 0.0  ;;  %v5226_v28 = vsel %vm5218_vm15, %v11966_v43, 0.0  ;;  %v5227_v53 = vsel %vm5219_vm13, %v11974_v57, 0.0  ;;  %v5189_v49 = vld [vmem:[#allocation3 + $0x48] sm:$0xff] }
 0x556   : > { %9184 = vmatpush3.bf16.msra.mxu0 %v9677_v27  ;;  %v13639_v27 = vmax.f32 %v11858_v0, 0.0  ;;  %v5358_v0 = vpop.permute.xlu1 %5357  ;;  %v5361_v41 = vpop.permute.xlu0 %5360  ;;  %v5231_v36 = vpack.c.bf16 %v5225_v18, %v5224_v32  ;;  %v5385_v46 = vpack.c.bf16 %v5379_v55, %v5378_v7  ;;  %vm5220_vm2 = vcmp.eq.s32.totalorder %v11964_v38, 1  ;;  %v5343_v57 = vld [vmem:[#allocation3 + $0x49] sm:$0xff] }
 0x557   : > { %9154 = vmatmul.mubr.msk.bf16.gmra.mxu1 %vm750_vm14, %v4665_v22  ;;  %9205 = vmatprep.subr.bf16.mxu0 %v9680_v59  ;;  %v4925_v22 = vpack.c.bf16 %v13642_v45, %v13640_v62  ;;  %vm5372_vm0 = vcmp.eq.s32.totalorder %v5358_v0, 1  ;;  %vm5373_vm1 = vcmp.eq.s32.totalorder %v5361_v41, 1  ;;  %v5232_v60 = vpack.c.bf16 %v5227_v53, %v5226_v28  ;;  %v5924_v62 = vld [vmem:[%s13543_s1 + $0x8] sm:$0xff] }
 0x558   : > { %9166 = vmatmul.mubr.msk.bf16.gmra.mxu0 %vm750_vm14, %v4819_v58  ;;  %9173 = vmatprep.mubr.msk.bf16.mxu1 %vm750_vm14, %v4922_v17  ;;  %v4924_v4 = vpack.c.bf16 %v13639_v27, %v13638_v31  ;;  %v5079_v58 = vpack.c.bf16 %v5075_v52, %v5074_v21  ;;  %v5380_v17 = vsel %vm5372_vm0, %v11976_v51, 0.0  ;;  %vm5221_vm3 = vcmp.eq.s32.totalorder %v12108_v54, 1  ;;  %v5925_v21 = vld [vmem:[%s13543_s1 + $0x10] sm:$0xff]  ;;  %v5926_v52 = vld [vmem:[%s13543_s1 + $0x18] sm:$0xff] }
 0x559   : > { %9185 = vmatprep.mubr.msk.bf16.mxu0 %vm750_vm14, %v5076_v1  ;;  %v5381_v1 = vsel %vm5373_vm1, %v11978_v23, 0.0  ;;  %vm5523_vm7 = vcmp.eq.s32.totalorder %v12100_v10, 1  ;;  %v5228_v23 = vsel %vm5220_vm2, %v12065_v48, 0.0  ;;  %v5229_v11 = vsel %vm5221_vm3, %v5189_v49, 0.0 }
 0x55a   : > { %v5364_v63 = vpop.permute.xlu1 %5363  ;;  %v5500_v14 = vpop.permute.xlu0 %5499  ;;  %v5386_v43 = vpack.c.bf16 %v5381_v1, %v5380_v17  ;;  %vm5524_vm10 = vcmp.eq.s32.totalorder %v12118_v25, 1  ;;  %vm5933_vm2 = vcmp.gt.f32.partialorder %v5925_v21, 0.0  ;;  %vm5934_vm3 = vcmp.gt.f32.partialorder %v5926_v52, 0.0 }
 0x55b   : > { %vm5374_vm4 = vcmp.eq.s32.totalorder %v5364_v63, 1  ;;  %vm5522_vm9 = vcmp.eq.s32.totalorder %v5500_v14, 1  ;;  %v5532_v38 = vsel %vm5524_vm10, %v12031_v12, 0.0  ;;  %v13649_v45 = vmov 2  }
 0x55c   : > { %v5382_v37 = vsel %vm5374_vm4, %v5342_v24, 0.0  ;;  %v5530_v10 = vsel %vm5522_vm9, %v12025_v47, 0.0  ;;  %vm5937_vm9 = vcmp.gt.f32.partialorder %v5929_v30, 0.0  ;;  %vm5935_vm10 = vcmp.gt.f32.partialorder %v5927_v34, 0.0 }
 0x55d   : > { %v13654_v28 = vmov 3  }
 0x55e   : > { %v5367_v44 = vpop.permute.xlu1 %5366  ;;  %v5509_v51 = vpop.permute.xlu0 %5508 }
 0x55f   : > { %9174 = vmatmul.mubr.msk.bf16.vlgmr.msra.gmra.mxu1 %vm750_vm14, %v4923_v56  ;;  %v5531_v56 = vsel %vm5523_vm7, %v12023_v35, 0.0  ;;  %vm5525_vm11 = vcmp.eq.s32.totalorder %v5509_v51, 1  ;;  %vm5932_vm7 = vcmp.gt.f32.partialorder %v5924_v62, 0.0 }
 0x560   : > { %9186 = vmatmul.mubr.msk.bf16.vlgmr.msra.gmra.mxu0 %vm750_vm14, %v5077_v42  ;;  %9194 = vmatpush3.bf16.msra.mxu1 %v9678_v61  ;;  %v5222_v61 = vsel %vm5214_vm5, %v11917_v40, 0.0  ;;  %v13645_v40 = vmov 0.0   ;;  %vm5375_vm5 = vcmp.eq.s32.totalorder %v5367_v44, 1  ;;  %v5233_v42 = vpack.c.bf16 %v5229_v11, %v5228_v23 }
 0x561   : > { %9177 = vmatprep.mubr.msk.bf16.mxu1 %vm750_vm14, %v4924_v4  ;;  %9189 = vmatprep.mubr.msk.bf16.mxu0 %vm750_vm14, %v5078_v16  ;;  %v5230_v50 = vpack.c.bf16 %v5223_v9, %v5222_v61  ;;  %v5383_v2 = vsel %vm5375_vm5, %v5343_v57, 0.0  ;;  %v5538_v5 = vpack.c.bf16 %v5531_v56, %v5530_v10  ;;  %v5533_v35 = vsel %vm5525_vm11, %v12033_v26, 0.0  ;;  %v5923_v26 = vld [vmem:[%s13543_s1] sm:$0xff]  ;;  %v5928_v61 = vld [vmem:[%s13543_s1 + $0x28] sm:$0xff] }
 0x562   : > { %9195 = vmatprep.subr.bf16.mxu1 %v9679_v19  ;;  %9206 = vmatpush3.bf16.msra.mxu0 %v9680_v59  ;;  %v5384_v59 = vpack.c.bf16 %v5377_v15, %v5376_v20  ;;  %v5515_v31 = vpop.permute.xlu1 %5514  ;;  %v5512_v27 = vpop.permute.xlu0 %5511  ;;  %v5539_v4 = vpack.c.bf16 %v5533_v35, %v5532_v38  ;;  %vm5931_vm1 = vcmp.gt.f32.partialorder %v5923_v26, 0.0  ;;  %vm5936_vm4 = vcmp.gt.f32.partialorder %v5928_v61, 0.0  ;;  %v5930_v15 = vld [vmem:[%s13543_s1 + $0x38] sm:$0xff] }
 0x563   : > { %9207 = vmatprep.subr.bf16.mxu0 %v9681_v39  ;;  %vm5527_vm12 = vcmp.eq.s32.totalorder %v5515_v31, 1  ;;  %vm5526_vm13 = vcmp.eq.s32.totalorder %v5512_v27, 1  ;;  %vm5938_vm5 = vcmp.gt.f32.partialorder %v5930_v15, 0.0  ;;  %v13655_v10 = vmov 5  }
 0x564   : > { %9196 = vmatpush3.bf16.msra.mxu1 %v9679_v19  ;;  %v5387_v19 = vpack.c.bf16 %v5383_v2, %v5382_v37  ;;  %v5535_v47 = vsel %vm5527_vm12, %v12067_v33, 0.0  ;;  %v5534_v48 = vsel %vm5526_vm13, %v12069_v6, 0.0  ;;  %v13646_v33 = vmov 0  }
 0x565   : > { %9217 = vmatprep.subr.bf16.mxu1 %v9682_v13  ;;  %v5540_v16 = vpack.c.bf16 %v5535_v47, %v5534_v48  ;;  %v12218_v6 = vsel %vm5931_vm1, 1, %v13646_v33  ;;  %v12232_v20 = vsel %vm5934_vm3, 1, %v13646_v33  ;;  %v12239_v9 = vsel %vm5936_vm4, 1, %v13646_v33 }
 0x566   : > { %9208 = vmatpush3.bf16.msra.mxu0 %v9681_v39  ;;  %v5518_v54 = vpop.permute.xlu1 %5517  ;;  %v5521_v25 = vpop.permute.xlu0 %5520  ;;  %v5497_v39 = vld [vmem:[#allocation3 + $0x4a] sm:$0xff]  ;;  %6004 = vperm.xlu1 %9572, %v12218_v6   ;;  %13648 = vst [vmem:[#allocation30_spill] sm:$0xff] %v12232_v20  ;;  %v12246_v41 = vsel %vm5938_vm5, 1, %v13646_v33  ;;  %v12254_v29 = vsel %vm5932_vm7, 1, %v13646_v33  ;;  %v12299_v63 = vsel %vm5935_vm10, 1, %v13646_v33  ;;  %v12304_v7 = vsel %vm5937_vm9, 1, %v13646_v33 }
 0x567   : > { %9178 = vmatmul.mubr.msk.bf16.gmra.mxu1 %vm750_vm14, %v4925_v22  ;;  %9229 = vmatprep.subr.mxu0 %v13645_v40  ;;  %vm5528_vm15 = vcmp.eq.s32.totalorder %v5518_v54, 1  ;;  %vm5529_vm0 = vcmp.eq.s32.totalorder %v5521_v25, 1  ;;  %v12264_v22 = vld [vmem:[%s13412_s18 + $0x18] sm:$0xff] }
 0x568   : > { %9190 = vmatmul.mubr.msk.bf16.gmra.mxu0 %vm750_vm14, %v5079_v58  ;;  %9197 = vmatprep.mubr.msk.bf16.mxu1 %vm750_vm14, %v5230_v50  ;;  %v5537_v12 = vsel %vm5529_vm0, %v5497_v39, 0.0  ;;  %13650 = vst [vmem:[#allocation23_spill] sm:$0xff] %v12264_v22  ;;  %v12269_v58 = vld [vmem:[%s13412_s18 + $0x10] sm:$0xff]  ;;  %v12277_v50 = vld [vmem:[%s13412_s18 + $0x8] sm:$0xff] }
 0x569   : > { %9209 = vmatprep.mubr.msk.bf16.mxu0 %vm750_vm14, %v5384_v59  ;;  %6007 = vperm.xlu0 %9573, %v12254_v29   ;;  %13651 = vst [vmem:[#allocation31_spill] sm:$0xff] %v12269_v58  ;;  %13652 = vst [vmem:[#allocation29_spill] sm:$0xff] %v12277_v50  ;;  %v12284_v59 = vld [vmem:[%s13412_s18] sm:$0xff] }
 0x56a   : > { %13653 = vst [vmem:[#allocation32_spill] sm:$0xff] %v12284_v59 }
 0x56d   : > { %6016 = vperm.xlu0 %9573, %v12299_v63  }
 0x56f   : > { %9198 = vmatmul.mubr.msk.bf16.vlgmr.msra.gmra.mxu1 %vm750_vm14, %v5231_v36 }
 0x570   : > { %9210 = vmatmul.mubr.msk.bf16.vlgmr.msra.gmra.mxu0 %vm750_vm14, %v5385_v46  ;;  %9218 = vmatpush3.bf16.msra.mxu1 %v9682_v13  ;;  %v5536_v13 = vsel %vm5528_vm15, %v12135_v3, 0.0  ;;  %v12225_v3 = vsel %vm5933_vm2, 1, %v13646_v33 }
 0x571   : > { %9201 = vmatprep.mubr.msk.bf16.mxu1 %vm750_vm14, %v5232_v60  ;;  %9213 = vmatprep.mubr.msk.bf16.mxu0 %vm750_vm14, %v5386_v43  ;;  %v5541_v0 = vpack.c.bf16 %v5537_v12, %v5536_v13  ;;  %13647 = vst [vmem:[#allocation26_spill] sm:$0xff] %v12225_v3 }
 0x572   : > { %9219 = vmatprep.subr.bf16.mxu1 %v9683_v8  ;;  %6010 = vperm.xlu1 %9572, %v12225_v3  }
 0x573   : > { %9230 = vmatpush3.msra.mxu0 %v12264_v22  ;;  %6022 = vperm.xlu0 %9573, %v12304_v7  }
 0x574   : > { %9220 = vmatpush3.bf16.msra.mxu1 %v9683_v8  ;;  %9231 = vmatprep.subr.mxu0 %v13645_v40 }
 0x575   : > { %9232 = vmatpush3.msra.mxu0 %v12269_v58 }
 0x576   : > { %6013 = vperm.xlu1 %9572, %v12232_v20   ;;  %9233 = vmatprep.subr.mxu0 %v13645_v40 }
 0x577   : > { %9202 = vmatmul.mubr.msk.bf16.gmra.mxu1 %vm750_vm14, %v5233_v42  ;;  %9234 = vmatpush3.msra.mxu0 %v12277_v50 }
 0x578   : > { %9214 = vmatmul.mubr.msk.bf16.gmra.mxu0 %vm750_vm14, %v5387_v19  ;;  %9221 = vmatprep.mubr.msk.bf16.mxu1 %vm750_vm14, %v5538_v5 }
 0x579   : > { %9237 = vmatprep.mubr.msk.f32.mxu0 %vm9785_vm6, %v13645_v40  ;;  %9235 = vmatprep.subr.mxu0 %v13645_v40 }
 0x57a   : > { %6019 = vperm.xlu1 %9572, %v12239_v9   ;;  %9236 = vmatpush3.msra.mxu0 %v12284_v59 }
 0x57b   : > { %9240 = vmatprep.subr.mxu0 %v13645_v40  ;;  %9574 = vset.pattern.permute.xlu0 %v13646_v33 }
 0x57c   : > { %5948 = vperm.xlu0 %9574, %v12218_v6  }
 0x57e   : > { %6025 = vperm.xlu1 %9572, %v12246_v41  }
 0x57f   : > { %9222 = vmatmul.mubr.msk.bf16.vlgmr.msra.gmra.mxu1 %vm750_vm14, %v5539_v4 }
 0x580   : > { %9225 = vmatprep.mubr.msk.bf16.mxu1 %vm750_vm14, %v5540_v16  ;;  %5957 = vperm.xlu0 %9574, %v12232_v20   ;;  %v13656_v16 = vmov 6  }
 0x582   : > { %9575 = vset.pattern.permute.xlu1 %v13646_v33 }
 0x583   : > { %5951 = vperm.xlu1 %9575, %v12254_v29  }
 0x584   : > { %5960 = vperm.xlu0 %9574, %v12299_v63  }
 0x587   : > { %9226 = vmatmul.mubr.msk.bf16.gmra.mxu1 %vm750_vm14, %v5541_v0  ;;  %5954 = vperm.xlu1 %9575, %v12225_v3  }
 0x588   : > { %5969 = vperm.xlu0 %9574, %v12246_v41  }
 0x58b   : > { %9576 = vset.pattern.permute.xlu1 %v13649_v45 }
 0x58c   : > { %6239 = vperm.xlu1 %9576, %v12218_v6   ;;  %9578 = vset.pattern.permute.xlu0 %v13649_v45 }
 0x58d   : > { %6242 = vperm.xlu0 %9578, %v12254_v29  }
 0x590   : > { %6245 = vperm.xlu1 %9576, %v12225_v3  }
 0x591   : > { %6254 = vperm.xlu0 %9578, %v12239_v9  }
 0x594   : > { %6248 = vperm.xlu1 %9576, %v12232_v20  }
 0x595   : > { %9580 = vset.pattern.permute.xlu0 %v13654_v28 }
 0x596   : > { %6393 = vperm.xlu0 %9580, %v12218_v6  }
 0x598   : > { %9577 = vset.pattern.permute.xlu1 %v13646_v33 }
 0x599   : > { %5963 = vperm.xlu1 %9577, %v12239_v9  }
 0x59a   : > { %6402 = vperm.xlu0 %9580, %v12232_v20  }
 0x59d   : > { %5966 = vperm.xlu1 %9577, %v12304_v7  }
 0x59e   : > { %6408 = vperm.xlu0 %9580, %v12239_v9  }
 0x5a1   : > { %9579 = vset.pattern.permute.xlu1 %v13649_v45 }
 0x5a2   : > { %6251 = vperm.xlu1 %9579, %v12299_v63   ;;  %6414 = vperm.xlu0 %9580, %v12246_v41  }
 0x5a6   : > { %6257 = vperm.xlu1 %9579, %v12304_v7   ;;  %9583 = vset.pattern.permute.xlu0 %v13655_v10 }
 0x5a7   : > { %6656 = vperm.xlu0 %9583, %v12254_v29  }
 0x5aa   : > { %6260 = vperm.xlu1 %9579, %v12246_v41  }
 0x5ab   : > { %6668 = vperm.xlu0 %9583, %v12239_v9  }
 0x5ae   : > { %9581 = vset.pattern.permute.xlu1 %v13654_v28 }
 0x5af   : > { %6396 = vperm.xlu1 %9581, %v12254_v29   ;;  %9586 = vset.pattern.permute.xlu0 %v13656_v16 }
 0x5b0   : > { %6807 = vperm.xlu0 %9586, %v12218_v6  }
 0x5b3   : > { %6399 = vperm.xlu1 %9581, %v12225_v3  }
 0x5b4   : > { %6816 = vperm.xlu0 %9586, %v12232_v20  }
 0x5b7   : > { %6405 = vperm.xlu1 %9581, %v12299_v63  }
 0x5b8   : > { %6819 = vperm.xlu0 %9586, %v12299_v63  }
 0x5bb   : > { %6411 = vperm.xlu1 %9581, %v12304_v7  }
 0x5bc   : > { %6828 = vperm.xlu0 %9586, %v12246_v41  }
 0x5bf   : > { %9582 = vset.pattern.permute.xlu1 %v13655_v10 }
 0x5c0   : > { %6653 = vperm.xlu1 %9582, %v12218_v6  }
 0x5c4   : > { %6659 = vperm.xlu1 %9582, %v12225_v3  }
 0x5c8   : > { %6662 = vperm.xlu1 %9582, %v12232_v20  }
 0x5cc   : > { %9584 = vset.pattern.permute.xlu1 %v13656_v16 }
 0x5cd   : > { %6810 = vperm.xlu1 %9584, %v12254_v29  }
 0x5d1   : > { %6813 = vperm.xlu1 %9584, %v12225_v3  }
 0x5d5   : > { %9585 = vset.pattern.permute.xlu1 %v13655_v10 }
 0x5d6   : > { %6665 = vperm.xlu1 %9585, %v12299_v63  }
 0x5da   : > { %6671 = vperm.xlu1 %9585, %v12304_v7  }
 0x5de   : > { %6674 = vperm.xlu1 %9585, %v12246_v41  }
 0x5e2   : > { %9587 = vset.pattern.permute.xlu1 %v13656_v16 }
 0x5e3   : > { %6822 = vperm.xlu1 %9587, %v12239_v9  }
 0x5e7   : > { %6825 = vperm.xlu1 %9587, %v12304_v7  }
 0x5ff   : > { %v12316_v32 = vpop.f32.mrf.mxu1 }
 0x600   : > { %v12318_v18 = vpop.f32.mrf.mxu0 }
 0x601   : > { %v12320_v55 = vpop.f32.mrf.mxu1  ;;  %v4592_v28 = vadd.f32 %v12318_v18, %v12316_v32 }
 0x602   : > { %v12322_v14 = vpop.f32.mrf.mxu0 }
 0x603   : > { %v12326_v53 = vpop.f32.mrf.mxu1  ;;  %v4584_v10 = vadd.f32 %v12322_v14, %v12320_v55 }
 0x604   : > { %v12328_v17 = vpop.f32.mrf.mxu0 }
 0x605   : > { %v12331_v1 = vpop.f32.mrf.mxu1  ;;  %v4595_v22 = vadd.f32 %v12328_v17, %v12326_v53 }
 0x606   : > { %v12333_v36 = vpop.f32.mrf.mxu0 }
 0x607   : > { %v12336_v46 = vpop.f32.mrf.mxu1  ;;  %v4587_v32 = vadd.f32 %v12333_v36, %v12331_v1 }
 0x608   : > { %v12338_v8 = vpop.f32.mrf.mxu0 }
 0x609   : > { %v12342_v60 = vpop.f32.mrf.mxu1 }
 0x60a   : > { %v12344_v44 = vpop.f32.mrf.mxu0 }
 0x60b   : > { %v12346_v49 = vpop.f32.mrf.mxu1  ;;  %v4600_v53 = vadd.f32 %v12344_v44, %v12342_v60 }
 0x60c   : > { %v12348_v43 = vpop.f32.mrf.mxu0 }
 0x60d   : > { %v12352_v24 = vpop.f32.mrf.mxu1 }
 0x60e   : > { %v12354_v57 = vpop.f32.mrf.mxu0 }
 0x60f   : > { %v9151_v51 = vpop.f32.mrf.mxu1 }
 0x610   : > { %v12356_v23 = vpop.f32.mrf.mxu0  ;;  %v4762_v58 = vadd.f32 %v9151_v51, %v4592_v28 }
 0x611   : > { %v4729_v11 = vpop.f32.mrf.mxu1 }
 0x612   : > { %v12361_v37 = vpop.f32.mrf.mxu0  ;;  %v4760_v40 = vadd.f32 %v4729_v11, %v4584_v10  ;;  %v4916_v20 = vadd.f32 %v12356_v23, %v4762_v58 }
 0x613   : > { %v9152_v2 = vpop.f32.mrf.mxu1 }
 0x614   : > { %v12363_v56 = vpop.f32.mrf.mxu0  ;;  %v4763_v18 = vadd.f32 %v9152_v2, %v4595_v22  ;;  %v4608_v22 = vadd.f32 %v12338_v8, %v12336_v46  ;;  %v4603_v46 = vadd.f32 %v12354_v57, %v12352_v24 }
 0x615   : > { %v4732_v42 = vpop.f32.mrf.mxu1 }
 0x616   : > { %v12368_v19 = vpop.f32.mrf.mxu0  ;;  %v4761_v51 = vadd.f32 %v4732_v42, %v4587_v32  ;;  %v4917_v1 = vadd.f32 %v12363_v56, %v4763_v18  ;;  %v13658_v42 = vmov 7  }
 0x617   : > { %v12370_v5 = vpop.f32.mrf.mxu1  ;;  %9589 = vset.pattern.permute.xlu0 %v13658_v42  ;;  %9588 = vset.pattern.permute.xlu1 %v13658_v42 }
 0x618   : > { %v12372_v31 = vpop.f32.mrf.mxu0  ;;  %v4766_v44 = vadd.f32 %v12370_v5, %v4608_v22  ;;  %6964 = vperm.xlu0 %9589, %v12254_v29   ;;  %6961 = vperm.xlu1 %9588, %v12218_v6  }
 0x619   : > { %v12376_v27 = vpop.f32.mrf.mxu1 }
 0x61a   : > { %v12378_v38 = vpop.f32.mrf.mxu0  ;;  %v4764_v60 = vadd.f32 %v12376_v27, %v4600_v53  ;;  %v4920_v57 = vadd.f32 %v12372_v31, %v4766_v44 }
 0x61b   : > { %v12380_v35 = vpop.f32.mrf.mxu1 }
 0x61c   : > { %v12382_v47 = vpop.f32.mrf.mxu0  ;;  %6976 = vperm.xlu0 %9589, %v12239_v9  }
 0x61d   : > { %v12386_v48 = vpop.f32.mrf.mxu1 }
 0x61e   : > { %v12388_v54 = vpop.f32.mrf.mxu0  ;;  %v4765_v5 = vadd.f32 %v12386_v48, %v4603_v46 }
 0x61f   : > { %v9175_v25 = vpop.f32.mrf.mxu1 }
 0x620   : > { %v12390_v4 = vpop.f32.mrf.mxu0  ;;  %v5022_v17 = vadd.f32 %v9175_v25, %v4916_v20  ;;  %v4915_v20 = vadd.f32 %v12368_v19, %v4761_v51  ;;  %v4918_v19 = vadd.f32 %v12378_v38, %v4764_v60 }
 0x621   : > { %v4989_v39 = vpop.f32.mrf.mxu1 }
 0x622   : > { %v5143_v13 = vpop.f32.mrf.mxu0  ;;  %v5176_v2 = vadd.f32 %v12390_v4, %v5022_v17 }
 0x623   : > { %v9176_v12 = vpop.f32.mrf.mxu1 }
 0x624   : > { %v12396_v0 = vpop.f32.mrf.mxu0  ;;  %v5023_v23 = vadd.f32 %v9176_v12, %v4917_v1 }
 0x625   : > { %v4992_v26 = vpop.f32.mrf.mxu1 }
 0x626   : > { %v12398_v33 = vpop.f32.mrf.mxu0  ;;  %v5021_v25 = vadd.f32 %v4992_v26, %v4915_v20 }
 0x627   : > { %v12402_v21 = vpop.f32.mrf.mxu1 }
 0x628   : > { %v12404_v52 = vpop.f32.mrf.mxu0  ;;  %v5026_v12 = vadd.f32 %v12402_v21, %v4920_v57 }
 0x629   : > { %v12406_v61 = vpop.f32.mrf.mxu1 }
 0x62a   : > { %v12408_v15 = vpop.f32.mrf.mxu0  ;;  %v5180_v32 = vadd.f32 %v12404_v52, %v5026_v12 }
 0x62b   : > { %v12414_v62 = vpop.f32.mrf.mxu1 }
 0x62c   : > { %v12416_v45 = vpop.f32.mrf.mxu0 }
 0x62d   : > { %v12418_v30 = vpop.f32.mrf.mxu1 }
 0x62e   : > { %v12420_v34 = vpop.f32.mrf.mxu0 }
 0x62f   : > { %13657 = vst [vmem:[#allocation21_spill] sm:$0xff] %v12420_v34  ;;  %v9199_v59 = vpop.f32.mrf.mxu1  ;;  %v4914_v34 = vadd.f32 %v12361_v37, %v4760_v40  ;;  %v4611_v40 = vadd.f32 %v12348_v43, %v12346_v49 }
 0x630   : > { %v9211_v50 = vpop.f32.mrf.mxu0  ;;  %v5330_v27 = vadd.f32 %v9199_v59, %v5176_v2 }
 0x631   : > { %v5297_v3 = vpop.f32.mrf.mxu1  ;;  %v5020_v28 = vadd.f32 %v4989_v39, %v4914_v34  ;;  %v4767_v8 = vadd.f32 %v12380_v35, %v4611_v40  ;;  %v5177_v35 = vadd.f32 %v12396_v0, %v5023_v23  ;;  %v5024_v39 = vadd.f32 %v12406_v61, %v4918_v19  ;;  %v13662_v23 = vld [vmem:[#allocation30_spill] sm:$0xff] }
 0x632   : > { %v5451_v55 = vpop.f32.mrf.mxu0  ;;  %v5484_v31 = vadd.f32 %v9211_v50, %v5330_v27 }
 0x633   : > { %v9200_v14 = vpop.f32.mrf.mxu1  ;;  %v5174_v56 = vadd.f32 %v5143_v13, %v5020_v28  ;;  %v4921_v16 = vadd.f32 %v12382_v47, %v4767_v8  ;;  %v5175_v13 = vadd.f32 %v12398_v33, %v5021_v25  ;;  %v5178_v33 = vadd.f32 %v12408_v15, %v5024_v39 }
 0x634   : > { %v9212_v36 = vpop.f32.mrf.mxu0  ;;  %v5331_v26 = vadd.f32 %v9200_v14, %v5177_v35 }
 0x635   : > { %v5300_v11 = vpop.f32.mrf.mxu1  ;;  %v5328_v24 = vadd.f32 %v5297_v3, %v5174_v56  ;;  %v4919_v3 = vadd.f32 %v12388_v54, %v4765_v5  ;;  %v5027_v59 = vadd.f32 %v12414_v62, %v4921_v16  ;;  %v8355_v54 = vld [vmem:[%s13405_s11] ss:$0 sm:$0xff]  ;;  %v13659_v62 = vmov 8  }
 0x636   : > { %v5454_v49 = vpop.f32.mrf.mxu0  ;;  %v5329_v47 = vadd.f32 %v5300_v11, %v5175_v13  ;;  %v5485_v18 = vadd.f32 %v9212_v36, %v5331_v26  ;;  %9592 = vset.pattern.permute.xlu0 %v13659_v62  ;;  %v13660_v11 = vld [vmem:[#allocation26_spill] sm:$0xff]  ;;  %v13661_v28 = vld [vmem:[#allocation21_spill] sm:$0xff] }
 0x637   : > { %v9203_v58 = vpop.f32.mrf.mxu1  ;;  %v5482_v48 = vadd.f32 %v5451_v55, %v5328_v24  ;;  %v5025_v21 = vadd.f32 %v12418_v30, %v4919_v3  ;;  %v5181_v55 = vadd.f32 %v12416_v45, %v5027_v59  ;;  %6967 = vperm.xlu1 %9588, %v13660_v11   ;;  %7115 = vperm.xlu0 %9592, %v12218_v6  }
 0x638   : > { %v9215_v34 = vpop.f32.mrf.mxu0  ;;  %v5483_v15 = vadd.f32 %v5454_v49, %v5329_v47  ;;  %v5334_v30 = vadd.f32 %v9203_v58, %v5180_v32 }
 0x639   : > { %v5313_v37 = vpop.f32.mrf.mxu1  ;;  %v5179_v22 = vadd.f32 %v13661_v28, %v5025_v21 }
 0x63a   : > { %v5467_v14 = vpop.f32.mrf.mxu0  ;;  %v5332_v51 = vadd.f32 %v5313_v37, %v5178_v33  ;;  %v5488_v6 = vadd.f32 %v9215_v34, %v5334_v30 }
 0x63b   : > { %v9204_v43 = vpop.f32.mrf.mxu1  ;;  %6970 = vperm.xlu1 %9588, %v13662_v23   ;;  %7124 = vperm.xlu0 %9592, %v13662_v23  }
 0x63c   : > { %v5335_v1 = vadd.f32 %v9204_v43, %v5181_v55  ;;  %v9216_v40 = vpop.f32.mrf.mxu0  ;;  %v5486_v45 = vadd.f32 %v5467_v14, %v5332_v51 }
 0x63d   : > { %v5316_v4 = vpop.f32.mrf.mxu1 }
 0x63e   : > { %v5333_v44 = vadd.f32 %v5316_v4, %v5179_v22  ;;  %v5489_v2 = vadd.f32 %v9216_v40, %v5335_v1  ;;  %v5470_v49 = vpop.f32.mrf.mxu0 }
 0x63f   : > { %v9223_v38 = vpop.f32.mrf.mxu1  ;;  %9590 = vset.pattern.permute.xlu1 %v13659_v62  ;;  %7127 = vperm.xlu0 %9592, %v12299_v63  }
 0x640   : > { %v5638_v61 = vadd.f32 %v9223_v38, %v5484_v31  ;;  %v5487_v57 = vadd.f32 %v5470_v49, %v5333_v44  ;;  %7118 = vperm.xlu1 %9590, %v12254_v29  }
 0x641   : > { %v5605_v0 = vpop.f32.mrf.mxu1 }
 0x642   : > { %v5636_v10 = vadd.f32 %v5605_v0, %v5482_v48  ;;  %v12482_v36 = vadd.f32 %v8355_v54, %v5638_v61 }
 0x643   : > { %v9224_v50 = vpop.f32.mrf.mxu1  ;;  %7136 = vperm.xlu0 %9592, %v12246_v41  }
 0x644   : > { %v12479_v53 = vadd.f32 %v8355_v54, %v5636_v10  ;;  %v5639_v52 = vadd.f32 %v9224_v50, %v5485_v18  ;;  %v5683_v56 = vmul.f32 %v12482_v36, %v12482_v36  ;;  %v5662_v35 = vsel %vm750_vm14, %v12482_v36, 0.0  ;;  %7121 = vperm.xlu1 %9590, %v13660_v11  }
 0x645   : > { %v5608_v17 = vpop.f32.mrf.mxu1 }
 0x646   : > { %v5637_v60 = vadd.f32 %v5608_v17, %v5483_v15  ;;  %v5681_v58 = vmul.f32 %v12479_v53, %v12479_v53  ;;  %v12488_v37 = vadd.f32 %v8355_v54, %v5639_v52  ;;  %v5659_v43 = vsel %vm750_vm14, %v12479_v53, 0.0 }
 0x647   : > { %v9227_v20 = vpop.f32.mrf.mxu1  ;;  %v5692_v38 = vsel %vm750_vm14, %v5683_v56, 0.0 }
 0x648   : > { %v12490_v46 = vadd.f32 %v8355_v54, %v5637_v60  ;;  %v5642_v27 = vadd.f32 %v9227_v20, %v5488_v6  ;;  %v5689_v39 = vsel %vm750_vm14, %v5681_v58, 0.0  ;;  %v5684_v13 = vmul.f32 %v12488_v37, %v12488_v37  ;;  %9591 = vset.pattern.permute.xlu1 %v13658_v42 }
 0x649   : > { %v5621_v8 = vpop.f32.mrf.mxu1  ;;  %v5664_v31 = vsel %vm750_vm14, %v12488_v37, 0.0  ;;  %6973 = vperm.xlu1 %9591, %v12299_v63  }
 0x64a   : > { %v5640_v25 = vadd.f32 %v5621_v8, %v5486_v45  ;;  %v5660_v19 = vsel %vm750_vm14, %v12490_v46, 0.0  ;;  %v5682_v5 = vmul.f32 %v12490_v46, %v12490_v46  ;;  %v12514_v48 = vadd.f32 %v8355_v54, %v5642_v27 }
 0x64b   : > { %v9228_v24 = vpop.f32.mrf.mxu1  ;;  %v5661_v4 = vadd.f32 %v5660_v19, %v5659_v43  ;;  %v5694_v61 = vsel %vm750_vm14, %v5684_v13, 0.0  ;;  %v13664_v27 = vmov 0.0  }
 0x64c   : > { %v12502_v16 = vadd.f32 %v8355_v54, %v5640_v25  ;;  %v5690_v12 = vsel %vm750_vm14, %v5682_v5, 0.0  ;;  %v5643_v26 = vadd.f32 %v9228_v24, %v5489_v2  ;;  %v5687_v50 = vmul.f32 %v12514_v48, %v12514_v48  ;;  %v13663_v5 = vld [vmem:[#allocation23_spill] sm:$0xff] }
 0x64d   : > { %v5624_v34 = vpop.f32.mrf.mxu1  ;;  %v5663_v3 = vadd.f32 %v5662_v35, %v5661_v4  ;;  %v5691_v59 = vadd.f32 %v5690_v12, %v5689_v39  ;;  %6979 = vperm.xlu1 %9591, %v12304_v7   ;;  %v13665_v24 = vld [vmem:[#allocation31_spill] sm:$0xff] }
 0x64e   : > { %v5685_v47 = vmul.f32 %v12502_v16, %v12502_v16  ;;  %v5641_v0 = vadd.f32 %v5624_v34, %v5487_v57  ;;  %v5666_v29 = vsel %vm750_vm14, %v12502_v16, 0.0  ;;  %v12522_v10 = vadd.f32 %v8355_v54, %v5643_v26  ;;  %v12561_v57 = vpop.permute.xlu1 %6004  ;;  %v9684_v26 = vld [vmem:[%s13408_s14 + $0x18] sm:$0xff]   ;;  %v9686_v34 = vld [vmem:[%s13408_s14 + $0x8] sm:$0xff]  }
 0x64f   : > { %v5693_v33 = vadd.f32 %v5692_v38, %v5691_v59  ;;  %v5665_v21 = vadd.f32 %v5664_v31, %v5663_v3  ;;  %v5700_v1 = vsel %vm750_vm14, %v5687_v50, 0.0  ;;  %9251 = vmatprep.subr.bf16.mxu1 %v9684_v26  ;;  %v9685_v3 = vld [vmem:[%s13408_s14 + $0x10] sm:$0xff]   ;;  %v9687_v59 = vld [vmem:[%s13408_s14] sm:$0xff]   ;;  %v12590_v31 = vld [vmem:[%s13408_s14 + $0x28] sm:$0xff]   ;;  %vm6027_vm11 = vcmp.eq.s32.totalorder %v12561_v57, 1 }
 0x650   : > { %v12524_v32 = vadd.f32 %v8355_v54, %v5641_v0  ;;  %v5696_v55 = vsel %vm750_vm14, %v5685_v47, 0.0  ;;  %v5670_v54 = vsel %vm750_vm14, %v12514_v48, 0.0  ;;  %v5688_v11 = vmul.f32 %v12522_v10, %v12522_v10  ;;  %9252 = vmatpush3.bf16.msra.mxu1 %v9684_v26 }
 0x651   : > { %v5667_v18 = vadd.f32 %v5666_v29, %v5665_v21  ;;  %v5695_v14 = vadd.f32 %v5694_v61, %v5693_v33  ;;  %v5672_v40 = vsel %vm750_vm14, %v12522_v10, 0.0  ;;  %6982 = vperm.xlu1 %9591, %v12246_v41   ;;  %9253 = vmatprep.subr.bf16.mxu1 %v9685_v3  ;;  %v12600_v33 = vld [vmem:[%s13408_s14 + $0x38] sm:$0xff]  }
 0x652   : > { %v5668_v51 = vsel %vm750_vm14, %v12524_v32, 0.0  ;;  %v5686_v15 = vmul.f32 %v12524_v32, %v12524_v32  ;;  %v5702_v45 = vsel %vm750_vm14, %v5688_v11, 0.0  ;;  %v12563_v35 = vpop.permute.xlu1 %6010 }
 0x653   : > { %v5697_v30 = vadd.f32 %v5696_v55, %v5695_v14  ;;  %v5669_v52 = vadd.f32 %v5668_v51, %v5667_v18  ;;  %v12615_v55 = vpop.permute.xlu0 %6007  ;;  %vm6029_vm12 = vcmp.eq.s32.totalorder %v12563_v35, 1 }
 0x654   : > { %v5698_v17 = vsel %vm750_vm14, %v5686_v15, 0.0  ;;  %9254 = vmatpush3.bf16.msra.mxu1 %v9685_v3  ;;  %vm6028_vm2 = vcmp.eq.s32.totalorder %v12615_v55, 1 }
 0x655   : > { %v5671_v28 = vadd.f32 %v5670_v54, %v5669_v52  ;;  %v5699_v22 = vadd.f32 %v5698_v17, %v5697_v30  ;;  %9593 = vset.pattern.permute.xlu1 %v13659_v62  ;;  %9275 = vmatprep.subr.bf16.mxu1 %v12590_v31 }
 0x656   : > { %7130 = vperm.xlu1 %9593, %v12239_v9   ;;  %v13666_v9 = vld [vmem:[#allocation29_spill] sm:$0xff]  ;;  %v12565_v4 = vpop.permute.xlu1 %6013 }
 0x657   : > { %v5673_v60 = vadd.f32 %v5672_v40, %v5671_v28  ;;  %v5701_v20 = vadd.f32 %v5700_v1, %v5699_v22  ;;  %v12619_v15 = vpop.permute.xlu0 %6016  ;;  %vm6030_vm13 = vcmp.eq.s32.totalorder %v12565_v4, 1 }
 0x658   : > { %vm6031_vm5 = vcmp.eq.s32.totalorder %v12619_v15, 1  ;;  %v9691_v15 = vld [vmem:[%s13408_s14 + $0x30] sm:$0xff]  }
 0x659   : > { %v5674_v44 = vrot.slane %v5673_v60, 4  ;;  %v5703_v23 = vadd.f32 %v5702_v45, %v5701_v20 }
 0x65a   : > { %7133 = vperm.xlu1 %9593, %v12304_v7   ;;  %v13667_v7 = vld [vmem:[#allocation32_spill] sm:$0xff]  ;;  %v12567_v39 = vpop.permute.xlu1 %6019 }
 0x65b   : > { %v5675_v6 = vadd.f32 %v5674_v44, %v5673_v60  ;;  %v5704_v58 = vrot.slane %v5703_v23, 4  ;;  %v12623_v52 = vpop.permute.xlu0 %6022  ;;  %vm6032_vm0 = vcmp.eq.s32.totalorder %v12567_v39, 1 }
 0x65d   : > { %v5676_v42 = vrot.slane %v5675_v6, 2  ;;  %v5705_v8 = vadd.f32 %v5704_v58, %v5703_v23 }
 0x65e   : > { %v12569_v13 = vpop.permute.xlu1 %6025 }
 0x65f   : > { %v5677_v63 = vadd.f32 %v5676_v42, %v5675_v6  ;;  %v5706_v2 = vrot.slane %v5705_v8, 2  ;;  %v12627_v11 = vpop.permute.xlu0 %5948  ;;  %vm6034_vm10 = vcmp.eq.s32.totalorder %v12569_v13, 1 }
 0x660   : > { %vm5971_vm15 = vcmp.eq.s32.totalorder %v12627_v11, 1 }
 0x661   : > { %v5678_v56 = vrot.slane %v5677_v63, 1  ;;  %v5707_v25 = vadd.f32 %v5706_v2, %v5705_v8 }
 0x662   : > { %v12571_v12 = vpop.permute.xlu1 %5951 }
 0x663   : > { %v5679_v49 = vadd.f32 %v5678_v56, %v5677_v63  ;;  %v5708_v19 = vrot.slane %v5707_v25, 1  ;;  %v12631_v1 = vpop.permute.xlu0 %5957  ;;  %vm5972_vm1 = vcmp.eq.s32.totalorder %v12571_v12, 1 }
 0x664   : > { %vm5974_vm7 = vcmp.eq.s32.totalorder %v12631_v1, 1 }
 0x665   : > { %v5680_v43 = vmul.f32 0.015625, %v5679_v49  ;;  %v5709_v41 = vadd.f32 %v5708_v19, %v5707_v25  ;;  %v5864_v25 = vld [vmem:[%s13406_s12] sm:$0x1] }
 0x666   : > { %v12579_v38 = vpop.permute.xlu1 %5954 }
 0x667   : > { %9238 = vmatmul.mubr.msk.f32.vlgmr.msra.gmra.mxu0 %vm750_vm14, %v5680_v43  ;;  %v5710_v62 = vmul.f32 0.015625, %v5709_v41  ;;  %v12635_v45 = vpop.permute.xlu0 %5960  ;;  %vm5973_vm3 = vcmp.eq.s32.totalorder %v12579_v38, 1  ;;  %v9689_v38 = vld [vmem:[%s13408_s14 + $0x20] sm:$0xff]  }
 0x668   : > { %9241 = vmatpush3.msra.mxu0 %v13663_v5  ;;  %9248 = vmatprep.mubr.msk.f32.mxu0 %vm9785_vm6, %v13664_v27  ;;  %v5868_v5 = vld [vmem:[%s13407_s13] sm:$0x1]  ;;  %vm5975_vm9 = vcmp.eq.s32.totalorder %v12635_v45, 1 }
 0x669   : > { %9242 = vmatprep.subr.mxu0 %v13664_v27 }
 0x66a   : > { %9243 = vmatpush3.msra.mxu0 %v13665_v24  ;;  %v12593_v47 = vpop.permute.xlu1 %6239 }
 0x66b   : > { %9244 = vmatprep.subr.mxu0 %v13664_v27  ;;  %v12639_v8 = vpop.permute.xlu0 %5969 }
 0x66c   : > { %9245 = vmatpush3.msra.mxu0 %v13666_v9  ;;  %v13669_v9 = vld [vmem:[#allocation25_spill] sm:$0xff] }
 0x66d   : > { %9246 = vmatprep.subr.mxu0 %v13664_v27 }
 0x66e   : > { %9247 = vmatpush3.msra.mxu0 %v13667_v7  ;;  %v12595_v0 = vpop.permute.xlu1 %6245 }
 0x66f   : > { %9249 = vmatmul.mubr.msk.f32.vlgmr.msra.gmra.mxu0 %vm750_vm14, %v5710_v62  ;;  %9263 = vmatprep.subr.bf16.mxu0 %v9686_v34  ;;  %v12643_v2 = vpop.permute.xlu0 %6242 }
 0x670   : > { %9264 = vmatpush3.bf16.msra.mxu0 %v9686_v34 }
 0x671   : > { %9265 = vmatprep.subr.bf16.mxu0 %v9687_v59 }
 0x672   : > { %v12603_v21 = vpop.permute.xlu1 %6248 }
 0x673   : > { %v12650_v49 = vpop.permute.xlu0 %6254 }
 0x674   : > { %9266 = vmatpush3.bf16.msra.mxu0 %v9687_v59 }
 0x675   : > { %9287 = vmatprep.subr.bf16.mxu0 %v12600_v33 }
 0x676   : > { %v12605_v61 = vpop.permute.xlu1 %5963 }
 0x677   : > { %v12658_v7 = vpop.permute.xlu0 %6393  ;;  %vm5976_vm4 = vcmp.eq.s32.totalorder %v12605_v61, 1 }
 0x67a   : > { %v12607_v29 = vpop.permute.xlu1 %5966 }
 0x67e   : > { %v12609_v18 = vpop.permute.xlu1 %6251 }
 0x682   : > { %v12611_v14 = vpop.permute.xlu1 %6257 }
 0x686   : > { %v12613_v50 = vpop.permute.xlu1 %6260 }
 0x68a   : > { %v12617_v51 = vpop.permute.xlu1 %6396 }
 0x68e   : > { %v12621_v30 = vpop.permute.xlu1 %6399 }
 0x692   : > { %v12625_v54 = vpop.permute.xlu1 %6405 }
 0x696   : > { %v12629_v28 = vpop.permute.xlu1 %6411 }
 0x69a   : > { %v12633_v40 = vpop.permute.xlu1 %6653 }
 0x69e   : > { %v12637_v58 = vpop.permute.xlu1 %6659 }
 0x6a2   : > { %v12641_v63 = vpop.permute.xlu1 %6662 }
 0x6a6   : > { %v12645_v56 = vpop.permute.xlu1 %6810 }
 0x6aa   : > { %v12655_v41 = vpop.permute.xlu1 %6813 }
 0x6ab   : > { %13668 = vst [vmem:[#allocation22_spill] sm:$0xff] %v12655_v41 }
 0x727   : > { %v5784_v17 = vpop.f32.mrf.mxu0 }
 0x728   : > { %v5861_v60 = vmul.f32 %v5784_v17, %v5784_v17 }
 0x729   : > { %v9239_v22 = vpop.f32.mrf.mxu0 }
 0x72f   : > { %v5857_v20 = vpop.f32.mrf.mxu0 }
 0x730   : > { %v5862_v44 = vsub.f32 %v5857_v20, %v5861_v60 }
 0x731   : > { %v9250_v23 = vpop.f32.mrf.mxu0 }
 0x732   : > { %v5863_v6 = vmax.f32 %v5862_v44, 0.0 }
 0x734   : > { %v5865_v42 = vadd.f32 1e-06, %v5863_v6  ;;  %v12669_v6 = vpop.permute.xlu1 %6665 }
 0x736   : > { %9706 = vrsqrt.f32 %v5865_v42 }
 0x743   : > { %v9707_v43 = vpop.eup %9706 }
 0x744   : > { %v5867_v19 = vmul.f32 %v9707_v43, %v5864_v25 }
 0x746   : > { %v5869_v24 = vmul.f32 %v5867_v19, %v5784_v17  ;;  %v5875_v62 = vrot.slane %v5867_v19, %v13669_v9 }
 0x748   : > { %v5870_v26 = vsub.f32 %v5868_v5, %v5869_v24  ;;  %v5877_v34 = vmul.f32 %v5875_v62, %v12479_v53  ;;  %v5878_v3 = vmul.f32 %v5875_v62, %v12490_v46  ;;  %v5879_v59 = vmul.f32 %v5875_v62, %v12482_v36 }
 0x749   : > { %v5880_v22 = vmul.f32 %v5875_v62, %v12488_v37  ;;  %v5881_v20 = vmul.f32 %v5875_v62, %v12502_v16  ;;  %v5882_v44 = vmul.f32 %v5875_v62, %v12524_v32  ;;  %v5883_v17 = vmul.f32 %v5875_v62, %v12514_v48  ;;  %v12687_v48 = vpop.permute.xlu0 %6402 }
 0x74a   : > { %v5889_v60 = vrot.slane %v5870_v26, %v13669_v9  ;;  %v5884_v23 = vmul.f32 %v5875_v62, %v12522_v10 }
 0x74c   : > { %v12671_v42 = vadd.f32 %v5889_v60, %v5877_v34  ;;  %v12673_v53 = vadd.f32 %v5889_v60, %v5878_v3  ;;  %v12675_v46 = vadd.f32 %v5889_v60, %v5879_v59  ;;  %v12677_v36 = vadd.f32 %v5889_v60, %v5880_v22  ;;  %v12721_v3 = vpop.permute.xlu1 %6671 }
 0x74d   : > { %v12679_v37 = vadd.f32 %v5889_v60, %v5881_v20  ;;  %v12681_v25 = vadd.f32 %v5889_v60, %v5882_v44  ;;  %v12683_v16 = vadd.f32 %v5889_v60, %v5883_v17  ;;  %v12685_v32 = vadd.f32 %v5889_v60, %v5884_v23  ;;  %v12723_v59 = vpop.permute.xlu0 %6408  ;;  %v5995_v60 = vld [vmem:[#allocation3 + $0x1] sm:$0xff] }
 0x74e   : > { %v13518_v10 = vmax.f32 %v12671_v42, 0.0  ;;  %v13517_v43 = vmax.f32 %v12673_v53, 0.0  ;;  %v13516_v19 = vmax.f32 %v12675_v46, 0.0  ;;  %v13515_v5 = vmax.f32 %v12677_v36, 0.0  ;;  %v5915_v17 = vld [vmem:[#allocation3] sm:$0xff] }
 0x74f   : > { %13670 = vst [vmem:[#allocation28_spill] sm:$0xff] %v12685_v32  ;;  %v13514_v24 = vmax.f32 %v12679_v37, 0.0  ;;  %v13513_v62 = vmax.f32 %v12681_v25, 0.0  ;;  %v13512_v26 = vmax.f32 %v12683_v16, 0.0  ;;  %v13511_v34 = vmax.f32 %v12685_v32, 0.0 }
 0x750   : > { %5907 = vst.msk [vmem:[#allocation3 + $0x9] sm:$0xff] %vm750_vm14, %v13518_v10  ;;  %5908 = vst.msk [vmem:[#allocation3 + $0x11] sm:$0xff] %vm750_vm14, %v13517_v43  ;;  %v12725_v22 = vpop.permute.xlu1 %6674  ;;  %v6035_v44 = vsel %vm6027_vm11, %v5995_v60, 0.0  ;;  %vm6262_vm11 = vcmp.eq.s32.totalorder %v12593_v47, 1  ;;  %v9694_v47 = vld [vmem:[%s13408_s14 + $0x58] sm:$0xff]  }
 0x751   : > { %5909 = vst.msk [vmem:[#allocation3 + $0x19] sm:$0xff] %vm750_vm14, %v13516_v19  ;;  %5910 = vst.msk [vmem:[#allocation3 + $0x21] sm:$0xff] %vm750_vm14, %v13515_v5  ;;  %v12728_v20 = vpop.permute.xlu0 %6414  ;;  %v5979_v5 = vsel %vm5971_vm15, %v5915_v17, 0.0  ;;  %vm5977_vm15 = vcmp.eq.s32.totalorder %v12607_v29, 1 }
 0x752   : > { %5911 = vst.msk [vmem:[#allocation3 + $0x29] sm:$0xff] %vm750_vm14, %v13514_v24  ;;  %5912 = vst.msk [vmem:[#allocation3 + $0x31] sm:$0xff] %vm750_vm14, %v13513_v62 }
 0x753   : > { %5913 = vst.msk [vmem:[#allocation3 + $0x39] sm:$0xff] %vm750_vm14, %v13512_v26  ;;  %5914 = vst.msk [vmem:[#allocation3 + $0x41] sm:$0xff] %vm750_vm14, %v13511_v34 }
 0x754   : > { %v12738_v34 = vpop.permute.xlu1 %6822 }
 0x755   : > { %13671 = vst [vmem:[#allocation24_spill] sm:$0xff] %v12738_v34  ;;  %v12754_v19 = vpop.permute.xlu0 %6656 }
 0x757   : > { %v12733_v23 = vld [vmem:[#allocation3 + $0x11] sm:$0xff]  ;;  %v5996_v26 = vld [vmem:[#allocation3 + $0x9] sm:$0xff] }
 0x758   : > { %v12740_v57 = vld [vmem:[#allocation3 + $0x10] sm:$0xff]  ;;  %v12742_v60 = vld [vmem:[#allocation3 + $0x18] sm:$0xff]  ;;  %v12747_v11 = vld [vmem:[#allocation3 + $0x21] sm:$0xff]  ;;  %v6036_v9 = vsel %vm6028_vm2, %v5996_v26, 0.0  ;;  %v6037_v1 = vsel %vm6029_vm12, %v12733_v23, 0.0  ;;  %vm6264_vm12 = vcmp.eq.s32.totalorder %v12595_v0, 1 }
 0x759   : > { %v12749_v62 = vld [vmem:[#allocation3 + $0x19] sm:$0xff]  ;;  %v12751_v24 = vld [vmem:[#allocation3 + $0x8] sm:$0xff]  ;;  %v6043_v17 = vpack.c.bf16 %v6036_v9, %v6035_v44  ;;  %v5981_v55 = vsel %vm5973_vm3, %v12740_v57, 0.0  ;;  %v5982_v12 = vsel %vm5974_vm7, %v12742_v60, 0.0  ;;  %v6039_v45 = vsel %vm6031_vm5, %v12747_v11, 0.0  ;;  %v12799_v39 = vld [vmem:[#allocation3 + $0x31] sm:$0xff]  ;;  %v12821_v61 = vpop.permute.xlu0 %6668 }
 0x75a   : > { %v12756_v43 = vld [vmem:[#allocation3 + $0x20] sm:$0xff]  ;;  %v12758_v10 = vld [vmem:[#allocation3 + $0x29] sm:$0xff]  ;;  %v5980_v27 = vsel %vm5972_vm1, %v12751_v24, 0.0  ;;  %v6038_v32 = vsel %vm6030_vm13, %v12749_v62, 0.0  ;;  %v5988_v35 = vpack.c.bf16 %v5982_v12, %v5981_v55  ;;  %vm6265_vm13 = vcmp.eq.s32.totalorder %v12603_v21, 1 }
 0x75b   : > { %v12766_v34 = vld [vmem:[#allocation3 + $0x28] sm:$0xff]  ;;  %v5987_v41 = vpack.c.bf16 %v5980_v27, %v5979_v5  ;;  %9255 = vmatprep.mubr.msk.bf16.mxu1 %vm750_vm14, %v6043_v17  ;;  %v6044_v27 = vpack.c.bf16 %v6038_v32, %v6037_v1  ;;  %v6040_v4 = vsel %vm6032_vm0, %v12758_v10, 0.0  ;;  %v5983_v9 = vsel %vm5975_vm9, %v12756_v43, 0.0  ;;  %v12797_v32 = vld [vmem:[#allocation3 + $0x1a] sm:$0xff]  ;;  %v12801_v5 = vld [vmem:[#allocation3 + $0x12] sm:$0xff] }
 0x75c   : > { %v6045_v26 = vpack.c.bf16 %v6040_v4, %v6039_v45  ;;  %v5984_v44 = vsel %vm5976_vm4, %v12766_v34, 0.0  ;;  %v12809_v17 = vld [vmem:[#allocation3 + $0x30] sm:$0xff]  ;;  %v12811_v1 = vld [vmem:[#allocation3 + $0x38] sm:$0xff]  ;;  %vm6033_vm0 = vcmp.eq.s32.totalorder %v12623_v52, 1  ;;  %vm5978_vm1 = vcmp.eq.s32.totalorder %v12639_v8, 1  ;;  %v6230_v45 = vld [vmem:[#allocation3 + $0x2] sm:$0xff] }
 0x75d   : > { %9267 = vmatprep.mubr.msk.bf16.mxu0 %vm750_vm14, %v5987_v41  ;;  %v12795_v41 = vpop.permute.xlu1 %6825  ;;  %v12813_v55 = vld [vmem:[#allocation3 + $0x39] sm:$0xff]  ;;  %9256 = vmatmul.mubr.msk.bf16.vlgmr.msra.gmra.mxu1 %vm750_vm14, %v6044_v27  ;;  %v5989_v12 = vpack.c.bf16 %v5984_v44, %v5983_v9  ;;  %vm6263_vm2 = vcmp.eq.s32.totalorder %v12643_v2, 1  ;;  %vm6416_vm3 = vcmp.eq.s32.totalorder %v12658_v7, 1  ;;  %v12825_v4 = vld [vmem:[#allocation3 + $0xa] sm:$0xff]  ;;  %vm6417_vm4 = vcmp.eq.s32.totalorder %v12617_v51, 1  ;;  %v12869_v7 = vld [vmem:[#allocation3 + $0x22] sm:$0xff] }
 0x75e   : > { %9268 = vmatmul.mubr.msk.bf16.vlgmr.msra.gmra.mxu0 %vm750_vm14, %v5988_v35  ;;  %9276 = vmatpush3.bf16.msra.mxu1 %v12590_v31  ;;  %v6041_v52 = vsel %vm6033_vm0, %v12799_v39, 0.0  ;;  %v9692_v27 = vld [vmem:[%s13408_s14 + $0x48] sm:$0xff]   ;;  %v6272_v31 = vsel %vm6264_vm12, %v12801_v5, 0.0  ;;  %v6273_v35 = vsel %vm6265_vm13, %v12797_v32, 0.0  ;;  %v6042_v51 = vsel %vm6034_vm10, %v12813_v55, 0.0 }
 0x75f   : > { %9259 = vmatprep.mubr.msk.bf16.mxu1 %vm750_vm14, %v6045_v26  ;;  %9271 = vmatprep.mubr.msk.bf16.mxu0 %vm750_vm14, %v5989_v12  ;;  %v5985_v9 = vsel %vm5977_vm15, %v12809_v17, 0.0  ;;  %v5986_v26 = vsel %vm5978_vm1, %v12811_v1, 0.0  ;;  %v6279_v0 = vpack.c.bf16 %v6273_v35, %v6272_v31  ;;  %v6270_v44 = vsel %vm6262_vm11, %v6230_v45, 0.0  ;;  %v12863_v45 = vpop.permute.xlu0 %6807 }
 0x760   : > { %9277 = vmatprep.subr.bf16.mxu1 %v9689_v38  ;;  %9288 = vmatpush3.bf16.msra.mxu0 %v12600_v33  ;;  %v6271_v21 = vsel %vm6263_vm2, %v12825_v4, 0.0  ;;  %v6424_v13 = vsel %vm6416_vm3, %v12751_v24, 0.0  ;;  %v6425_v29 = vsel %vm6417_vm4, %v12740_v57, 0.0  ;;  %v6046_v8 = vpack.c.bf16 %v6042_v51, %v6041_v52  ;;  %v12871_v24 = vld [vmem:[#allocation3 + $0x2a] sm:$0xff] }
 0x761   : > { %9289 = vmatprep.subr.bf16.mxu0 %v9691_v15  ;;  %v12858_v12 = vpop.permute.xlu1 %6961  ;;  %v5990_v33 = vpack.c.bf16 %v5986_v26, %v5985_v9  ;;  %v6278_v2 = vpack.c.bf16 %v6271_v21, %v6270_v44  ;;  %v6432_v31 = vpack.c.bf16 %v6425_v29, %v6424_v13  ;;  %vm6419_vm5 = vcmp.eq.s32.totalorder %v12687_v48, 1  ;;  %v12896_v26 = vld [vmem:[#allocation3 + $0x40] sm:$0xff]  ;;  %v12900_v21 = vld [vmem:[#allocation3 + $0x32] sm:$0xff] }
 0x762   : > { %9278 = vmatpush3.bf16.msra.mxu1 %v9689_v38  ;;  %vm6267_vm7 = vcmp.eq.s32.totalorder %v12650_v49, 1  ;;  %vm6418_vm9 = vcmp.eq.s32.totalorder %v12621_v30, 1  ;;  %vm6421_vm10 = vcmp.eq.s32.totalorder %v12723_v59, 1  ;;  %vm6266_vm11 = vcmp.eq.s32.totalorder %v12609_v18, 1  ;;  %v9693_v18 = vld [vmem:[%s13408_s14 + $0x40] sm:$0xff]   ;;  %v12898_v44 = vld [vmem:[#allocation3 + $0x3a] sm:$0xff] }
 0x763   : > { %9299 = vmatprep.subr.bf16.mxu1 %v9692_v27  ;;  %v6426_v38 = vsel %vm6418_vm9, %v12742_v60, 0.0  ;;  %v6427_v49 = vsel %vm6419_vm5, %v12756_v43, 0.0  ;;  %vm6420_vm12 = vcmp.eq.s32.totalorder %v12625_v54, 1  ;;  %v6275_v52 = vsel %vm6267_vm7, %v12871_v24, 0.0  ;;  %v12885_v35 = vpop.permute.xlu0 %6816  ;;  %v9695_v54 = vld [vmem:[%s13408_s14 + $0x50] sm:$0xff]  }
 0x764   : > { %9290 = vmatpush3.bf16.msra.mxu0 %v9691_v15  ;;  %v6274_v15 = vsel %vm6266_vm11, %v12869_v7, 0.0  ;;  %v6428_v30 = vsel %vm6420_vm12, %v12766_v34, 0.0  ;;  %v6429_v59 = vsel %vm6421_vm10, %v12809_v17, 0.0  ;;  %v6433_v51 = vpack.c.bf16 %v6427_v49, %v6426_v38  ;;  %v9698_v38 = vld [vmem:[%s13408_s14 + $0x78] sm:$0xff]  }
 0x765   : > { %9260 = vmatmul.mubr.msk.bf16.gmra.mxu1 %vm750_vm14, %v6046_v8  ;;  %9311 = vmatprep.subr.bf16.mxu0 %v9694_v47  ;;  %v12878_v48 = vpop.permute.xlu1 %6967  ;;  %v6280_v9 = vpack.c.bf16 %v6275_v52, %v6274_v15  ;;  %vm6423_vm13 = vcmp.eq.s32.totalorder %v12728_v20, 1  ;;  %v6434_v13 = vpack.c.bf16 %v6429_v59, %v6428_v30  ;;  %vm6677_vm15 = vcmp.eq.s32.totalorder %v12754_v19, 1 }
 0x766   : > { %9272 = vmatmul.mubr.msk.bf16.gmra.mxu0 %vm750_vm14, %v5990_v33  ;;  %9279 = vmatprep.mubr.msk.bf16.mxu1 %vm750_vm14, %v6278_v2  ;;  %vm6268_vm0 = vcmp.eq.s32.totalorder %v12611_v14, 1  ;;  %vm6269_vm1 = vcmp.eq.s32.totalorder %v12613_v50, 1  ;;  %vm6422_vm2 = vcmp.eq.s32.totalorder %v12629_v28, 1  ;;  %vm6676_vm3 = vcmp.eq.s32.totalorder %v12633_v40, 1 }
 0x767   : > { %9291 = vmatprep.mubr.msk.bf16.mxu0 %vm750_vm14, %v6432_v31  ;;  %v12916_v8 = vpop.permute.xlu0 %6819  ;;  %v6277_v33 = vsel %vm6269_vm1, %v12898_v44, 0.0  ;;  %v6430_v14 = vsel %vm6422_vm2, %v12811_v1, 0.0  ;;  %v6431_v50 = vsel %vm6423_vm13, %v12896_v26, 0.0  ;;  %v6684_v28 = vsel %vm6676_vm3, %v12825_v4, 0.0 }
 0x768   : > { %v6685_v40 = vsel %vm6677_vm15, %v12801_v5, 0.0  ;;  %v6435_v31 = vpack.c.bf16 %v6431_v50, %v6430_v14  ;;  %v13672_v20 = vmax.f32 %v12671_v42, 0.0  ;;  %vm6678_vm4 = vcmp.eq.s32.totalorder %v12637_v58, 1 }
 0x769   : > { %v12905_v29 = vpop.permute.xlu1 %6970  ;;  %v6692_v15 = vpack.c.bf16 %v6685_v40, %v6684_v28  ;;  %vm6679_vm5 = vcmp.eq.s32.totalorder %v12641_v63, 1  ;;  %vm6680_vm7 = vcmp.eq.s32.totalorder %v12669_v6, 1  ;;  %vm6681_vm9 = vcmp.eq.s32.totalorder %v12821_v61, 1  ;;  %v9697_v6 = vld [vmem:[%s13408_s14 + $0x60] sm:$0xff]  }
 0x76a   : > { %v6686_v42 = vsel %vm6678_vm4, %v12797_v32, 0.0  ;;  %v6688_v30 = vsel %vm6680_vm7, %v12871_v24, 0.0  ;;  %v6689_v59 = vsel %vm6681_vm9, %v12900_v21, 0.0  ;;  %v13675_v58 = vmax.f32 %v12677_v36, 0.0  ;;  %v9699_v36 = vld [vmem:[%s13408_s14 + $0x70] sm:$0xff]  }
 0x76b   : > { %v12939_v19 = vpop.permute.xlu0 %6828  ;;  %vm6682_vm10 = vcmp.eq.s32.totalorder %v12721_v3, 1  ;;  %vm6683_vm11 = vcmp.eq.s32.totalorder %v12725_v22, 1  ;;  %vm6831_vm12 = vcmp.eq.s32.totalorder %v12645_v56, 1  ;;  %vm6984_vm13 = vcmp.eq.s32.totalorder %v12858_v12, 1  ;;  %v13679_v3 = vld [vmem:[#allocation28_spill] sm:$0xff] }
 0x76c   : > { %vm6830_vm15 = vcmp.eq.s32.totalorder %v12863_v45, 1  ;;  %v6690_v56 = vsel %vm6682_vm10, %v12898_v44, 0.0  ;;  %v6992_v45 = vsel %vm6984_vm13, %v12733_v23, 0.0  ;;  %v13678_v28 = vmax.f32 %v12683_v16, 0.0  ;;  %v13681_v23 = vld [vmem:[#allocation22_spill] sm:$0xff]  ;;  %v13682_v16 = vld [vmem:[#allocation24_spill] sm:$0xff] }
 0x76d   : > { %9280 = vmatmul.mubr.msk.bf16.vlgmr.msra.gmra.mxu1 %vm750_vm14, %v6279_v0  ;;  %v9696_v0 = vld [vmem:[%s13408_s14 + $0x68] sm:$0xff]   ;;  %v12931_v49 = vpop.permute.xlu1 %7118  ;;  %v13680_v40 = vmax.f32 %v13679_v3, 0.0  ;;  %vm6832_vm1 = vcmp.eq.s32.totalorder %v13681_v23, 1  ;;  %vm6986_vm2 = vcmp.eq.s32.totalorder %v12878_v48, 1  ;;  %vm6833_vm3 = vcmp.eq.s32.totalorder %v12885_v35, 1 }
 0x76e   : > { %9292 = vmatmul.mubr.msk.bf16.vlgmr.msra.gmra.mxu0 %vm750_vm14, %v6433_v51  ;;  %9300 = vmatpush3.bf16.msra.mxu1 %v9692_v27  ;;  %v6276_v27 = vsel %vm6268_vm0, %v12900_v21, 0.0  ;;  %v13674_v51 = vmax.f32 %v12675_v46, 0.0  ;;  %v6694_v46 = vpack.c.bf16 %v6689_v59, %v6688_v30  ;;  %vm6987_vm4 = vcmp.eq.s32.totalorder %v12905_v29, 1  ;;  %v6958_v30 = vld [vmem:[#allocation3 + $0x41] sm:$0xff] }
 0x76f   : > { %9283 = vmatprep.mubr.msk.bf16.mxu1 %vm750_vm14, %v6280_v9  ;;  %9295 = vmatprep.mubr.msk.bf16.mxu0 %vm750_vm14, %v6434_v13  ;;  %v6281_v2 = vpack.c.bf16 %v6277_v33, %v6276_v27  ;;  %v6965_v61 = vpop.permute.xlu0 %6964  ;;  %v13676_v9 = vmax.f32 %v12679_v37, 0.0  ;;  %v12966_v27 = vld [vmem:[#allocation3 + $0x42] sm:$0xff]  ;;  %v9700_v37 = vld [vmem:[%s13408_s14 + $0x88] sm:$0xff]   ;;  %v6839_v33 = vsel %vm6831_vm12, %v12742_v60, 0.0  ;;  %vm6834_vm7 = vcmp.eq.s32.totalorder %v12916_v8, 1 }
 0x770   : > { %9301 = vmatprep.subr.bf16.mxu1 %v9693_v18  ;;  %9312 = vmatpush3.bf16.msra.mxu0 %v9694_v47  ;;  %v13673_v47 = vmax.f32 %v12673_v53, 0.0  ;;  %v6687_v53 = vsel %vm6679_vm5, %v12869_v7, 0.0  ;;  %v6539_v63 = vpack.c.bf16 %v13675_v58, %v13674_v51  ;;  %vm6985_vm0 = vcmp.eq.s32.totalorder %v6965_v61, 1 }
 0x771   : > { %9313 = vmatprep.subr.bf16.mxu0 %v9695_v54  ;;  %v12949_v52 = vpop.permute.xlu1 %7121  ;;  %v6691_v12 = vsel %vm6683_vm11, %v12966_v27, 0.0  ;;  %v6993_v14 = vsel %vm6985_vm0, %v12749_v62, 0.0  ;;  %vm6835_vm5 = vcmp.eq.s32.totalorder %v13682_v16, 1  ;;  %v6994_v60 = vsel %vm6986_vm2, %v12747_v11, 0.0  ;;  %v9701_v11 = vld [vmem:[%s13408_s14 + $0x80] sm:$0xff]  }
 0x772   : > { %9302 = vmatpush3.bf16.msra.mxu1 %v9693_v18  ;;  %v6538_v4 = vpack.c.bf16 %v13673_v47, %v13672_v20  ;;  %v6693_v18 = vpack.c.bf16 %v6687_v53, %v6686_v42  ;;  %v6840_v48 = vsel %vm6832_vm1, %v12756_v43, 0.0  ;;  %v6841_v35 = vsel %vm6833_vm3, %v12766_v34, 0.0 }
 0x773   : > { %9323 = vmatprep.subr.bf16.mxu1 %v9696_v0  ;;  %v6977_v50 = vpop.permute.xlu0 %6976  ;;  %v6995_v29 = vsel %vm6987_vm4, %v12758_v10, 0.0  ;;  %v6842_v8 = vsel %vm6834_vm7, %v12809_v17, 0.0  ;;  %v6843_v47 = vsel %vm6835_vm5, %v12811_v1, 0.0  ;;  %v6847_v42 = vpack.c.bf16 %v6841_v35, %v6840_v48  ;;  %v6805_v10 = vld [vmem:[#allocation3 + $0x48] sm:$0xff] }
 0x774   : > { %9314 = vmatpush3.bf16.msra.mxu0 %v9695_v54  ;;  %v13677_v54 = vmax.f32 %v12681_v25, 0.0  ;;  %vm6989_vm10 = vcmp.eq.s32.totalorder %v6977_v50, 1  ;;  %v7001_v53 = vpack.c.bf16 %v6995_v29, %v6994_v60  ;;  %vm6836_vm11 = vcmp.eq.s32.totalorder %v12795_v41, 1  ;;  %v6959_v1 = vld [vmem:[#allocation3 + $0x49] sm:$0xff] }
 0x775   : > { %9284 = vmatmul.mubr.msk.bf16.gmra.mxu1 %vm750_vm14, %v6281_v2  ;;  %9335 = vmatprep.subr.bf16.mxu0 %v9698_v38  ;;  %v6974_v25 = vpop.permute.xlu1 %6973  ;;  %v6541_v2 = vpack.c.bf16 %v13680_v40, %v13678_v28  ;;  %v6848_v43 = vpack.c.bf16 %v6843_v47, %v6842_v8  ;;  %vm6837_vm12 = vcmp.eq.s32.totalorder %v12939_v19, 1  ;;  %vm7139_vm0 = vcmp.eq.s32.totalorder %v12931_v49, 1  ;;  %v7328_v50 = vld [vmem:[%s13413_s19 + $0x8] sm:$0xff]  ;;  %v7327_v28 = vld [vmem:[%s13413_s19] sm:$0xff] }
 0x776   : > { %9296 = vmatmul.mubr.msk.bf16.gmra.mxu0 %vm750_vm14, %v6435_v31  ;;  %9303 = vmatprep.mubr.msk.bf16.mxu1 %vm750_vm14, %v6538_v4  ;;  %v6540_v13 = vpack.c.bf16 %v13677_v54, %v13676_v9  ;;  %v6695_v31 = vpack.c.bf16 %v6691_v12, %v6690_v56  ;;  %vm6988_vm9 = vcmp.eq.s32.totalorder %v6974_v25, 1  ;;  %v6845_v59 = vsel %vm6837_vm12, %v6805_v10, 0.0  ;;  %v7334_v56 = vld [vmem:[%s13413_s19 + $0x38] sm:$0xff]  ;;  %v7333_v12 = vld [vmem:[%s13413_s19 + $0x30] sm:$0xff] }
 0x777   : > { %9315 = vmatprep.mubr.msk.bf16.mxu0 %vm750_vm14, %v6692_v15  ;;  %v7116_v20 = vpop.permute.xlu0 %7115  ;;  %v6996_v4 = vsel %vm6988_vm9, %v12799_v39, 0.0  ;;  %v6997_v15 = vsel %vm6989_vm10, %v12813_v55, 0.0  ;;  %v6844_v55 = vsel %vm6836_vm11, %v12896_v26, 0.0  ;;  %vm7140_vm2 = vcmp.eq.s32.totalorder %v12949_v52, 1 }
 0x778   : > { %v7002_v17 = vpack.c.bf16 %v6997_v15, %v6996_v4  ;;  %vm7138_vm1 = vcmp.eq.s32.totalorder %v7116_v20, 1  ;;  %v7148_v41 = vsel %vm7140_vm2, %v12869_v7, 0.0  ;;  %vm7632_vm10 = vcmask 48128  }
 0x779   : > { %v6980_v62 = vpop.permute.xlu1 %6979  ;;  %v7146_v49 = vsel %vm7138_vm1, %v12801_v5, 0.0 }
 0x77a   : > { %vm6990_vm13 = vcmp.eq.s32.totalorder %v6980_v62, 1 }
 0x77b   : > { %v7125_v39 = vpop.permute.xlu0 %7124  ;;  %v6998_v51 = vsel %vm6990_vm13, %v6958_v30, 0.0 }
 0x77c   : > { %vm7141_vm3 = vcmp.eq.s32.totalorder %v7125_v39, 1 }
 0x77d   : > { %9304 = vmatmul.mubr.msk.bf16.vlgmr.msra.gmra.mxu1 %vm750_vm14, %v6539_v63  ;;  %v6983_v34 = vpop.permute.xlu1 %6982  ;;  %v7147_v63 = vsel %vm7139_vm0, %v12797_v32, 0.0  ;;  %v7149_v32 = vsel %vm7141_vm3, %v12871_v24, 0.0  ;;  %v7338_v24 = vld [vmem:[%s13413_s19 + $0x58] sm:$0xff] }
 0x77e   : > { %9316 = vmatmul.mubr.msk.bf16.vlgmr.msra.gmra.mxu0 %vm750_vm14, %v6693_v18  ;;  %9324 = vmatpush3.bf16.msra.mxu1 %v9696_v0  ;;  %v6838_v0 = vsel %vm6830_vm15, %v12740_v57, 0.0  ;;  %v13683_v57 = vmov 0.0   ;;  %vm6991_vm15 = vcmp.eq.s32.totalorder %v6983_v34, 1  ;;  %v6849_v18 = vpack.c.bf16 %v6845_v59, %v6844_v55 }
 0x77f   : > { %9307 = vmatprep.mubr.msk.bf16.mxu1 %vm750_vm14, %v6540_v13  ;;  %9319 = vmatprep.mubr.msk.bf16.mxu0 %vm750_vm14, %v6694_v46  ;;  %v6846_v22 = vpack.c.bf16 %v6839_v33, %v6838_v0  ;;  %v6999_v58 = vsel %vm6991_vm15, %v6959_v1, 0.0  ;;  %v7154_v61 = vpack.c.bf16 %v7147_v63, %v7146_v49  ;;  %v7128_v54 = vpop.permute.xlu0 %7127  ;;  %v7155_v13 = vpack.c.bf16 %v7149_v32, %v7148_v41  ;;  %v7331_v0 = vld [vmem:[%s13413_s19 + $0x20] sm:$0xff]  ;;  %v7330_v33 = vld [vmem:[%s13413_s19 + $0x18] sm:$0xff] }
 0x780   : > { %9325 = vmatprep.subr.bf16.mxu1 %v9697_v6  ;;  %9336 = vmatpush3.bf16.msra.mxu0 %v9698_v38  ;;  %v7000_v38 = vpack.c.bf16 %v6993_v14, %v6992_v45  ;;  %vm7142_vm5 = vcmp.eq.s32.totalorder %v7128_v54, 1  ;;  %v7332_v45 = vld [vmem:[%s13413_s19 + $0x28] sm:$0xff]  ;;  %v7329_v14 = vld [vmem:[%s13413_s19 + $0x10] sm:$0xff] }
 0x781   : > { %9337 = vmatprep.subr.bf16.mxu0 %v9699_v36  ;;  %v7131_v9 = vpop.permute.xlu1 %7130  ;;  %v7150_v26 = vsel %vm7142_vm5, %v12900_v21, 0.0  ;;  %v7336_v21 = vld [vmem:[%s13413_s19 + $0x48] sm:$0xff] }
 0x782   : > { %9326 = vmatpush3.bf16.msra.mxu1 %v9697_v6  ;;  %v7003_v6 = vpack.c.bf16 %v6999_v58, %v6998_v51  ;;  %vm7143_vm4 = vcmp.eq.s32.totalorder %v7131_v9, 1 }
 0x783   : > { %9347 = vmatprep.subr.bf16.mxu1 %v9700_v37  ;;  %v7151_v5 = vsel %vm7143_vm4, %v12898_v44, 0.0  ;;  %v7137_v52 = vpop.permute.xlu0 %7136  ;;  %v7337_v44 = vld [vmem:[%s13413_s19 + $0x50] sm:$0xff] }
 0x784   : > { %9338 = vmatpush3.bf16.msra.mxu0 %v9699_v36  ;;  %v7156_v46 = vpack.c.bf16 %v7151_v5, %v7150_v26  ;;  %v7113_v36 = vld [vmem:[#allocation3 + $0x4a] sm:$0xff]  ;;  %vm7145_vm9 = vcmp.eq.s32.totalorder %v7137_v52, 1 }
 0x785   : > { %9308 = vmatmul.mubr.msk.bf16.gmra.mxu1 %vm750_vm14, %v6541_v2  ;;  %9359 = vmatprep.subr.mxu0 %v13683_v57  ;;  %v7134_v19 = vpop.permute.xlu1 %7133  ;;  %v7153_v7 = vsel %vm7145_vm9, %v7113_v36, 0.0 }
 0x786   : > { %9320 = vmatmul.mubr.msk.bf16.gmra.mxu0 %vm750_vm14, %v6695_v31  ;;  %9327 = vmatprep.mubr.msk.bf16.mxu1 %vm750_vm14, %v6846_v22  ;;  %vm7144_vm7 = vcmp.eq.s32.totalorder %v7134_v19, 1 }
 0x787   : > { %9339 = vmatprep.mubr.msk.bf16.mxu0 %vm750_vm14, %v7000_v38 }
 0x78d   : > { %9328 = vmatmul.mubr.msk.bf16.vlgmr.msra.gmra.mxu1 %vm750_vm14, %v6847_v42 }
 0x78e   : > { %9340 = vmatmul.mubr.msk.bf16.vlgmr.msra.gmra.mxu0 %vm750_vm14, %v7001_v53  ;;  %9348 = vmatpush3.bf16.msra.mxu1 %v9700_v37  ;;  %v7152_v37 = vsel %vm7144_vm7, %v12966_v27, 0.0  ;;  %v7335_v27 = vld [vmem:[%s13413_s19 + $0x40] sm:$0xff] }
 0x78f   : > { %9331 = vmatprep.mubr.msk.bf16.mxu1 %vm750_vm14, %v6848_v43  ;;  %9343 = vmatprep.mubr.msk.bf16.mxu0 %vm750_vm14, %v7002_v17  ;;  %v7157_v25 = vpack.c.bf16 %v7153_v7, %v7152_v37 }
 0x790   : > { %9349 = vmatprep.subr.bf16.mxu1 %v9701_v11  ;;  %9360 = vmatpush3.msra.mxu0 %v7338_v24 }
 0x791   : > { %9361 = vmatprep.subr.mxu0 %v13683_v57 }
 0x792   : > { %9350 = vmatpush3.bf16.msra.mxu1 %v9701_v11  ;;  %9362 = vmatpush3.msra.mxu0 %v7337_v44 }
 0x793   : > { %9386 = vmatprep.subr.mxu1 %v13683_v57  ;;  %9363 = vmatprep.subr.mxu0 %v13683_v57 }
 0x794   : > { %9364 = vmatpush3.msra.mxu0 %v7336_v21 }
 0x795   : > { %9332 = vmatmul.mubr.msk.bf16.gmra.mxu1 %vm750_vm14, %v6849_v18  ;;  %9365 = vmatprep.subr.mxu0 %v13683_v57 }
 0x796   : > { %9344 = vmatmul.mubr.msk.bf16.gmra.mxu0 %vm750_vm14, %v7003_v6  ;;  %9351 = vmatprep.mubr.msk.bf16.mxu1 %vm750_vm14, %v7154_v61 }
 0x797   : > { %9383 = vmatprep.mubr.msk.f32.mxu0 %vm9785_vm6, %v13683_v57  ;;  %9366 = vmatpush3.msra.mxu0 %v7335_v27 }
 0x798   : > { %9367 = vmatprep.subr.mxu0 %v13683_v57 }
 0x799   : > { %9368 = vmatpush3.msra.mxu0 %v7334_v56 }
 0x79a   : > { %9369 = vmatprep.subr.mxu0 %v13683_v57 }
 0x79b   : > { %9370 = vmatpush3.msra.mxu0 %v7333_v12 }
 0x79c   : > { %9371 = vmatprep.subr.mxu0 %v13683_v57 }
 0x79d   : > { %9352 = vmatmul.mubr.msk.bf16.vlgmr.msra.gmra.mxu1 %vm750_vm14, %v7155_v13  ;;  %9372 = vmatpush3.msra.mxu0 %v7332_v45 }
 0x79e   : > { %9355 = vmatprep.mubr.msk.bf16.mxu1 %vm750_vm14, %v7156_v46  ;;  %9387 = vmatpush3.msra.mxu1 %v7338_v24 }
 0x79f   : > { %9388 = vmatprep.subr.mxu1 %v13683_v57  ;;  %9373 = vmatprep.subr.mxu0 %v13683_v57 }
 0x7a0   : > { %9389 = vmatpush3.msra.mxu1 %v7337_v44  ;;  %9374 = vmatpush3.msra.mxu0 %v7331_v0 }
 0x7a1   : > { %9390 = vmatprep.subr.mxu1 %v13683_v57  ;;  %9375 = vmatprep.subr.mxu0 %v13683_v57 }
 0x7a2   : > { %9391 = vmatpush3.msra.mxu1 %v7336_v21  ;;  %9376 = vmatpush3.msra.mxu0 %v7330_v33 }
 0x7a3   : > { %9392 = vmatprep.subr.mxu1 %v13683_v57  ;;  %9377 = vmatprep.subr.mxu0 %v13683_v57 }
 0x7a4   : > { %9393 = vmatpush3.msra.mxu1 %v7335_v27  ;;  %9378 = vmatpush3.msra.mxu0 %v7329_v14 }
 0x7a5   : > { %9356 = vmatmul.mubr.msk.bf16.gmra.mxu1 %vm750_vm14, %v7157_v25  ;;  %9394 = vmatprep.subr.mxu1 %v13683_v57  ;;  %vm7636_vm14 = vcmask 1045504  }
 0x7a6   : > { %9410 = vmatprep.mubr.msk.f32.mxu1 %vm9785_vm6, %v13683_v57  ;;  %9395 = vmatpush3.msra.mxu1 %v7334_v56 }
 0x7a7   : > { %9396 = vmatprep.subr.mxu1 %v13683_v57  ;;  %9379 = vmatprep.subr.mxu0 %v13683_v57 }
 0x7a8   : > { %9397 = vmatpush3.msra.mxu1 %v7333_v12  ;;  %9380 = vmatpush3.msra.mxu0 %v7328_v50 }
 0x7a9   : > { %9398 = vmatprep.subr.mxu1 %v13683_v57  ;;  %9381 = vmatprep.subr.mxu0 %v13683_v57 }
 0x7aa   : > { %9399 = vmatpush3.msra.mxu1 %v7332_v45  ;;  %9382 = vmatpush3.msra.mxu0 %v7327_v28 }
 0x7ab   : > { %9400 = vmatprep.subr.mxu1 %v13683_v57  ;;  %9413 = vmatprep.subr.mxu0 %v13683_v57 }
 0x7ac   : > { %9401 = vmatpush3.msra.mxu1 %v7331_v0 }
 0x7ad   : > { %9402 = vmatprep.subr.mxu1 %v13683_v57 }
 0x7ae   : > { %9403 = vmatpush3.msra.mxu1 %v7330_v33 }
 0x7af   : > { %9404 = vmatprep.subr.mxu1 %v13683_v57 }
 0x7b0   : > { %9405 = vmatpush3.msra.mxu1 %v7329_v14 }
 0x7b1   : > { %9406 = vmatprep.subr.mxu1 %v13683_v57 }
 0x7b2   : > { %9407 = vmatpush3.msra.mxu1 %v7328_v50 }
 0x7b3   : > { %9408 = vmatprep.subr.mxu1 %v13683_v57 }
 0x7b4   : > { %9409 = vmatpush3.msra.mxu1 %v7327_v28 }
 0x7b5   : > { %9440 = vmatprep.subr.mxu1 %v13683_v57 }
 0x81d   : > { %v9257_v3 = vpop.f32.mrf.mxu1 }
 0x81e   : > { %v9269_v40 = vpop.f32.mrf.mxu0 }
 0x81f   : > { %v6110_v2 = vpop.f32.mrf.mxu1  ;;  %v6208_v37 = vadd.f32 %v9269_v40, %v9257_v3 }
 0x820   : > { %v6199_v31 = vpop.f32.mrf.mxu0 }
 0x821   : > { %v9258_v22 = vpop.f32.mrf.mxu1  ;;  %v6200_v7 = vadd.f32 %v6199_v31, %v6110_v2 }
 0x822   : > { %v9270_v38 = vpop.f32.mrf.mxu0 }
 0x823   : > { %v6113_v23 = vpop.f32.mrf.mxu1  ;;  %v6211_v27 = vadd.f32 %v9270_v38, %v9258_v22 }
 0x824   : > { %v6202_v16 = vpop.f32.mrf.mxu0 }
 0x825   : > { %v9261_v62 = vpop.f32.mrf.mxu1  ;;  %v6203_v12 = vadd.f32 %v6202_v16, %v6113_v23 }
 0x826   : > { %v9273_v60 = vpop.f32.mrf.mxu0 }
 0x827   : > { %v6126_v48 = vpop.f32.mrf.mxu1 }
 0x828   : > { %v6215_v35 = vpop.f32.mrf.mxu0 }
 0x829   : > { %v9262_v29 = vpop.f32.mrf.mxu1 }
 0x82a   : > { %v9274_v20 = vpop.f32.mrf.mxu0 }
 0x82b   : > { %v13108_v8 = vpop.f32.mrf.mxu1  ;;  %v6227_v31 = vadd.f32 %v9274_v20, %v9262_v29 }
 0x82c   : > { %v6218_v47 = vpop.f32.mrf.mxu0 }
 0x82d   : > { %v9281_v4 = vpop.f32.mrf.mxu1  ;;  %v6219_v16 = vadd.f32 %v6218_v47, %v13108_v8 }
 0x82e   : > { %v9293_v15 = vpop.f32.mrf.mxu0  ;;  %v6378_v44 = vadd.f32 %v9281_v4, %v6208_v37 }
 0x82f   : > { %v6345_v42 = vpop.f32.mrf.mxu1 }
 0x830   : > { %v6499_v53 = vpop.f32.mrf.mxu0  ;;  %v6376_v21 = vadd.f32 %v6345_v42, %v6200_v7  ;;  %v6532_v14 = vadd.f32 %v9293_v15, %v6378_v44 }
 0x831   : > { %v9282_v11 = vpop.f32.mrf.mxu1 }
 0x832   : > { %v9294_v43 = vpop.f32.mrf.mxu0  ;;  %v6379_v45 = vadd.f32 %v9282_v11, %v6211_v27  ;;  %v6530_v50 = vadd.f32 %v6499_v53, %v6376_v21 }
 0x833   : > { %v6348_v34 = vpop.f32.mrf.mxu1 }
 0x834   : > { %v6502_v10 = vpop.f32.mrf.mxu0  ;;  %v6377_v28 = vadd.f32 %v6348_v34, %v6203_v12  ;;  %v6533_v3 = vadd.f32 %v9294_v43, %v6379_v45 }
 0x835   : > { %v9285_v17 = vpop.f32.mrf.mxu1 }
 0x836   : > { %v13110_v30 = vpop.f32.mrf.mxu0  ;;  %v6531_v42 = vadd.f32 %v6502_v10, %v6377_v28 }
 0x837   : > { %v6361_v1 = vpop.f32.mrf.mxu1 }
 0x838   : > { %v6515_v39 = vpop.f32.mrf.mxu0 }
 0x839   : > { %v9286_v55 = vpop.f32.mrf.mxu1 }
 0x83a   : > { %v9298_v59 = vpop.f32.mrf.mxu0  ;;  %v6383_v11 = vadd.f32 %v9286_v55, %v6227_v31 }
 0x83b   : > { %v6364_v51 = vpop.f32.mrf.mxu1 }
 0x83c   : > { %v13112_v58 = vpop.f32.mrf.mxu0  ;;  %v6537_v10 = vadd.f32 %v9298_v59, %v6383_v11 }
 0x83d   : > { %13684 = vst [vmem:[#allocation27_spill] sm:$0xff] %v13112_v58  ;;  %v9305_v63 = vpop.f32.mrf.mxu1 }
 0x83e   : > { %v9317_v49 = vpop.f32.mrf.mxu0 }
 0x83f   : > { %v6605_v18 = vpop.f32.mrf.mxu1 }
 0x840   : > { %v6759_v6 = vpop.f32.mrf.mxu0  ;;  %v6636_v58 = vadd.f32 %v6605_v18, %v6530_v50 }
 0x841   : > { %v9306_v61 = vpop.f32.mrf.mxu1 }
 0x842   : > { %v9318_v9 = vpop.f32.mrf.mxu0  ;;  %v6639_v38 = vadd.f32 %v9306_v61, %v6533_v3  ;;  %v6790_v53 = vadd.f32 %v6759_v6, %v6636_v58 }
 0x843   : > { %v6608_v54 = vpop.f32.mrf.mxu1 }
 0x844   : > { %v6762_v41 = vpop.f32.mrf.mxu0  ;;  %v6637_v34 = vadd.f32 %v6608_v54, %v6531_v42  ;;  %v6793_v29 = vadd.f32 %v9318_v9, %v6639_v38  ;;  %v13688_v55 = vld [vmem:[#allocation27_spill] sm:$0xff] }
 0x845   : > { %v9309_v32 = vpop.f32.mrf.mxu1 }
 0x846   : > { %v13114_v5 = vpop.f32.mrf.mxu0 }
 0x847   : > { %13685 = vst [vmem:[#allocation26_spill] sm:$0xff] %v13114_v5  ;;  %v6621_v26 = vpop.f32.mrf.mxu1  ;;  %v6638_v5 = vadd.f32 %v9305_v63, %v6532_v14  ;;  %v6381_v63 = vadd.f32 %v6364_v51, %v6219_v16 }
 0x848   : > { %v6775_v19 = vpop.f32.mrf.mxu0 }
 0x849   : > { %v9310_v52 = vpop.f32.mrf.mxu1  ;;  %v6792_v15 = vadd.f32 %v9317_v49, %v6638_v5  ;;  %v6535_v58 = vadd.f32 %v13688_v55, %v6381_v63 }
 0x84a   : > { %v13116_v13 = vpop.f32.mrf.mxu0  ;;  %v6643_v49 = vadd.f32 %v9310_v52, %v6537_v10 }
 0x84b   : > { %13686 = vst [vmem:[#allocation21_spill] sm:$0xff] %v13116_v13  ;;  %v6624_v46 = vpop.f32.mrf.mxu1  ;;  %v6216_v13 = vadd.f32 %v6215_v35, %v6126_v48 }
 0x84c   : > { %v13118_v36 = vpop.f32.mrf.mxu0 }
 0x84d   : > { %13687 = vst [vmem:[#allocation30_spill] sm:$0xff] %v13118_v36  ;;  %v9329_v25 = vpop.f32.mrf.mxu1  ;;  %v6224_v36 = vadd.f32 %v9273_v60, %v9261_v62  ;;  %v6380_v4 = vadd.f32 %v6361_v1, %v6216_v13  ;;  %v6791_v1 = vadd.f32 %v6762_v41, %v6637_v34  ;;  %v6641_v13 = vadd.f32 %v6624_v46, %v6535_v58  ;;  %v8444_v41 = vld [vmem:[%s13409_s15] ss:$0 sm:$0xff] }
 0x84e   : > { %v9341_v24 = vpop.f32.mrf.mxu0  ;;  %v6946_v62 = vadd.f32 %v9329_v25, %v6792_v15  ;;  %v13689_v9 = vld [vmem:[#allocation26_spill] sm:$0xff] }
 0x84f   : > { %v6913_v56 = vpop.f32.mrf.mxu1  ;;  %v6382_v22 = vadd.f32 %v9285_v17, %v6224_v36  ;;  %v6534_v35 = vadd.f32 %v6515_v39, %v6380_v4 }
 0x850   : > { %v7067_v0 = vpop.f32.mrf.mxu0  ;;  %v6944_v60 = vadd.f32 %v6913_v56, %v6790_v53  ;;  %v7100_v6 = vadd.f32 %v9341_v24, %v6946_v62 }
 0x851   : > { %v9330_v33 = vpop.f32.mrf.mxu1  ;;  %v6536_v43 = vadd.f32 %v13110_v30, %v6382_v22  ;;  %v6640_v17 = vadd.f32 %v6621_v26, %v6534_v35 }
 0x852   : > { %v9342_v40 = vpop.f32.mrf.mxu0  ;;  %v6947_v61 = vadd.f32 %v9330_v33, %v6793_v29  ;;  %v7098_v54 = vadd.f32 %v7067_v0, %v6944_v60  ;;  %v13690_v25 = vld [vmem:[#allocation21_spill] sm:$0xff] }
 0x853   : > { %v6916_v57 = vpop.f32.mrf.mxu1  ;;  %v6642_v18 = vadd.f32 %v9309_v32, %v6536_v43  ;;  %v6794_v5 = vadd.f32 %v6775_v19, %v6640_v17  ;;  %v6797_v44 = vadd.f32 %v13690_v25, %v6643_v49 }
 0x854   : > { %v7070_v37 = vpop.f32.mrf.mxu0  ;;  %v6945_v39 = vadd.f32 %v6916_v57, %v6791_v1  ;;  %v7101_v59 = vadd.f32 %v9342_v40, %v6947_v61  ;;  %v13691_v27 = vld [vmem:[#allocation30_spill] sm:$0xff] }
 0x855   : > { %v9333_v2 = vpop.f32.mrf.mxu1  ;;  %v6796_v7 = vadd.f32 %v13689_v9, %v6642_v18  ;;  %v6795_v56 = vadd.f32 %v13691_v27, %v6641_v13 }
 0x856   : > { %v9345_v8 = vpop.f32.mrf.mxu0  ;;  %v7099_v24 = vadd.f32 %v7070_v37, %v6945_v39 }
 0x857   : > { %v6929_v23 = vpop.f32.mrf.mxu1  ;;  %v6950_v21 = vadd.f32 %v9333_v2, %v6796_v7 }
 0x858   : > { %v7083_v26 = vpop.f32.mrf.mxu0  ;;  %v6948_v52 = vadd.f32 %v6929_v23, %v6794_v5 }
 0x859   : > { %v9334_v48 = vpop.f32.mrf.mxu1  ;;  %v7104_v3 = vadd.f32 %v9345_v8, %v6950_v21 }
 0x85a   : > { %v6951_v12 = vadd.f32 %v9334_v48, %v6797_v44  ;;  %v9346_v0 = vpop.f32.mrf.mxu0  ;;  %v7102_v50 = vadd.f32 %v7083_v26, %v6948_v52 }
 0x85b   : > { %v6932_v20 = vpop.f32.mrf.mxu1 }
 0x85c   : > { %v6949_v28 = vadd.f32 %v6932_v20, %v6795_v56  ;;  %v7105_v42 = vadd.f32 %v9346_v0, %v6951_v12  ;;  %v7086_v23 = vpop.f32.mrf.mxu0 }
 0x85d   : > { %v9353_v47 = vpop.f32.mrf.mxu1 }
 0x85e   : > { %v7254_v36 = vadd.f32 %v9353_v47, %v7100_v6  ;;  %v7103_v37 = vadd.f32 %v7086_v23, %v6949_v28 }
 0x85f   : > { %v7221_v51 = vpop.f32.mrf.mxu1 }
 0x860   : > { %v7252_v30 = vadd.f32 %v7221_v51, %v7098_v54  ;;  %v13131_v45 = vadd.f32 %v8444_v41, %v7254_v36 }
 0x861   : > { %v9354_v32 = vpop.f32.mrf.mxu1 }
 0x862   : > { %v13128_v57 = vadd.f32 %v8444_v41, %v7252_v30  ;;  %v7255_v19 = vadd.f32 %v9354_v32, %v7101_v59  ;;  %v7299_v22 = vmul.f32 %v13131_v45, %v13131_v45  ;;  %v7278_v48 = vsel %vm737_vm8, %v13131_v45, 0.0 }
 0x863   : > { %v7224_v46 = vpop.f32.mrf.mxu1 }
 0x864   : > { %v7253_v33 = vadd.f32 %v7224_v46, %v7099_v24  ;;  %v7297_v40 = vmul.f32 %v13128_v57, %v13128_v57  ;;  %v13135_v31 = vadd.f32 %v8444_v41, %v7255_v19  ;;  %v7275_v16 = vsel %vm737_vm8, %v13128_v57, 0.0 }
 0x865   : > { %v9357_v14 = vpop.f32.mrf.mxu1  ;;  %v7308_v10 = vsel %vm737_vm8, %v7299_v22, 0.0 }
 0x866   : > { %v13137_v2 = vadd.f32 %v8444_v41, %v7253_v33  ;;  %v7258_v53 = vadd.f32 %v9357_v14, %v7104_v3  ;;  %v7305_v62 = vsel %vm737_vm8, %v7297_v40, 0.0  ;;  %v7300_v60 = vmul.f32 %v13135_v31, %v13135_v31 }
 0x867   : > { %v7237_v4 = vpop.f32.mrf.mxu1  ;;  %v7280_v18 = vsel %vm737_vm8, %v13135_v31, 0.0 }
 0x868   : > { %v7256_v38 = vadd.f32 %v7237_v4, %v7102_v50  ;;  %v7276_v11 = vsel %vm737_vm8, %v13137_v2, 0.0  ;;  %v7298_v15 = vmul.f32 %v13137_v2, %v13137_v2  ;;  %v13158_v61 = vadd.f32 %v8444_v41, %v7258_v53  ;;  %v7554_v53 = vld [vmem:[%s13414_s20 + $0x48] sm:$0xff] }
 0x869   : > { %v9358_v34 = vpop.f32.mrf.mxu1  ;;  %v7277_v35 = vadd.f32 %v7276_v11, %v7275_v16  ;;  %v7310_v49 = vsel %vm737_vm8, %v7300_v60, 0.0  ;;  %v13692_v16 = vmov 0.0   ;;  %v7556_v11 = vld [vmem:[%s13414_s20 + $0x58] sm:$0xff] }
 0x86a   : > { %v13149_v63 = vadd.f32 %v8444_v41, %v7256_v38  ;;  %v7306_v43 = vsel %vm737_vm8, %v7298_v15, 0.0  ;;  %v7259_v29 = vadd.f32 %v9358_v34, %v7105_v42  ;;  %v7303_v13 = vmul.f32 %v13158_v61, %v13158_v61  ;;  %v7555_v15 = vld [vmem:[%s13414_s20 + $0x50] sm:$0xff]  ;;  %v7553_v34 = vld [vmem:[%s13414_s20 + $0x40] sm:$0xff]  ;;  %v7548_v60 = vld [vmem:[%s13414_s20 + $0x18] sm:$0xff] }
 0x86b   : > { %v7240_v20 = vpop.f32.mrf.mxu1  ;;  %v7279_v17 = vadd.f32 %v7278_v48, %v7277_v35  ;;  %v7307_v1 = vadd.f32 %v7306_v43, %v7305_v62  ;;  %v7286_v26 = vsel %vm737_vm8, %v13158_v61, 0.0  ;;  %v7551_v48 = vld [vmem:[%s13414_s20 + $0x30] sm:$0xff]  ;;  %v7550_v35 = vld [vmem:[%s13414_s20 + $0x28] sm:$0xff]  ;;  %v7549_v62 = vld [vmem:[%s13414_s20 + $0x20] sm:$0xff] }
 0x86c   : > { %v7301_v8 = vmul.f32 %v13149_v63, %v13149_v63  ;;  %v7257_v47 = vadd.f32 %v7240_v20, %v7103_v37  ;;  %v7282_v6 = vsel %vm737_vm8, %v13149_v63, 0.0  ;;  %v13165_v54 = vadd.f32 %v8444_v41, %v7259_v29  ;;  %v7552_v37 = vld [vmem:[%s13414_s20 + $0x38] sm:$0xff]  ;;  %v7547_v43 = vld [vmem:[%s13414_s20 + $0x10] sm:$0xff]  ;;  %v7546_v29 = vld [vmem:[%s13414_s20 + $0x8] sm:$0xff] }
 0x86d   : > { %v7309_v55 = vadd.f32 %v7308_v10, %v7307_v1  ;;  %v7281_v58 = vadd.f32 %v7280_v18, %v7279_v17  ;;  %v7316_v52 = vsel %vm737_vm8, %v7303_v13, 0.0  ;;  %v7545_v20 = vld [vmem:[%s13414_s20] sm:$0xff] }
 0x86e   : > { %v13167_v39 = vadd.f32 %v8444_v41, %v7257_v47  ;;  %v7312_v36 = vsel %vm737_vm8, %v7301_v8, 0.0  ;;  %v7304_v41 = vmul.f32 %v13165_v54, %v13165_v54  ;;  %v7288_v24 = vsel %vm737_vm8, %v13165_v54, 0.0  ;;  %v7631_v10 = vld [vmem:[%s13415_s21] sm:$0x3f] }
 0x86f   : > { %v7283_v51 = vadd.f32 %v7282_v6, %v7281_v58  ;;  %v7311_v5 = vadd.f32 %v7310_v49, %v7309_v55  ;;  %v7488_v6 = vld [vmem:[%s13410_s16] sm:$0x1] }
 0x870   : > { %v7284_v30 = vsel %vm737_vm8, %v13167_v39, 0.0  ;;  %v7302_v9 = vmul.f32 %v13167_v39, %v13167_v39  ;;  %v7318_v46 = vsel %vm737_vm8, %v7304_v41, 0.0  ;;  %v7492_v13 = vld [vmem:[%s13411_s17] sm:$0x1] }
 0x871   : > { %v7313_v7 = vadd.f32 %v7312_v36, %v7311_v5  ;;  %v7285_v59 = vadd.f32 %v7284_v30, %v7283_v51  ;;  %v13693_v30 = vld [vmem:[#allocation25_spill] sm:$0xff] }
 0x872   : > { %v7314_v32 = vsel %vm737_vm8, %v7302_v9, 0.0 }
 0x873   : > { %v7287_v25 = vadd.f32 %v7286_v26, %v7285_v59  ;;  %v7315_v44 = vadd.f32 %v7314_v32, %v7313_v7 }
 0x875   : > { %v7289_v21 = vadd.f32 %v7288_v24, %v7287_v25  ;;  %v7317_v19 = vadd.f32 %v7316_v52, %v7315_v44 }
 0x877   : > { %v7290_v27 = vrot.slane %v7289_v21, 4  ;;  %v7319_v56 = vadd.f32 %v7318_v46, %v7317_v19 }
 0x879   : > { %v7291_v12 = vadd.f32 %v7290_v27, %v7289_v21  ;;  %v7320_v0 = vrot.slane %v7319_v56, 4 }
 0x87b   : > { %v7292_v33 = vrot.slane %v7291_v12, 2  ;;  %v7321_v14 = vadd.f32 %v7320_v0, %v7319_v56 }
 0x87d   : > { %v7293_v50 = vadd.f32 %v7292_v33, %v7291_v12  ;;  %v7322_v28 = vrot.slane %v7321_v14, 2 }
 0x87f   : > { %v7294_v3 = vrot.slane %v7293_v50, 1  ;;  %v7323_v40 = vadd.f32 %v7322_v28, %v7321_v14 }
 0x881   : > { %v7295_v4 = vadd.f32 %v7294_v3, %v7293_v50  ;;  %v7324_v42 = vrot.slane %v7323_v40, 1 }
 0x883   : > { %v7296_v22 = vmul.f32 0.015625, %v7295_v4  ;;  %v7325_v38 = vadd.f32 %v7324_v42, %v7323_v40 }
 0x885   : > { %v7326_v23 = vmul.f32 0.015625, %v7325_v38  ;;  %9384 = vmatmul.mubr.msk.f32.vlgmr.msra.gmra.mxu0 %vm737_vm8, %v7296_v22 }
 0x886   : > { %9437 = vmatprep.mubr.msk.f32.mxu0 %vm9785_vm6, %v13692_v16  ;;  %9414 = vmatpush3.msra.mxu0 %v7556_v11 }
 0x887   : > { %9411 = vmatmul.mubr.msk.f32.vlgmr.msra.gmra.mxu1 %vm737_vm8, %v7326_v23  ;;  %9415 = vmatprep.subr.mxu0 %v13692_v16 }
 0x888   : > { %9442 = vmatprep.mubr.msk.f32.mxu1 %vm9785_vm6, %v13692_v16  ;;  %9416 = vmatpush3.msra.mxu0 %v7555_v15 }
 0x889   : > { %9417 = vmatprep.subr.mxu0 %v13692_v16  ;;  %9441 = vmatpush3.msk.msra.mxu1 %vm7636_vm14, %v7631_v10 }
 0x88a   : > { %9418 = vmatpush3.msra.mxu0 %v7554_v53  ;;  %9445 = vmatprep.subr.mxu1 %v13692_v16 }
 0x88b   : > { %9419 = vmatprep.subr.mxu0 %v13692_v16 }
 0x88c   : > { %9420 = vmatpush3.msra.mxu0 %v7553_v34 }
 0x88d   : > { %9421 = vmatprep.subr.mxu0 %v13692_v16 }
 0x88e   : > { %9422 = vmatpush3.msra.mxu0 %v7552_v37 }
 0x88f   : > { %9423 = vmatprep.subr.mxu0 %v13692_v16 }
 0x890   : > { %9424 = vmatpush3.msra.mxu0 %v7551_v48 }
 0x891   : > { %9425 = vmatprep.subr.mxu0 %v13692_v16 }
 0x892   : > { %9426 = vmatpush3.msra.mxu0 %v7550_v35 }
 0x893   : > { %9427 = vmatprep.subr.mxu0 %v13692_v16 }
 0x894   : > { %9428 = vmatpush3.msra.mxu0 %v7549_v62  ;;  %v7711_v62 = vld [vmem:[%s13416_s22] sm:$0x3f] }
 0x895   : > { %9429 = vmatprep.subr.mxu0 %v13692_v16 }
 0x896   : > { %9430 = vmatpush3.msra.mxu0 %v7548_v60 }
 0x897   : > { %9431 = vmatprep.subr.mxu0 %v13692_v16 }
 0x898   : > { %9432 = vmatpush3.msra.mxu0 %v7547_v43 }
 0x899   : > { %9433 = vmatprep.subr.mxu0 %v13692_v16 }
 0x89a   : > { %9434 = vmatpush3.msra.mxu0 %v7546_v29 }
 0x89b   : > { %9435 = vmatprep.subr.mxu0 %v13692_v16 }
 0x89c   : > { %9436 = vmatpush3.msra.mxu0 %v7545_v20  ;;  %v7789_v20 = vld [vmem:[%s13417_s23] sm:$0x3f] }
 0x945   : > { %v7408_v17 = vpop.f32.mrf.mxu0 }
 0x946   : > { %v7485_v1 = vmul.f32 %v7408_v17, %v7408_v17 }
 0x947   : > { %v9385_v18 = vpop.f32.mrf.mxu0  ;;  %v7481_v8 = vpop.f32.mrf.mxu1 }
 0x948   : > { %v7486_v47 = vsub.f32 %v7481_v8, %v7485_v1 }
 0x949   : > { %v9412_v55 = vpop.f32.mrf.mxu1 }
 0x94a   : > { %v7487_v58 = vmax.f32 %v7486_v47, 0.0 }
 0x94c   : > { %v7489_v49 = vadd.f32 1e-06, %v7487_v58 }
 0x94e   : > { %9708 = vrsqrt.f32 %v7489_v49 }
 0x95b   : > { %v9709_v51 = vpop.eup %9708 }
 0x95c   : > { %v7491_v5 = vmul.f32 %v9709_v51, %v7488_v6 }
 0x95e   : > { %v7493_v36 = vmul.f32 %v7491_v5, %v7408_v17  ;;  %v7499_v9 = vrot.slane %v7491_v5, %v13693_v30 }
 0x960   : > { %v7494_v7 = vsub.f32 %v7492_v13, %v7493_v36  ;;  %v7501_v26 = vmul.f32 %v7499_v9, %v13128_v57  ;;  %v7502_v41 = vmul.f32 %v7499_v9, %v13137_v2  ;;  %v7503_v32 = vmul.f32 %v7499_v9, %v13131_v45 }
 0x961   : > { %v7504_v25 = vmul.f32 %v7499_v9, %v13135_v31  ;;  %v7505_v21 = vmul.f32 %v7499_v9, %v13149_v63  ;;  %v7506_v45 = vmul.f32 %v7499_v9, %v13167_v39  ;;  %v7507_v12 = vmul.f32 %v7499_v9, %v13158_v61 }
 0x962   : > { %v7513_v59 = vrot.slane %v7494_v7, %v13693_v30  ;;  %v7508_v14 = vmul.f32 %v7499_v9, %v13165_v54 }
 0x964   : > { %v13255_v44 = vadd.f32 %v7513_v59, %v7501_v26  ;;  %v13257_v52 = vadd.f32 %v7513_v59, %v7502_v41  ;;  %v13259_v24 = vadd.f32 %v7513_v59, %v7503_v32  ;;  %v13262_v19 = vadd.f32 %v7513_v59, %v7504_v25 }
 0x965   : > { %v13269_v31 = vadd.f32 %v7513_v59, %v7505_v21  ;;  %v13274_v63 = vadd.f32 %v7513_v59, %v7506_v45  ;;  %v13279_v50 = vadd.f32 %v7513_v59, %v7507_v12  ;;  %v13283_v3 = vadd.f32 %v7513_v59, %v7508_v14  ;;  %v13694_v45 = vld [vmem:[#allocation17_spill] sm:$0xff]  ;;  %v13700_v14 = vld [vmem:[#allocation18_spill] sm:$0xff] }
 0x966   : > { %v7523_v46 = vsel %vm737_vm8, %v13255_v44, 0.0  ;;  %v7524_v57 = vsel %vm737_vm8, %v13257_v52, 0.0  ;;  %v7526_v27 = vsel %vm737_vm8, %v13259_v24, 0.0  ;;  %v7528_v0 = vsel %vm737_vm8, %v13262_v19, 0.0 }
 0x967   : > { %v7525_v2 = vadd.f32 %v7524_v57, %v7523_v46  ;;  %v7530_v39 = vsel %vm737_vm8, %v13269_v31, 0.0  ;;  %v7532_v40 = vsel %vm737_vm8, %v13274_v63, 0.0  ;;  %v7534_v4 = vsel %vm737_vm8, %v13279_v50, 0.0 }
 0x968   : > { %v7536_v22 = vsel %vm737_vm8, %v13283_v3, 0.0 }
 0x969   : > { %v7527_v56 = vadd.f32 %v7526_v27, %v7525_v2 }
 0x96b   : > { %v7529_v33 = vadd.f32 %v7528_v0, %v7527_v56  ;;  %v13695_v56 = vld [vmem:[#allocation13_spill] sm:$0xff]  ;;  %v13696_v0 = vld [vmem:[#allocation14_spill] sm:$0xff] }
 0x96d   : > { %v7531_v28 = vadd.f32 %v7530_v39, %v7529_v33  ;;  %v13697_v33 = vld [vmem:[#allocation16_spill] sm:$0xff] }
 0x96e   : > { %v13701_v39 = vld [vmem:[#allocation20_spill] sm:$0xff] }
 0x96f   : > { %v7533_v61 = vadd.f32 %v7532_v40, %v7531_v28 }
 0x971   : > { %v7535_v42 = vadd.f32 %v7534_v4, %v7533_v61 }
 0x973   : > { %v7537_v54 = vadd.f32 %v7536_v22, %v7535_v42 }
 0x975   : > { %v7538_v38 = vrot.slane %v7537_v54, 4 }
 0x977   : > { %v7539_v23 = vadd.f32 %v7538_v38, %v7537_v54 }
 0x979   : > { %v7540_v11 = vrot.slane %v7539_v23, 2 }
 0x97b   : > { %v7541_v15 = vadd.f32 %v7540_v11, %v7539_v23 }
 0x97d   : > { %v7542_v53 = vrot.slane %v7541_v15, 1 }
 0x97f   : > { %v7543_v34 = vadd.f32 %v7542_v53, %v7541_v15 }
 0x981   : > { %v7544_v37 = vmul.f32 0.015625, %v7543_v34 }
 0x983   : > { %9438 = vmatmul.mubr.msk.f32.vlgmr.msra.gmra.mxu0 %vm737_vm8, %v7544_v37 }
 0xa43   : > { %v7626_v48 = vpop.f32.mrf.mxu0 }
 0xa44   : > { %v7630_v35 = vmax.f32 %v7626_v48, 0.0 }
 0xa45   : > { %v9439_v60 = vpop.f32.mrf.mxu0 }
 0xa46   : > { %9443 = vmatmul.mubr.msk.f32.vlgmr.msra.gmra.mxu1 %vm7632_vm10, %v7630_v35 }
 0xa47   : > { %9446 = vmatpush3.msk.msra.mxu1 %vm7636_vm14, %v7711_v62  ;;  %9447 = vmatprep.mubr.msk.f32.mxu1 %vm9785_vm6, %v13692_v16 }
 0xa48   : > { %9450 = vmatprep.subr.mxu1 %v13692_v16 }
 0xb06   : > { %v7706_v43 = vpop.f32.mrf.mxu1 }
 0xb07   : > { %v7710_v29 = vmax.f32 %v7706_v43, 0.0 }
 0xb08   : > { %v9444_v10 = vpop.f32.mrf.mxu1 }
 0xb09   : > { %9448 = vmatmul.mubr.msk.f32.vlgmr.msra.gmra.mxu1 %vm7632_vm10, %v7710_v29 }
 0xb0a   : > { %9451 = vmatpush3.msk.msra.mxu1 %vm7636_vm14, %v7789_v20  ;;  %9452 = vmatprep.mubr.msk.f32.mxu1 %vm9785_vm6, %v13692_v16 }
 0xbc9   : > { %v7784_v17 = vpop.f32.mrf.mxu1 }
 0xbca   : > { %v7788_v1 = vmax.f32 %v7784_v17, 0.0 }
 0xbcb   : > { %v9449_v18 = vpop.f32.mrf.mxu1 }
 0xbcc   : > { %9453 = vmatmul.mubr.msk.f32.vlgmr.msra.gmra.mxu1 %vm7632_vm10, %v7788_v1 }
 0xc8c   : > { %v7862_v8 = vpop.f32.mrf.mxu1 }
 0xc8d   : > { %v8454_v47 = vmul.f32 -1.442695, %v7862_v8 }
 0xc8e   : > { %v9454_v55 = vpop.f32.mrf.mxu1 }
 0xc8f   : > { %9710 = vpow2.f32 %v8454_v47 }
 0xc9c   : > { %v9711_v58 = vpop.eup %9710 }
 0xc9d   : > { %v7869_v49 = vadd.f32 1.0, %v9711_v58 }
 0xc9f   : > { %9712 = vrcp.f32 %v7869_v49 }
 0xcac   : > { %v9713_v6 = vpop.eup %9712 }
 0xcad   : > { %v7875_v51 = vrot.slane %v9713_v6, %v13693_v30 }
 0xcaf   : > { %v7876_v16 = vmul.f32 %v7875_v51, %v13255_v44  ;;  %v7877_v5 = vmul.f32 %v7875_v51, %v13257_v52  ;;  %v7878_v13 = vmul.f32 %v7875_v51, %v13259_v24  ;;  %v7879_v36 = vmul.f32 %v7875_v51, %v13262_v19 }
 0xcb0   : > { %v7880_v9 = vmul.f32 %v7875_v51, %v13269_v31  ;;  %v7881_v7 = vmul.f32 %v7875_v51, %v13274_v63  ;;  %v7882_v59 = vmul.f32 %v7875_v51, %v13279_v50  ;;  %v7883_v26 = vmul.f32 %v7875_v51, %v13283_v3 }
 0xcb1   : > { %v7884_v30 = vmul.f32 %v7876_v16, %v13255_v44  ;;  %v7885_v41 = vmul.f32 %v7877_v5, %v13257_v52  ;;  %v7886_v32 = vmul.f32 %v7878_v13, %v13259_v24  ;;  %v7887_v25 = vmul.f32 %v7879_v36, %v13262_v19  ;;  %v13698_v24 = vld [vmem:[#allocation15_spill] sm:$0xff] }
 0xcb2   : > { %v7888_v21 = vmul.f32 %v7880_v9, %v13269_v31  ;;  %v7889_v46 = vmul.f32 %v7881_v7, %v13274_v63  ;;  %v7890_v57 = vmul.f32 %v7882_v59, %v13279_v50  ;;  %v7891_v2 = vmul.f32 %v7883_v26, %v13283_v3  ;;  %v13699_v31 = vld [vmem:[#allocation19_spill] sm:$0xff] }
 0xcb3   : > { %v7892_v27 = vadd.f32 %v7884_v30, %v13694_v45  ;;  %v7893_v12 = vadd.f32 %v7885_v41, %v13695_v56  ;;  %v7894_v44 = vadd.f32 %v7886_v32, %v13696_v0  ;;  %v7895_v52 = vadd.f32 %v7887_v25, %v13697_v33 }
 0xcb4   : > { %v7896_v19 = vadd.f32 %v7888_v21, %v13698_v24  ;;  %v7897_v63 = vadd.f32 %v7889_v46, %v13699_v31  ;;  %v7898_v50 = vadd.f32 %v7890_v57, %v13700_v14  ;;  %v7899_v28 = vadd.f32 %v7891_v2, %v13701_v39 }
 0xcb5   : > { %7900 = vst.msk [vmem:[%s730_s29] sm:$0xff] %vm737_vm8, %v7892_v27  ;;  %7901 = vst.msk [vmem:[%s730_s29 + $0x8] sm:$0xff] %vm737_vm8, %v7893_v12 }
 0xcb6   : > { %7902 = vst.msk [vmem:[%s730_s29 + $0x10] sm:$0xff] %vm737_vm8, %v7894_v44  ;;  %7903 = vst.msk [vmem:[%s730_s29 + $0x18] sm:$0xff] %vm737_vm8, %v7895_v52 }
 0xcb7   : > { %7904 = vst.msk [vmem:[%s730_s29 + $0x20] sm:$0xff] %vm737_vm8, %v7896_v19  ;;  %7905 = vst.msk [vmem:[%s730_s29 + $0x28] sm:$0xff] %vm737_vm8, %v7897_v63 }
 0xcb8   : > { %7906 = vst.msk [vmem:[%s730_s29 + $0x30] sm:$0xff] %vm737_vm8, %v7898_v50  ;;  %7907 = vst.msk [vmem:[%s730_s29 + $0x38] sm:$0xff] %vm737_vm8, %v7899_v28 }
 0xcb9   : > { %9727 = shalt.err (!%p9724_p3)
}
 0xcba   : > { %s9728_s28 = scalar_lea.hbm %s13336_s30, 1024  ;;  %s9732_s4 = scalar_lea.hbm %s13418_s24, 2048 }
 0xcbb   : > { %p9729_p4 = scmp.ne.s32.totalorder %s13336_s30, %s9728_s28  ;;  %p9733_p9 = scmp.lt.s32.totalorder %s13336_s30, %s13418_s24 }
 0xcbc   : > { %p9734_p10 = scmp.lt.s32.totalorder %s9732_s4, %s9728_s28 }
 0xcbd   : > { %p9730_p7 = pnand %p9729_p4, %p9952_p5 }
 0xcbe   : > { %p9735_p11 = por %p9734_p10, %p9733_p9 }
 0xcbf   : > { %p9731_p8 = pneg %p9730_p7 }
 0xcc1   : > { %p9736_p12 = pnand %p9735_p11, %p9731_p8 }
 0xcc3   : > { %9739 = shalt.err (!%p9736_p12)
}
 0xcc4   : > { %s9787_s27 = smov 128   ;;  %s9788_s2 = smov 8  }
 0xcc5   : > { %9455 = dma.vmem_to_hbm [thread:$0]  (%p9952_p5), %s13338_s5, 1024, %s13336_s30, %s13354_s0, %s9787_s27, %s9787_s27, %s9788_s2  }
 0xcc6 PF: > { %s13702_s6 = sld [smem:[#allocation9_spill]] }
 0xcc7   : > { %s13703_s29 = sld [smem:[#allocation7_spill]] }
 0xccc   : > { %p9461_p13 = scmp.ge.s32.totalorder %s13702_s6, 2 }
 0xccd   : > { %s7937_s8 = sand.u32 1, %s13703_s29  }
 0xcce   : > { %p9458_p0 = pnand %p9461_p13, %p9956_p6  ;;  %s7938_s1 = scalar_lea.sflag [#allocation5], %s7937_s8 }
 0xcd0   : > { %p9459_p1 = pneg %p9458_p0 }
 0xcd2   : > { %9757 = dma.done.wait (%p9459_p1), %s7938_s1, 1024  }
 0xcd3   : > { %9759 = vsyncadd (%p9459_p1), %s7938_s1, 4294966272  ;;  %s13705_s28 = sld [smem:[#allocation10_spill]]  ;;  %s13708_s5 = smov %s9766_s26 }
 0xcd4   : > { %s13706_s7 = sld [smem:[#allocation8_spill]] }
 0xcd5   : > { %s13707_s27 = sld [smem:[#allocation11_spill]] }
 0xcd9   : > { %p34_p2 = scmp.ge.s32.totalorder %s13705_s28, 4  }
 0xcda   : > { %s13709_s26 = smov %s13706_s7 }
 0xcdb   :  { %36 = sbr.rel (!%p34_p2) target bundleno = 13 (0xd), region = 183 }
 0xce0   :  { %7943 = vsyncpa [#allocation5], 1 }
 0xce1   :  { %7945 = vsyncpa [#allocation5 + $0x1], 1 }

</bundles_post_ra>
